<compile_context>
chip_gen: v7x
topology: tpu7x:2x2x1
jax: 0.10.0
libtpu: 0.0.40
codegen_flags: <defaults>
</compile_context>

<pallas_src>
import jax
import jax.numpy as jnp
from jax.experimental import pallas as pl
from jax.experimental.pallas import tpu as pltpu


# ---------------------------------------------------------------------------
# Fused 6-layer autoencoder kernel
#   inputs : x (bf16), (w0,b0) ... (w5,b5)   with w_i in (in, out) layout
#   outputs: latent (f32), reconstructed (f32)
# ---------------------------------------------------------------------------
def _autoencoder_kernel(x_ref, *refs):
    w_refs = refs[0:12:2]
    b_refs = refs[1:12:2]
    lat_ref, rec_ref = refs[12], refs[13]
    bf16 = jnp.bfloat16

    def dense(h, w_ref, b_ref):
        w = w_ref[...]                                   # (K, N), bf16
        acc = jax.lax.dot_general(
            h.astype(w.dtype), w,
            dimension_numbers=(((1,), (0,)), ((), ())),  # x @ w, no transpose
            preferred_element_type=jnp.float32)          # fp32 MXU accumulation
        return acc + b_ref[...]                          # (1, N) f32 bias

    # encoder
    h = x_ref[...]                                                    # bf16
    h = jnp.maximum(dense(h, w_refs[0], b_refs[0]), 0.0).astype(bf16)  # ReLU
    h = jnp.maximum(dense(h, w_refs[1], b_refs[1]), 0.0).astype(bf16)  # ReLU
    latent = jnp.tanh(dense(h, w_refs[2], b_refs[2]))                  # Tanh, f32
    lat_ref[...] = latent.astype(lat_ref.dtype)
    # decoder
    h = latent.astype(bf16)
    h = jnp.maximum(dense(h, w_refs[3], b_refs[3]), 0.0).astype(bf16)  # ReLU
    h = jnp.maximum(dense(h, w_refs[4], b_refs[4]), 0.0).astype(bf16)  # ReLU
    rec = jax.nn.sigmoid(dense(h, w_refs[5], b_refs[5]))               # Sigmoid
    rec_ref[...] = rec.astype(rec_ref.dtype)


# ---------------------------------------------------------------------------
# Wrapper
# ---------------------------------------------------------------------------
def _round_up(x, m):
    return ((x + m - 1) // m) * m


def _tpu_budget():
    """Generation-specific (max_batch_tile, vmem_limit_bytes)."""
    try:
        vmem_cap = pltpu.get_tpu_info().vmem_capacity_bytes
    except Exception:
        vmem_cap = 64 * 1024 * 1024            # conservative (v7x) fallback
    if vmem_cap >= 128 * 1024 * 1024:          # v5e / v6e: 128 MiB physical VMEM
        return 1024, 96 * 1024 * 1024
    return 512, 48 * 1024 * 1024               # v7x: 64 MiB physical VMEM


def autoencoder_forward(params, x, *, batch_tile=None, vmem_limit_bytes=None):
    """Fused forward.  params: list of 6 (wT:(K,N) bf16, b:(1,N) f32); x:(B,K0)."""
    B, in_dim = x.shape
    dims = [(w.shape[0], w.shape[1]) for w, _ in params]
    assert dims[0][0] == in_dim, (dims[0], in_dim)
    latent_dim = dims[2][1]
    out_dim = dims[5][1]

    max_tile, default_vmem = _tpu_budget()
    if batch_tile is None:
        batch_tile = max_tile
    if vmem_limit_bytes is None:
        vmem_limit_bytes = default_vmem

    # Batch tile: >= 2 grid steps once B >= 16 so "parallel" shards across the
    # 2 TensorCores on v7x; tile rows padded to a sublane multiple of 8.
    if B < 16:
        tb = _round_up(B, 8)
    else:
        tb = min(batch_tile, _round_up(pl.cdiv(B, 2), 8))
    grid_n = pl.cdiv(B, tb)
    b_pad = grid_n * tb

    # bf16 input halves the input DMA bytes (accumulation stays fp32 on MXU).
    x_in = x.astype(jnp.bfloat16)
    if b_pad != B:
        x_in = jnp.pad(x_in, ((0, b_pad - B), (0, 0)))

    resident = pl.Buffered(1)    # grid-invariant params: single VMEM buffer
    in_specs = [pl.BlockSpec((tb, in_dim), lambda i: (i, 0))]
    flat_inputs = [x_in]
    for w, b in params:
        in_specs.append(pl.BlockSpec(w.shape, lambda i: (0, 0),
                                     pipeline_mode=resident))
        in_specs.append(pl.BlockSpec(b.shape, lambda i: (0, 0),
                                     pipeline_mode=resident))
        flat_inputs += [w, b]

    out_specs = [
        pl.BlockSpec((tb, latent_dim), lambda i: (i, 0)),
        pl.BlockSpec((tb, out_dim), lambda i: (i, 0)),
    ]
    out_shape = (
        jax.ShapeDtypeStruct((b_pad, latent_dim), jnp.float32),
        jax.ShapeDtypeStruct((b_pad, out_dim), jnp.float32),
    )

    param_bytes = sum(w.size * w.dtype.itemsize + b.size * b.dtype.itemsize
                      for w, b in params)
    act_bytes = b_pad * in_dim * 2 + b_pad * (latent_dim + out_dim) * 4
    cost = pl.CostEstimate(
        flops=2 * b_pad * sum(k * n for k, n in dims),
        transcendentals=b_pad * (latent_dim + out_dim),   # tanh + sigmoid
        bytes_accessed=param_bytes + act_bytes,
    )

    latent, reconstructed = pl.pallas_call(
        _autoencoder_kernel,
        out_shape=out_shape,
        grid_spec=pltpu.PrefetchScalarGridSpec(
            num_scalar_prefetch=0,
            grid=(grid_n,),
            in_specs=in_specs,
            out_specs=out_specs,
        ),
        compiler_params=pltpu.CompilerParams(
            dimension_semantics=("parallel",),      # megacore sharding on v7x
            vmem_limit_bytes=vmem_limit_bytes,      # generation-specific cap
        ),
        cost_estimate=cost,
    )(*flat_inputs)

    if b_pad != B:
        latent = latent[:B]
        reconstructed = reconstructed[:B]
    return latent, reconstructed


# ---------------------------------------------------------------------------
# Parameter construction (deterministic, PyTorch-style uniform init)
# ---------------------------------------------------------------------------
def _init_linear(key, in_f, out_f):
    kw, kb = jax.random.split(key)
    bound = 1.0 / jnp.sqrt(jnp.float32(in_f))
    w = jax.random.uniform(kw, (out_f, in_f), jnp.float32, -bound, bound)
    b = jax.random.uniform(kb, (out_f,), jnp.float32, -bound, bound)
    return w, b


def make_autoencoder_params(key, input_dim, latent_dim=1024):
    keys = jax.random.split(key, 6)
    dims = [
        (input_dim, 1024),   # enc0
        (1024, 512),         # enc1
        (512, latent_dim),   # enc2  (Tanh)
        (latent_dim, 512),   # dec0
        (512, 1024),         # dec1
        (1024, input_dim),   # dec2  (Sigmoid)
    ]
    return [_init_linear(k, i, o) for k, (i, o) in zip(keys, dims)]


def prepare_params(torch_style_params, weight_dtype=jnp.bfloat16):
    """One-time conversion: (out,in) f32 -> (in,out) weight_dtype; bias -> (1,out) f32."""
    return [(jnp.asarray(w.T, weight_dtype),
             b.reshape(1, -1).astype(jnp.float32))
            for w, b in torch_style_params]


# ---------------------------------------------------------------------------
# Pure-JAX reference (same mixed precision as the kernel)
# ---------------------------------------------------------------------------
def _ref_forward(params, x):
    bf16 = jnp.bfloat16

    def dense(h, w, b):
        return jnp.dot(h.astype(w.dtype), w,
                       preferred_element_type=jnp.float32) + b

    h = x.astype(bf16)
    h = jnp.maximum(dense(h, *params[0]), 0.0).astype(bf16)
    h = jnp.maximum(dense(h, *params[1]), 0.0).astype(bf16)
    lat = jnp.tanh(dense(h, *params[2]))
    h = lat.astype(bf16)
    h = jnp.maximum(dense(h, *params[3]), 0.0).astype(bf16)
    h = jnp.maximum(dense(h, *params[4]), 0.0).astype(bf16)
    rec = jax.nn.sigmoid(dense(h, *params[5]))
    return lat, rec


if __name__ == "__main__":
    INPUT_DIM = 256
    LATENT_DIM = 1024
    BATCH = 32            # >= 16 -> grid has 2 steps (exercises megacore path)

    key = jax.random.PRNGKey(0)
    k_params, k_x = jax.random.split(key)

    raw_params = make_autoencoder_params(k_params, INPUT_DIM, LATENT_DIM)
    params = prepare_params(raw_params)          # transpose + bf16 cast, once
    x = jax.random.uniform(k_x, (BATCH, INPUT_DIM), jnp.float32)

    fwd = jax.jit(autoencoder_forward)
    latent, reconstructed = fwd(params, x)
    jax.block_until_ready((latent, reconstructed))

    assert latent.shape == (BATCH, LATENT_DIM), latent.shape
    assert reconstructed.shape == (BATCH, INPUT_DIM), reconstructed.shape
    # activation ranges: tanh in [-1, 1], sigmoid in [0, 1]
    assert bool(jnp.all(jnp.abs(latent) <= 1.0))
    assert bool(jnp.all((reconstructed >= 0.0) & (reconstructed <= 1.0)))

    # numerical check against a matching mixed-precision JAX reference
    lat_ref, rec_ref = _ref_forward(params, x)
    assert jnp.allclose(latent, lat_ref, atol=2e-2, rtol=2e-2)
    assert jnp.allclose(reconstructed, rec_ref, atol=2e-2, rtol=2e-2)

    # ragged batch (not a multiple of the tile): exercises the padding path
    x_ragged = jax.random.uniform(jax.random.PRNGKey(1), (10, INPUT_DIM), jnp.float32)
    lat_r, rec_r = fwd(params, x_ragged)
    jax.block_until_ready((lat_r, rec_r))
    assert lat_r.shape == (10, LATENT_DIM) and rec_r.shape == (10, INPUT_DIM)
    lat_rr, rec_rr = _ref_forward(params, x_ragged)
    assert jnp.allclose(lat_r, lat_rr, atol=2e-2, rtol=2e-2)
    assert jnp.allclose(rec_r, rec_rr, atol=2e-2, rtol=2e-2)

    print("KERNEL_OK")
</pallas_src>

<mosaic_0001>
module attributes {stable_mosaic.version = 11 : i64} {
  func.func @_autoencoder_kernel(%arg0: i32, %arg1: memref<16x256xbf16, #tpu.memory_space<vmem>>, %arg2: memref<256x1024xbf16, #tpu.memory_space<vmem>>, %arg3: memref<1x1024xf32, #tpu.memory_space<vmem>>, %arg4: memref<1024x512xbf16, #tpu.memory_space<vmem>>, %arg5: memref<1x512xf32, #tpu.memory_space<vmem>>, %arg6: memref<512x1024xbf16, #tpu.memory_space<vmem>>, %arg7: memref<1x1024xf32, #tpu.memory_space<vmem>>, %arg8: memref<1024x512xbf16, #tpu.memory_space<vmem>>, %arg9: memref<1x512xf32, #tpu.memory_space<vmem>>, %arg10: memref<512x1024xbf16, #tpu.memory_space<vmem>>, %arg11: memref<1x1024xf32, #tpu.memory_space<vmem>>, %arg12: memref<1024x256xbf16, #tpu.memory_space<vmem>>, %arg13: memref<1x256xf32, #tpu.memory_space<vmem>>, %arg14: memref<16x1024xf32, #tpu.memory_space<vmem>>, %arg15: memref<16x256xf32, #tpu.memory_space<vmem>>) attributes {dimension_semantics = [#tpu.dimension_semantics<parallel>], iteration_bounds = array<i64: 2>, scalar_prefetch = 0 : i64, scratch_operands = 0 : i64, tpu.core_type = #tpu.core_type<tc>, window_params = [{transform_indices = @transform_0, window_bounds = array<i64: 16, 256>}, {pipeline_mode = #tpu.pipeline_mode<synchronous>, transform_indices = @transform_1, window_bounds = array<i64: 256, 1024>}, {pipeline_mode = #tpu.pipeline_mode<synchronous>, transform_indices = @transform_2, window_bounds = array<i64: 1, 1024>}, {pipeline_mode = #tpu.pipeline_mode<synchronous>, transform_indices = @transform_3, window_bounds = array<i64: 1024, 512>}, {pipeline_mode = #tpu.pipeline_mode<synchronous>, transform_indices = @transform_4, window_bounds = array<i64: 1, 512>}, {pipeline_mode = #tpu.pipeline_mode<synchronous>, transform_indices = @transform_5, window_bounds = array<i64: 512, 1024>}, {pipeline_mode = #tpu.pipeline_mode<synchronous>, transform_indices = @transform_6, window_bounds = array<i64: 1, 1024>}, {pipeline_mode = #tpu.pipeline_mode<synchronous>, transform_indices = @transform_7, window_bounds = array<i64: 1024, 512>}, {pipeline_mode = #tpu.pipeline_mode<synchronous>, transform_indices = @transform_8, window_bounds = array<i64: 1, 512>}, {pipeline_mode = #tpu.pipeline_mode<synchronous>, transform_indices = @transform_9, window_bounds = array<i64: 512, 1024>}, {pipeline_mode = #tpu.pipeline_mode<synchronous>, transform_indices = @transform_10, window_bounds = array<i64: 1, 1024>}, {pipeline_mode = #tpu.pipeline_mode<synchronous>, transform_indices = @transform_11, window_bounds = array<i64: 1024, 256>}, {pipeline_mode = #tpu.pipeline_mode<synchronous>, transform_indices = @transform_12, window_bounds = array<i64: 1, 256>}, {transform_indices = @transform_13, window_bounds = array<i64: 16, 1024>}, {transform_indices = @transform_14, window_bounds = array<i64: 16, 256>}]} {
    %c0 = arith.constant 0 : index
    %c0_0 = arith.constant 0 : index
    %0 = vector.load %arg1[%c0, %c0_0] : memref<16x256xbf16, #tpu.memory_space<vmem>>, vector<16x256xbf16>
    %c0_1 = arith.constant 0 : index
    %c0_2 = arith.constant 0 : index
    %1 = vector.load %arg2[%c0_1, %c0_2] : memref<256x1024xbf16, #tpu.memory_space<vmem>>, vector<256x1024xbf16>
    %cst = arith.constant dense<0.000000e+00> : vector<16x1024xf32>
    %2 = tpu.matmul %0, %1, %cst {dimension_numbers = #tpu.dot_dimension_numbers<[1], [0], [0], [1], [0, 0, 1, 1], [], []>} : vector<16x256xbf16>, vector<256x1024xbf16>, vector<16x1024xf32> -> vector<16x1024xf32>
    %c0_3 = arith.constant 0 : index
    %c0_4 = arith.constant 0 : index
    %3 = vector.load %arg3[%c0_3, %c0_4] : memref<1x1024xf32, #tpu.memory_space<vmem>>, vector<1x1024xf32>
    %4 = vector.broadcast %3 : vector<1x1024xf32> to vector<16x1024xf32>
    %5 = arith.addf %2, %4 : vector<16x1024xf32>
    %cst_5 = arith.constant 0.000000e+00 : f32
    %6 = vector.broadcast %cst_5 : f32 to vector<16x1024xf32>
    %7 = arith.maximumf %5, %6 : vector<16x1024xf32>
    %8 = arith.truncf %7 : vector<16x1024xf32> to vector<16x1024xbf16>
    %c0_6 = arith.constant 0 : index
    %c0_7 = arith.constant 0 : index
    %9 = vector.load %arg4[%c0_6, %c0_7] : memref<1024x512xbf16, #tpu.memory_space<vmem>>, vector<1024x512xbf16>
    %cst_8 = arith.constant dense<0.000000e+00> : vector<16x512xf32>
    %10 = tpu.matmul %8, %9, %cst_8 {dimension_numbers = #tpu.dot_dimension_numbers<[1], [0], [0], [1], [0, 0, 1, 1], [], []>} : vector<16x1024xbf16>, vector<1024x512xbf16>, vector<16x512xf32> -> vector<16x512xf32>
    %c0_9 = arith.constant 0 : index
    %c0_10 = arith.constant 0 : index
    %11 = vector.load %arg5[%c0_9, %c0_10] : memref<1x512xf32, #tpu.memory_space<vmem>>, vector<1x512xf32>
    %12 = vector.broadcast %11 : vector<1x512xf32> to vector<16x512xf32>
    %13 = arith.addf %10, %12 : vector<16x512xf32>
    %cst_11 = arith.constant 0.000000e+00 : f32
    %14 = vector.broadcast %cst_11 : f32 to vector<16x512xf32>
    %15 = arith.maximumf %13, %14 : vector<16x512xf32>
    %16 = arith.truncf %15 : vector<16x512xf32> to vector<16x512xbf16>
    %c0_12 = arith.constant 0 : index
    %c0_13 = arith.constant 0 : index
    %17 = vector.load %arg6[%c0_12, %c0_13] : memref<512x1024xbf16, #tpu.memory_space<vmem>>, vector<512x1024xbf16>
    %cst_14 = arith.constant dense<0.000000e+00> : vector<16x1024xf32>
    %18 = tpu.matmul %16, %17, %cst_14 {dimension_numbers = #tpu.dot_dimension_numbers<[1], [0], [0], [1], [0, 0, 1, 1], [], []>} : vector<16x512xbf16>, vector<512x1024xbf16>, vector<16x1024xf32> -> vector<16x1024xf32>
    %c0_15 = arith.constant 0 : index
    %c0_16 = arith.constant 0 : index
    %19 = vector.load %arg7[%c0_15, %c0_16] : memref<1x1024xf32, #tpu.memory_space<vmem>>, vector<1x1024xf32>
    %20 = vector.broadcast %19 : vector<1x1024xf32> to vector<16x1024xf32>
    %21 = arith.addf %18, %20 : vector<16x1024xf32>
    %22 = math.tanh %21 : vector<16x1024xf32>
    %c0_17 = arith.constant 0 : index
    %c0_18 = arith.constant 0 : index
    %23 = vector.load %arg14[%c0_17, %c0_18] : memref<16x1024xf32, #tpu.memory_space<vmem>>, vector<16x1024xf32>
    tpu.vector_store %arg14[%c0_17, %c0_18], %22 {strides = array<i32>} : memref<16x1024xf32, #tpu.memory_space<vmem>>, vector<16x1024xf32>,
    %24 = arith.truncf %22 : vector<16x1024xf32> to vector<16x1024xbf16>
    %c0_19 = arith.constant 0 : index
    %c0_20 = arith.constant 0 : index
    %25 = vector.load %arg8[%c0_19, %c0_20] : memref<1024x512xbf16, #tpu.memory_space<vmem>>, vector<1024x512xbf16>
    %cst_21 = arith.constant dense<0.000000e+00> : vector<16x512xf32>
    %26 = tpu.matmul %24, %25, %cst_21 {dimension_numbers = #tpu.dot_dimension_numbers<[1], [0], [0], [1], [0, 0, 1, 1], [], []>} : vector<16x1024xbf16>, vector<1024x512xbf16>, vector<16x512xf32> -> vector<16x512xf32>
    %c0_22 = arith.constant 0 : index
    %c0_23 = arith.constant 0 : index
    %27 = vector.load %arg9[%c0_22, %c0_23] : memref<1x512xf32, #tpu.memory_space<vmem>>, vector<1x512xf32>
    %28 = vector.broadcast %27 : vector<1x512xf32> to vector<16x512xf32>
    %29 = arith.addf %26, %28 : vector<16x512xf32>
    %cst_24 = arith.constant 0.000000e+00 : f32
    %30 = vector.broadcast %cst_24 : f32 to vector<16x512xf32>
    %31 = arith.maximumf %29, %30 : vector<16x512xf32>
    %32 = arith.truncf %31 : vector<16x512xf32> to vector<16x512xbf16>
    %c0_25 = arith.constant 0 : index
    %c0_26 = arith.constant 0 : index
    %33 = vector.load %arg10[%c0_25, %c0_26] : memref<512x1024xbf16, #tpu.memory_space<vmem>>, vector<512x1024xbf16>
    %cst_27 = arith.constant dense<0.000000e+00> : vector<16x1024xf32>
    %34 = tpu.matmul %32, %33, %cst_27 {dimension_numbers = #tpu.dot_dimension_numbers<[1], [0], [0], [1], [0, 0, 1, 1], [], []>} : vector<16x512xbf16>, vector<512x1024xbf16>, vector<16x1024xf32> -> vector<16x1024xf32>
    %c0_28 = arith.constant 0 : index
    %c0_29 = arith.constant 0 : index
    %35 = vector.load %arg11[%c0_28, %c0_29] : memref<1x1024xf32, #tpu.memory_space<vmem>>, vector<1x1024xf32>
    %36 = vector.broadcast %35 : vector<1x1024xf32> to vector<16x1024xf32>
    %37 = arith.addf %34, %36 : vector<16x1024xf32>
    %cst_30 = arith.constant 0.000000e+00 : f32
    %38 = vector.broadcast %cst_30 : f32 to vector<16x1024xf32>
    %39 = arith.maximumf %37, %38 : vector<16x1024xf32>
    %40 = arith.truncf %39 : vector<16x1024xf32> to vector<16x1024xbf16>
    %c0_31 = arith.constant 0 : index
    %c0_32 = arith.constant 0 : index
    %41 = vector.load %arg12[%c0_31, %c0_32] : memref<1024x256xbf16, #tpu.memory_space<vmem>>, vector<1024x256xbf16>
    %cst_33 = arith.constant dense<0.000000e+00> : vector<16x256xf32>
    %42 = tpu.matmul %40, %41, %cst_33 {dimension_numbers = #tpu.dot_dimension_numbers<[1], [0], [0], [1], [0, 0, 1, 1], [], []>} : vector<16x1024xbf16>, vector<1024x256xbf16>, vector<16x256xf32> -> vector<16x256xf32>
    %c0_34 = arith.constant 0 : index
    %c0_35 = arith.constant 0 : index
    %43 = vector.load %arg13[%c0_34, %c0_35] : memref<1x256xf32, #tpu.memory_space<vmem>>, vector<1x256xf32>
    %44 = vector.broadcast %43 : vector<1x256xf32> to vector<16x256xf32>
    %45 = arith.addf %42, %44 : vector<16x256xf32>
    %46 = arith.negf %45 : vector<16x256xf32>
    %47 = math.exp %46 : vector<16x256xf32>
    %cst_36 = arith.constant 1.000000e+00 : f32
    %48 = vector.broadcast %cst_36 : f32 to vector<16x256xf32>
    %49 = arith.addf %48, %47 : vector<16x256xf32>
    %50 = arith.divf %48, %49 : vector<16x256xf32>
    %c0_37 = arith.constant 0 : index
    %c0_38 = arith.constant 0 : index
    %51 = vector.load %arg15[%c0_37, %c0_38] : memref<16x256xf32, #tpu.memory_space<vmem>>, vector<16x256xf32>
    tpu.vector_store %arg15[%c0_37, %c0_38], %50 {strides = array<i32>} : memref<16x256xf32, #tpu.memory_space<vmem>>, vector<16x256xf32>,
    return
  }
  func.func @transform_0(%arg0: i32) -> (i32, i32) {
    %c0_i32 = arith.constant 0 : i32
    %c0_i32_0 = arith.constant 0 : i32
    return %arg0, %c0_i32 : i32, i32
  }
  func.func @transform_1(%arg0: i32) -> (i32, i32) {
    %c0_i32 = arith.constant 0 : i32
    %c0_i32_0 = arith.constant 0 : i32
    %c0_i32_1 = arith.constant 0 : i32
    return %c0_i32, %c0_i32_0 : i32, i32
  }
  func.func @transform_2(%arg0: i32) -> (i32, i32) {
    %c0_i32 = arith.constant 0 : i32
    %c0_i32_0 = arith.constant 0 : i32
    %c0_i32_1 = arith.constant 0 : i32
    return %c0_i32, %c0_i32_0 : i32, i32
  }
  func.func @transform_3(%arg0: i32) -> (i32, i32) {
    %c0_i32 = arith.constant 0 : i32
    %c0_i32_0 = arith.constant 0 : i32
    %c0_i32_1 = arith.constant 0 : i32
    return %c0_i32, %c0_i32_0 : i32, i32
  }
  func.func @transform_4(%arg0: i32) -> (i32, i32) {
    %c0_i32 = arith.constant 0 : i32
    %c0_i32_0 = arith.constant 0 : i32
    %c0_i32_1 = arith.constant 0 : i32
    return %c0_i32, %c0_i32_0 : i32, i32
  }
  func.func @transform_5(%arg0: i32) -> (i32, i32) {
    %c0_i32 = arith.constant 0 : i32
    %c0_i32_0 = arith.constant 0 : i32
    %c0_i32_1 = arith.constant 0 : i32
    return %c0_i32, %c0_i32_0 : i32, i32
  }
  func.func @transform_6(%arg0: i32) -> (i32, i32) {
    %c0_i32 = arith.constant 0 : i32
    %c0_i32_0 = arith.constant 0 : i32
    %c0_i32_1 = arith.constant 0 : i32
    return %c0_i32, %c0_i32_0 : i32, i32
  }
  func.func @transform_7(%arg0: i32) -> (i32, i32) {
    %c0_i32 = arith.constant 0 : i32
    %c0_i32_0 = arith.constant 0 : i32
    %c0_i32_1 = arith.constant 0 : i32
    return %c0_i32, %c0_i32_0 : i32, i32
  }
  func.func @transform_8(%arg0: i32) -> (i32, i32) {
    %c0_i32 = arith.constant 0 : i32
    %c0_i32_0 = arith.constant 0 : i32
    %c0_i32_1 = arith.constant 0 : i32
    return %c0_i32, %c0_i32_0 : i32, i32
  }
  func.func @transform_9(%arg0: i32) -> (i32, i32) {
    %c0_i32 = arith.constant 0 : i32
    %c0_i32_0 = arith.constant 0 : i32
    %c0_i32_1 = arith.constant 0 : i32
    return %c0_i32, %c0_i32_0 : i32, i32
  }
  func.func @transform_10(%arg0: i32) -> (i32, i32) {
    %c0_i32 = arith.constant 0 : i32
    %c0_i32_0 = arith.constant 0 : i32
    %c0_i32_1 = arith.constant 0 : i32
    return %c0_i32, %c0_i32_0 : i32, i32
  }
  func.func @transform_11(%arg0: i32) -> (i32, i32) {
    %c0_i32 = arith.constant 0 : i32
    %c0_i32_0 = arith.constant 0 : i32
    %c0_i32_1 = arith.constant 0 : i32
    return %c0_i32, %c0_i32_0 : i32, i32
  }
  func.func @transform_12(%arg0: i32) -> (i32, i32) {
    %c0_i32 = arith.constant 0 : i32
    %c0_i32_0 = arith.constant 0 : i32
    %c0_i32_1 = arith.constant 0 : i32
    return %c0_i32, %c0_i32_0 : i32, i32
  }
  func.func @transform_13(%arg0: i32) -> (i32, i32) {
    %c0_i32 = arith.constant 0 : i32
    %c0_i32_0 = arith.constant 0 : i32
    return %arg0, %c0_i32 : i32, i32
  }
  func.func @transform_14(%arg0: i32) -> (i32, i32) {
    %c0_i32 = arith.constant 0 : i32
    %c0_i32_0 = arith.constant 0 : i32
    return %arg0, %c0_i32 : i32, i32
  }
}

</mosaic_0001>

<bundles_post_ra>
// kernel: autoencoder_forward.1
= control target key start
LH: loop header
LB: loop body
LE: loop exit
PB: predicated region body
PF: predicated region fallthrough
CT: control target
= control target key end

     0   :  { %s14005_s0 = inlined_call_operand.vmem [shape: bf16[32,256], index: 0, kind: input, shape index: {}]   ;;  %s14006_s1 = inlined_call_operand.hbm [shape: bf16[256,1024], index: 1, kind: input, shape index: {}]   ;;  %s14007_s2 = inlined_call_operand.vmem [shape: f32[1,1024], index: 2, kind: input, shape index: {}]   ;;  %s14008_s3 = inlined_call_operand.hbm [shape: bf16[1024,512], index: 3, kind: input, shape index: {}]   ;;  %s14009_s4 = inlined_call_operand.vmem [shape: f32[1,512], index: 4, kind: input, shape index: {}]   ;;  %s14010_s5 = inlined_call_operand.hbm [shape: bf16[512,1024], index: 5, kind: input, shape index: {}]   ;;  %s14011_s6 = inlined_call_operand.vmem [shape: f32[1,1024], index: 6, kind: input, shape index: {}]   ;;  %s14012_s7 = inlined_call_operand.hbm [shape: bf16[1024,512], index: 7, kind: input, shape index: {}]   ;;  %s14013_s8 = inlined_call_operand.vmem [shape: f32[1,512], index: 8, kind: input, shape index: {}]   ;;  %s14014_s9 = inlined_call_operand.hbm [shape: bf16[512,1024], index: 9, kind: input, shape index: {}]   ;;  %s14015_s10 = inlined_call_operand.vmem [shape: f32[1,1024], index: 10, kind: input, shape index: {}]   ;;  %s14016_s11 = inlined_call_operand.hbm [shape: bf16[1024,256], index: 11, kind: input, shape index: {}]   ;;  %s14017_s12 = inlined_call_operand.vmem [shape: f32[1,256], index: 12, kind: input, shape index: {}]   ;;  %s14018_s13 = inlined_call_operand.hbm [shape: f32[32,1024], index: 13, kind: output, shape index: {0}]   ;;  %s14019_s14 = inlined_call_operand.hbm [shape: f32[32,256], index: 14, kind: output, shape index: {1}]  }
   0x1   :  { %14033 = sst [smem:[#allocation29_spill]] %s14008_s3 }
   0x2   :  { %14034 = sst [smem:[#allocation30_spill]] %s14012_s7 }
   0x3   :  { %14035 = sst [smem:[#allocation31_spill]] %s14017_s12 }
   0x4   :  { %14036 = sst [smem:[#allocation32_spill]] %s14018_s13 }
   0x5   :  { %14037 = sst [smem:[#allocation33_spill]] %s14019_s14 }
   0x6   :  { %20 = vsyncpa [#allocation3], 0 }
   0x7   :  { %21 = vsyncpa [#allocation6], 0 }
   0x8   :  { %22 = vsyncpa [#allocation9], 0 }
   0x9   :  { %23 = vsyncpa [#allocation12], 0 }
   0xa   :  { %24 = vsyncpa [#allocation4], 0 }
   0xb   :  { %26 = vsyncpa [#allocation4 + $0x1], 0 }
   0xc   :  { %27 = vsyncpa [#allocation15], 0 }
   0xd   :  { %29 = vsyncpa [#allocation15 + $0x1], 0  ;;  %s13465_s29 = smov 0   ;;  %s13467_s30 = smov 0  }
   0xe   :  { %s13469_s15 = smov 0   ;;  %s13471_s16 = smov 0  }
   0xf LB: > { %14038 = sst [smem:[#allocation22_spill]] %s13358_s29  ;;  %s13486_s17 = sadd.s32 4294967295, %s13370_s16   ;;  %s13370_s16 = sphi %s13471_s16, %s14071_s16   ;;  %s13366_s15 = sphi %s13469_s15, %s14073_s15   ;;  %s13362_s30 = sphi %s13467_s30, %s14075_s30   ;;  %s13358_s29 = sphi %s13465_s29, %s14074_s29  }
  0x10   : > { %14039 = sst [smem:[#allocation23_spill]] %s13366_s15  ;;  %s10497_s18 = sadd.s32 4294967294, %s13370_s16  }
  0x11   : > { %14040 = sst [smem:[#allocation24_spill]] %s13370_s16  ;;  %s13490_s19 = sadd.s32 1, %s13370_s16  }
  0x12   : > { %14041 = sst [smem:[#allocation25_spill]] %s13490_s19  ;;  %s320_s20 = sadd.s32 1, %s13366_s15 }
  0x13   : > { %s317_s21 = ssub.s32 %s13370_s16, %s13490_s19  ;;  %p330_p0 = scmp.ne.s32.totalorder %s13366_s15, %s13362_s30 }
  0x14   : > { %p318_p1 = scmp.eq.s32.totalorder %s317_s21, 0  ;;  %p331_p2 = scmp.eq.s32.totalorder %s13486_s17, 1 }
  0x15   : > { %p336_p3 = scmp.ne.s32.totalorder %s13362_s30, %s13358_s29  ;;  %p337_p4 = scmp.eq.s32.totalorder %s10497_s18, 1 }
  0x16   : > { %s13501_s22 = scalar_select %p318_p1, %s13366_s15, %s320_s20  }
  0x17   : > { %p13503_p5 = por %p331_p2, %p330_p0  ;;  %p13507_p6 = por %p337_p4, %p336_p3 }
  0x18   : > { %14042 = sst [smem:[#allocation26_spill]] %s13501_s22  ;;  %p10498_p7 = scmp.ge.s32.totalorder %s13370_s16, 1 }
  0x19   : > { %s14043_s23 = scalar_select %p13503_p5, 1, 0 }
  0x1a   : > { %s14045_s24 = scalar_select %p13507_p6, 1, 0 }
  0x1b   : > { %14044 = sst [smem:[#allocation27_spill]] %s14043_s23  ;;  %p370_p8 = scmp.lt.s32.totalorder %s13370_s16, 3 }
  0x1c   : > { %14046 = sst [smem:[#allocation28_spill]] %s14045_s24  ;;  %p14026_p9 = scmp.eq.s32.totalorder %s13486_s17, 0 }
  0x1d   : > { %p13514_p10 = pnand %p10498_p7, %p370_p8  ;;  %s13372_s26 = smov [#allocation5]  }
  0x1e   : > { %s398_s27 = sshll.u32 %s13372_s26, 4  ;;  %s13373_s18 = smov [#allocation8]   ;;  %s13520_s27 = int_to_ptr.vmem [resolvable:$true] %s398_s27 }
  0x1f   : > { %s14047_s25 = scalar_select %p13514_p10, 1, 0 }
  0x20   : > { %p11991_p11 = pneg %p13514_p10  ;;  %s430_s20 = sshll.u32 %s13373_s18, 4  ;;  %s13528_s20 = int_to_ptr.vmem [resolvable:$true] %s430_s20 }
  0x21   : > { %s13374_s21 = smov [#allocation2]   ;;  %s14049_s3 = sld [smem:[#allocation29_spill]] }
  0x22   : > { %p13524_p12 = pnand %p14026_p9, %p11991_p11  ;;  %s13530_s22 = sshll.u32 %s13374_s21, 4  ;;  %s383_s22 = int_to_ptr.vmem [resolvable:$true] %s13530_s22 }
  0x24   : > { %p13540_p0 = pneg %p13524_p12 }
  0x27   : > { %s13092_s26 = scalar_lea.hbm %s14049_s3, 32768 }
  0x28   : > { %p13093_p13 = scmp.ne.s32.totalorder %s14049_s3, %s13092_s26  ;;  %p13099_p3 = scmp.lt.u32.totalorder %s13092_s26, %s14049_s3 }
  0x2a   : > { %p13095_p1 = pnand %p13540_p0, %p13093_p13 }
  0x2c   : > { %p13096_p2 = pneg %p13095_p1 }
  0x2e   : > { %p13101_p4 = pnand %p13099_p3, %p13096_p2 }
  0x30   : > { %13104 = shalt.err (!%p13101_p4)
}
  0x31   : > { %s13105_s29 = scalar_lea.vmem %s13520_s27, 32768  ;;  %p13113_p9 = scmp.lt.s32.totalorder %s13520_s27, %s13520_s27 }
  0x32   : > { %p13106_p7 = scmp.ne.s32.totalorder %s13520_s27, %s13105_s29  ;;  %p13114_p6 = scmp.lt.s32.totalorder %s13105_s29, %s13105_s29 }
  0x34   : > { %p13108_p8 = pnand %p13106_p7, %p13540_p0  ;;  %p13115_p13 = por %p13114_p6, %p13113_p9 }
  0x36   : > { %p13109_p11 = pneg %p13108_p8 }
  0x38   : > { %p13116_p1 = pnand %p13115_p13, %p13109_p11 }
  0x3a   : > { %13119 = shalt.err (!%p13116_p1)
}
  0x3b   : > { %s13375_s15 = smov 256   ;;  %s13376_s19 = smov 16  }
  0x3c   : > { %11997 = dma.hbm_to_vmem [thread:$0]  (!%p13524_p12), %s14049_s3, 32768, %s13520_s27, [#allocation6], %s13375_s15, %s13375_s15, %s13376_s19  }
  0x3d   : > { %s14051_s7 = sld [smem:[#allocation30_spill]] }
  0x43   : > { %s13120_s14 = scalar_lea.hbm %s14051_s7, 32768 }
  0x44   : > { %p13121_p6 = scmp.ne.s32.totalorder %s14051_s7, %s13120_s14  ;;  %p13127_p3 = scmp.lt.u32.totalorder %s13120_s14, %s14051_s7 }
  0x46   : > { %p13123_p9 = pnand %p13121_p6, %p13540_p0 }
  0x48   : > { %p13124_p2 = pneg %p13123_p9 }
  0x4a   : > { %p13129_p4 = pnand %p13127_p3, %p13124_p2 }
  0x4c   : > { %13132 = shalt.err (!%p13129_p4)
}
  0x4d   : > { %s13133_s27 = scalar_lea.vmem %s13528_s20, 32768  ;;  %p13141_p13 = scmp.lt.s32.totalorder %s13528_s20, %s13528_s20 }
  0x4e   : > { %p13134_p7 = scmp.ne.s32.totalorder %s13528_s20, %s13133_s27  ;;  %p13142_p1 = scmp.lt.s32.totalorder %s13133_s27, %s13133_s27 }
  0x50   : > { %p13136_p8 = pnand %p13134_p7, %p13540_p0  ;;  %p13143_p6 = por %p13142_p1, %p13141_p13 }
  0x52   : > { %p13137_p11 = pneg %p13136_p8 }
  0x54   : > { %p13144_p9 = pnand %p13143_p6, %p13137_p11 }
  0x56   : > { %13147 = shalt.err (!%p13144_p9)
}
  0x57   : > { %12003 = dma.hbm_to_vmem [thread:$0]  (!%p13524_p12), %s14051_s7, 32768, %s13528_s20, [#allocation9], %s13375_s15, %s13375_s15, %s13376_s19  }
  0x58   : > { %s13148_s24 = scalar_lea.hbm %s14006_s1, 16384 }
  0x59   : > { %p13149_p2 = scmp.ne.s32.totalorder %s14006_s1, %s13148_s24  ;;  %p13155_p7 = scmp.lt.u32.totalorder %s13148_s24, %s14006_s1 }
  0x5b   : > { %p13151_p3 = pnand %p13149_p2, %p13540_p0 }
  0x5d   : > { %p13152_p4 = pneg %p13151_p3 }
  0x5f   : > { %p13157_p8 = pnand %p13155_p7, %p13152_p4 }
  0x61   : > { %13160 = shalt.err (!%p13157_p8)
}
  0x62   : > { %s13161_s27 = scalar_lea.vmem %s383_s22, 16384  ;;  %p13169_p6 = scmp.lt.s32.totalorder %s383_s22, %s383_s22 }
  0x63   : > { %p13162_p11 = scmp.ne.s32.totalorder %s383_s22, %s13161_s27  ;;  %p13170_p9 = scmp.lt.s32.totalorder %s13161_s27, %s13161_s27 }
  0x65   : > { %p13164_p13 = pnand %p13162_p11, %p13540_p0  ;;  %p13171_p5 = por %p13170_p9, %p13169_p6 }
  0x67   : > { %p13165_p1 = pneg %p13164_p13 }
  0x69   : > { %p13172_p10 = pnand %p13171_p5, %p13165_p1 }
  0x6b   : > { %13175 = shalt.err (!%p13172_p10)
}
  0x6c   : > { %s13377_s20 = smov 512   ;;  %s13378_s15 = smov 32  }
  0x6d   : > { %11994 = dma.hbm_to_vmem [thread:$0]  (!%p13524_p12), %s14006_s1, 16384, %s383_s22, [#allocation3], %s13377_s20, %s13377_s20, %s13378_s15  }
  0x6e   : > { %s13379_s13 = smov [#allocation7]   ;;  %s13380_s23 = smov [#allocation10]  }
  0x6f   : > { %s414_s14 = sshll.u32 %s13379_s13, 4  ;;  %s446_s24 = sshll.u32 %s13380_s23, 4  ;;  %s415_s14 = int_to_ptr.vmem [resolvable:$true] %s414_s14  ;;  %s447_s24 = int_to_ptr.vmem [resolvable:$true] %s446_s24 }
  0x70   : > { %s13176_s21 = scalar_lea.hbm %s14010_s5, 32768 }
  0x71   : > { %p13177_p5 = scmp.ne.s32.totalorder %s14010_s5, %s13176_s21  ;;  %p13183_p3 = scmp.lt.u32.totalorder %s13176_s21, %s14010_s5 }
  0x73   : > { %p13179_p10 = pnand %p13177_p5, %p13540_p0 }
  0x75   : > { %p13180_p2 = pneg %p13179_p10 }
  0x77   : > { %p13185_p4 = pnand %p13183_p3, %p13180_p2 }
  0x79   : > { %13188 = shalt.err (!%p13185_p4)
}
  0x7a   : > { %s13189_s22 = scalar_lea.vmem %s415_s14, 32768  ;;  %p13197_p13 = scmp.lt.s32.totalorder %s415_s14, %s415_s14 }
  0x7b   : > { %p13190_p7 = scmp.ne.s32.totalorder %s415_s14, %s13189_s22  ;;  %p13198_p1 = scmp.lt.s32.totalorder %s13189_s22, %s13189_s22 }
  0x7d   : > { %p13192_p8 = pnand %p13190_p7, %p13540_p0  ;;  %p13199_p6 = por %p13198_p1, %p13197_p13 }
  0x7f   : > { %p13193_p11 = pneg %p13192_p8 }
  0x81   : > { %p13200_p9 = pnand %p13199_p6, %p13193_p11 }
  0x83   : > { %13203 = shalt.err (!%p13200_p9)
}
  0x84   : > { %12000 = dma.hbm_to_vmem [thread:$0]  (!%p13524_p12), %s14010_s5, 32768, %s415_s14, [#allocation6], %s13377_s20, %s13377_s20, %s13378_s15  }
  0x85   : > { %s13204_s13 = scalar_lea.hbm %s14014_s9, 32768 }
  0x86   : > { %p13205_p5 = scmp.ne.s32.totalorder %s14014_s9, %s13204_s13  ;;  %p13211_p3 = scmp.lt.u32.totalorder %s13204_s13, %s14014_s9 }
  0x88   : > { %p13207_p10 = pnand %p13205_p5, %p13540_p0 }
  0x8a   : > { %p13208_p2 = pneg %p13207_p10 }
  0x8c   : > { %p13213_p4 = pnand %p13211_p3, %p13208_p2 }
  0x8e   : > { %13216 = shalt.err (!%p13213_p4)
}
  0x8f   : > { %s13217_s29 = scalar_lea.vmem %s447_s24, 32768  ;;  %p13225_p13 = scmp.lt.s32.totalorder %s447_s24, %s447_s24 }
  0x90   : > { %p13218_p7 = scmp.ne.s32.totalorder %s447_s24, %s13217_s29  ;;  %p13226_p1 = scmp.lt.s32.totalorder %s13217_s29, %s13217_s29 }
  0x92   : > { %p13220_p8 = pnand %p13218_p7, %p13540_p0  ;;  %p13227_p6 = por %p13226_p1, %p13225_p13 }
  0x94   : > { %p13221_p11 = pneg %p13220_p8 }
  0x96   : > { %p13228_p9 = pnand %p13227_p6, %p13221_p11 }
  0x98   : > { %13231 = shalt.err (!%p13228_p9)
}
  0x99   : > { %12006 = dma.hbm_to_vmem [thread:$0]  (!%p13524_p12), %s14014_s9, 32768, %s447_s24, [#allocation9], %s13377_s20, %s13377_s20, %s13378_s15  }
  0x9a   : > { %s13381_s22 = smov [#allocation11]   ;;  %s13232_s12 = scalar_lea.hbm %s14016_s11, 16384 }
  0x9b   : > { %s462_s3 = sshll.u32 %s13381_s22, 4  ;;  %p13233_p5 = scmp.ne.s32.totalorder %s14016_s11, %s13232_s12  ;;  %s463_s3 = int_to_ptr.vmem [resolvable:$true] %s462_s3 }
  0x9c   : > { %p13239_p3 = scmp.lt.u32.totalorder %s13232_s12, %s14016_s11 }
  0x9d   : > { %p13235_p10 = pnand %p13233_p5, %p13540_p0 }
  0x9f   : > { %p13236_p2 = pneg %p13235_p10 }
  0xa1   : > { %p13241_p4 = pnand %p13239_p3, %p13236_p2 }
  0xa3   : > { %13244 = shalt.err (!%p13241_p4)
}
  0xa4   : > { %s13245_s20 = scalar_lea.vmem %s463_s3, 16384  ;;  %p13253_p13 = scmp.lt.s32.totalorder %s463_s3, %s463_s3 }
  0xa5   : > { %p13246_p7 = scmp.ne.s32.totalorder %s463_s3, %s13245_s20  ;;  %p13254_p1 = scmp.lt.s32.totalorder %s13245_s20, %s13245_s20 }
  0xa7   : > { %p13248_p8 = pnand %p13246_p7, %p13540_p0  ;;  %p13255_p6 = por %p13254_p1, %p13253_p13 }
  0xa9   : > { %p13249_p11 = pneg %p13248_p8 }
  0xab   : > { %p13256_p9 = pnand %p13255_p6, %p13249_p11 }
  0xad   : > { %13259 = shalt.err (!%p13256_p9)
}
  0xae   : > { %s13382_s15 = smov 128   ;;  %s13383_s24 = smov 8  }
  0xaf   : > { %12009 = dma.hbm_to_vmem [thread:$0]  (!%p13524_p12), %s14016_s11, 16384, %s463_s3, [#allocation12], %s13382_s15, %s13382_s15, %s13383_s24  }
  0xb0   : > { %p14052_p5 = scmp.ne.s32.totalorder %s14047_s25, 0 }
  0xb1   : > { %p14053_p10 = scmp.eq.s32.totalorder (!%p14052_p5), %s13486_s17, 0 }
  0xb2   : > { %491 = sbr.rel (%p14052_p5) target bundleno = 2348 (0x92c), region = 72 }
  0xb9   : > { %13333 = dma.done.wait (%p14053_p10), [#allocation3], 16384   ;;  %p14054_p0 = pmov %p14053_p10 }
  0xbb   : > { %13335 = vsyncadd (%p14054_p0), [#allocation3], 4294950912  ;;  %p14055_p2 = pmov %p14054_p0 }
  0xbc   : > { %p14056_p3 = pmov %p14054_p0 }
  0xbd   : > { %13337 = dma.done.wait (%p14055_p2), [#allocation6], 65536  }
  0xbe   : > { %13339 = vsyncadd (%p14056_p3), [#allocation6], 4294901760  ;;  %p14057_p4 = pmov %p14054_p0 }
  0xbf   : > { %p14058_p12 = pmov %p14054_p0 }
  0xc0   : > { %13341 = dma.done.wait (%p14057_p4), [#allocation9], 65536  }
  0xc1   : > { %13343 = vsyncadd (%p14058_p12), [#allocation9], 4294901760  ;;  %p14059_p7 = pmov %p14054_p0 }
  0xc2   : > { %p14060_p8 = pmov %p14054_p0 }
  0xc3   : > { %13345 = dma.done.wait (%p14059_p7), [#allocation12], 16384  }
  0xc4   : > { %13347 = vsyncadd (%p14060_p8), [#allocation12], 4294950912  ;;  %s10515_s16 = sshll.u32 %s13486_s17, 1  ;;  %v574_v0 = vld [vmem:[#allocation2] sm:$0xff]  ;;  %v575_v63 = vld [vmem:[#allocation2 + $0x8] sm:$0xff]  ;;  %s13822_s18 = sand.u32 1, %s13362_s30  }
  0xc5   : > { %p564_p11 = scmp.lt.s32.totalorder %s10515_s16, 3  ;;  %v578_v1 = vld [vmem:[#allocation2 + $0x20] sm:$0xff]  ;;  %s10513_s20 = sshll.u32 %s13822_s18, 7 }
  0xc6   : > { %v582_v2 = vld [vmem:[#allocation2 + $0x40] sm:$0xff]  ;;  %v10521_v3 = vcombine.high %v574_v0, %v578_v1  ;;  %v10520_v4 = vcombine.low %v574_v0, %v578_v1  ;;  %v579_v0 = vld [vmem:[#allocation2 + $0x28] sm:$0xff]  ;;  %s13825_s15 = scalar_lea.vmem [#allocation13], %s10513_s20  ;;  %s11816_s28 = sshll.u32 %s13486_s17, 11 }
  0xc7   : > { %v586_v5 = vld [vmem:[#allocation2 + $0x60] sm:$0xff]  ;;  %s14077_s16 = smov (!%p564_p11, %s10515_s16), 3  ;;  %s10326_s14 = sshll.u32 %s13825_s15, 4  ;;  %s13924_s14 = int_to_ptr.vmem [resolvable:$true] %s10326_s14 }
  0xc8   : > { %v10529_v6 = vcombine.high %v582_v2, %v586_v5  ;;  %v590_v7 = vld [vmem:[#allocation2 + $0x80] sm:$0xff]  ;;  %1394 = vmatprep.subr.bf16.mxu1 %v10521_v3  ;;  %v10528_v9 = vcombine.low %v582_v2, %v586_v5  ;;  %s11814_s25 = sshll.u32 %s14077_s16, 3  ;;  %v583_v3 = vld [vmem:[#allocation2 + $0x48] sm:$0xff]  ;;  %s14062_s3 = sld [smem:[#allocation32_spill]] }
  0xc9   : > { %v594_v8 = vld [vmem:[#allocation2 + $0xa0] sm:$0xff]  ;;  %1395 = vmatpush1.bf16.msra.mxu1 %v10520_v4  ;;  %s13688_s27 = scalar_lea.vmem %s14005_s0, %s11814_s25  ;;  %v587_v4 = vld [vmem:[#allocation2 + $0x68] sm:$0xff]  ;;  %s14061_s25 = sld [smem:[#allocation27_spill]] }
  0xca   : > { %1396 = vmatprep.subr.bf16.mxu1 %v10529_v6  ;;  %v10537_v10 = vcombine.high %v590_v7, %v594_v8  ;;  %v598_v11 = vld [vmem:[#allocation2 + $0xc0] sm:$0xff]  ;;  %v10536_v13 = vcombine.low %v590_v7, %v594_v8  ;;  %v10523_v6 = vcombine.high %v575_v63, %v579_v0  ;;  %v10522_v7 = vcombine.low %v575_v63, %v579_v0  ;;  %v591_v8 = vld [vmem:[#allocation2 + $0x88] sm:$0xff]  ;;  %s10307_s19 = scalar_lea.sflag [#allocation4], %s13822_s18  ;;  %s13260_s12 = scalar_lea.vmem %s13924_s14, 2048 }
  0xcb   : > { %v602_v12 = vld [vmem:[#allocation2 + $0xe0] sm:$0xff]  ;;  %p13261_p13 = scmp.ne.s32.totalorder %s13924_s14, %s13260_s12  ;;  %s13384_s13 = smov [#allocation13]  }
  0xcc   : > { %v10545_v14 = vcombine.high %v598_v11, %v602_v12  ;;  %v606_v15 = vld [vmem:[#allocation2 + $0x100] sm:$0xff]  ;;  %v10544_v18 = vcombine.low %v598_v11, %v602_v12  ;;  %v10530_v11 = vcombine.low %v583_v3, %v587_v4  ;;  %v599_v12 = vld [vmem:[#allocation2 + $0xc8] sm:$0xff]  ;;  %s13264_s23 = sshll.u32 %s13384_s13, 4  ;;  %s13265_s23 = int_to_ptr.vmem [resolvable:$false] %s13264_s23 }
  0xcd   : > { %1397 = vmatpush1.bf16.msra.mxu1 %v10528_v9  ;;  %v610_v16 = vld [vmem:[#allocation2 + $0x120] sm:$0xff]  ;;  %v595_v9 = vld [vmem:[#allocation2 + $0xa8] sm:$0xff]  ;;  %s13266_s26 = scalar_lea.vmem %s13265_s23, 4096  ;;  %p13267_p5 = scmp.lt.s32.totalorder %s13924_s14, %s13265_s23 }
  0xce   : > { %1398 = vmatprep.subr.bf16.mxu1 %v10537_v10  ;;  %v13691_v17 = vld [vmem:[%s13688_s27 + $0x4] ss:$8 sps:$4 sm:$0xff]   ;;  %v10553_v19 = vcombine.high %v606_v15, %v610_v16  ;;  %v10552_v22 = vcombine.low %v606_v15, %v610_v16  ;;  %v13695_v5 = vld [vmem:[%s13688_s27] ss:$8 sps:$4 sm:$0xff]   ;;  %v10531_v10 = vcombine.high %v583_v3, %v587_v4  ;;  %v10538_v15 = vcombine.low %v591_v8, %v595_v9  ;;  %s13922_s7 = scalar_lea.hbm %s14062_s3, %s11816_s28  ;;  %p13268_p10 = scmp.lt.s32.totalorder %s13266_s26, %s13260_s12 }
  0xcf   : > { %1426 = vmatprep.mubr.bf16.mxu1 %v13691_v17  ;;  %v614_v20 = vld [vmem:[#allocation2 + $0x140] sm:$0xff]  ;;  %v607_v16 = vld [vmem:[#allocation2 + $0x108] sm:$0xff]  ;;  %p14063_p1 = scmp.ne.s32.totalorder %s14061_s25, 0 }
  0xd0   : > { %v618_v21 = vld [vmem:[#allocation2 + $0x160] sm:$0xff]  ;;  %v691_v3 = vld [vmem:[#allocation2 + $0x3a8] sm:$0xff]  ;;  %p13269_p0 = por %p13268_p10, %p13267_p5 }
  0xd1   : > { %1399 = vmatpush1.bf16.msra.mxu1 %v10536_v13  ;;  %v10561_v23 = vcombine.high %v614_v20, %v618_v21  ;;  %v622_v24 = vld [vmem:[#allocation2 + $0x180] sm:$0xff]  ;;  %v10560_v26 = vcombine.low %v614_v20, %v618_v21  ;;  %v603_v13 = vld [vmem:[#allocation2 + $0xe8] sm:$0xff]  ;;  %p13262_p6 = pnand %p13261_p13, %p14063_p1 }
  0xd2   : > { %1400 = vmatprep.subr.bf16.mxu1 %v10545_v14  ;;  %v626_v25 = vld [vmem:[#allocation2 + $0x1a0] sm:$0xff]  ;;  %v10539_v14 = vcombine.high %v591_v8, %v595_v9  ;;  %v10546_v20 = vcombine.low %v599_v12, %v603_v13  ;;  %v615_v21 = vld [vmem:[#allocation2 + $0x148] sm:$0xff] }
  0xd3   : > { %v10569_v27 = vcombine.high %v622_v24, %v626_v25  ;;  %v630_v28 = vld [vmem:[#allocation2 + $0x1c0] sm:$0xff]  ;;  %v10568_v30 = vcombine.low %v622_v24, %v626_v25  ;;  %v623_v25 = vld [vmem:[#allocation2 + $0x188] sm:$0xff]  ;;  %p13263_p9 = pneg %p13262_p6 }
  0xd4   : > { %v634_v29 = vld [vmem:[#allocation2 + $0x1e0] sm:$0xff]  ;;  %v695_v9 = vld [vmem:[#allocation2 + $0x3c8] sm:$0xff] }
  0xd5   : > { %1401 = vmatpush1.bf16.msra.mxu1 %v10544_v18  ;;  %v10577_v31 = vcombine.high %v630_v28, %v634_v29  ;;  %v638_v32 = vld [vmem:[#allocation2 + $0x200] sm:$0xff]  ;;  %v10576_v34 = vcombine.low %v630_v28, %v634_v29  ;;  %v611_v18 = vld [vmem:[#allocation2 + $0x128] sm:$0xff]  ;;  %p13270_p2 = pnand %p13269_p0, %p13263_p9 }
  0xd6   : > { %1402 = vmatprep.subr.bf16.mxu1 %v10553_v19  ;;  %v642_v33 = vld [vmem:[#allocation2 + $0x220] sm:$0xff]  ;;  %v10547_v19 = vcombine.high %v599_v12, %v603_v13  ;;  %v10554_v24 = vcombine.low %v607_v16, %v611_v18  ;;  %v631_v29 = vld [vmem:[#allocation2 + $0x1c8] sm:$0xff] }
  0xd7   : > { %v646_v35 = vld [vmem:[#allocation2 + $0x240] sm:$0xff]  ;;  %v10585_v37 = vcombine.high %v638_v32, %v642_v33  ;;  %v10584_v38 = vcombine.low %v638_v32, %v642_v33  ;;  %v639_v33 = vld [vmem:[#allocation2 + $0x208] sm:$0xff] }
  0xd8   : > { %v650_v36 = vld [vmem:[#allocation2 + $0x260] sm:$0xff] }
  0xd9   : > { %1403 = vmatpush1.bf16.msra.mxu1 %v10552_v22  ;;  %v654_v39 = vld [vmem:[#allocation2 + $0x280] sm:$0xff]  ;;  %v10593_v41 = vcombine.high %v646_v35, %v650_v36  ;;  %v10592_v42 = vcombine.low %v646_v35, %v650_v36  ;;  %v619_v22 = vld [vmem:[#allocation2 + $0x168] sm:$0xff] }
  0xda   : > { %1404 = vmatprep.subr.bf16.mxu1 %v10561_v23  ;;  %v658_v40 = vld [vmem:[#allocation2 + $0x2a0] sm:$0xff]  ;;  %v10555_v23 = vcombine.high %v607_v16, %v611_v18  ;;  %v10562_v28 = vcombine.low %v615_v21, %v619_v22  ;;  %v580_v16 = vld [vmem:[#allocation2 + $0x30] sm:$0xff] }
  0xdb   : > { %v662_v43 = vld [vmem:[#allocation2 + $0x2c0] sm:$0xff]  ;;  %v10601_v45 = vcombine.high %v654_v39, %v658_v40  ;;  %v10600_v46 = vcombine.low %v654_v39, %v658_v40 }
  0xdc   : > { %v666_v44 = vld [vmem:[#allocation2 + $0x2e0] sm:$0xff] }
  0xdd   : > { %1405 = vmatpush1.bf16.msra.mxu1 %v10560_v26  ;;  %v670_v47 = vld [vmem:[#allocation2 + $0x300] sm:$0xff]  ;;  %v10609_v49 = vcombine.high %v662_v43, %v666_v44  ;;  %v10608_v50 = vcombine.low %v662_v43, %v666_v44  ;;  %v627_v26 = vld [vmem:[#allocation2 + $0x1a8] sm:$0xff] }
  0xde   : > { %1406 = vmatprep.subr.bf16.mxu1 %v10569_v27  ;;  %v674_v48 = vld [vmem:[#allocation2 + $0x320] sm:$0xff]  ;;  %v10563_v27 = vcombine.high %v615_v21, %v619_v22  ;;  %v10570_v32 = vcombine.low %v623_v25, %v627_v26  ;;  %v659_v43 = vld [vmem:[#allocation2 + $0x2a8] sm:$0xff]  ;;  %v584_v22 = vld [vmem:[#allocation2 + $0x50] sm:$0xff] }
  0xdf   : > { %v678_v51 = vld [vmem:[#allocation2 + $0x340] sm:$0xff]  ;;  %v10617_v53 = vcombine.high %v670_v47, %v674_v48  ;;  %v10616_v54 = vcombine.low %v670_v47, %v674_v48  ;;  %v663_v48 = vld [vmem:[#allocation2 + $0x2c8] sm:$0xff] }
  0xe0   : > { %v682_v52 = vld [vmem:[#allocation2 + $0x360] sm:$0xff] }
  0xe1   : > { %1407 = vmatpush1.bf16.msra.mxu1 %v10568_v30  ;;  %v686_v55 = vld [vmem:[#allocation2 + $0x380] sm:$0xff]  ;;  %v10625_v57 = vcombine.high %v678_v51, %v682_v52  ;;  %v10624_v58 = vcombine.low %v678_v51, %v682_v52  ;;  %v635_v30 = vld [vmem:[#allocation2 + $0x1e8] sm:$0xff] }
  0xe2   : > { %1408 = vmatprep.subr.bf16.mxu1 %v10577_v31  ;;  %v690_v56 = vld [vmem:[#allocation2 + $0x3a0] sm:$0xff]  ;;  %v10571_v31 = vcombine.high %v623_v25, %v627_v26  ;;  %v10579_v35 = vcombine.high %v631_v29, %v635_v30  ;;  %v10578_v36 = vcombine.low %v631_v29, %v635_v30  ;;  %v592_v30 = vld [vmem:[#allocation2 + $0x90] sm:$0xff] }
  0xe3   : > { %v694_v59 = vld [vmem:[#allocation2 + $0x3c0] sm:$0xff]  ;;  %v10633_v61 = vcombine.high %v686_v55, %v690_v56  ;;  %v10632_v62 = vcombine.low %v686_v55, %v690_v56  ;;  %v675_v55 = vld [vmem:[#allocation2 + $0x328] sm:$0xff] }
  0xe4   : > { %v698_v60 = vld [vmem:[#allocation2 + $0x3e0] sm:$0xff] }
  0xe5   : > { %1409 = vmatpush1.bf16.msra.mxu1 %v10576_v34  ;;  %v10641_v1 = vcombine.high %v694_v59, %v698_v60  ;;  %v10640_v2 = vcombine.low %v694_v59, %v698_v60  ;;  %v643_v34 = vld [vmem:[#allocation2 + $0x228] sm:$0xff]  ;;  %v12081_v40 = vld [vmem:[#allocation5 + $0x4] ss:$16 sps:$4 sm:$0xff]   ;;  %v12083_v44 = vld [vmem:[#allocation5] ss:$16 sps:$4 sm:$0xff]  }
  0xe6   : > { %1410 = vmatprep.subr.bf16.mxu1 %v10585_v37  ;;  %v647_v37 = vld [vmem:[#allocation2 + $0x248] sm:$0xff]  ;;  %v10587_v39 = vcombine.high %v639_v33, %v643_v34  ;;  %3148 = vmatprep.subr.bf16.mxu0 %v12081_v40  ;;  %v12087_v52 = vld [vmem:[#allocation5 + $0x44] ss:$16 sps:$4 sm:$0xff]   ;;  %v12089_v56 = vld [vmem:[#allocation5 + $0x40] ss:$16 sps:$4 sm:$0xff]  }
  0xe7   : > { %3149 = vmatpush1.bf16.msra.mxu0 %v12083_v44  ;;  %v679_v60 = vld [vmem:[#allocation2 + $0x348] sm:$0xff]  ;;  %v12093_v0 = vld [vmem:[#allocation5 + $0x84] ss:$16 sps:$4 sm:$0xff]   ;;  %v12095_v4 = vld [vmem:[#allocation5 + $0x80] ss:$16 sps:$4 sm:$0xff]  }
  0xe8   : > { %v12099_v13 = vld [vmem:[#allocation5 + $0xc4] ss:$16 sps:$4 sm:$0xff]   ;;  %v12101_v18 = vld [vmem:[#allocation5 + $0xc0] ss:$16 sps:$4 sm:$0xff]  }
  0xe9   : > { %1411 = vmatpush1.bf16.msra.mxu1 %v10584_v38  ;;  %v651_v38 = vld [vmem:[#allocation2 + $0x268] sm:$0xff]  ;;  %v12105_v26 = vld [vmem:[#allocation5 + $0x104] ss:$16 sps:$4 sm:$0xff]  }
  0xea   : > { %1412 = vmatprep.subr.bf16.mxu1 %v10593_v41  ;;  %v10586_v41 = vcombine.low %v639_v33, %v643_v34  ;;  %v10594_v47 = vcombine.low %v647_v37, %v651_v38  ;;  %v600_v34 = vld [vmem:[#allocation2 + $0xd0] sm:$0xff] }
  0xeb   : > { %v608_v40 = vld [vmem:[#allocation2 + $0x110] sm:$0xff] }
  0xed   : > { %1413 = vmatpush1.bf16.msra.mxu1 %v10592_v42  ;;  %v655_v42 = vld [vmem:[#allocation2 + $0x288] sm:$0xff] }
  0xee   : > { %1414 = vmatprep.subr.bf16.mxu1 %v10601_v45  ;;  %v10595_v45 = vcombine.high %v647_v37, %v651_v38  ;;  %v10603_v51 = vcombine.high %v655_v42, %v659_v43  ;;  %v12117_v38 = vld [vmem:[#allocation5 + $0x144] ss:$16 sps:$4 sm:$0xff]  }
  0xf1   : > { %1415 = vmatpush1.bf16.msra.mxu1 %v10600_v46  ;;  %v12084_v46 = vld [vmem:[#allocation5 + $0x24] ss:$16 sps:$4 sm:$0xff]  }
  0xf2   : > { %1416 = vmatprep.subr.bf16.mxu1 %v10609_v49  ;;  %v667_v49 = vld [vmem:[#allocation2 + $0x2e8] sm:$0xff]  ;;  %3150 = vmatprep.subr.bf16.mxu0 %v12084_v46  ;;  %v12125_v46 = vld [vmem:[#allocation5 + $0x160] ss:$16 sps:$4 sm:$0xff]  }
  0xf3   : > { %v10610_v59 = vcombine.low %v663_v48, %v667_v49 }
  0xf5   : > { %1417 = vmatpush1.bf16.msra.mxu1 %v10608_v50  ;;  %v12086_v50 = vld [vmem:[#allocation5 + $0x20] ss:$16 sps:$4 sm:$0xff]  }
  0xf6   : > { %1418 = vmatprep.subr.bf16.mxu1 %v10617_v53  ;;  %3151 = vmatpush1.bf16.msra.mxu0 %v12086_v50  ;;  %v10602_v53 = vcombine.low %v655_v42, %v659_v43  ;;  %v12119_v42 = vld [vmem:[#allocation5 + $0x140] ss:$16 sps:$4 sm:$0xff]   ;;  %v12123_v43 = vld [vmem:[#allocation5 + $0x164] ss:$16 sps:$4 sm:$0xff]  }
  0xf7   : > { %3152 = vmatprep.subr.bf16.mxu0 %v12087_v52  ;;  %v624_v50 = vld [vmem:[#allocation2 + $0x190] sm:$0xff] }
  0xf8   : > { %v12131_v52 = vld [vmem:[#allocation5 + $0x180] ss:$16 sps:$4 sm:$0xff]  }
  0xf9   : > { %1419 = vmatpush1.bf16.msra.mxu1 %v10616_v54  ;;  %v671_v54 = vld [vmem:[#allocation2 + $0x308] sm:$0xff] }
  0xfa   : > { %1420 = vmatprep.subr.bf16.mxu1 %v10625_v57  ;;  %v10611_v57 = vcombine.high %v663_v48, %v667_v49  ;;  %3153 = vmatpush1.bf16.msra.mxu0 %v12089_v56  ;;  %v10619_v63 = vcombine.high %v671_v54, %v675_v55  ;;  %v12129_v48 = vld [vmem:[#allocation5 + $0x184] ss:$16 sps:$4 sm:$0xff]   ;;  %v12137_v56 = vld [vmem:[#allocation5 + $0x1a0] ss:$16 sps:$4 sm:$0xff]  }
  0xfd   : > { %1421 = vmatpush1.bf16.msra.mxu1 %v10624_v58  ;;  %v12090_v58 = vld [vmem:[#allocation5 + $0x64] ss:$16 sps:$4 sm:$0xff]  }
  0xfe   : > { %1422 = vmatprep.subr.bf16.mxu1 %v10633_v61  ;;  %v683_v61 = vld [vmem:[#allocation2 + $0x368] sm:$0xff]  ;;  %3154 = vmatprep.subr.bf16.mxu0 %v12090_v58  ;;  %v632_v58 = vld [vmem:[#allocation2 + $0x1d0] sm:$0xff] }
  0xff   : > { %v10626_v8 = vcombine.low %v679_v60, %v683_v61 }
 0x101   : > { %1423 = vmatpush1.bf16.msra.mxu1 %v10632_v62  ;;  %v12092_v62 = vld [vmem:[#allocation5 + $0x60] ss:$16 sps:$4 sm:$0xff]  }
 0x102   : > { %1424 = vmatprep.subr.bf16.mxu1 %v10641_v1  ;;  %3155 = vmatpush1.bf16.msra.mxu0 %v12092_v62  ;;  %v10618_v1 = vcombine.low %v671_v54, %v675_v55  ;;  %v12135_v54 = vld [vmem:[#allocation5 + $0x1a4] ss:$16 sps:$4 sm:$0xff]   ;;  %v12143_v62 = vld [vmem:[#allocation5 + $0x1c0] ss:$16 sps:$4 sm:$0xff]  }
 0x103   : > { %3156 = vmatprep.subr.bf16.mxu0 %v12093_v0  ;;  %v640_v0 = vld [vmem:[#allocation2 + $0x210] sm:$0xff] }
 0x105   : > { %1425 = vmatpush1.bf16.msra.mxu1 %v10640_v2  ;;  %v687_v2 = vld [vmem:[#allocation2 + $0x388] sm:$0xff] }
 0x106   : > { %1437 = vmatprep.subr.bf16.mxu1 %v10523_v6  ;;  %v10627_v6 = vcombine.high %v679_v60, %v683_v61  ;;  %3157 = vmatpush1.bf16.msra.mxu0 %v12095_v4  ;;  %v10635_v12 = vcombine.high %v687_v2, %v691_v3  ;;  %v12141_v60 = vld [vmem:[#allocation5 + $0x1c4] ss:$16 sps:$4 sm:$0xff]   ;;  %v12149_v4 = vld [vmem:[#allocation5 + $0x1e0] ss:$16 sps:$4 sm:$0xff]  }
 0x108   : > { %1427 = vmatmul.mubr.bf16.vlgmr.msra.gmra.mrb[0].mxu1 %v13695_v5 }
 0x109   : > { %1438 = vmatpush1.bf16.msra.mxu1 %v10522_v7  ;;  %1469 = vmatprep.mubr.bf16.mxu1 %v13691_v17  ;;  %v12096_v7 = vld [vmem:[#allocation5 + $0xa4] ss:$16 sps:$4 sm:$0xff]  }
 0x10a   : > { %1439 = vmatprep.subr.bf16.mxu1 %v10531_v10  ;;  %v699_v10 = vld [vmem:[#allocation2 + $0x3e8] sm:$0xff]  ;;  %3158 = vmatprep.subr.bf16.mxu0 %v12096_v7  ;;  %v648_v7 = vld [vmem:[#allocation2 + $0x250] sm:$0xff] }
 0x10b   : > { %v10642_v21 = vcombine.low %v695_v9, %v699_v10 }
 0x10d   : > { %1440 = vmatpush1.bf16.msra.mxu1 %v10530_v11  ;;  %v12098_v11 = vld [vmem:[#allocation5 + $0xa0] ss:$16 sps:$4 sm:$0xff]  }
 0x10e   : > { %1441 = vmatprep.subr.bf16.mxu1 %v10539_v14  ;;  %3159 = vmatpush1.bf16.msra.mxu0 %v12098_v11  ;;  %v10634_v14 = vcombine.low %v687_v2, %v691_v3  ;;  %v12147_v2 = vld [vmem:[#allocation5 + $0x1e4] ss:$16 sps:$4 sm:$0xff]  }
 0x10f   : > { %3160 = vmatprep.subr.bf16.mxu0 %v12099_v13  ;;  %v660_v13 = vld [vmem:[#allocation2 + $0x2b0] sm:$0xff] }
 0x111   : > { %1442 = vmatpush1.bf16.msra.mxu1 %v10538_v15  ;;  %v576_v15 = vld [vmem:[#allocation2 + $0x10] sm:$0xff] }
 0x112   : > { %1443 = vmatprep.subr.bf16.mxu1 %v10547_v19  ;;  %v10643_v19 = vcombine.high %v695_v9, %v699_v10  ;;  %3161 = vmatpush1.bf16.msra.mxu0 %v12101_v18  ;;  %v10525_v25 = vcombine.high %v576_v15, %v580_v16  ;;  %v12155_v10 = vld [vmem:[#allocation5 + $0x204] ss:$16 sps:$4 sm:$0xff]  }
 0x113   : > { %v668_v18 = vld [vmem:[#allocation2 + $0x2f0] sm:$0xff] }
 0x115   : > { %1444 = vmatpush1.bf16.msra.mxu1 %v10546_v20  ;;  %v12102_v20 = vld [vmem:[#allocation5 + $0xe4] ss:$16 sps:$4 sm:$0xff]  }
 0x116   : > { %1445 = vmatprep.subr.bf16.mxu1 %v10555_v23  ;;  %v588_v23 = vld [vmem:[#allocation2 + $0x70] sm:$0xff]  ;;  %3162 = vmatprep.subr.bf16.mxu0 %v12102_v20 }
 0x117   : > { %v10533_v29 = vcombine.high %v584_v22, %v588_v23  ;;  %v10532_v33 = vcombine.low %v584_v22, %v588_v23  ;;  %v676_v22 = vld [vmem:[#allocation2 + $0x330] sm:$0xff] }
 0x119   : > { %1446 = vmatpush1.bf16.msra.mxu1 %v10554_v24  ;;  %v12104_v24 = vld [vmem:[#allocation5 + $0xe0] ss:$16 sps:$4 sm:$0xff]  }
 0x11a   : > { %1447 = vmatprep.subr.bf16.mxu1 %v10563_v27  ;;  %3163 = vmatpush1.bf16.msra.mxu0 %v12104_v24  ;;  %v10524_v27 = vcombine.low %v576_v15, %v580_v16  ;;  %v664_v16 = vld [vmem:[#allocation2 + $0x2d0] sm:$0xff] }
 0x11b   : > { %3164 = vmatprep.subr.bf16.mxu0 %v12105_v26  ;;  %v10613_v20 = vcombine.high %v664_v16, %v668_v18  ;;  %v10612_v23 = vcombine.low %v664_v16, %v668_v18  ;;  %v684_v26 = vld [vmem:[#allocation2 + $0x370] sm:$0xff] }
 0x11d   : > { %1448 = vmatpush1.bf16.msra.mxu1 %v10562_v28  ;;  %v12107_v28 = vld [vmem:[#allocation5 + $0x100] ss:$16 sps:$4 sm:$0xff]  }
 0x11e   : > { %1449 = vmatprep.subr.bf16.mxu1 %v10571_v31  ;;  %v596_v31 = vld [vmem:[#allocation2 + $0xb0] sm:$0xff]  ;;  %3165 = vmatpush1.bf16.msra.mxu0 %v12107_v28 }
 0x11f   : > { %v10541_v37 = vcombine.high %v592_v30, %v596_v31 }
 0x121   : > { %1450 = vmatpush1.bf16.msra.mxu1 %v10570_v32  ;;  %v12111_v32 = vld [vmem:[#allocation5 + $0x124] ss:$16 sps:$4 sm:$0xff]  }
 0x122   : > { %1451 = vmatprep.subr.bf16.mxu1 %v10579_v35  ;;  %v604_v35 = vld [vmem:[#allocation2 + $0xf0] sm:$0xff]  ;;  %3166 = vmatprep.subr.bf16.mxu0 %v12111_v32 }
 0x123   : > { %v10548_v44 = vcombine.low %v600_v34, %v604_v35 }
 0x125   : > { %1452 = vmatpush1.bf16.msra.mxu1 %v10578_v36  ;;  %v12113_v36 = vld [vmem:[#allocation5 + $0x120] ss:$16 sps:$4 sm:$0xff]  }
 0x126   : > { %1453 = vmatprep.subr.bf16.mxu1 %v10587_v39  ;;  %3167 = vmatpush1.bf16.msra.mxu0 %v12113_v36  ;;  %v10540_v39 = vcombine.low %v592_v30, %v596_v31  ;;  %v692_v30 = vld [vmem:[#allocation2 + $0x3b0] sm:$0xff] }
 0x127   : > { %3168 = vmatprep.subr.bf16.mxu0 %v12117_v38  ;;  %v581_v38 = vld [vmem:[#allocation2 + $0x38] sm:$0xff] }
 0x129   : > { %1454 = vmatpush1.bf16.msra.mxu1 %v10586_v41  ;;  %v612_v41 = vld [vmem:[#allocation2 + $0x130] sm:$0xff] }
 0x12a   : > { %1455 = vmatprep.subr.bf16.mxu1 %v10595_v45  ;;  %3169 = vmatpush1.bf16.msra.mxu0 %v12119_v42  ;;  %v616_v45 = vld [vmem:[#allocation2 + $0x150] sm:$0xff]  ;;  %v10556_v49 = vcombine.low %v608_v40, %v612_v41  ;;  %v589_v42 = vld [vmem:[#allocation2 + $0x78] sm:$0xff] }
 0x12b   : > { %3170 = vmatprep.subr.bf16.mxu0 %v12123_v43  ;;  %v593_v43 = vld [vmem:[#allocation2 + $0x98] sm:$0xff] }
 0x12d   : > { %1456 = vmatpush1.bf16.msra.mxu1 %v10594_v47  ;;  %v10557_v47 = vcombine.high %v608_v40, %v612_v41  ;;  %v585_v41 = vld [vmem:[#allocation2 + $0x58] sm:$0xff] }
 0x12e   : > { %1457 = vmatprep.subr.bf16.mxu1 %v10603_v51  ;;  %3171 = vmatpush1.bf16.msra.mxu0 %v12125_v46  ;;  %v628_v51 = vld [vmem:[#allocation2 + $0x1b0] sm:$0xff]  ;;  %v10534_v46 = vcombine.low %v585_v41, %v589_v42 }
 0x12f   : > { %3172 = vmatprep.subr.bf16.mxu0 %v12129_v48  ;;  %v10572_v61 = vcombine.low %v624_v50, %v628_v51 }
 0x131   : > { %1458 = vmatpush1.bf16.msra.mxu1 %v10602_v53 }
 0x132   : > { %1459 = vmatprep.subr.bf16.mxu1 %v10611_v57  ;;  %3173 = vmatpush1.bf16.msra.mxu0 %v12131_v52  ;;  %v10573_v57 = vcombine.high %v624_v50, %v628_v51  ;;  %v605_v50 = vld [vmem:[#allocation2 + $0xf8] sm:$0xff] }
 0x133   : > { %3174 = vmatprep.subr.bf16.mxu0 %v12135_v54  ;;  %v613_v54 = vld [vmem:[#allocation2 + $0x138] sm:$0xff] }
 0x135   : > { %1460 = vmatpush1.bf16.msra.mxu1 %v10610_v59  ;;  %v636_v59 = vld [vmem:[#allocation2 + $0x1f0] sm:$0xff] }
 0x136   : > { %1461 = vmatprep.subr.bf16.mxu1 %v10619_v63  ;;  %3175 = vmatpush1.bf16.msra.mxu0 %v12137_v56  ;;  %v10581_v63 = vcombine.high %v632_v58, %v636_v59  ;;  %v10580_v3 = vcombine.low %v632_v58, %v636_v59  ;;  %v621_v58 = vld [vmem:[#allocation2 + $0x178] sm:$0xff] }
 0x137   : > { %3176 = vmatprep.subr.bf16.mxu0 %v12141_v60 }
 0x139   : > { %1462 = vmatpush1.bf16.msra.mxu1 %v10618_v1  ;;  %v644_v1 = vld [vmem:[#allocation2 + $0x230] sm:$0xff] }
 0x13a   : > { %1463 = vmatprep.subr.bf16.mxu1 %v10627_v6  ;;  %3177 = vmatpush1.bf16.msra.mxu0 %v12143_v62  ;;  %v10589_v6 = vcombine.high %v640_v0, %v644_v1  ;;  %v10588_v9 = vcombine.low %v640_v0, %v644_v1  ;;  %v629_v62 = vld [vmem:[#allocation2 + $0x1b8] sm:$0xff] }
 0x13b   : > { %3178 = vmatprep.subr.bf16.mxu0 %v12147_v2  ;;  %v633_v0 = vld [vmem:[#allocation2 + $0x1d8] sm:$0xff] }
 0x13c   : > { %v637_v2 = vld [vmem:[#allocation2 + $0x1f8] sm:$0xff] }
 0x13d   : > { %1464 = vmatpush1.bf16.msra.mxu1 %v10626_v8  ;;  %v652_v8 = vld [vmem:[#allocation2 + $0x270] sm:$0xff] }
 0x13e   : > { %1465 = vmatprep.subr.bf16.mxu1 %v10635_v12  ;;  %3179 = vmatpush1.bf16.msra.mxu0 %v12149_v4  ;;  %v10597_v11 = vcombine.high %v648_v7, %v652_v8  ;;  %v656_v12 = vld [vmem:[#allocation2 + $0x290] sm:$0xff]  ;;  %v10583_v4 = vcombine.high %v633_v0, %v637_v2 }
 0x13f   : > { %3191 = vmatprep.subr.bf16.mxu0 %v12155_v10  ;;  %v10605_v15 = vcombine.high %v656_v12, %v660_v13  ;;  %v649_v10 = vld [vmem:[#allocation2 + $0x258] sm:$0xff] }
 0x141   : > { %1466 = vmatpush1.bf16.msra.mxu1 %v10634_v14  ;;  %v10596_v14 = vcombine.low %v648_v7, %v652_v8  ;;  %v645_v7 = vld [vmem:[#allocation2 + $0x238] sm:$0xff]  ;;  %v10582_v8 = vcombine.low %v633_v0, %v637_v2 }
 0x142   : > { %1467 = vmatprep.subr.bf16.mxu1 %v10643_v19  ;;  %v10604_v19 = vcombine.low %v656_v12, %v660_v13 }
 0x145   : > { %1468 = vmatpush1.bf16.msra.mxu1 %v10642_v21  ;;  %v672_v21 = vld [vmem:[#allocation2 + $0x310] sm:$0xff] }
 0x146   : > { %1480 = vmatprep.subr.bf16.mxu1 %v10525_v25  ;;  %v10621_v24 = vcombine.high %v672_v21, %v676_v22  ;;  %v680_v25 = vld [vmem:[#allocation2 + $0x350] sm:$0xff] }
 0x147   : > { %v10629_v28 = vcombine.high %v680_v25, %v684_v26  ;;  %v10628_v31 = vcombine.low %v680_v25, %v684_v26 }
 0x148   : > { %1470 = vmatmul.mubr.bf16.vlgmr.msra.gmra.mrb[4].mxu1 %v13695_v5  ;;  %v10549_v5 = vcombine.high %v600_v34, %v604_v35  ;;  %v700_v34 = vld [vmem:[#allocation2 + $0x3f0] sm:$0xff] }
 0x149   : > { %1481 = vmatpush1.bf16.msra.mxu1 %v10524_v27  ;;  %1512 = vmatprep.mubr.bf16.mxu1 %v13691_v17  ;;  %v620_v17 = vld [vmem:[#allocation2 + $0x170] sm:$0xff]  ;;  %v10620_v27 = vcombine.low %v672_v21, %v676_v22 }
 0x14a   : > { %1482 = vmatprep.subr.bf16.mxu1 %v10533_v29  ;;  %v10565_v53 = vcombine.high %v616_v45, %v620_v17  ;;  %v10564_v55 = vcombine.low %v616_v45, %v620_v17  ;;  %v688_v29 = vld [vmem:[#allocation2 + $0x390] sm:$0xff]  ;;  %v597_v45 = vld [vmem:[#allocation2 + $0xb8] sm:$0xff]  ;;  %v13702_v17 = vld [vmem:[%s13688_s27] ss:$8 sps:$4 sm:$0xff]  }
 0x14b   : > { %v10637_v32 = vcombine.high %v688_v29, %v692_v30  ;;  %v10636_v35 = vcombine.low %v688_v29, %v692_v30  ;;  %v10543_v48 = vcombine.high %v593_v43, %v597_v45  ;;  %v10542_v51 = vcombine.low %v593_v43, %v597_v45  ;;  %v12122_v43 = vld [vmem:[#allocation5 + $0x4c] ss:$16 sps:$4 sm:$0xff]   ;;  %v12120_v45 = vld [vmem:[#allocation5 + $0x48] ss:$16 sps:$4 sm:$0xff]  }
 0x14d   : > { %1483 = vmatpush1.bf16.msra.mxu1 %v10532_v33  ;;  %v696_v33 = vld [vmem:[#allocation2 + $0x3d0] sm:$0xff] }
 0x14e   : > { %1484 = vmatprep.subr.bf16.mxu1 %v10541_v37  ;;  %v10645_v36 = vcombine.high %v696_v33, %v700_v34  ;;  %v577_v37 = vld [vmem:[#allocation2 + $0x18] sm:$0xff] }
 0x14f   : > { %v10527_v40 = vcombine.high %v577_v37, %v581_v38 }
 0x151   : > { %1485 = vmatpush1.bf16.msra.mxu1 %v10540_v39  ;;  %v10644_v39 = vcombine.low %v696_v33, %v700_v34 }
 0x152   : > { %1486 = vmatprep.subr.bf16.mxu1 %v10549_v5  ;;  %v10526_v5 = vcombine.low %v577_v37, %v581_v38 }
 0x155   : > { %1487 = vmatpush1.bf16.msra.mxu1 %v10548_v44  ;;  %v10535_v44 = vcombine.high %v585_v41, %v589_v42  ;;  %v12108_v41 = vld [vmem:[#allocation5 + $0x8] ss:$16 sps:$4 sm:$0xff]   ;;  %v12116_v42 = vld [vmem:[#allocation5 + $0x2c] ss:$16 sps:$4 sm:$0xff]  }
 0x156   : > { %1488 = vmatprep.subr.bf16.mxu1 %v10557_v47  ;;  %v13090_v47 = vld [vmem:[%s13688_s27 + $0x4] ss:$8 sps:$4 sm:$0xff]  }
 0x159   : > { %1489 = vmatpush1.bf16.msra.mxu1 %v10556_v49  ;;  %v601_v49 = vld [vmem:[#allocation2 + $0xd8] sm:$0xff] }
 0x15a   : > { %1490 = vmatprep.subr.bf16.mxu1 %v10565_v53  ;;  %v10551_v52 = vcombine.high %v601_v49, %v605_v50  ;;  %v609_v53 = vld [vmem:[#allocation2 + $0x118] sm:$0xff] }
 0x15b   : > { %v10559_v56 = vcombine.high %v609_v53, %v613_v54  ;;  %v10558_v59 = vcombine.low %v609_v53, %v613_v54  ;;  %v12140_v53 = vld [vmem:[#allocation5 + $0xac] ss:$16 sps:$4 sm:$0xff]  }
 0x15d   : > { %1491 = vmatpush1.bf16.msra.mxu1 %v10564_v55  ;;  %v10550_v55 = vcombine.low %v601_v49, %v605_v50  ;;  %v12134_v49 = vld [vmem:[#allocation5 + $0x8c] ss:$16 sps:$4 sm:$0xff]   ;;  %v12132_v50 = vld [vmem:[#allocation5 + $0x88] ss:$16 sps:$4 sm:$0xff]  }
 0x15e   : > { %1492 = vmatprep.subr.bf16.mxu1 %v10573_v57  ;;  %v617_v57 = vld [vmem:[#allocation2 + $0x158] sm:$0xff] }
 0x15f   : > { %v10567_v60 = vcombine.high %v617_v57, %v621_v58 }
 0x161   : > { %1493 = vmatpush1.bf16.msra.mxu1 %v10572_v61  ;;  %v625_v61 = vld [vmem:[#allocation2 + $0x198] sm:$0xff] }
 0x162   : > { %1494 = vmatprep.subr.bf16.mxu1 %v10581_v63  ;;  %v10566_v63 = vcombine.low %v617_v57, %v621_v58  ;;  %v10575_v1 = vcombine.high %v625_v61, %v629_v62  ;;  %v12146_v57 = vld [vmem:[#allocation5 + $0xcc] ss:$16 sps:$4 sm:$0xff]  }
 0x165   : > { %1495 = vmatpush1.bf16.msra.mxu1 %v10580_v3  ;;  %v10574_v3 = vcombine.low %v625_v61, %v629_v62 }
 0x166   : > { %1496 = vmatprep.subr.bf16.mxu1 %v10589_v6  ;;  %v641_v6 = vld [vmem:[#allocation2 + $0x218] sm:$0xff] }
 0x167   : > { %v10590_v12 = vcombine.low %v641_v6, %v645_v7 }
 0x169   : > { %1497 = vmatpush1.bf16.msra.mxu1 %v10588_v9  ;;  %v10591_v9 = vcombine.high %v641_v6, %v645_v7 }
 0x16a   : > { %1498 = vmatprep.subr.bf16.mxu1 %v10597_v11  ;;  %v653_v11 = vld [vmem:[#allocation2 + $0x278] sm:$0xff] }
 0x16b   : > { %v10599_v13 = vcombine.high %v649_v10, %v653_v11  ;;  %v10598_v16 = vcombine.low %v649_v10, %v653_v11  ;;  %v12153_v11 = vld [vmem:[#allocation5 + $0x200] ss:$16 sps:$4 sm:$0xff]  }
 0x16d   : > { %1499 = vmatpush1.bf16.msra.mxu1 %v10596_v14  ;;  %v657_v14 = vld [vmem:[#allocation2 + $0x298] sm:$0xff] }
 0x16e   : > { %1500 = vmatprep.subr.bf16.mxu1 %v10605_v15  ;;  %v661_v15 = vld [vmem:[#allocation2 + $0x2b8] sm:$0xff] }
 0x16f   : > { %v10607_v18 = vcombine.high %v657_v14, %v661_v15  ;;  %v10606_v21 = vcombine.low %v657_v14, %v661_v15  ;;  %v12161_v14 = vld [vmem:[#allocation5 + $0x224] ss:$16 sps:$4 sm:$0xff]   ;;  %v12156_v15 = vld [vmem:[#allocation5 + $0x108] ss:$16 sps:$4 sm:$0xff]  }
 0x171   : > { %1501 = vmatpush1.bf16.msra.mxu1 %v10604_v19  ;;  %v665_v19 = vld [vmem:[#allocation2 + $0x2d8] sm:$0xff] }
 0x172   : > { %1502 = vmatprep.subr.bf16.mxu1 %v10613_v20  ;;  %v669_v20 = vld [vmem:[#allocation2 + $0x2f8] sm:$0xff] }
 0x173   : > { %v10615_v22 = vcombine.high %v665_v19, %v669_v20  ;;  %v10614_v25 = vcombine.low %v665_v19, %v669_v20  ;;  %v12167_v19 = vld [vmem:[#allocation5 + $0x244] ss:$16 sps:$4 sm:$0xff]   ;;  %v12162_v20 = vld [vmem:[#allocation5 + $0x128] ss:$16 sps:$4 sm:$0xff]  }
 0x175   : > { %1503 = vmatpush1.bf16.msra.mxu1 %v10612_v23  ;;  %v673_v23 = vld [vmem:[#allocation2 + $0x318] sm:$0xff] }
 0x176   : > { %1504 = vmatprep.subr.bf16.mxu1 %v10621_v24  ;;  %v677_v24 = vld [vmem:[#allocation2 + $0x338] sm:$0xff] }
 0x177   : > { %v10623_v26 = vcombine.high %v673_v23, %v677_v24  ;;  %v10622_v29 = vcombine.low %v673_v23, %v677_v24  ;;  %v12173_v23 = vld [vmem:[#allocation5 + $0x264] ss:$16 sps:$4 sm:$0xff]   ;;  %v12168_v24 = vld [vmem:[#allocation5 + $0x148] ss:$16 sps:$4 sm:$0xff]  }
 0x179   : > { %1505 = vmatpush1.bf16.msra.mxu1 %v10620_v27  ;;  %v681_v27 = vld [vmem:[#allocation2 + $0x358] sm:$0xff] }
 0x17a   : > { %1506 = vmatprep.subr.bf16.mxu1 %v10629_v28  ;;  %v685_v28 = vld [vmem:[#allocation2 + $0x378] sm:$0xff] }
 0x17b   : > { %v10631_v30 = vcombine.high %v681_v27, %v685_v28  ;;  %v10630_v33 = vcombine.low %v681_v27, %v685_v28  ;;  %v12179_v27 = vld [vmem:[#allocation5 + $0x284] ss:$16 sps:$4 sm:$0xff]   ;;  %v12174_v28 = vld [vmem:[#allocation5 + $0x168] ss:$16 sps:$4 sm:$0xff]  }
 0x17d   : > { %1507 = vmatpush1.bf16.msra.mxu1 %v10628_v31  ;;  %v689_v31 = vld [vmem:[#allocation2 + $0x398] sm:$0xff] }
 0x17e   : > { %1508 = vmatprep.subr.bf16.mxu1 %v10637_v32  ;;  %v693_v32 = vld [vmem:[#allocation2 + $0x3b8] sm:$0xff] }
 0x17f   : > { %v10639_v34 = vcombine.high %v689_v31, %v693_v32  ;;  %v10638_v37 = vcombine.low %v689_v31, %v693_v32  ;;  %v12185_v31 = vld [vmem:[#allocation5 + $0x2a4] ss:$16 sps:$4 sm:$0xff]   ;;  %v12180_v32 = vld [vmem:[#allocation5 + $0x188] ss:$16 sps:$4 sm:$0xff]  }
 0x181   : > { %1509 = vmatpush1.bf16.msra.mxu1 %v10636_v35  ;;  %v697_v35 = vld [vmem:[#allocation2 + $0x3d8] sm:$0xff] }
 0x182   : > { %1510 = vmatprep.subr.bf16.mxu1 %v10645_v36  ;;  %v701_v36 = vld [vmem:[#allocation2 + $0x3f8] sm:$0xff] }
 0x183   : > { %v10647_v38 = vcombine.high %v697_v35, %v701_v36 }
 0x185   : > { %1511 = vmatpush1.bf16.msra.mxu1 %v10644_v39  ;;  %v10646_v39 = vcombine.low %v697_v35, %v701_v36  ;;  %v12191_v35 = vld [vmem:[#allocation5 + $0x2c4] ss:$16 sps:$4 sm:$0xff]   ;;  %v12186_v36 = vld [vmem:[#allocation5 + $0x1a8] ss:$16 sps:$4 sm:$0xff]  }
 0x186   : > { %1523 = vmatprep.subr.bf16.mxu1 %v10527_v40  ;;  %v12110_v40 = vld [vmem:[#allocation5 + $0xc] ss:$16 sps:$4 sm:$0xff]  }
 0x188   : > { %1513 = vmatmul.mubr.bf16.vlgmr.msra.gmra.mrb[8].mxu1 %v13702_v17 }
 0x189   : > { %1524 = vmatpush1.bf16.msra.mxu1 %v10526_v5  ;;  %1555 = vmatprep.mubr.bf16.mxu1 %v13090_v47  ;;  %v12114_v5 = vld [vmem:[#allocation5 + $0x28] ss:$16 sps:$4 sm:$0xff]  }
 0x18a   : > { %1525 = vmatprep.subr.bf16.mxu1 %v10535_v44  ;;  %v704_v44 = vlaneseq }
 0x18c   : > { %v13707_v47 = vshrl.u32 %v704_v44, 7  ;;  %v12206_v44 = vld [vmem:[#allocation5 + $0x20c] ss:$16 sps:$4 sm:$0xff]  }
 0x18d   : > { %1526 = vmatpush1.bf16.msra.mxu1 %v10534_v46  ;;  %v12128_v46 = vld [vmem:[#allocation5 + $0x6c] ss:$16 sps:$4 sm:$0xff]  }
 0x18e   : > { %1527 = vmatprep.subr.bf16.mxu1 %v10543_v48  ;;  %v12126_v48 = vld [vmem:[#allocation5 + $0x68] ss:$16 sps:$4 sm:$0xff]  }
 0x191   : > { %1528 = vmatpush1.bf16.msra.mxu1 %v10542_v51  ;;  %v13710_v51 = vsub.s32 0, %v13707_v47 }
 0x192   : > { %1529 = vmatprep.subr.bf16.mxu1 %v10551_v52  ;;  %v13718_v52 = vsub.s32 1, %v13707_v47 }
 0x195   : > { %1530 = vmatpush1.bf16.msra.mxu1 %v10550_v55 }
 0x196   : > { %1531 = vmatprep.subr.bf16.mxu1 %v10559_v56  ;;  %v12138_v56 = vld [vmem:[#allocation5 + $0xa8] ss:$16 sps:$4 sm:$0xff]  }
 0x199   : > { %1532 = vmatpush1.bf16.msra.mxu1 %v10558_v59 }
 0x19a   : > { %1533 = vmatprep.subr.bf16.mxu1 %v10567_v60 }
 0x19d   : > { %1534 = vmatpush1.bf16.msra.mxu1 %v10566_v63  ;;  %v12144_v63 = vld [vmem:[#allocation5 + $0xc8] ss:$16 sps:$4 sm:$0xff]  }
 0x19e   : > { %1535 = vmatprep.subr.bf16.mxu1 %v10575_v1 }
 0x1a1   : > { %1536 = vmatpush1.bf16.msra.mxu1 %v10574_v3  ;;  %v12152_v3 = vld [vmem:[#allocation5 + $0xec] ss:$16 sps:$4 sm:$0xff]  }
 0x1a2   : > { %1537 = vmatprep.subr.bf16.mxu1 %v10583_v4 }
 0x1a5   : > { %1538 = vmatpush1.bf16.msra.mxu1 %v10582_v8 }
 0x1a6   : > { %1539 = vmatprep.subr.bf16.mxu1 %v10591_v9  ;;  %v12150_v9 = vld [vmem:[#allocation5 + $0xe8] ss:$16 sps:$4 sm:$0xff]  }
 0x1a9   : > { %1540 = vmatpush1.bf16.msra.mxu1 %v10590_v12 }
 0x1aa   : > { %1541 = vmatprep.subr.bf16.mxu1 %v10599_v13  ;;  %v12158_v13 = vld [vmem:[#allocation5 + $0x10c] ss:$16 sps:$4 sm:$0xff]  }
 0x1ad   : > { %1542 = vmatpush1.bf16.msra.mxu1 %v10598_v16  ;;  %v12164_v16 = vld [vmem:[#allocation5 + $0x12c] ss:$16 sps:$4 sm:$0xff]  }
 0x1ae   : > { %1543 = vmatprep.subr.bf16.mxu1 %v10607_v18  ;;  %v12159_v18 = vld [vmem:[#allocation5 + $0x220] ss:$16 sps:$4 sm:$0xff]  }
 0x1b1   : > { %1544 = vmatpush1.bf16.msra.mxu1 %v10606_v21  ;;  %v12170_v21 = vld [vmem:[#allocation5 + $0x14c] ss:$16 sps:$4 sm:$0xff]  }
 0x1b2   : > { %1545 = vmatprep.subr.bf16.mxu1 %v10615_v22  ;;  %v12165_v22 = vld [vmem:[#allocation5 + $0x240] ss:$16 sps:$4 sm:$0xff]  }
 0x1b5   : > { %1546 = vmatpush1.bf16.msra.mxu1 %v10614_v25  ;;  %v12176_v25 = vld [vmem:[#allocation5 + $0x16c] ss:$16 sps:$4 sm:$0xff]  }
 0x1b6   : > { %1547 = vmatprep.subr.bf16.mxu1 %v10623_v26  ;;  %v12171_v26 = vld [vmem:[#allocation5 + $0x260] ss:$16 sps:$4 sm:$0xff]  }
 0x1b9   : > { %1548 = vmatpush1.bf16.msra.mxu1 %v10622_v29  ;;  %v12182_v29 = vld [vmem:[#allocation5 + $0x18c] ss:$16 sps:$4 sm:$0xff]  }
 0x1ba   : > { %1549 = vmatprep.subr.bf16.mxu1 %v10631_v30  ;;  %v12177_v30 = vld [vmem:[#allocation5 + $0x280] ss:$16 sps:$4 sm:$0xff]  }
 0x1bd   : > { %1550 = vmatpush1.bf16.msra.mxu1 %v10630_v33  ;;  %v12188_v33 = vld [vmem:[#allocation5 + $0x1ac] ss:$16 sps:$4 sm:$0xff]  }
 0x1be   : > { %1551 = vmatprep.subr.bf16.mxu1 %v10639_v34  ;;  %v12183_v34 = vld [vmem:[#allocation5 + $0x2a0] ss:$16 sps:$4 sm:$0xff]  }
 0x1c1   : > { %1552 = vmatpush1.bf16.msra.mxu1 %v10638_v37  ;;  %v12194_v37 = vld [vmem:[#allocation5 + $0x1cc] ss:$16 sps:$4 sm:$0xff]  }
 0x1c2   : > { %1553 = vmatprep.subr.bf16.mxu1 %v10647_v38  ;;  %v12189_v38 = vld [vmem:[#allocation5 + $0x2c0] ss:$16 sps:$4 sm:$0xff]  }
 0x1c5   : > { %1554 = vmatpush1.bf16.msra.mxu1 %v10646_v39  ;;  %v12197_v39 = vld [vmem:[#allocation5 + $0x2e4] ss:$16 sps:$4 sm:$0xff]  }
 0x1c6   : > { %3320 = vmatprep.subr.bf16.mxu1 %v12110_v40  ;;  %v12192_v40 = vld [vmem:[#allocation5 + $0x1c8] ss:$16 sps:$4 sm:$0xff]  }
 0x1c8   : > { %1556 = vmatmul.mubr.bf16.vlgmr.msra.gmra.mrb[12].mxu1 %v13702_v17  ;;  %v13715_v17 = vld [vmem:[%s14007_s2] sm:$0xff] }
 0x1c9   : > { %3321 = vmatpush1.bf16.msra.mxu1 %v12108_v41  ;;  %v707_v54 = vrot.slane %v13715_v17, %v13710_v51  ;;  %v711_v55 = vrot.slane %v13715_v17, %v13718_v52  ;;  %v12200_v41 = vld [vmem:[#allocation5 + $0x1ec] ss:$16 sps:$4 sm:$0xff]  }
 0x1ca   : > { %3322 = vmatprep.subr.bf16.mxu1 %v12116_v42  ;;  %v12195_v42 = vld [vmem:[#allocation5 + $0x2e0] ss:$16 sps:$4 sm:$0xff]  }
 0x1cd   : > { %3323 = vmatpush1.bf16.msra.mxu1 %v12114_v5  ;;  %v12203_v5 = vld [vmem:[#allocation5 + $0x304] ss:$16 sps:$4 sm:$0xff]  }
 0x1ce   : > { %3324 = vmatprep.subr.bf16.mxu1 %v12122_v43  ;;  %v12198_v43 = vld [vmem:[#allocation5 + $0x1e8] ss:$16 sps:$4 sm:$0xff]  }
 0x1d1   : > { %3325 = vmatpush1.bf16.msra.mxu1 %v12120_v45  ;;  %v12201_v45 = vld [vmem:[#allocation5 + $0x300] ss:$16 sps:$4 sm:$0xff]  }
 0x1d2   : > { %3326 = vmatprep.subr.bf16.mxu1 %v12128_v46  ;;  %v12209_v46 = vld [vmem:[#allocation5 + $0x324] ss:$16 sps:$4 sm:$0xff]  }
 0x1d5   : > { %3327 = vmatpush1.bf16.msra.mxu1 %v12126_v48  ;;  %v12204_v48 = vld [vmem:[#allocation5 + $0x208] ss:$16 sps:$4 sm:$0xff]  }
 0x1d6   : > { %3328 = vmatprep.subr.bf16.mxu1 %v12134_v49  ;;  %v12212_v49 = vld [vmem:[#allocation5 + $0x22c] ss:$16 sps:$4 sm:$0xff]  }
 0x1d9   : > { %3329 = vmatpush1.bf16.msra.mxu1 %v12132_v50  ;;  %v12207_v50 = vld [vmem:[#allocation5 + $0x320] ss:$16 sps:$4 sm:$0xff]  }
 0x1da   : > { %3330 = vmatprep.subr.bf16.mxu1 %v12140_v53  ;;  %v12215_v53 = vld [vmem:[#allocation5 + $0x344] ss:$16 sps:$4 sm:$0xff]  }
 0x1db   : > { %v1428_v58 = vpop.f32.mrb[0].mxu1 }
 0x1dc   : > { %v1429_v59 = vadd.f32 %v1428_v58, %v707_v54  ;;  %v1430_v60 = vpop.f32.mrb[1].mxu1  ;;  %v12216_v58 = vld [vmem:[#allocation5 + $0x248] ss:$16 sps:$4 sm:$0xff]  }
 0x1dd   : > { %v1431_v61 = vadd.f32 %v1430_v60, %v711_v55  ;;  %v1432_v62 = vpop.f32.mrb[2].mxu1  ;;  %3331 = vmatpush1.bf16.msra.mxu1 %v12138_v56  ;;  %v12213_v56 = vld [vmem:[#allocation5 + $0x340] ss:$16 sps:$4 sm:$0xff]  }
 0x1de   : > { %v1566_v0 = vmax.f32 %v1429_v59, 0.0  ;;  %v1433_v1 = vadd.f32 %v1432_v62, %v707_v54  ;;  %v1434_v2 = vpop.f32.mrb[3].mxu1  ;;  %3332 = vmatprep.subr.bf16.mxu1 %v12146_v57  ;;  %v12210_v54 = vld [vmem:[#allocation5 + $0x228] ss:$16 sps:$4 sm:$0xff]   ;;  %v12221_v57 = vld [vmem:[#allocation5 + $0x364] ss:$16 sps:$4 sm:$0xff]  }
 0x1df   : > { %v1435_v4 = vadd.f32 %v1434_v2, %v711_v55  ;;  %v1567_v7 = vmax.f32 %v1431_v61, 0.0  ;;  %v12218_v55 = vld [vmem:[#allocation5 + $0x24c] ss:$16 sps:$4 sm:$0xff]   ;;  %v12219_v60 = vld [vmem:[#allocation5 + $0x360] ss:$16 sps:$4 sm:$0xff]   ;;  %v13729_v2 = vsub.s32 2, %v13707_v47 }
 0x1e0   : > { %v1574_v6 = vmax.f32 %v1433_v1, 0.0  ;;  %v12224_v59 = vld [vmem:[#allocation5 + $0x26c] ss:$16 sps:$4 sm:$0xff]   ;;  %v12227_v61 = vld [vmem:[#allocation5 + $0x384] ss:$16 sps:$4 sm:$0xff]  }
 0x1e1   : > { %v1575_v8 = vmax.f32 %v1435_v4, 0.0  ;;  %3333 = vmatpush1.bf16.msra.mxu1 %v12144_v63  ;;  %v12222_v62 = vld [vmem:[#allocation5 + $0x268] ss:$16 sps:$4 sm:$0xff]   ;;  %v12230_v63 = vld [vmem:[#allocation5 + $0x28c] ss:$16 sps:$4 sm:$0xff]   ;;  %v13732_v4 = vsub.s32 3, %v13707_v47 }
 0x1e2   : > { %v13724_v10 = vpack.c.bf16 %v1574_v6, %v1566_v0  ;;  %3334 = vmatprep.subr.bf16.mxu1 %v12152_v3  ;;  %v12225_v0 = vld [vmem:[#allocation5 + $0x380] ss:$16 sps:$4 sm:$0xff]   ;;  %v12233_v1 = vld [vmem:[#allocation5 + $0x3a4] ss:$16 sps:$4 sm:$0xff]   ;;  %v12228_v3 = vld [vmem:[#allocation5 + $0x288] ss:$16 sps:$4 sm:$0xff]  }
 0x1e3   : > { %v1583_v12 = vpack.c.bf16 %v1575_v8, %v1567_v7  ;;  %v12236_v6 = vld [vmem:[#allocation5 + $0x2ac] ss:$16 sps:$4 sm:$0xff]   ;;  %v12231_v7 = vld [vmem:[#allocation5 + $0x3a0] ss:$16 sps:$4 sm:$0xff]   ;;  %v715_v8 = vrot.slane %v13715_v17, %v13729_v2 }
 0x1e5   : > { %3180 = vmatprep.mubr.bf16.mxu0 %v1583_v12  ;;  %3335 = vmatpush1.bf16.msra.mxu1 %v12150_v9  ;;  %v12239_v9 = vld [vmem:[#allocation5 + $0x3c4] ss:$16 sps:$4 sm:$0xff]  }
 0x1e6   : > { %3352 = vmatprep.mubr.bf16.mxu1 %v1583_v12  ;;  %3181 = vmatmul.mubr.bf16.vlgmr.msra.gmra.mrb[0].mxu0 %v13724_v10  ;;  %v12242_v12 = vld [vmem:[#allocation5 + $0x2cc] ss:$16 sps:$4 sm:$0xff]  }
 0x1e7   : > { %3192 = vmatpush1.bf16.msra.mxu0 %v12153_v11  ;;  %3336 = vmatprep.subr.bf16.mxu1 %v12158_v13  ;;  %v12234_v11 = vld [vmem:[#allocation5 + $0x2a8] ss:$16 sps:$4 sm:$0xff]  }
 0x1e8   : > { %3193 = vmatprep.subr.bf16.mxu0 %v12161_v14  ;;  %v12237_v14 = vld [vmem:[#allocation5 + $0x3c0] ss:$16 sps:$4 sm:$0xff]  }
 0x1e9   : > { %3337 = vmatpush1.bf16.msra.mxu1 %v12156_v15 }
 0x1ea   : > { %3338 = vmatprep.subr.bf16.mxu1 %v12164_v16 }
 0x1eb   : > { %3194 = vmatpush1.bf16.msra.mxu0 %v12159_v18  ;;  %v12245_v18 = vld [vmem:[#allocation5 + $0x3e4] ss:$16 sps:$4 sm:$0xff]  }
 0x1ec   : > { %3195 = vmatprep.subr.bf16.mxu0 %v12167_v19 }
 0x1ed   : > { %3339 = vmatpush1.bf16.msra.mxu1 %v12162_v20 }
 0x1ee   : > { %3340 = vmatprep.subr.bf16.mxu1 %v12170_v21  ;;  %v12240_v21 = vld [vmem:[#allocation5 + $0x2c8] ss:$16 sps:$4 sm:$0xff]  }
 0x1ef   : > { %3196 = vmatpush1.bf16.msra.mxu0 %v12165_v22 }
 0x1f0   : > { %3197 = vmatprep.subr.bf16.mxu0 %v12173_v23 }
 0x1f1   : > { %3341 = vmatpush1.bf16.msra.mxu1 %v12168_v24 }
 0x1f2   : > { %3342 = vmatprep.subr.bf16.mxu1 %v12176_v25  ;;  %v12248_v25 = vld [vmem:[#allocation5 + $0x2ec] ss:$16 sps:$4 sm:$0xff]  }
 0x1f3   : > { %3198 = vmatpush1.bf16.msra.mxu0 %v12171_v26 }
 0x1f4   : > { %3199 = vmatprep.subr.bf16.mxu0 %v12179_v27  ;;  %v12243_v27 = vld [vmem:[#allocation5 + $0x3e0] ss:$16 sps:$4 sm:$0xff]  }
 0x1f5   : > { %3343 = vmatpush1.bf16.msra.mxu1 %v12174_v28 }
 0x1f6   : > { %3344 = vmatprep.subr.bf16.mxu1 %v12182_v29  ;;  %v12251_v29 = vld [vmem:[#allocation5 + $0x404] ss:$16 sps:$4 sm:$0xff]  }
 0x1f7   : > { %3200 = vmatpush1.bf16.msra.mxu0 %v12177_v30 }
 0x1f8   : > { %3201 = vmatprep.subr.bf16.mxu0 %v12185_v31 }
 0x1f9   : > { %3345 = vmatpush1.bf16.msra.mxu1 %v12180_v32  ;;  %v12246_v32 = vld [vmem:[#allocation5 + $0x2e8] ss:$16 sps:$4 sm:$0xff]  }
 0x1fa   : > { %3346 = vmatprep.subr.bf16.mxu1 %v12188_v33 }
 0x1fb   : > { %3202 = vmatpush1.bf16.msra.mxu0 %v12183_v34 }
 0x1fc   : > { %3203 = vmatprep.subr.bf16.mxu0 %v12191_v35  ;;  %v12249_v35 = vld [vmem:[#allocation5 + $0x400] ss:$16 sps:$4 sm:$0xff]  }
 0x1fd   : > { %3347 = vmatpush1.bf16.msra.mxu1 %v12186_v36  ;;  %v12254_v36 = vld [vmem:[#allocation5 + $0x30c] ss:$16 sps:$4 sm:$0xff]  }
 0x1fe   : > { %3348 = vmatprep.subr.bf16.mxu1 %v12194_v37  ;;  %v12257_v37 = vld [vmem:[#allocation5 + $0x424] ss:$16 sps:$4 sm:$0xff]  }
 0x1ff   : > { %3204 = vmatpush1.bf16.msra.mxu0 %v12189_v38  ;;  %v12252_v38 = vld [vmem:[#allocation5 + $0x308] ss:$16 sps:$4 sm:$0xff]  }
 0x200   : > { %3205 = vmatprep.subr.bf16.mxu0 %v12197_v39  ;;  %v12260_v39 = vld [vmem:[#allocation5 + $0x32c] ss:$16 sps:$4 sm:$0xff]  }
 0x201   : > { %3349 = vmatpush1.bf16.msra.mxu1 %v12192_v40  ;;  %v12255_v40 = vld [vmem:[#allocation5 + $0x420] ss:$16 sps:$4 sm:$0xff]  }
 0x202   : > { %3350 = vmatprep.subr.bf16.mxu1 %v12200_v41  ;;  %v12263_v41 = vld [vmem:[#allocation5 + $0x444] ss:$16 sps:$4 sm:$0xff]  }
 0x203   : > { %3206 = vmatpush1.bf16.msra.mxu0 %v12195_v42  ;;  %v12258_v42 = vld [vmem:[#allocation5 + $0x328] ss:$16 sps:$4 sm:$0xff]  }
 0x204   : > { %3207 = vmatprep.subr.bf16.mxu0 %v12203_v5  ;;  %v12266_v5 = vld [vmem:[#allocation5 + $0x34c] ss:$16 sps:$4 sm:$0xff]  }
 0x205   : > { %3351 = vmatpush1.bf16.msra.mxu1 %v12198_v43  ;;  %v12261_v43 = vld [vmem:[#allocation5 + $0x440] ss:$16 sps:$4 sm:$0xff]  }
 0x206   : > { %3363 = vmatprep.subr.bf16.mxu1 %v12206_v44  ;;  %v12269_v44 = vld [vmem:[#allocation5 + $0x464] ss:$16 sps:$4 sm:$0xff]  }
 0x207   : > { %3208 = vmatpush1.bf16.msra.mxu0 %v12201_v45  ;;  %v12264_v45 = vld [vmem:[#allocation5 + $0x348] ss:$16 sps:$4 sm:$0xff]  }
 0x208   : > { %3353 = vmatmul.mubr.bf16.vlgmr.msra.gmra.mrb[16].mxu1 %v13724_v10  ;;  %3209 = vmatprep.subr.bf16.mxu0 %v12209_v46  ;;  %v719_v10 = vrot.slane %v13715_v17, %v13732_v4  ;;  %v12272_v46 = vld [vmem:[#allocation5 + $0x36c] ss:$16 sps:$4 sm:$0xff]  }
 0x209   : > { %3364 = vmatpush1.bf16.msra.mxu1 %v12204_v48  ;;  %v12267_v48 = vld [vmem:[#allocation5 + $0x460] ss:$16 sps:$4 sm:$0xff]  }
 0x20a   : > { %3365 = vmatprep.subr.bf16.mxu1 %v12212_v49  ;;  %v12275_v49 = vld [vmem:[#allocation5 + $0x484] ss:$16 sps:$4 sm:$0xff]  }
 0x20b   : > { %3210 = vmatpush1.bf16.msra.mxu0 %v12207_v50  ;;  %v12270_v50 = vld [vmem:[#allocation5 + $0x368] ss:$16 sps:$4 sm:$0xff]  }
 0x20c   : > { %3211 = vmatprep.subr.bf16.mxu0 %v12215_v53  ;;  %v12278_v53 = vld [vmem:[#allocation5 + $0x38c] ss:$16 sps:$4 sm:$0xff]  }
 0x20d   : > { %3366 = vmatpush1.bf16.msra.mxu1 %v12210_v54  ;;  %v12273_v54 = vld [vmem:[#allocation5 + $0x480] ss:$16 sps:$4 sm:$0xff]  }
 0x20e   : > { %3367 = vmatprep.subr.bf16.mxu1 %v12218_v55  ;;  %v12281_v55 = vld [vmem:[#allocation5 + $0x4a4] ss:$16 sps:$4 sm:$0xff]  }
 0x20f   : > { %3212 = vmatpush1.bf16.msra.mxu0 %v12213_v56  ;;  %v12276_v56 = vld [vmem:[#allocation5 + $0x388] ss:$16 sps:$4 sm:$0xff]  }
 0x210   : > { %3213 = vmatprep.subr.bf16.mxu0 %v12221_v57  ;;  %v12284_v57 = vld [vmem:[#allocation5 + $0x3ac] ss:$16 sps:$4 sm:$0xff]  }
 0x211   : > { %3368 = vmatpush1.bf16.msra.mxu1 %v12216_v58  ;;  %v12279_v58 = vld [vmem:[#allocation5 + $0x4a0] ss:$16 sps:$4 sm:$0xff]  }
 0x212   : > { %3369 = vmatprep.subr.bf16.mxu1 %v12224_v59  ;;  %v12287_v59 = vld [vmem:[#allocation5 + $0x4c4] ss:$16 sps:$4 sm:$0xff]  }
 0x213   : > { %3214 = vmatpush1.bf16.msra.mxu0 %v12219_v60  ;;  %v12282_v60 = vld [vmem:[#allocation5 + $0x3a8] ss:$16 sps:$4 sm:$0xff]  }
 0x214   : > { %3215 = vmatprep.subr.bf16.mxu0 %v12227_v61  ;;  %v12290_v61 = vld [vmem:[#allocation5 + $0x3cc] ss:$16 sps:$4 sm:$0xff]  }
 0x215   : > { %3370 = vmatpush1.bf16.msra.mxu1 %v12222_v62  ;;  %v12285_v62 = vld [vmem:[#allocation5 + $0x4c0] ss:$16 sps:$4 sm:$0xff]  }
 0x216   : > { %3371 = vmatprep.subr.bf16.mxu1 %v12230_v63  ;;  %v12293_v63 = vld [vmem:[#allocation5 + $0x4e4] ss:$16 sps:$4 sm:$0xff]  }
 0x217   : > { %3216 = vmatpush1.bf16.msra.mxu0 %v12225_v0  ;;  %v12288_v0 = vld [vmem:[#allocation5 + $0x3c8] ss:$16 sps:$4 sm:$0xff]  }
 0x218   : > { %3217 = vmatprep.subr.bf16.mxu0 %v12233_v1  ;;  %v12296_v1 = vld [vmem:[#allocation5 + $0x3ec] ss:$16 sps:$4 sm:$0xff]  }
 0x219   : > { %3372 = vmatpush1.bf16.msra.mxu1 %v12228_v3  ;;  %v12291_v3 = vld [vmem:[#allocation5 + $0x4e0] ss:$16 sps:$4 sm:$0xff]  }
 0x21a   : > { %3373 = vmatprep.subr.bf16.mxu1 %v12236_v6  ;;  %v12299_v6 = vld [vmem:[#allocation5 + $0x504] ss:$16 sps:$4 sm:$0xff]  }
 0x21b   : > { %v1471_v13 = vpop.f32.mrb[4].mxu1  ;;  %3218 = vmatpush1.bf16.msra.mxu0 %v12231_v7  ;;  %v12294_v7 = vld [vmem:[#allocation5 + $0x3e8] ss:$16 sps:$4 sm:$0xff]  }
 0x21c   : > { %v1472_v15 = vadd.f32 %v1471_v13, %v715_v8  ;;  %v1473_v16 = vpop.f32.mrb[5].mxu1  ;;  %3219 = vmatprep.subr.bf16.mxu0 %v12239_v9  ;;  %v12297_v9 = vld [vmem:[#allocation5 + $0x500] ss:$16 sps:$4 sm:$0xff]  }
 0x21d   : > { %v1474_v19 = vadd.f32 %v1473_v16, %v719_v10  ;;  %v1475_v20 = vpop.f32.mrb[6].mxu1  ;;  %3374 = vmatpush1.bf16.msra.mxu1 %v12234_v11  ;;  %v12300_v11 = vld [vmem:[#allocation5 + $0x408] ss:$16 sps:$4 sm:$0xff]   ;;  %v12303_v13 = vld [vmem:[#allocation5 + $0x520] ss:$16 sps:$4 sm:$0xff]  }
 0x21e   : > { %v1568_v22 = vmax.f32 %v1472_v15, 0.0  ;;  %v1476_v23 = vadd.f32 %v1475_v20, %v715_v8  ;;  %v1477_v24 = vpop.f32.mrb[7].mxu1  ;;  %3375 = vmatprep.subr.bf16.mxu1 %v12242_v12  ;;  %v12302_v8 = vld [vmem:[#allocation5 + $0x40c] ss:$16 sps:$4 sm:$0xff]   ;;  %v12306_v15 = vld [vmem:[#allocation5 + $0x428] ss:$16 sps:$4 sm:$0xff]  }
 0x21f   : > { %v1478_v26 = vadd.f32 %v1477_v24, %v719_v10  ;;  %3220 = vmatpush1.bf16.msra.mxu0 %v12237_v14  ;;  %v1569_v30 = vmax.f32 %v1474_v19, 0.0  ;;  %v12305_v10 = vld [vmem:[#allocation5 + $0x524] ss:$16 sps:$4 sm:$0xff]   ;;  %v12308_v12 = vld [vmem:[#allocation5 + $0x42c] ss:$16 sps:$4 sm:$0xff]  }
 0x220   : > { %v1576_v28 = vmax.f32 %v1476_v23, 0.0  ;;  %3221 = vmatprep.subr.bf16.mxu0 %v12245_v18  ;;  %v12311_v14 = vld [vmem:[#allocation5 + $0x544] ss:$16 sps:$4 sm:$0xff]   ;;  %v12314_v16 = vld [vmem:[#allocation5 + $0x44c] ss:$16 sps:$4 sm:$0xff]  }
 0x221   : > { %v1577_v31 = vmax.f32 %v1478_v26, 0.0  ;;  %3376 = vmatpush1.bf16.msra.mxu1 %v12240_v21  ;;  %v12309_v18 = vld [vmem:[#allocation5 + $0x540] ss:$16 sps:$4 sm:$0xff]   ;;  %v12317_v19 = vld [vmem:[#allocation5 + $0x564] ss:$16 sps:$4 sm:$0xff]  }
 0x222   : > { %v13738_v33 = vpack.c.bf16 %v1576_v28, %v1568_v22  ;;  %3377 = vmatprep.subr.bf16.mxu1 %v12248_v25  ;;  %v12312_v20 = vld [vmem:[#allocation5 + $0x448] ss:$16 sps:$4 sm:$0xff]   ;;  %v12320_v21 = vld [vmem:[#allocation5 + $0x46c] ss:$16 sps:$4 sm:$0xff]   ;;  %v12315_v22 = vld [vmem:[#allocation5 + $0x560] ss:$16 sps:$4 sm:$0xff]  }
 0x223   : > { %v1585_v34 = vpack.c.bf16 %v1577_v31, %v1569_v30  ;;  %3222 = vmatpush1.bf16.msra.mxu0 %v12243_v27  ;;  %v12323_v23 = vld [vmem:[#allocation5 + $0x584] ss:$16 sps:$4 sm:$0xff]   ;;  %v12318_v24 = vld [vmem:[#allocation5 + $0x468] ss:$16 sps:$4 sm:$0xff]   ;;  %v12326_v25 = vld [vmem:[#allocation5 + $0x48c] ss:$16 sps:$4 sm:$0xff]  }
 0x224   : > { %3234 = vmatprep.subr.bf16.mxu0 %v12251_v29  ;;  %v12321_v26 = vld [vmem:[#allocation5 + $0x580] ss:$16 sps:$4 sm:$0xff]   ;;  %v12329_v27 = vld [vmem:[#allocation5 + $0x5a4] ss:$16 sps:$4 sm:$0xff]   ;;  %v13743_v28 = vsub.s32 4, %v13707_v47  ;;  %v13746_v30 = vsub.s32 5, %v13707_v47 }
 0x225   : > { %3223 = vmatprep.mubr.bf16.mxu0 %v1585_v34  ;;  %3378 = vmatpush1.bf16.msra.mxu1 %v12246_v32  ;;  %v12324_v29 = vld [vmem:[#allocation5 + $0x488] ss:$16 sps:$4 sm:$0xff]   ;;  %v12332_v31 = vld [vmem:[#allocation5 + $0x4ac] ss:$16 sps:$4 sm:$0xff]   ;;  %v12327_v32 = vld [vmem:[#allocation5 + $0x5a0] ss:$16 sps:$4 sm:$0xff]  }
 0x226   : > { %3395 = vmatprep.mubr.bf16.mxu1 %v1585_v34  ;;  %3224 = vmatmul.mubr.bf16.vlgmr.msra.gmra.mrb[0].mxu0 %v13738_v33  ;;  %v12335_v34 = vld [vmem:[#allocation5 + $0x5c4] ss:$16 sps:$4 sm:$0xff]  }
 0x227   : > { %3235 = vmatpush1.bf16.msra.mxu0 %v12249_v35  ;;  %3379 = vmatprep.subr.bf16.mxu1 %v12254_v36  ;;  %v727_v35 = vrot.slane %v13715_v17, %v13746_v30  ;;  %v12330_v36 = vld [vmem:[#allocation5 + $0x4a8] ss:$16 sps:$4 sm:$0xff]  }
 0x228   : > { %3236 = vmatprep.subr.bf16.mxu0 %v12257_v37  ;;  %v12338_v37 = vld [vmem:[#allocation5 + $0x4cc] ss:$16 sps:$4 sm:$0xff]  }
 0x229   : > { %3380 = vmatpush1.bf16.msra.mxu1 %v12252_v38 }
 0x22a   : > { %3381 = vmatprep.subr.bf16.mxu1 %v12260_v39  ;;  %v12333_v39 = vld [vmem:[#allocation5 + $0x5c0] ss:$16 sps:$4 sm:$0xff]  }
 0x22b   : > { %3237 = vmatpush1.bf16.msra.mxu0 %v12255_v40 }
 0x22c   : > { %3238 = vmatprep.subr.bf16.mxu0 %v12263_v41 }
 0x22d   : > { %3382 = vmatpush1.bf16.msra.mxu1 %v12258_v42  ;;  %v12341_v42 = vld [vmem:[#allocation5 + $0x5e4] ss:$16 sps:$4 sm:$0xff]  }
 0x22e   : > { %3383 = vmatprep.subr.bf16.mxu1 %v12266_v5 }
 0x22f   : > { %3239 = vmatpush1.bf16.msra.mxu0 %v12261_v43 }
 0x230   : > { %3240 = vmatprep.subr.bf16.mxu0 %v12269_v44  ;;  %v12336_v44 = vld [vmem:[#allocation5 + $0x4c8] ss:$16 sps:$4 sm:$0xff]  }
 0x231   : > { %3384 = vmatpush1.bf16.msra.mxu1 %v12264_v45 }
 0x232   : > { %3385 = vmatprep.subr.bf16.mxu1 %v12272_v46 }
 0x233   : > { %3241 = vmatpush1.bf16.msra.mxu0 %v12267_v48 }
 0x234   : > { %3242 = vmatprep.subr.bf16.mxu0 %v12275_v49  ;;  %v12344_v49 = vld [vmem:[#allocation5 + $0x4ec] ss:$16 sps:$4 sm:$0xff]  }
 0x235   : > { %3386 = vmatpush1.bf16.msra.mxu1 %v12270_v50  ;;  %v12339_v50 = vld [vmem:[#allocation5 + $0x5e0] ss:$16 sps:$4 sm:$0xff]  }
 0x236   : > { %3387 = vmatprep.subr.bf16.mxu1 %v12278_v53 }
 0x237   : > { %3243 = vmatpush1.bf16.msra.mxu0 %v12273_v54  ;;  %v12347_v54 = vld [vmem:[#allocation5 + $0x604] ss:$16 sps:$4 sm:$0xff]  }
 0x238   : > { %3244 = vmatprep.subr.bf16.mxu0 %v12281_v55 }
 0x239   : > { %3388 = vmatpush1.bf16.msra.mxu1 %v12276_v56 }
 0x23a   : > { %3389 = vmatprep.subr.bf16.mxu1 %v12284_v57  ;;  %v12342_v57 = vld [vmem:[#allocation5 + $0x4e8] ss:$16 sps:$4 sm:$0xff]  }
 0x23b   : > { %3245 = vmatpush1.bf16.msra.mxu0 %v12279_v58 }
 0x23c   : > { %3246 = vmatprep.subr.bf16.mxu0 %v12287_v59 }
 0x23d   : > { %3390 = vmatpush1.bf16.msra.mxu1 %v12282_v60  ;;  %v12345_v60 = vld [vmem:[#allocation5 + $0x600] ss:$16 sps:$4 sm:$0xff]  }
 0x23e   : > { %3391 = vmatprep.subr.bf16.mxu1 %v12290_v61  ;;  %v12350_v61 = vld [vmem:[#allocation5 + $0x50c] ss:$16 sps:$4 sm:$0xff]  }
 0x23f   : > { %3247 = vmatpush1.bf16.msra.mxu0 %v12285_v62  ;;  %v12353_v62 = vld [vmem:[#allocation5 + $0x624] ss:$16 sps:$4 sm:$0xff]  }
 0x240   : > { %3248 = vmatprep.subr.bf16.mxu0 %v12293_v63  ;;  %v12348_v63 = vld [vmem:[#allocation5 + $0x508] ss:$16 sps:$4 sm:$0xff]  }
 0x241   : > { %3392 = vmatpush1.bf16.msra.mxu1 %v12288_v0  ;;  %v12356_v0 = vld [vmem:[#allocation5 + $0x52c] ss:$16 sps:$4 sm:$0xff]  }
 0x242   : > { %3393 = vmatprep.subr.bf16.mxu1 %v12296_v1  ;;  %v12351_v1 = vld [vmem:[#allocation5 + $0x620] ss:$16 sps:$4 sm:$0xff]  }
 0x243   : > { %3249 = vmatpush1.bf16.msra.mxu0 %v12291_v3  ;;  %v12359_v3 = vld [vmem:[#allocation5 + $0x644] ss:$16 sps:$4 sm:$0xff]  }
 0x244   : > { %3250 = vmatprep.subr.bf16.mxu0 %v12299_v6  ;;  %v12354_v6 = vld [vmem:[#allocation5 + $0x528] ss:$16 sps:$4 sm:$0xff]  }
 0x245   : > { %3394 = vmatpush1.bf16.msra.mxu1 %v12294_v7  ;;  %v12362_v7 = vld [vmem:[#allocation5 + $0x54c] ss:$16 sps:$4 sm:$0xff]  }
 0x246   : > { %3406 = vmatprep.subr.bf16.mxu1 %v12302_v8  ;;  %v12357_v8 = vld [vmem:[#allocation5 + $0x640] ss:$16 sps:$4 sm:$0xff]  }
 0x247   : > { %3251 = vmatpush1.bf16.msra.mxu0 %v12297_v9  ;;  %v12365_v9 = vld [vmem:[#allocation5 + $0x664] ss:$16 sps:$4 sm:$0xff]  }
 0x248   : > { %3396 = vmatmul.mubr.bf16.vlgmr.msra.gmra.mrb[16].mxu1 %v13738_v33  ;;  %3252 = vmatprep.subr.bf16.mxu0 %v12305_v10  ;;  %v723_v33 = vrot.slane %v13715_v17, %v13743_v28  ;;  %v12360_v10 = vld [vmem:[#allocation5 + $0x548] ss:$16 sps:$4 sm:$0xff]  }
 0x249   : > { %3407 = vmatpush1.bf16.msra.mxu1 %v12300_v11  ;;  %v12368_v11 = vld [vmem:[#allocation5 + $0x56c] ss:$16 sps:$4 sm:$0xff]  }
 0x24a   : > { %3408 = vmatprep.subr.bf16.mxu1 %v12308_v12  ;;  %v12363_v12 = vld [vmem:[#allocation5 + $0x660] ss:$16 sps:$4 sm:$0xff]  }
 0x24b   : > { %3253 = vmatpush1.bf16.msra.mxu0 %v12303_v13  ;;  %v12371_v13 = vld [vmem:[#allocation5 + $0x684] ss:$16 sps:$4 sm:$0xff]  }
 0x24c   : > { %3254 = vmatprep.subr.bf16.mxu0 %v12311_v14  ;;  %v12366_v14 = vld [vmem:[#allocation5 + $0x568] ss:$16 sps:$4 sm:$0xff]  }
 0x24d   : > { %3409 = vmatpush1.bf16.msra.mxu1 %v12306_v15  ;;  %v12374_v15 = vld [vmem:[#allocation5 + $0x58c] ss:$16 sps:$4 sm:$0xff]  }
 0x24e   : > { %3410 = vmatprep.subr.bf16.mxu1 %v12314_v16  ;;  %v12369_v16 = vld [vmem:[#allocation5 + $0x680] ss:$16 sps:$4 sm:$0xff]  }
 0x24f   : > { %3255 = vmatpush1.bf16.msra.mxu0 %v12309_v18  ;;  %v12377_v18 = vld [vmem:[#allocation5 + $0x6a4] ss:$16 sps:$4 sm:$0xff]  }
 0x250   : > { %3256 = vmatprep.subr.bf16.mxu0 %v12317_v19  ;;  %v12372_v19 = vld [vmem:[#allocation5 + $0x588] ss:$16 sps:$4 sm:$0xff]  }
 0x251   : > { %3411 = vmatpush1.bf16.msra.mxu1 %v12312_v20  ;;  %v12380_v20 = vld [vmem:[#allocation5 + $0x5ac] ss:$16 sps:$4 sm:$0xff]  }
 0x252   : > { %3412 = vmatprep.subr.bf16.mxu1 %v12320_v21  ;;  %v12375_v21 = vld [vmem:[#allocation5 + $0x6a0] ss:$16 sps:$4 sm:$0xff]  }
 0x253   : > { %3257 = vmatpush1.bf16.msra.mxu0 %v12315_v22  ;;  %v12383_v22 = vld [vmem:[#allocation5 + $0x6c4] ss:$16 sps:$4 sm:$0xff]  }
 0x254   : > { %3258 = vmatprep.subr.bf16.mxu0 %v12323_v23  ;;  %v12378_v23 = vld [vmem:[#allocation5 + $0x5a8] ss:$16 sps:$4 sm:$0xff]  }
 0x255   : > { %3413 = vmatpush1.bf16.msra.mxu1 %v12318_v24  ;;  %v12386_v24 = vld [vmem:[#allocation5 + $0x5cc] ss:$16 sps:$4 sm:$0xff]  }
 0x256   : > { %3414 = vmatprep.subr.bf16.mxu1 %v12326_v25  ;;  %v12381_v25 = vld [vmem:[#allocation5 + $0x6c0] ss:$16 sps:$4 sm:$0xff]  }
 0x257   : > { %3259 = vmatpush1.bf16.msra.mxu0 %v12321_v26  ;;  %v12389_v26 = vld [vmem:[#allocation5 + $0x6e4] ss:$16 sps:$4 sm:$0xff]  }
 0x258   : > { %3260 = vmatprep.subr.bf16.mxu0 %v12329_v27  ;;  %v12384_v27 = vld [vmem:[#allocation5 + $0x5c8] ss:$16 sps:$4 sm:$0xff]  }
 0x259   : > { %3415 = vmatpush1.bf16.msra.mxu1 %v12324_v29  ;;  %v12392_v29 = vld [vmem:[#allocation5 + $0x5ec] ss:$16 sps:$4 sm:$0xff]  }
 0x25a   : > { %3416 = vmatprep.subr.bf16.mxu1 %v12332_v31  ;;  %v12387_v31 = vld [vmem:[#allocation5 + $0x6e0] ss:$16 sps:$4 sm:$0xff]  }
 0x25b   : > { %v1514_v38 = vpop.f32.mrb[8].mxu1  ;;  %3261 = vmatpush1.bf16.msra.mxu0 %v12327_v32  ;;  %v12395_v32 = vld [vmem:[#allocation5 + $0x704] ss:$16 sps:$4 sm:$0xff]  }
 0x25c   : > { %v1515_v40 = vadd.f32 %v1514_v38, %v723_v33  ;;  %v1516_v41 = vpop.f32.mrb[9].mxu1  ;;  %3262 = vmatprep.subr.bf16.mxu0 %v12335_v34  ;;  %v12398_v34 = vld [vmem:[#allocation5 + $0x60c] ss:$16 sps:$4 sm:$0xff]  }
 0x25d   : > { %v1517_v5 = vadd.f32 %v1516_v41, %v727_v35  ;;  %v1518_v43 = vpop.f32.mrb[10].mxu1  ;;  %3417 = vmatpush1.bf16.msra.mxu1 %v12330_v36  ;;  %v12401_v36 = vld [vmem:[#allocation5 + $0x724] ss:$16 sps:$4 sm:$0xff]   ;;  %v12404_v38 = vld [vmem:[#allocation5 + $0x62c] ss:$16 sps:$4 sm:$0xff]  }
 0x25e   : > { %v1570_v45 = vmax.f32 %v1515_v40, 0.0  ;;  %v1519_v46 = vadd.f32 %v1518_v43, %v723_v33  ;;  %v1520_v48 = vpop.f32.mrb[11].mxu1  ;;  %3418 = vmatprep.subr.bf16.mxu1 %v12338_v37  ;;  %v12390_v33 = vld [vmem:[#allocation5 + $0x5e8] ss:$16 sps:$4 sm:$0xff]   ;;  %v12407_v40 = vld [vmem:[#allocation5 + $0x744] ss:$16 sps:$4 sm:$0xff]  }
 0x25f   : > { %v1521_v17 = vadd.f32 %v1520_v48, %v727_v35  ;;  %3263 = vmatpush1.bf16.msra.mxu0 %v12333_v39  ;;  %v1571_v55 = vmax.f32 %v1517_v5, 0.0  ;;  %v12393_v35 = vld [vmem:[#allocation5 + $0x700] ss:$16 sps:$4 sm:$0xff]   ;;  %v12396_v37 = vld [vmem:[#allocation5 + $0x608] ss:$16 sps:$4 sm:$0xff]  }
 0x260   : > { %v1578_v53 = vmax.f32 %v1519_v46, 0.0  ;;  %3264 = vmatprep.subr.bf16.mxu0 %v12341_v42  ;;  %v12399_v39 = vld [vmem:[#allocation5 + $0x720] ss:$16 sps:$4 sm:$0xff]   ;;  %v12402_v41 = vld [vmem:[#allocation5 + $0x628] ss:$16 sps:$4 sm:$0xff]  }
 0x261   : > { %v1579_v56 = vmax.f32 %v1521_v17, 0.0  ;;  %3419 = vmatpush1.bf16.msra.mxu1 %v12336_v44  ;;  %v12410_v42 = vld [vmem:[#allocation5 + $0x64c] ss:$16 sps:$4 sm:$0xff]   ;;  %v12405_v5 = vld [vmem:[#allocation5 + $0x740] ss:$16 sps:$4 sm:$0xff]  }
 0x262   : > { %v13752_v58 = vpack.c.bf16 %v1578_v53, %v1570_v45  ;;  %3420 = vmatprep.subr.bf16.mxu1 %v12344_v49  ;;  %v12413_v43 = vld [vmem:[#allocation5 + $0x764] ss:$16 sps:$4 sm:$0xff]   ;;  %v12408_v44 = vld [vmem:[#allocation5 + $0x648] ss:$16 sps:$4 sm:$0xff]   ;;  %v12416_v45 = vld [vmem:[#allocation5 + $0x66c] ss:$16 sps:$4 sm:$0xff]  }
 0x263   : > { %v1587_v59 = vpack.c.bf16 %v1579_v56, %v1571_v55  ;;  %3265 = vmatpush1.bf16.msra.mxu0 %v12339_v50  ;;  %v12411_v46 = vld [vmem:[#allocation5 + $0x760] ss:$16 sps:$4 sm:$0xff]   ;;  %v12419_v48 = vld [vmem:[#allocation5 + $0x784] ss:$16 sps:$4 sm:$0xff]   ;;  %v12414_v49 = vld [vmem:[#allocation5 + $0x668] ss:$16 sps:$4 sm:$0xff]  }
 0x264   : > { %3277 = vmatprep.subr.bf16.mxu0 %v12347_v54  ;;  %v12422_v17 = vld [vmem:[#allocation5 + $0x68c] ss:$16 sps:$4 sm:$0xff]   ;;  %v12417_v50 = vld [vmem:[#allocation5 + $0x780] ss:$16 sps:$4 sm:$0xff]   ;;  %v12425_v53 = vld [vmem:[#allocation5 + $0x7a4] ss:$16 sps:$4 sm:$0xff]  }
 0x265   : > { %3266 = vmatprep.mubr.bf16.mxu0 %v1587_v59  ;;  %3421 = vmatpush1.bf16.msra.mxu1 %v12342_v57  ;;  %v13757_v54 = vsub.s32 6, %v13707_v47  ;;  %v12420_v55 = vld [vmem:[#allocation5 + $0x688] ss:$16 sps:$4 sm:$0xff]   ;;  %v13760_v56 = vsub.s32 7, %v13707_v47  ;;  %v12428_v57 = vld [vmem:[#allocation5 + $0x6ac] ss:$16 sps:$4 sm:$0xff]  }
 0x266   : > { %3438 = vmatprep.mubr.bf16.mxu1 %v1587_v59  ;;  %3267 = vmatmul.mubr.bf16.vlgmr.msra.gmra.mrb[0].mxu0 %v13752_v58  ;;  %v13091_v59 = vld [vmem:[%s14007_s2] sm:$0xff] }
 0x267   : > { %3278 = vmatpush1.bf16.msra.mxu0 %v12345_v60  ;;  %3422 = vmatprep.subr.bf16.mxu1 %v12350_v61  ;;  %v731_v60 = vrot.slane %v13091_v59, %v13757_v54  ;;  %v12431_v61 = vld [vmem:[#allocation5 + $0x7c4] ss:$16 sps:$4 sm:$0xff]  }
 0x268   : > { %3279 = vmatprep.subr.bf16.mxu0 %v12353_v62  ;;  %v735_v62 = vrot.slane %v13091_v59, %v13760_v56 }
 0x269   : > { %3423 = vmatpush1.bf16.msra.mxu1 %v12348_v63  ;;  %v12426_v63 = vld [vmem:[#allocation5 + $0x6a8] ss:$16 sps:$4 sm:$0xff]  }
 0x26a   : > { %3424 = vmatprep.subr.bf16.mxu1 %v12356_v0  ;;  %v12434_v0 = vld [vmem:[#allocation5 + $0x6cc] ss:$16 sps:$4 sm:$0xff]  }
 0x26b   : > { %3280 = vmatpush1.bf16.msra.mxu0 %v12351_v1  ;;  %v12429_v1 = vld [vmem:[#allocation5 + $0x7c0] ss:$16 sps:$4 sm:$0xff]  }
 0x26c   : > { %3281 = vmatprep.subr.bf16.mxu0 %v12359_v3 }
 0x26d   : > { %3425 = vmatpush1.bf16.msra.mxu1 %v12354_v6 }
 0x26e   : > { %3426 = vmatprep.subr.bf16.mxu1 %v12362_v7  ;;  %v12437_v7 = vld [vmem:[#allocation5 + $0x7e4] ss:$16 sps:$4 sm:$0xff]  }
 0x26f   : > { %3282 = vmatpush1.bf16.msra.mxu0 %v12357_v8 }
 0x270   : > { %3283 = vmatprep.subr.bf16.mxu0 %v12365_v9 }
 0x271   : > { %3427 = vmatpush1.bf16.msra.mxu1 %v12360_v10  ;;  %v12432_v10 = vld [vmem:[#allocation5 + $0x6c8] ss:$16 sps:$4 sm:$0xff]  }
 0x272   : > { %3428 = vmatprep.subr.bf16.mxu1 %v12368_v11  ;;  %v3504_v11 = vld [vmem:[#allocation7] sm:$0xff] }
 0x273   : > { %3284 = vmatpush1.bf16.msra.mxu0 %v12363_v12  ;;  %v3508_v12 = vld [vmem:[#allocation7 + $0x20] sm:$0xff] }
 0x274   : > { %3285 = vmatprep.subr.bf16.mxu0 %v12371_v13 }
 0x275   : > { %3429 = vmatpush1.bf16.msra.mxu1 %v12366_v14 }
 0x276   : > { %3430 = vmatprep.subr.bf16.mxu1 %v12374_v15  ;;  %v12440_v15 = vld [vmem:[#allocation5 + $0x6ec] ss:$16 sps:$4 sm:$0xff]  }
 0x277   : > { %3286 = vmatpush1.bf16.msra.mxu0 %v12369_v16 }
 0x278   : > { %3287 = vmatprep.subr.bf16.mxu0 %v12377_v18  ;;  %v12435_v18 = vld [vmem:[#allocation5 + $0x7e0] ss:$16 sps:$4 sm:$0xff]  }
 0x279   : > { %3431 = vmatpush1.bf16.msra.mxu1 %v12372_v19 }
 0x27a   : > { %3432 = vmatprep.subr.bf16.mxu1 %v12380_v20 }
 0x27b   : > { %3288 = vmatpush1.bf16.msra.mxu0 %v12375_v21  ;;  %v10905_v21 = vcombine.high %v3504_v11, %v3508_v12 }
 0x27c   : > { %3289 = vmatprep.subr.bf16.mxu0 %v12383_v22 }
 0x27d   : > { %3433 = vmatpush1.bf16.msra.mxu1 %v12378_v23 }
 0x27e   : > { %3434 = vmatprep.subr.bf16.mxu1 %v12386_v24  ;;  %v12438_v24 = vld [vmem:[#allocation5 + $0x6e8] ss:$16 sps:$4 sm:$0xff]  }
 0x27f   : > { %3290 = vmatpush1.bf16.msra.mxu0 %v12381_v25  ;;  %v3512_v25 = vld [vmem:[#allocation7 + $0x40] sm:$0xff] }
 0x280   : > { %3291 = vmatprep.subr.bf16.mxu0 %v12389_v26  ;;  %v3516_v26 = vld [vmem:[#allocation7 + $0x60] sm:$0xff] }
 0x281   : > { %3435 = vmatpush1.bf16.msra.mxu1 %v12384_v27 }
 0x282   : > { %3436 = vmatprep.subr.bf16.mxu1 %v12392_v29 }
 0x283   : > { %3292 = vmatpush1.bf16.msra.mxu0 %v12387_v31  ;;  %v12443_v31 = vld [vmem:[#allocation5 + $0x70c] ss:$16 sps:$4 sm:$0xff]  }
 0x284   : > { %3293 = vmatprep.subr.bf16.mxu0 %v12395_v32  ;;  %v10904_v32 = vcombine.low %v3504_v11, %v3508_v12  ;;  %v12459_v11 = vld [vmem:[#allocation5 + $0x7c8] ss:$16 sps:$4 sm:$0xff]   ;;  %v3568_v12 = vld [vmem:[#allocation7 + $0x200] sm:$0xff] }
 0x285   : > { %3437 = vmatpush1.bf16.msra.mxu1 %v12390_v33  ;;  %v10913_v33 = vcombine.high %v3512_v25, %v3516_v26 }
 0x286   : > { %3449 = vmatprep.subr.bf16.mxu1 %v12398_v34  ;;  %v12441_v34 = vld [vmem:[#allocation5 + $0x708] ss:$16 sps:$4 sm:$0xff]  }
 0x287   : > { %3294 = vmatpush1.bf16.msra.mxu0 %v12393_v35  ;;  %v3520_v35 = vld [vmem:[#allocation7 + $0x80] sm:$0xff] }
 0x288   : > { %3439 = vmatmul.mubr.bf16.vlgmr.msra.gmra.mrb[16].mxu1 %v13752_v58  ;;  %3295 = vmatprep.subr.bf16.mxu0 %v12401_v36  ;;  %v12423_v58 = vld [vmem:[#allocation5 + $0x7a0] ss:$16 sps:$4 sm:$0xff]  }
 0x289   : > { %3450 = vmatpush1.bf16.msra.mxu1 %v12396_v37  ;;  %v3524_v36 = vld [vmem:[#allocation7 + $0xa0] sm:$0xff]  ;;  %v12446_v37 = vld [vmem:[#allocation5 + $0x72c] ss:$16 sps:$4 sm:$0xff]  }
 0x28a   : > { %3451 = vmatprep.subr.bf16.mxu1 %v12404_v38  ;;  %v10912_v38 = vcombine.low %v3512_v25, %v3516_v26  ;;  %v3517_v25 = vld [vmem:[#allocation7 + $0x68] sm:$0xff] }
 0x28b   : > { %3296 = vmatpush1.bf16.msra.mxu0 %v12399_v39  ;;  %v10921_v39 = vcombine.high %v3520_v35, %v3524_v36 }
 0x28c   : > { %3297 = vmatprep.subr.bf16.mxu0 %v12407_v40  ;;  %v12444_v40 = vld [vmem:[#allocation5 + $0x728] ss:$16 sps:$4 sm:$0xff]  }
 0x28d   : > { %3452 = vmatpush1.bf16.msra.mxu1 %v12402_v41  ;;  %v3528_v41 = vld [vmem:[#allocation7 + $0xc0] sm:$0xff] }
 0x28e   : > { %3453 = vmatprep.subr.bf16.mxu1 %v12410_v42  ;;  %v3532_v42 = vld [vmem:[#allocation7 + $0xe0] sm:$0xff] }
 0x28f   : > { %3298 = vmatpush1.bf16.msra.mxu0 %v12405_v5  ;;  %v12449_v5 = vld [vmem:[#allocation5 + $0x74c] ss:$16 sps:$4 sm:$0xff]  }
 0x290   : > { %3299 = vmatprep.subr.bf16.mxu0 %v12413_v43  ;;  %v10920_v43 = vcombine.low %v3520_v35, %v3524_v36  ;;  %v3521_v35 = vld [vmem:[#allocation7 + $0x88] sm:$0xff] }
 0x291   : > { %3454 = vmatpush1.bf16.msra.mxu1 %v12408_v44  ;;  %v10929_v44 = vcombine.high %v3528_v41, %v3532_v42  ;;  %v3525_v36 = vld [vmem:[#allocation7 + $0xa8] sm:$0xff] }
 0x292   : > { %3455 = vmatprep.subr.bf16.mxu1 %v12416_v45  ;;  %v12447_v45 = vld [vmem:[#allocation5 + $0x748] ss:$16 sps:$4 sm:$0xff]  }
 0x293   : > { %3300 = vmatpush1.bf16.msra.mxu0 %v12411_v46  ;;  %v3536_v46 = vld [vmem:[#allocation7 + $0x100] sm:$0xff] }
 0x294   : > { %3301 = vmatprep.subr.bf16.mxu0 %v12419_v48  ;;  %v3540_v48 = vld [vmem:[#allocation7 + $0x120] sm:$0xff] }
 0x295   : > { %3456 = vmatpush1.bf16.msra.mxu1 %v12414_v49  ;;  %v12452_v49 = vld [vmem:[#allocation5 + $0x76c] ss:$16 sps:$4 sm:$0xff]   ;;  %v10936_v59 = vcombine.low %v3536_v46, %v3540_v48 }
 0x296   : > { %3457 = vmatprep.subr.bf16.mxu1 %v12422_v17  ;;  %v10928_v17 = vcombine.low %v3528_v41, %v3532_v42  ;;  %v3596_v41 = vld [vmem:[#allocation7 + $0x2e0] sm:$0xff]  ;;  %v10923_v42 = vcombine.high %v3521_v35, %v3525_v36 }
 0x297   : > { %3302 = vmatpush1.bf16.msra.mxu0 %v12417_v50  ;;  %v10937_v50 = vcombine.high %v3536_v46, %v3540_v48  ;;  %v10922_v46 = vcombine.low %v3521_v35, %v3525_v36  ;;  %v3600_v48 = vld [vmem:[#allocation7 + $0x300] sm:$0xff]  ;;  %v3605_v35 = vld [vmem:[#allocation7 + $0x328] sm:$0xff] }
 0x298   : > { %3303 = vmatprep.subr.bf16.mxu0 %v12425_v53  ;;  %v12450_v53 = vld [vmem:[#allocation5 + $0x768] ss:$16 sps:$4 sm:$0xff]  }
 0x299   : > { %3458 = vmatpush1.bf16.msra.mxu1 %v12420_v55  ;;  %v3544_v55 = vld [vmem:[#allocation7 + $0x140] sm:$0xff] }
 0x29a   : > { %3459 = vmatprep.subr.bf16.mxu1 %v12428_v57  ;;  %v3548_v57 = vld [vmem:[#allocation7 + $0x160] sm:$0xff] }
 0x29b   : > { %v1557_v47 = vpop.f32.mrb[12].mxu1  ;;  %3304 = vmatpush1.bf16.msra.mxu0 %v12423_v58  ;;  %v12455_v58 = vld [vmem:[#allocation5 + $0x78c] ss:$16 sps:$4 sm:$0xff]  }
 0x29c   : > { %v1558_v3 = vadd.f32 %v1557_v47, %v731_v60  ;;  %v1559_v6 = vpop.f32.mrb[13].mxu1  ;;  %3305 = vmatprep.subr.bf16.mxu0 %v12431_v61  ;;  %v12453_v61 = vld [vmem:[#allocation5 + $0x788] ss:$16 sps:$4 sm:$0xff]   ;;  %v10944_v47 = vcombine.low %v3544_v55, %v3548_v57 }
 0x29d   : > { %v1560_v8 = vadd.f32 %v1559_v6, %v735_v62  ;;  %v1561_v9 = vpop.f32.mrb[14].mxu1  ;;  %3460 = vmatpush1.bf16.msra.mxu1 %v12426_v63  ;;  %v3556_v63 = vld [vmem:[#allocation7 + $0x1a0] sm:$0xff] }
 0x29e   : > { %v1562_v13 = vadd.f32 %v1561_v9, %v731_v60  ;;  %v1563_v14 = vpop.f32.mrb[15].mxu1  ;;  %3461 = vmatprep.subr.bf16.mxu1 %v12434_v0  ;;  %v1572_v19 = vmax.f32 %v1558_v3, 0.0  ;;  %v10945_v60 = vcombine.high %v3544_v55, %v3548_v57  ;;  %v12458_v0 = vld [vmem:[#allocation5 + $0x7ac] ss:$16 sps:$4 sm:$0xff]   ;;  %v12456_v3 = vld [vmem:[#allocation5 + $0x7a8] ss:$16 sps:$4 sm:$0xff]  }
 0x29f   : > { %v1564_v16 = vadd.f32 %v1563_v14, %v735_v62  ;;  %3306 = vmatpush1.bf16.msra.mxu0 %v12429_v1  ;;  %v1573_v22 = vmax.f32 %v1560_v8, 0.0  ;;  %v3552_v62 = vld [vmem:[#allocation7 + $0x180] sm:$0xff]  ;;  %v12461_v8 = vld [vmem:[#allocation5 + $0x7cc] ss:$16 sps:$4 sm:$0xff]  }
 0x2a0   : > { %v1580_v20 = vmax.f32 %v1562_v13, 0.0  ;;  %3307 = vmatprep.subr.bf16.mxu0 %v12437_v7  ;;  %v10953_v1 = vcombine.high %v3552_v62, %v3556_v63  ;;  %v3560_v6 = vld [vmem:[#allocation7 + $0x1c0] sm:$0xff]  ;;  %v10952_v9 = vcombine.low %v3552_v62, %v3556_v63  ;;  %v12464_v14 = vld [vmem:[#allocation5 + $0x7ec] ss:$16 sps:$4 sm:$0xff]  }
 0x2a1   : > { %v1581_v23 = vmax.f32 %v1564_v16, 0.0  ;;  %3462 = vmatpush1.bf16.msra.mxu1 %v12432_v10  ;;  %v3564_v7 = vld [vmem:[#allocation7 + $0x1e0] sm:$0xff]  ;;  %v3509_v16 = vld [vmem:[#allocation7 + $0x28] sm:$0xff] }
 0x2a2   : > { %v13767_v27 = vpack.c.bf16 %v1580_v20, %v1572_v19  ;;  %3463 = vmatprep.subr.bf16.mxu1 %v12440_v15  ;;  %v10961_v10 = vcombine.high %v3560_v6, %v3564_v7  ;;  %v3572_v13 = vld [vmem:[#allocation7 + $0x220] sm:$0xff]  ;;  %v3505_v15 = vld [vmem:[#allocation7 + $0x8] sm:$0xff] }
 0x2a3   : > { %v1589_v29 = vpack.c.bf16 %v1581_v23, %v1573_v22  ;;  %3308 = vmatpush1.bf16.msra.mxu0 %v12435_v18  ;;  %v10960_v18 = vcombine.low %v3560_v6, %v3564_v7  ;;  %v10969_v19 = vcombine.high %v3568_v12, %v3572_v13  ;;  %v12462_v20 = vld [vmem:[#allocation5 + $0x7e8] ss:$16 sps:$4 sm:$0xff]   ;;  %v3580_v22 = vld [vmem:[#allocation7 + $0x260] sm:$0xff]  ;;  %v10907_v23 = vcombine.high %v3505_v15, %v3509_v16 }
 0x2a4   : > { %5082 = vmatprep.subr.bf16.mxu0 %v10905_v21  ;;  %v3576_v21 = vld [vmem:[#allocation7 + $0x240] sm:$0xff]  ;;  %v10968_v26 = vcombine.low %v3568_v12, %v3572_v13  ;;  %v3549_v62 = vld [vmem:[#allocation7 + $0x168] sm:$0xff] }
 0x2a5   : > { %3309 = vmatprep.mubr.bf16.mxu0 %v1589_v29  ;;  %3464 = vmatpush1.bf16.msra.mxu1 %v12438_v24  ;;  %v3513_v24 = vld [vmem:[#allocation7 + $0x48] sm:$0xff] }
 0x2a6   : > { %3481 = vmatprep.mubr.bf16.mxu1 %v1589_v29  ;;  %3310 = vmatmul.mubr.bf16.vlgmr.msra.gmra.mrb[0].mxu0 %v13767_v27  ;;  %v10977_v29 = vcombine.high %v3576_v21, %v3580_v22  ;;  %v3557_v6 = vld [vmem:[#allocation7 + $0x1a8] sm:$0xff] }
 0x2a7   : > { %3465 = vmatprep.subr.bf16.mxu1 %v12443_v31  ;;  %5083 = vmatpush1.bf16.msra.mxu0 %v10904_v32  ;;  %v10906_v31 = vcombine.low %v3505_v15, %v3509_v16  ;;  %v3584_v32 = vld [vmem:[#allocation7 + $0x280] sm:$0xff]  ;;  %v3573_v15 = vld [vmem:[#allocation7 + $0x228] sm:$0xff] }
 0x2a8   : > { %5084 = vmatprep.subr.bf16.mxu0 %v10913_v33  ;;  %v3588_v33 = vld [vmem:[#allocation7 + $0x2a0] sm:$0xff] }
 0x2a9   : > { %3466 = vmatpush1.bf16.msra.mxu1 %v12441_v34  ;;  %v10915_v34 = vcombine.high %v3513_v24, %v3517_v25 }
 0x2aa   : > { %3467 = vmatprep.subr.bf16.mxu1 %v12446_v37  ;;  %v10976_v37 = vcombine.low %v3576_v21, %v3580_v22 }
 0x2ab   : > { %5085 = vmatpush1.bf16.msra.mxu0 %v10912_v38  ;;  %v10985_v38 = vcombine.high %v3584_v32, %v3588_v33 }
 0x2ac   : > { %5086 = vmatprep.subr.bf16.mxu0 %v10921_v39  ;;  %v10914_v39 = vcombine.low %v3513_v24, %v3517_v25  ;;  %v3589_v24 = vld [vmem:[#allocation7 + $0x2a8] sm:$0xff] }
 0x2ad   : > { %3468 = vmatpush1.bf16.msra.mxu1 %v12444_v40  ;;  %v3592_v40 = vld [vmem:[#allocation7 + $0x2c0] sm:$0xff] }
 0x2ae   : > { %3469 = vmatprep.subr.bf16.mxu1 %v12449_v5  ;;  %v3529_v5 = vld [vmem:[#allocation7 + $0xc8] sm:$0xff] }
 0x2af   : > { %5087 = vmatpush1.bf16.msra.mxu0 %v10920_v43  ;;  %v3533_v43 = vld [vmem:[#allocation7 + $0xe8] sm:$0xff] }
 0x2b0   : > { %5088 = vmatprep.subr.bf16.mxu0 %v10929_v44  ;;  %v10984_v44 = vcombine.low %v3584_v32, %v3588_v33  ;;  %v10930_v57 = vcombine.low %v3529_v5, %v3533_v43 }
 0x2b1   : > { %3470 = vmatpush1.bf16.msra.mxu1 %v12447_v45  ;;  %v10993_v45 = vcombine.high %v3592_v40, %v3596_v41 }
 0x2b2   : > { %3471 = vmatprep.subr.bf16.mxu1 %v12452_v49  ;;  %v3604_v49 = vld [vmem:[#allocation7 + $0x320] sm:$0xff] }
 0x2b3   : > { %5089 = vmatpush1.bf16.msra.mxu0 %v10928_v17  ;;  %v3537_v17 = vld [vmem:[#allocation7 + $0x108] sm:$0xff]  ;;  %v11001_v55 = vcombine.high %v3600_v48, %v3604_v49  ;;  %v11000_v63 = vcombine.low %v3600_v48, %v3604_v49 }
 0x2b4   : > { %5090 = vmatprep.subr.bf16.mxu0 %v10937_v50  ;;  %v3541_v50 = vld [vmem:[#allocation7 + $0x128] sm:$0xff] }
 0x2b5   : > { %3472 = vmatpush1.bf16.msra.mxu1 %v12450_v53  ;;  %v10992_v53 = vcombine.low %v3592_v40, %v3596_v41 }
 0x2b6   : > { %3473 = vmatprep.subr.bf16.mxu1 %v12455_v58  ;;  %v3608_v58 = vld [vmem:[#allocation7 + $0x340] sm:$0xff] }
 0x2b7   : > { %5091 = vmatpush1.bf16.msra.mxu0 %v10936_v59  ;;  %v3612_v59 = vld [vmem:[#allocation7 + $0x360] sm:$0xff] }
 0x2b8   : > { %5092 = vmatprep.subr.bf16.mxu0 %v10945_v60  ;;  %v10939_v60 = vcombine.high %v3537_v17, %v3541_v50  ;;  %v11008_v7 = vcombine.low %v3608_v58, %v3612_v59 }
 0x2b9   : > { %3474 = vmatpush1.bf16.msra.mxu1 %v12453_v61  ;;  %v3545_v61 = vld [vmem:[#allocation7 + $0x148] sm:$0xff] }
 0x2ba   : > { %3475 = vmatprep.subr.bf16.mxu1 %v12458_v0  ;;  %v11009_v0 = vcombine.high %v3608_v58, %v3612_v59 }
 0x2bb   : > { %5093 = vmatpush1.bf16.msra.mxu0 %v10944_v47  ;;  %v10938_v47 = vcombine.low %v3537_v17, %v3541_v50  ;;  %v3624_v17 = vld [vmem:[#allocation7 + $0x3c0] sm:$0xff] }
 0x2bc   : > { %5094 = vmatprep.subr.bf16.mxu0 %v10953_v1  ;;  %v10947_v1 = vcombine.high %v3545_v61, %v3549_v62  ;;  %v3628_v50 = vld [vmem:[#allocation7 + $0x3e0] sm:$0xff] }
 0x2bd   : > { %3476 = vmatpush1.bf16.msra.mxu1 %v12456_v3  ;;  %v3553_v3 = vld [vmem:[#allocation7 + $0x188] sm:$0xff]  ;;  %v11024_v58 = vcombine.low %v3624_v17, %v3628_v50 }
 0x2be   : > { %3477 = vmatprep.subr.bf16.mxu1 %v12461_v8  ;;  %v10946_v8 = vcombine.low %v3545_v61, %v3549_v62  ;;  %v10954_v12 = vcombine.low %v3553_v3, %v3557_v6  ;;  %v3632_v61 = vld [vmem:[#allocation7 + $0x400] sm:$0xff] }
 0x2bf   : > { %5095 = vmatpush1.bf16.msra.mxu0 %v10952_v9  ;;  %v10955_v9 = vcombine.high %v3553_v3, %v3557_v6  ;;  %v3636_v62 = vld [vmem:[#allocation7 + $0x420] sm:$0xff] }
 0x2c0   : > { %5096 = vmatprep.subr.bf16.mxu0 %v10961_v10  ;;  %v3561_v10 = vld [vmem:[#allocation7 + $0x1c8] sm:$0xff] }
 0x2c1   : > { %3478 = vmatpush1.bf16.msra.mxu1 %v12459_v11  ;;  %v3565_v11 = vld [vmem:[#allocation7 + $0x1e8] sm:$0xff] }
 0x2c2   : > { %3479 = vmatprep.subr.bf16.mxu1 %v12464_v14  ;;  %v10963_v13 = vcombine.high %v3561_v10, %v3565_v11  ;;  %v3569_v14 = vld [vmem:[#allocation7 + $0x208] sm:$0xff]  ;;  %v10962_v16 = vcombine.low %v3561_v10, %v3565_v11 }
 0x2c3   : > { %5097 = vmatpush1.bf16.msra.mxu0 %v10960_v18  ;;  %v10971_v18 = vcombine.high %v3569_v14, %v3573_v15  ;;  %v10970_v21 = vcombine.low %v3569_v14, %v3573_v15 }
 0x2c4   : > { %5098 = vmatprep.subr.bf16.mxu0 %v10969_v19  ;;  %v3577_v19 = vld [vmem:[#allocation7 + $0x248] sm:$0xff] }
 0x2c5   : > { %3480 = vmatpush1.bf16.msra.mxu1 %v12462_v20  ;;  %v3581_v20 = vld [vmem:[#allocation7 + $0x268] sm:$0xff] }
 0x2c6   : > { %5168 = vmatprep.subr.bf16.mxu1 %v10907_v23  ;;  %v10979_v22 = vcombine.high %v3577_v19, %v3581_v20  ;;  %v3585_v23 = vld [vmem:[#allocation7 + $0x288] sm:$0xff]  ;;  %v10978_v25 = vcombine.low %v3577_v19, %v3581_v20 }
 0x2c7   : > { %5099 = vmatpush1.bf16.msra.mxu0 %v10968_v26  ;;  %v10987_v26 = vcombine.high %v3585_v23, %v3589_v24  ;;  %v10986_v32 = vcombine.low %v3585_v23, %v3589_v24  ;;  %v3644_v24 = vld [vmem:[#allocation7 + $0x460] sm:$0xff] }
 0x2c8   : > { %3482 = vmatmul.mubr.bf16.vlgmr.msra.gmra.mrb[16].mxu1 %v13767_v27  ;;  %5100 = vmatprep.subr.bf16.mxu0 %v10977_v29  ;;  %v10931_v27 = vcombine.high %v3529_v5, %v3533_v43  ;;  %v3593_v29 = vld [vmem:[#allocation7 + $0x2c8] sm:$0xff]  ;;  %v3616_v5 = vld [vmem:[#allocation7 + $0x380] sm:$0xff] }
 0x2c9   : > { %5169 = vmatpush1.bf16.msra.mxu1 %v10906_v31  ;;  %v3597_v31 = vld [vmem:[#allocation7 + $0x2e8] sm:$0xff]  ;;  %v3620_v43 = vld [vmem:[#allocation7 + $0x3a0] sm:$0xff] }
 0x2ca   : > { %5170 = vmatprep.subr.bf16.mxu1 %v10915_v34  ;;  %v10995_v33 = vcombine.high %v3593_v29, %v3597_v31  ;;  %v3601_v34 = vld [vmem:[#allocation7 + $0x308] sm:$0xff]  ;;  %v10994_v36 = vcombine.low %v3593_v29, %v3597_v31  ;;  %v11016_v48 = vcombine.low %v3616_v5, %v3620_v43 }
 0x2cb   : > { %5101 = vmatpush1.bf16.msra.mxu0 %v10976_v37  ;;  %v11003_v37 = vcombine.high %v3601_v34, %v3605_v35  ;;  %v11002_v40 = vcombine.low %v3601_v34, %v3605_v35  ;;  %v3648_v34 = vld [vmem:[#allocation7 + $0x480] sm:$0xff] }
 0x2cc   : > { %5102 = vmatprep.subr.bf16.mxu0 %v10985_v38  ;;  %v3609_v38 = vld [vmem:[#allocation7 + $0x348] sm:$0xff]  ;;  %v3652_v35 = vld [vmem:[#allocation7 + $0x4a0] sm:$0xff] }
 0x2cd   : > { %5171 = vmatpush1.bf16.msra.mxu1 %v10914_v39  ;;  %v3613_v39 = vld [vmem:[#allocation7 + $0x368] sm:$0xff] }
 0x2ce   : > { %5172 = vmatprep.subr.bf16.mxu1 %v10923_v42  ;;  %v11011_v41 = vcombine.high %v3609_v38, %v3613_v39  ;;  %v11010_v42 = vcombine.low %v3609_v38, %v3613_v39 }
 0x2cf   : > { %5103 = vmatpush1.bf16.msra.mxu0 %v10984_v44  ;;  %v3617_v44 = vld [vmem:[#allocation7 + $0x388] sm:$0xff] }
 0x2d0   : > { %5104 = vmatprep.subr.bf16.mxu0 %v10993_v45  ;;  %v11017_v45 = vcombine.high %v3616_v5, %v3620_v43  ;;  %v3660_v5 = vld [vmem:[#allocation7 + $0x4e0] sm:$0xff]  ;;  %v3657_v43 = vld [vmem:[#allocation7 + $0x4c8] sm:$0xff] }
 0x2d1   : > { %5173 = vmatpush1.bf16.msra.mxu1 %v10922_v46  ;;  %v3621_v46 = vld [vmem:[#allocation7 + $0x3a8] sm:$0xff] }
 0x2d2   : > { %5174 = vmatprep.subr.bf16.mxu1 %v10931_v27  ;;  %v11019_v49 = vcombine.high %v3617_v44, %v3621_v46  ;;  %v11018_v27 = vcombine.low %v3617_v44, %v3621_v46  ;;  %v3661_v44 = vld [vmem:[#allocation7 + $0x4e8] sm:$0xff] }
 0x2d3   : > { %5105 = vmatpush1.bf16.msra.mxu0 %v10992_v53  ;;  %v3625_v53 = vld [vmem:[#allocation7 + $0x3c8] sm:$0xff] }
 0x2d4   : > { %5106 = vmatprep.subr.bf16.mxu0 %v11001_v55  ;;  %v11025_v55 = vcombine.high %v3624_v17, %v3628_v50  ;;  %v3668_v17 = vld [vmem:[#allocation7 + $0x520] sm:$0xff]  ;;  %v3665_v50 = vld [vmem:[#allocation7 + $0x508] sm:$0xff] }
 0x2d5   : > { %5175 = vmatpush1.bf16.msra.mxu1 %v10930_v57  ;;  %v3629_v57 = vld [vmem:[#allocation7 + $0x3e8] sm:$0xff] }
 0x2d6   : > { %5176 = vmatprep.subr.bf16.mxu1 %v10939_v60  ;;  %v11027_v59 = vcombine.high %v3625_v53, %v3629_v57  ;;  %v11026_v60 = vcombine.low %v3625_v53, %v3629_v57  ;;  %v3669_v53 = vld [vmem:[#allocation7 + $0x528] sm:$0xff]  ;;  %v11058_v57 = vcombine.low %v3657_v43, %v3661_v44 }
 0x2d7   : > { %5107 = vmatpush1.bf16.msra.mxu0 %v11000_v63  ;;  %v3633_v63 = vld [vmem:[#allocation7 + $0x408] sm:$0xff] }
 0x2d8   : > { %5108 = vmatprep.subr.bf16.mxu0 %v11009_v0  ;;  %v11033_v0 = vcombine.high %v3632_v61, %v3636_v62 }
 0x2d9   : > { %5177 = vmatpush1.bf16.msra.mxu1 %v10938_v47  ;;  %v3637_v47 = vld [vmem:[#allocation7 + $0x428] sm:$0xff] }
 0x2da   : > { %5178 = vmatprep.subr.bf16.mxu1 %v10947_v1  ;;  %v11032_v1 = vcombine.low %v3632_v61, %v3636_v62  ;;  %v11034_v3 = vcombine.low %v3633_v63, %v3637_v47  ;;  %v11035_v6 = vcombine.high %v3633_v63, %v3637_v47  ;;  %v3676_v61 = vld [vmem:[#allocation7 + $0x560] sm:$0xff]  ;;  %v3673_v62 = vld [vmem:[#allocation7 + $0x548] sm:$0xff]  ;;  %v11066_v47 = vcombine.low %v3665_v50, %v3669_v53 }
 0x2db   : > { %5109 = vmatpush1.bf16.msra.mxu0 %v11008_v7  ;;  %v13774_v7 = vld [vmem:[%s14009_s4] sm:$0xf]  ;;  %v3677_v63 = vld [vmem:[#allocation7 + $0x568] sm:$0xff] }
 0x2dc   : > { %5110 = vmatprep.subr.bf16.mxu0 %v11017_v45  ;;  %v11048_v45 = vcombine.low %v3648_v34, %v3652_v35 }
 0x2dd   : > { %5179 = vmatpush1.bf16.msra.mxu1 %v10946_v8  ;;  %v1851_v8 = vrot.slane %v13774_v7, %v13710_v51 }
 0x2de   : > { %5180 = vmatprep.subr.bf16.mxu1 %v10955_v9  ;;  %v1855_v9 = vrot.slane %v13774_v7, %v13718_v52 }
 0x2df   : > { %5111 = vmatpush1.bf16.msra.mxu0 %v11016_v48 }
 0x2e0   : > { %5112 = vmatprep.subr.bf16.mxu0 %v11025_v55 }
 0x2e1   : > { %5181 = vmatpush1.bf16.msra.mxu1 %v10954_v12 }
 0x2e2   : > { %5182 = vmatprep.subr.bf16.mxu1 %v10963_v13 }
 0x2e3   : > { %5113 = vmatpush1.bf16.msra.mxu0 %v11024_v58 }
 0x2e4   : > { %5125 = vmatprep.subr.bf16.mxu0 %v11033_v0 }
 0x2e5   : > { %5183 = vmatpush1.bf16.msra.mxu1 %v10962_v16 }
 0x2e6   : > { %5184 = vmatprep.subr.bf16.mxu1 %v10971_v18 }
 0x2e9   : > { %5185 = vmatpush1.bf16.msra.mxu1 %v10970_v21  ;;  %v3640_v21 = vld [vmem:[#allocation7 + $0x440] sm:$0xff] }
 0x2ea   : > { %5186 = vmatprep.subr.bf16.mxu1 %v10979_v22  ;;  %v11040_v38 = vcombine.low %v3640_v21, %v3644_v24 }
 0x2ed   : > { %5187 = vmatpush1.bf16.msra.mxu1 %v10978_v25  ;;  %v3641_v25 = vld [vmem:[#allocation7 + $0x448] sm:$0xff] }
 0x2ee   : > { %5188 = vmatprep.subr.bf16.mxu1 %v10987_v26  ;;  %v3645_v26 = vld [vmem:[#allocation7 + $0x468] sm:$0xff] }
 0x2ef   : > { %v11042_v39 = vcombine.low %v3641_v25, %v3645_v26 }
 0x2f1   : > { %5189 = vmatpush1.bf16.msra.mxu1 %v10986_v32  ;;  %v11041_v32 = vcombine.high %v3640_v21, %v3644_v24 }
 0x2f2   : > { %5190 = vmatprep.subr.bf16.mxu1 %v10995_v33  ;;  %v11043_v33 = vcombine.high %v3641_v25, %v3645_v26  ;;  %v3696_v26 = vld [vmem:[#allocation7 + $0x600] sm:$0xff] }
 0x2f5   : > { %5191 = vmatpush1.bf16.msra.mxu1 %v10994_v36  ;;  %v3649_v36 = vld [vmem:[#allocation7 + $0x488] sm:$0xff] }
 0x2f6   : > { %5192 = vmatprep.subr.bf16.mxu1 %v11003_v37  ;;  %v3653_v37 = vld [vmem:[#allocation7 + $0x4a8] sm:$0xff] }
 0x2f7   : > { %v11050_v46 = vcombine.low %v3649_v36, %v3653_v37 }
 0x2f9   : > { %5193 = vmatpush1.bf16.msra.mxu1 %v11002_v40  ;;  %v11049_v40 = vcombine.high %v3648_v34, %v3652_v35  ;;  %v3697_v34 = vld [vmem:[#allocation7 + $0x608] sm:$0xff] }
 0x2fa   : > { %5194 = vmatprep.subr.bf16.mxu1 %v11011_v41  ;;  %v11051_v41 = vcombine.high %v3649_v36, %v3653_v37  ;;  %v3701_v35 = vld [vmem:[#allocation7 + $0x628] sm:$0xff] }
 0x2fd   : > { %5195 = vmatpush1.bf16.msra.mxu1 %v11010_v42  ;;  %v3656_v42 = vld [vmem:[#allocation7 + $0x4c0] sm:$0xff] }
 0x2fe   : > { %5196 = vmatprep.subr.bf16.mxu1 %v11019_v49  ;;  %v11057_v48 = vcombine.high %v3656_v42, %v3660_v5  ;;  %v11059_v49 = vcombine.high %v3657_v43, %v3661_v44  ;;  %v11056_v55 = vcombine.low %v3656_v42, %v3660_v5  ;;  %v11099_v43 = vcombine.high %v3697_v34, %v3701_v35 }
 0x301   : > { %5197 = vmatpush1.bf16.msra.mxu1 %v11018_v27  ;;  %v3664_v27 = vld [vmem:[#allocation7 + $0x500] sm:$0xff] }
 0x302   : > { %5198 = vmatprep.subr.bf16.mxu1 %v11027_v59  ;;  %v11065_v58 = vcombine.high %v3664_v27, %v3668_v17  ;;  %v11067_v59 = vcombine.high %v3665_v50, %v3669_v53  ;;  %v11064_v0 = vcombine.low %v3664_v27, %v3668_v17  ;;  %v3705_v27 = vld [vmem:[#allocation7 + $0x648] sm:$0xff] }
 0x303   : > { %v3709_v17 = vld [vmem:[#allocation7 + $0x668] sm:$0xff] }
 0x305   : > { %5199 = vmatpush1.bf16.msra.mxu1 %v11026_v60  ;;  %v3672_v60 = vld [vmem:[#allocation7 + $0x540] sm:$0xff] }
 0x306   : > { %5211 = vmatprep.subr.bf16.mxu1 %v11035_v6  ;;  %v3680_v6 = vld [vmem:[#allocation7 + $0x580] sm:$0xff] }
 0x379   : > { %v3311_v10 = vpop.f32.mrb[0].mxu0 }
 0x37a   : > { %v11819_v11 = vadd.f32 %v3311_v10, %v1851_v8  ;;  %v3313_v12 = vpop.f32.mrb[1].mxu0  ;;  %v3685_v10 = vld [vmem:[#allocation7 + $0x5a8] sm:$0xff] }
 0x37b   : > { %v11820_v13 = vadd.f32 %v3313_v12, %v1855_v9  ;;  %v3315_v14 = vpop.f32.mrb[2].mxu0  ;;  %v11074_v12 = vcombine.low %v3673_v62, %v3677_v63 }
 0x37c   : > { %v11821_v15 = vadd.f32 %v3315_v14, %v1851_v8  ;;  %v3317_v16 = vpop.f32.mrb[3].mxu0  ;;  %v3492_v19 = vmax.f32 %v11819_v11, 0.0  ;;  %v3684_v8 = vld [vmem:[#allocation7 + $0x5a0] sm:$0xff]  ;;  %v11072_v11 = vcombine.low %v3672_v60, %v3676_v61 }
 0x37d   : > { %v11822_v18 = vadd.f32 %v3317_v16, %v1855_v9  ;;  %v3493_v22 = vmax.f32 %v11820_v13, 0.0  ;;  %v3681_v9 = vld [vmem:[#allocation7 + $0x588] sm:$0xff]  ;;  %v11081_v13 = vcombine.high %v3680_v6, %v3684_v8  ;;  %v3692_v16 = vld [vmem:[#allocation7 + $0x5e0] sm:$0xff]  ;;  %v11080_v21 = vcombine.low %v3680_v6, %v3684_v8 }
 0x37e   : > { %v3496_v20 = vmax.f32 %v11821_v15, 0.0  ;;  %v11083_v14 = vcombine.high %v3681_v9, %v3685_v10  ;;  %v3688_v15 = vld [vmem:[#allocation7 + $0x5c0] sm:$0xff] }
 0x37f   : > { %v3497_v23 = vmax.f32 %v11822_v18, 0.0  ;;  %v3689_v18 = vld [vmem:[#allocation7 + $0x5c8] sm:$0xff]  ;;  %v11089_v24 = vcombine.high %v3688_v15, %v3692_v16 }
 0x380   : > { %v13780_v29 = vpack.c.bf16 %v3496_v20, %v3492_v19  ;;  %v3693_v19 = vld [vmem:[#allocation7 + $0x5e8] sm:$0xff]  ;;  %v1859_v20 = vrot.slane %v13774_v7, %v13729_v2 }
 0x381   : > { %v13782_v31 = vpack.c.bf16 %v3497_v23, %v3493_v22  ;;  %v11082_v22 = vcombine.low %v3681_v9, %v3685_v10  ;;  %v1863_v23 = vrot.slane %v13774_v7, %v13732_v4  ;;  %v11091_v25 = vcombine.high %v3689_v18, %v3693_v19  ;;  %v3720_v9 = vld [vmem:[#allocation7 + $0x6c0] sm:$0xff] }
 0x382   : > { %v3724_v10 = vld [vmem:[#allocation7 + $0x6e0] sm:$0xff] }
 0x383   : > { %5114 = vmatprep.mubr.bf16.mxu0 %v13782_v31  ;;  %5200 = vmatprep.mubr.bf16.mxu1 %v13782_v31 }
 0x384   : > { %5115 = vmatmul.mubr.bf16.vlgmr.msra.gmra.mrb[4].mxu0 %v13780_v29  ;;  %5201 = vmatmul.mubr.bf16.vlgmr.msra.gmra.mrb[20].mxu1 %v13780_v29 }
 0x385   : > { %5126 = vmatpush1.bf16.msra.mxu0 %v11032_v1  ;;  %5212 = vmatpush1.bf16.msra.mxu1 %v11034_v3  ;;  %v11073_v1 = vcombine.high %v3672_v60, %v3676_v61  ;;  %v11075_v3 = vcombine.high %v3673_v62, %v3677_v63  ;;  %v11107_v62 = vcombine.high %v3705_v27, %v3709_v17  ;;  %v3716_v63 = vld [vmem:[#allocation7 + $0x6a0] sm:$0xff] }
 0x386   : > { %5127 = vmatprep.subr.bf16.mxu0 %v11041_v32  ;;  %5213 = vmatprep.subr.bf16.mxu1 %v11043_v33  ;;  %v3700_v33 = vld [vmem:[#allocation7 + $0x620] sm:$0xff] }
 0x387   : > { %v11097_v7 = vcombine.high %v3696_v26, %v3700_v33 }
 0x389   : > { %5128 = vmatpush1.bf16.msra.mxu0 %v11040_v38  ;;  %5214 = vmatpush1.bf16.msra.mxu1 %v11042_v39 }
 0x38a   : > { %5129 = vmatprep.subr.bf16.mxu0 %v11049_v40  ;;  %5215 = vmatprep.subr.bf16.mxu1 %v11051_v41  ;;  %v11088_v40 = vcombine.low %v3688_v15, %v3692_v16  ;;  %v11090_v41 = vcombine.low %v3689_v18, %v3693_v19  ;;  %v11121_v15 = vcombine.high %v3720_v9, %v3724_v10  ;;  %v3728_v18 = vld [vmem:[#allocation7 + $0x700] sm:$0xff] }
 0x38b   : > { %v3732_v19 = vld [vmem:[#allocation7 + $0x720] sm:$0xff] }
 0x38d   : > { %5130 = vmatpush1.bf16.msra.mxu0 %v11048_v45  ;;  %5216 = vmatpush1.bf16.msra.mxu1 %v11050_v46  ;;  %v3704_v45 = vld [vmem:[#allocation7 + $0x640] sm:$0xff] }
 0x38e   : > { %5131 = vmatprep.subr.bf16.mxu0 %v11057_v48  ;;  %5217 = vmatprep.subr.bf16.mxu1 %v11059_v49  ;;  %v3708_v49 = vld [vmem:[#allocation7 + $0x660] sm:$0xff] }
 0x38f   : > { %v11105_v61 = vcombine.high %v3704_v45, %v3708_v49 }
 0x391   : > { %5132 = vmatpush1.bf16.msra.mxu0 %v11056_v55  ;;  %5218 = vmatpush1.bf16.msra.mxu1 %v11058_v57  ;;  %v11096_v55 = vcombine.low %v3696_v26, %v3700_v33  ;;  %v11098_v57 = vcombine.low %v3697_v34, %v3701_v35  ;;  %v3736_v26 = vld [vmem:[#allocation7 + $0x740] sm:$0xff]  ;;  %v3737_v33 = vld [vmem:[#allocation7 + $0x748] sm:$0xff]  ;;  %v11128_v35 = vcombine.low %v3728_v18, %v3732_v19 }
 0x392   : > { %5133 = vmatprep.subr.bf16.mxu0 %v11065_v58  ;;  %5219 = vmatprep.subr.bf16.mxu1 %v11067_v59  ;;  %v3712_v59 = vld [vmem:[#allocation7 + $0x680] sm:$0xff]  ;;  %v3741_v34 = vld [vmem:[#allocation7 + $0x768] sm:$0xff] }
 0x393   : > { %v11113_v6 = vcombine.high %v3712_v59, %v3716_v63 }
 0x395   : > { %5134 = vmatpush1.bf16.msra.mxu0 %v11064_v0  ;;  %5220 = vmatpush1.bf16.msra.mxu1 %v11066_v47  ;;  %v3713_v0 = vld [vmem:[#allocation7 + $0x688] sm:$0xff] }
 0x396   : > { %5135 = vmatprep.subr.bf16.mxu0 %v11073_v1  ;;  %5221 = vmatprep.subr.bf16.mxu1 %v11075_v3  ;;  %v3717_v47 = vld [vmem:[#allocation7 + $0x6a8] sm:$0xff]  ;;  %v11104_v1 = vcombine.low %v3704_v45, %v3708_v49  ;;  %v11106_v3 = vcombine.low %v3705_v27, %v3709_v17  ;;  %v3752_v45 = vld [vmem:[#allocation7 + $0x7c0] sm:$0xff] }
 0x397   : > { %v11115_v8 = vcombine.high %v3713_v0, %v3717_v47  ;;  %v3757_v49 = vld [vmem:[#allocation7 + $0x7e8] sm:$0xff] }
 0x399   : > { %5136 = vmatpush1.bf16.msra.mxu0 %v11072_v11  ;;  %5222 = vmatpush1.bf16.msra.mxu1 %v11074_v12  ;;  %v3721_v11 = vld [vmem:[#allocation7 + $0x6c8] sm:$0xff] }
 0x39a   : > { %5137 = vmatprep.subr.bf16.mxu0 %v11081_v13  ;;  %5223 = vmatprep.subr.bf16.mxu1 %v11083_v14  ;;  %v3725_v12 = vld [vmem:[#allocation7 + $0x6e8] sm:$0xff]  ;;  %v11112_v13 = vcombine.low %v3712_v59, %v3716_v63  ;;  %v11114_v14 = vcombine.low %v3713_v0, %v3717_v47  ;;  %v3507_v59 = vld [vmem:[#allocation7 + $0x18] sm:$0xff] }
 0x39b   : > { %v3483_v32 = vpop.f32.mrb[16].mxu1  ;;  %v11123_v16 = vcombine.high %v3721_v11, %v3725_v12 }
 0x39c   : > { %v11823_v36 = vadd.f32 %v3483_v32, %v1859_v20  ;;  %v3485_v37 = vpop.f32.mrb[17].mxu1  ;;  %v3740_v32 = vld [vmem:[#allocation7 + $0x760] sm:$0xff] }
 0x39d   : > { %v11824_v38 = vadd.f32 %v3485_v37, %v1863_v23  ;;  %5138 = vmatpush1.bf16.msra.mxu0 %v11080_v21  ;;  %5224 = vmatpush1.bf16.msra.mxu1 %v11082_v22  ;;  %v3487_v39 = vpop.f32.mrb[18].mxu1  ;;  %v3733_v21 = vld [vmem:[#allocation7 + $0x728] sm:$0xff]  ;;  %v11120_v22 = vcombine.low %v3720_v9, %v3724_v10  ;;  %v11137_v37 = vcombine.high %v3736_v26, %v3740_v32 }
 0x39e   : > { %v11825_v42 = vadd.f32 %v3487_v39, %v1859_v20  ;;  %v3489_v5 = vpop.f32.mrb[19].mxu1  ;;  %5139 = vmatprep.subr.bf16.mxu0 %v11089_v24  ;;  %5225 = vmatprep.subr.bf16.mxu1 %v11091_v25  ;;  %v3494_v46 = vmax.f32 %v11823_v36, 0.0  ;;  %v3729_v20 = vld [vmem:[#allocation7 + $0x708] sm:$0xff]  ;;  %v11129_v24 = vcombine.high %v3728_v18, %v3732_v19  ;;  %v3744_v39 = vld [vmem:[#allocation7 + $0x780] sm:$0xff] }
 0x39f   : > { %v11826_v44 = vadd.f32 %v3489_v5, %v1863_v23  ;;  %v3495_v50 = vmax.f32 %v11824_v38, 0.0  ;;  %v11122_v23 = vcombine.low %v3721_v11, %v3725_v12  ;;  %v11131_v25 = vcombine.high %v3729_v20, %v3733_v21 }
 0x3a0   : > { %v3498_v48 = vmax.f32 %v11825_v42, 0.0  ;;  %v11130_v36 = vcombine.low %v3729_v20, %v3733_v21  ;;  %v11139_v38 = vcombine.high %v3737_v33, %v3741_v34  ;;  %v3749_v42 = vld [vmem:[#allocation7 + $0x7a8] sm:$0xff]  ;;  %v11136_v5 = vcombine.low %v3736_v26, %v3740_v32 }
 0x3a1   : > { %v3499_v53 = vmax.f32 %v11826_v44, 0.0  ;;  %5140 = vmatpush1.bf16.msra.mxu0 %v11088_v40  ;;  %5226 = vmatpush1.bf16.msra.mxu1 %v11090_v41  ;;  %v3748_v40 = vld [vmem:[#allocation7 + $0x7a0] sm:$0xff]  ;;  %v3745_v41 = vld [vmem:[#allocation7 + $0x788] sm:$0xff] }
 0x3a2   : > { %v13792_v58 = vpack.c.bf16 %v3498_v48, %v3494_v46  ;;  %5141 = vmatprep.subr.bf16.mxu0 %v11097_v7  ;;  %5227 = vmatprep.subr.bf16.mxu1 %v11099_v43  ;;  %v11138_v7 = vcombine.low %v3737_v33, %v3741_v34  ;;  %v11145_v43 = vcombine.high %v3744_v39, %v3748_v40  ;;  %v3756_v46 = vld [vmem:[#allocation7 + $0x7e0] sm:$0xff]  ;;  %v3753_v48 = vld [vmem:[#allocation7 + $0x7c8] sm:$0xff] }
 0x3a3   : > { %v13794_v60 = vpack.c.bf16 %v3499_v53, %v3495_v50  ;;  %v11147_v44 = vcombine.high %v3745_v41, %v3749_v42  ;;  %v11144_v27 = vcombine.low %v3744_v39, %v3748_v40  ;;  %v11146_v17 = vcombine.low %v3745_v41, %v3749_v42  ;;  %v3546_v42 = vld [vmem:[#allocation7 + $0x150] sm:$0xff] }
 0x3a4   : > { %v11153_v50 = vcombine.high %v3752_v45, %v3756_v46  ;;  %v11155_v53 = vcombine.high %v3753_v48, %v3757_v49  ;;  %v11154_v63 = vcombine.low %v3753_v48, %v3757_v49  ;;  %v3554_v49 = vld [vmem:[#allocation7 + $0x190] sm:$0xff] }
 0x3a5   : > { %5142 = vmatpush1.bf16.msra.mxu0 %v11096_v55  ;;  %5228 = vmatpush1.bf16.msra.mxu1 %v11098_v57  ;;  %v3506_v55 = vld [vmem:[#allocation7 + $0x10] sm:$0xff] }
 0x3a6   : > { %5157 = vmatprep.mubr.bf16.mxu0 %v13794_v60  ;;  %5243 = vmatprep.mubr.bf16.mxu1 %v13794_v60  ;;  %v3510_v57 = vld [vmem:[#allocation7 + $0x30] sm:$0xff] }
 0x3a7   : > { %5143 = vmatprep.subr.bf16.mxu0 %v11105_v61  ;;  %5229 = vmatprep.subr.bf16.mxu1 %v11107_v62  ;;  %v3511_v61 = vld [vmem:[#allocation7 + $0x38] sm:$0xff]  ;;  %v11152_v62 = vcombine.low %v3752_v45, %v3756_v46  ;;  %v10909_v0 = vcombine.high %v3506_v55, %v3510_v57  ;;  %v10908_v9 = vcombine.low %v3506_v55, %v3510_v57 }
 0x3a8   : > { %v10911_v47 = vcombine.high %v3507_v59, %v3511_v61  ;;  %v10910_v10 = vcombine.low %v3507_v59, %v3511_v61  ;;  %v3562_v61 = vld [vmem:[#allocation7 + $0x1d0] sm:$0xff] }
 0x3a9   : > { %5144 = vmatpush1.bf16.msra.mxu0 %v11104_v1  ;;  %5230 = vmatpush1.bf16.msra.mxu1 %v11106_v3  ;;  %v3514_v1 = vld [vmem:[#allocation7 + $0x50] sm:$0xff] }
 0x3aa   : > { %5145 = vmatprep.subr.bf16.mxu0 %v11113_v6  ;;  %5231 = vmatprep.subr.bf16.mxu1 %v11115_v8  ;;  %v3518_v3 = vld [vmem:[#allocation7 + $0x70] sm:$0xff]  ;;  %v3515_v6 = vld [vmem:[#allocation7 + $0x58] sm:$0xff] }
 0x3ab   : > { %v3519_v8 = vld [vmem:[#allocation7 + $0x78] sm:$0xff]  ;;  %v10917_v11 = vcombine.high %v3514_v1, %v3518_v3  ;;  %v10916_v18 = vcombine.low %v3514_v1, %v3518_v3 }
 0x3ac   : > { %v10919_v12 = vcombine.high %v3515_v6, %v3519_v8  ;;  %v10918_v19 = vcombine.low %v3515_v6, %v3519_v8  ;;  %v3570_v8 = vld [vmem:[#allocation7 + $0x210] sm:$0xff] }
 0x3ad   : > { %5146 = vmatpush1.bf16.msra.mxu0 %v11112_v13  ;;  %5232 = vmatpush1.bf16.msra.mxu1 %v11114_v14  ;;  %v3522_v13 = vld [vmem:[#allocation7 + $0x90] sm:$0xff] }
 0x3ae   : > { %5147 = vmatprep.subr.bf16.mxu0 %v11121_v15  ;;  %5233 = vmatprep.subr.bf16.mxu1 %v11123_v16  ;;  %v3526_v14 = vld [vmem:[#allocation7 + $0xb0] sm:$0xff]  ;;  %v3523_v15 = vld [vmem:[#allocation7 + $0x98] sm:$0xff] }
 0x3af   : > { %v3527_v16 = vld [vmem:[#allocation7 + $0xb8] sm:$0xff]  ;;  %v10925_v20 = vcombine.high %v3522_v13, %v3526_v14  ;;  %v10924_v26 = vcombine.low %v3522_v13, %v3526_v14 }
 0x3b0   : > { %v10927_v21 = vcombine.high %v3523_v15, %v3527_v16  ;;  %v10926_v32 = vcombine.low %v3523_v15, %v3527_v16  ;;  %v3578_v16 = vld [vmem:[#allocation7 + $0x250] sm:$0xff] }
 0x3b1   : > { %5148 = vmatpush1.bf16.msra.mxu0 %v11120_v22  ;;  %5234 = vmatpush1.bf16.msra.mxu1 %v11122_v23  ;;  %v3530_v22 = vld [vmem:[#allocation7 + $0xd0] sm:$0xff] }
 0x3b2   : > { %5149 = vmatprep.subr.bf16.mxu0 %v11129_v24  ;;  %5235 = vmatprep.subr.bf16.mxu1 %v11131_v25  ;;  %v3534_v23 = vld [vmem:[#allocation7 + $0xf0] sm:$0xff]  ;;  %v3531_v24 = vld [vmem:[#allocation7 + $0xd8] sm:$0xff] }
 0x3b3   : > { %v3535_v25 = vld [vmem:[#allocation7 + $0xf8] sm:$0xff]  ;;  %v10933_v33 = vcombine.high %v3530_v22, %v3534_v23 }
 0x3b4   : > { %v10935_v34 = vcombine.high %v3531_v24, %v3535_v25  ;;  %v10934_v39 = vcombine.low %v3531_v24, %v3535_v25  ;;  %v3586_v25 = vld [vmem:[#allocation7 + $0x290] sm:$0xff] }
 0x3b5   : > { %5150 = vmatpush1.bf16.msra.mxu0 %v11128_v35  ;;  %5236 = vmatpush1.bf16.msra.mxu1 %v11130_v36  ;;  %v3538_v35 = vld [vmem:[#allocation7 + $0x110] sm:$0xff] }
 0x3b6   : > { %5151 = vmatprep.subr.bf16.mxu0 %v11137_v37  ;;  %5237 = vmatprep.subr.bf16.mxu1 %v11139_v38  ;;  %v3542_v36 = vld [vmem:[#allocation7 + $0x130] sm:$0xff]  ;;  %v3543_v37 = vld [vmem:[#allocation7 + $0x138] sm:$0xff]  ;;  %v10932_v38 = vcombine.low %v3530_v22, %v3534_v23 }
 0x3b7   : > { %v10941_v40 = vcombine.high %v3538_v35, %v3542_v36 }
 0x3b9   : > { %5152 = vmatpush1.bf16.msra.mxu0 %v11136_v5  ;;  %5238 = vmatpush1.bf16.msra.mxu1 %v11138_v7  ;;  %v3550_v5 = vld [vmem:[#allocation7 + $0x170] sm:$0xff]  ;;  %v3547_v7 = vld [vmem:[#allocation7 + $0x158] sm:$0xff] }
 0x3ba   : > { %5153 = vmatprep.subr.bf16.mxu0 %v11145_v43  ;;  %5239 = vmatprep.subr.bf16.mxu1 %v11147_v44  ;;  %v3551_v43 = vld [vmem:[#allocation7 + $0x178] sm:$0xff]  ;;  %v10940_v44 = vcombine.low %v3538_v35, %v3542_v36  ;;  %v10949_v46 = vcombine.high %v3546_v42, %v3550_v5 }
 0x3bb   : > { %v10951_v48 = vcombine.high %v3547_v7, %v3551_v43  ;;  %v10950_v55 = vcombine.low %v3547_v7, %v3551_v43  ;;  %v3602_v43 = vld [vmem:[#allocation7 + $0x310] sm:$0xff] }
 0x3bd   : > { %5154 = vmatpush1.bf16.msra.mxu0 %v11144_v27  ;;  %5240 = vmatpush1.bf16.msra.mxu1 %v11146_v17  ;;  %v3558_v27 = vld [vmem:[#allocation7 + $0x1b0] sm:$0xff]  ;;  %v3555_v17 = vld [vmem:[#allocation7 + $0x198] sm:$0xff] }
 0x3be   : > { %5155 = vmatprep.subr.bf16.mxu0 %v11153_v50  ;;  %5241 = vmatprep.subr.bf16.mxu1 %v11155_v53  ;;  %v3559_v50 = vld [vmem:[#allocation7 + $0x1b8] sm:$0xff]  ;;  %v10948_v53 = vcombine.low %v3546_v42, %v3550_v5  ;;  %v10957_v57 = vcombine.high %v3554_v49, %v3558_v27 }
 0x3bf   : > { %v10959_v59 = vcombine.high %v3555_v17, %v3559_v50  ;;  %v10958_v1 = vcombine.low %v3555_v17, %v3559_v50  ;;  %v3610_v50 = vld [vmem:[#allocation7 + $0x350] sm:$0xff] }
 0x3c1   : > { %5156 = vmatpush1.bf16.msra.mxu0 %v11152_v62  ;;  %5242 = vmatpush1.bf16.msra.mxu1 %v11154_v63  ;;  %v3566_v62 = vld [vmem:[#allocation7 + $0x1f0] sm:$0xff]  ;;  %v3563_v63 = vld [vmem:[#allocation7 + $0x1d8] sm:$0xff] }
 0x3c2   : > { %5254 = vmatprep.subr.bf16.mxu0 %v10909_v0  ;;  %5340 = vmatprep.subr.bf16.mxu1 %v10911_v47  ;;  %v3567_v0 = vld [vmem:[#allocation7 + $0x1f8] sm:$0xff]  ;;  %v10956_v47 = vcombine.low %v3554_v49, %v3558_v27  ;;  %v10965_v3 = vcombine.high %v3562_v61, %v3566_v62 }
 0x3c3   : > { %v10967_v6 = vcombine.high %v3563_v63, %v3567_v0  ;;  %v10966_v13 = vcombine.low %v3563_v63, %v3567_v0  ;;  %v3618_v0 = vld [vmem:[#allocation7 + $0x390] sm:$0xff] }
 0x3c4   : > { %5158 = vmatmul.mubr.bf16.vlgmr.msra.gmra.mrb[4].mxu0 %v13792_v58  ;;  %5244 = vmatmul.mubr.bf16.vlgmr.msra.gmra.mrb[20].mxu1 %v13792_v58 }
 0x3c5   : > { %5255 = vmatpush1.bf16.msra.mxu0 %v10908_v9  ;;  %5286 = vmatprep.mubr.bf16.mxu0 %v13782_v31  ;;  %v3574_v9 = vld [vmem:[#allocation7 + $0x230] sm:$0xff] }
 0x3c6   : > { %5341 = vmatpush1.bf16.msra.mxu1 %v10910_v10  ;;  %5372 = vmatprep.mubr.bf16.mxu1 %v13782_v31  ;;  %v3539_v31 = vld [vmem:[#allocation7 + $0x118] sm:$0xff]  ;;  %v10973_v14 = vcombine.high %v3570_v8, %v3574_v9 }
 0x3c7   : > { %5256 = vmatprep.subr.bf16.mxu0 %v10917_v11  ;;  %5342 = vmatprep.subr.bf16.mxu1 %v10919_v12  ;;  %v10943_v41 = vcombine.high %v3539_v31, %v3543_v37  ;;  %v10942_v45 = vcombine.low %v3539_v31, %v3543_v37  ;;  %v3571_v10 = vld [vmem:[#allocation7 + $0x218] sm:$0xff]  ;;  %v10964_v12 = vcombine.low %v3562_v61, %v3566_v62  ;;  %v3594_v37 = vld [vmem:[#allocation7 + $0x2d0] sm:$0xff] }
 0x3c8   : > { %v3575_v11 = vld [vmem:[#allocation7 + $0x238] sm:$0xff] }
 0x3c9   : > { %5257 = vmatpush1.bf16.msra.mxu0 %v10916_v18  ;;  %v10975_v15 = vcombine.high %v3571_v10, %v3575_v11  ;;  %v3582_v18 = vld [vmem:[#allocation7 + $0x270] sm:$0xff]  ;;  %v10974_v22 = vcombine.low %v3571_v10, %v3575_v11 }
 0x3ca   : > { %5343 = vmatpush1.bf16.msra.mxu1 %v10918_v19  ;;  %5258 = vmatprep.subr.bf16.mxu0 %v10925_v20  ;;  %v3579_v19 = vld [vmem:[#allocation7 + $0x258] sm:$0xff]  ;;  %v10981_v23 = vcombine.high %v3578_v16, %v3582_v18  ;;  %v3626_v11 = vld [vmem:[#allocation7 + $0x3d0] sm:$0xff] }
 0x3cb   : > { %5344 = vmatprep.subr.bf16.mxu1 %v10927_v21  ;;  %v3583_v20 = vld [vmem:[#allocation7 + $0x278] sm:$0xff]  ;;  %v10972_v21 = vcombine.low %v3570_v8, %v3574_v9 }
 0x3cc   : > { %v10983_v24 = vcombine.high %v3579_v19, %v3583_v20  ;;  %v10982_v35 = vcombine.low %v3579_v19, %v3583_v20  ;;  %v3634_v20 = vld [vmem:[#allocation7 + $0x410] sm:$0xff] }
 0x3cd   : > { %5259 = vmatpush1.bf16.msra.mxu0 %v10924_v26  ;;  %v3590_v26 = vld [vmem:[#allocation7 + $0x2b0] sm:$0xff] }
 0x3ce   : > { %5345 = vmatpush1.bf16.msra.mxu1 %v10926_v32  ;;  %5260 = vmatprep.subr.bf16.mxu0 %v10933_v33  ;;  %v3587_v32 = vld [vmem:[#allocation7 + $0x298] sm:$0xff]  ;;  %v10989_v36 = vcombine.high %v3586_v25, %v3590_v26 }
 0x3cf   : > { %5346 = vmatprep.subr.bf16.mxu1 %v10935_v34  ;;  %v3591_v33 = vld [vmem:[#allocation7 + $0x2b8] sm:$0xff]  ;;  %v10980_v34 = vcombine.low %v3578_v16, %v3582_v18 }
 0x3d0   : > { %v10991_v31 = vcombine.high %v3587_v32, %v3591_v33  ;;  %v10990_v42 = vcombine.low %v3587_v32, %v3591_v33  ;;  %v3642_v33 = vld [vmem:[#allocation7 + $0x450] sm:$0xff] }
 0x3d1   : > { %5261 = vmatpush1.bf16.msra.mxu0 %v10932_v38  ;;  %v3598_v38 = vld [vmem:[#allocation7 + $0x2f0] sm:$0xff] }
 0x3d2   : > { %5347 = vmatpush1.bf16.msra.mxu1 %v10934_v39  ;;  %5262 = vmatprep.subr.bf16.mxu0 %v10941_v40  ;;  %v3595_v39 = vld [vmem:[#allocation7 + $0x2d8] sm:$0xff]  ;;  %v10997_v5 = vcombine.high %v3594_v37, %v3598_v38 }
 0x3d3   : > { %5348 = vmatprep.subr.bf16.mxu1 %v10943_v41  ;;  %v3599_v40 = vld [vmem:[#allocation7 + $0x2f8] sm:$0xff]  ;;  %v10988_v41 = vcombine.low %v3586_v25, %v3590_v26 }
 0x3d4   : > { %v10999_v7 = vcombine.high %v3595_v39, %v3599_v40  ;;  %v10998_v49 = vcombine.low %v3595_v39, %v3599_v40  ;;  %v3650_v39 = vld [vmem:[#allocation7 + $0x490] sm:$0xff] }
 0x3d5   : > { %5263 = vmatpush1.bf16.msra.mxu0 %v10940_v44  ;;  %v3606_v44 = vld [vmem:[#allocation7 + $0x330] sm:$0xff] }
 0x3d6   : > { %5349 = vmatpush1.bf16.msra.mxu1 %v10942_v45  ;;  %5264 = vmatprep.subr.bf16.mxu0 %v10949_v46  ;;  %v3603_v45 = vld [vmem:[#allocation7 + $0x318] sm:$0xff]  ;;  %v11005_v27 = vcombine.high %v3602_v43, %v3606_v44  ;;  %v3654_v40 = vld [vmem:[#allocation7 + $0x4b0] sm:$0xff] }
 0x3d7   : > { %5350 = vmatprep.subr.bf16.mxu1 %v10951_v48  ;;  %v3607_v46 = vld [vmem:[#allocation7 + $0x338] sm:$0xff]  ;;  %v10996_v48 = vcombine.low %v3594_v37, %v3598_v38 }
 0x3d8   : > { %v11007_v17 = vcombine.high %v3603_v45, %v3607_v46  ;;  %v11006_v61 = vcombine.low %v3603_v45, %v3607_v46  ;;  %v3658_v46 = vld [vmem:[#allocation7 + $0x4d0] sm:$0xff] }
 0x3d9   : > { %5265 = vmatpush1.bf16.msra.mxu0 %v10948_v53  ;;  %v3614_v53 = vld [vmem:[#allocation7 + $0x370] sm:$0xff] }
 0x3da   : > { %5351 = vmatpush1.bf16.msra.mxu1 %v10950_v55  ;;  %5266 = vmatprep.subr.bf16.mxu0 %v10957_v57  ;;  %v3611_v55 = vld [vmem:[#allocation7 + $0x358] sm:$0xff]  ;;  %v11013_v62 = vcombine.high %v3610_v50, %v3614_v53 }
 0x3db   : > { %5352 = vmatprep.subr.bf16.mxu1 %v10959_v59  ;;  %v3615_v57 = vld [vmem:[#allocation7 + $0x378] sm:$0xff]  ;;  %v11004_v59 = vcombine.low %v3602_v43, %v3606_v44  ;;  %v11053_v44 = vcombine.high %v3650_v39, %v3654_v40 }
 0x3dc   : > { %v11015_v63 = vcombine.high %v3611_v55, %v3615_v57  ;;  %v11014_v8 = vcombine.low %v3611_v55, %v3615_v57  ;;  %v3666_v55 = vld [vmem:[#allocation7 + $0x510] sm:$0xff] }
 0x3dd   : > { %5267 = vmatpush1.bf16.msra.mxu0 %v10956_v47  ;;  %v3622_v47 = vld [vmem:[#allocation7 + $0x3b0] sm:$0xff] }
 0x3de   : > { %5353 = vmatpush1.bf16.msra.mxu1 %v10958_v1  ;;  %5268 = vmatprep.subr.bf16.mxu0 %v10965_v3  ;;  %v3619_v1 = vld [vmem:[#allocation7 + $0x398] sm:$0xff]  ;;  %v11021_v9 = vcombine.high %v3618_v0, %v3622_v47  ;;  %v3670_v57 = vld [vmem:[#allocation7 + $0x530] sm:$0xff] }
 0x3df   : > { %5354 = vmatprep.subr.bf16.mxu1 %v10967_v6  ;;  %v3623_v3 = vld [vmem:[#allocation7 + $0x3b8] sm:$0xff]  ;;  %v11012_v6 = vcombine.low %v3610_v50, %v3614_v53 }
 0x3e0   : > { %v11023_v10 = vcombine.high %v3619_v1, %v3623_v3  ;;  %v11022_v16 = vcombine.low %v3619_v1, %v3623_v3  ;;  %v3678_v1 = vld [vmem:[#allocation7 + $0x570] sm:$0xff]  ;;  %v3675_v3 = vld [vmem:[#allocation7 + $0x558] sm:$0xff] }
 0x3e1   : > { %5269 = vmatpush1.bf16.msra.mxu0 %v10964_v12  ;;  %v3630_v12 = vld [vmem:[#allocation7 + $0x3f0] sm:$0xff] }
 0x3e2   : > { %5355 = vmatpush1.bf16.msra.mxu1 %v10966_v13  ;;  %5270 = vmatprep.subr.bf16.mxu0 %v10973_v14  ;;  %v3627_v13 = vld [vmem:[#allocation7 + $0x3d8] sm:$0xff]  ;;  %v11029_v18 = vcombine.high %v3626_v11, %v3630_v12 }
 0x3e3   : > { %5356 = vmatprep.subr.bf16.mxu1 %v10975_v15  ;;  %v3631_v14 = vld [vmem:[#allocation7 + $0x3f8] sm:$0xff]  ;;  %v11020_v15 = vcombine.low %v3618_v0, %v3622_v47  ;;  %v3674_v47 = vld [vmem:[#allocation7 + $0x550] sm:$0xff] }
 0x3e4   : > { %v11031_v19 = vcombine.high %v3627_v13, %v3631_v14  ;;  %v11030_v25 = vcombine.low %v3627_v13, %v3631_v14  ;;  %v3686_v13 = vld [vmem:[#allocation7 + $0x5b0] sm:$0xff]  ;;  %v3683_v14 = vld [vmem:[#allocation7 + $0x598] sm:$0xff] }
 0x3e5   : > { %5271 = vmatpush1.bf16.msra.mxu0 %v10972_v21  ;;  %v3638_v21 = vld [vmem:[#allocation7 + $0x430] sm:$0xff] }
 0x3e6   : > { %5357 = vmatpush1.bf16.msra.mxu1 %v10974_v22  ;;  %5272 = vmatprep.subr.bf16.mxu0 %v10981_v23  ;;  %v3635_v22 = vld [vmem:[#allocation7 + $0x418] sm:$0xff]  ;;  %v11037_v26 = vcombine.high %v3634_v20, %v3638_v21 }
 0x3e7   : > { %5358 = vmatprep.subr.bf16.mxu1 %v10983_v24  ;;  %v3639_v23 = vld [vmem:[#allocation7 + $0x438] sm:$0xff]  ;;  %v11028_v24 = vcombine.low %v3626_v11, %v3630_v12  ;;  %v3682_v12 = vld [vmem:[#allocation7 + $0x590] sm:$0xff] }
 0x3e8   : > { %v11039_v32 = vcombine.high %v3635_v22, %v3639_v23  ;;  %v11038_v37 = vcombine.low %v3635_v22, %v3639_v23  ;;  %v3694_v22 = vld [vmem:[#allocation7 + $0x5f0] sm:$0xff]  ;;  %v3691_v23 = vld [vmem:[#allocation7 + $0x5d8] sm:$0xff] }
 0x3e9   : > { %5273 = vmatpush1.bf16.msra.mxu0 %v10980_v34  ;;  %v3646_v34 = vld [vmem:[#allocation7 + $0x470] sm:$0xff] }
 0x3ea   : > { %5359 = vmatpush1.bf16.msra.mxu1 %v10982_v35  ;;  %5274 = vmatprep.subr.bf16.mxu0 %v10989_v36  ;;  %v11036_v35 = vcombine.low %v3634_v20, %v3638_v21  ;;  %v3643_v36 = vld [vmem:[#allocation7 + $0x458] sm:$0xff]  ;;  %v11045_v38 = vcombine.high %v3642_v33, %v3646_v34  ;;  %v3690_v21 = vld [vmem:[#allocation7 + $0x5d0] sm:$0xff] }
 0x3eb   : > { %5360 = vmatprep.subr.bf16.mxu1 %v10991_v31  ;;  %v3647_v31 = vld [vmem:[#allocation7 + $0x478] sm:$0xff] }
 0x3ec   : > { %v11046_v43 = vcombine.low %v3643_v36, %v3647_v31 }
 0x3ed   : > { %5275 = vmatpush1.bf16.msra.mxu0 %v10988_v41  ;;  %v11047_v41 = vcombine.high %v3643_v36, %v3647_v31  ;;  %v3699_v36 = vld [vmem:[#allocation7 + $0x618] sm:$0xff] }
 0x3ee   : > { %5361 = vmatpush1.bf16.msra.mxu1 %v10990_v42  ;;  %5276 = vmatprep.subr.bf16.mxu0 %v10997_v5  ;;  %v3651_v42 = vld [vmem:[#allocation7 + $0x498] sm:$0xff] }
 0x3ef   : > { %5362 = vmatprep.subr.bf16.mxu1 %v10999_v7  ;;  %v3655_v5 = vld [vmem:[#allocation7 + $0x4b8] sm:$0xff]  ;;  %v11044_v7 = vcombine.low %v3642_v33, %v3646_v34  ;;  %v3698_v34 = vld [vmem:[#allocation7 + $0x610] sm:$0xff] }
 0x3f0   : > { %v11055_v45 = vcombine.high %v3651_v42, %v3655_v5  ;;  %v3703_v31 = vld [vmem:[#allocation7 + $0x638] sm:$0xff] }
 0x3f1   : > { %5277 = vmatpush1.bf16.msra.mxu0 %v10996_v48  ;;  %v3662_v48 = vld [vmem:[#allocation7 + $0x4f0] sm:$0xff] }
 0x3f2   : > { %5363 = vmatpush1.bf16.msra.mxu1 %v10998_v49  ;;  %5278 = vmatprep.subr.bf16.mxu0 %v11005_v27  ;;  %v3659_v49 = vld [vmem:[#allocation7 + $0x4d8] sm:$0xff]  ;;  %v11061_v50 = vcombine.high %v3658_v46, %v3662_v48 }
 0x3f3   : > { %5364 = vmatprep.subr.bf16.mxu1 %v11007_v17  ;;  %v3663_v27 = vld [vmem:[#allocation7 + $0x4f8] sm:$0xff]  ;;  %v11052_v17 = vcombine.low %v3650_v39, %v3654_v40  ;;  %v11103_v40 = vcombine.high %v3699_v36, %v3703_v31 }
 0x3f4   : > { %v11063_v53 = vcombine.high %v3659_v49, %v3663_v27 }
 0x3f5   : > { %5279 = vmatpush1.bf16.msra.mxu0 %v11004_v59  ;;  %v3667_v59 = vld [vmem:[#allocation7 + $0x518] sm:$0xff] }
 0x3f6   : > { %5365 = vmatpush1.bf16.msra.mxu1 %v11006_v61  ;;  %5280 = vmatprep.subr.bf16.mxu0 %v11013_v62  ;;  %v3671_v61 = vld [vmem:[#allocation7 + $0x538] sm:$0xff]  ;;  %v11062_v62 = vcombine.low %v3659_v49, %v3663_v27  ;;  %v3718_v49 = vld [vmem:[#allocation7 + $0x6b0] sm:$0xff] }
 0x3f7   : > { %5366 = vmatprep.subr.bf16.mxu1 %v11015_v63  ;;  %v11069_v63 = vcombine.high %v3666_v55, %v3670_v57  ;;  %v11071_v0 = vcombine.high %v3667_v59, %v3671_v61  ;;  %v3715_v27 = vld [vmem:[#allocation7 + $0x698] sm:$0xff] }
 0x3f9   : > { %5281 = vmatpush1.bf16.msra.mxu0 %v11012_v6  ;;  %v3679_v6 = vld [vmem:[#allocation7 + $0x578] sm:$0xff] }
 0x3fa   : > { %5367 = vmatpush1.bf16.msra.mxu1 %v11014_v8  ;;  %5282 = vmatprep.subr.bf16.mxu0 %v11021_v9  ;;  %v11068_v8 = vcombine.low %v3666_v55, %v3670_v57  ;;  %v11070_v9 = vcombine.low %v3667_v59, %v3671_v61  ;;  %v11079_v11 = vcombine.high %v3675_v3, %v3679_v6  ;;  %v3722_v57 = vld [vmem:[#allocation7 + $0x6d0] sm:$0xff]  ;;  %v3723_v61 = vld [vmem:[#allocation7 + $0x6d8] sm:$0xff] }
 0x3fb   : > { %5368 = vmatprep.subr.bf16.mxu1 %v11023_v10  ;;  %v11077_v10 = vcombine.high %v3674_v47, %v3678_v1  ;;  %v3726_v59 = vld [vmem:[#allocation7 + $0x6f0] sm:$0xff] }
 0x3fd   : > { %5283 = vmatpush1.bf16.msra.mxu0 %v11020_v15  ;;  %v3687_v15 = vld [vmem:[#allocation7 + $0x5b8] sm:$0xff] }
 0x3fe   : > { %5369 = vmatpush1.bf16.msra.mxu1 %v11022_v16  ;;  %5284 = vmatprep.subr.bf16.mxu0 %v11029_v18  ;;  %v11076_v16 = vcombine.low %v3674_v47, %v3678_v1  ;;  %v11078_v18 = vcombine.low %v3675_v3, %v3679_v6  ;;  %v11087_v20 = vcombine.high %v3683_v14, %v3687_v15  ;;  %v3730_v1 = vld [vmem:[#allocation7 + $0x710] sm:$0xff]  ;;  %v3731_v6 = vld [vmem:[#allocation7 + $0x718] sm:$0xff] }
 0x3ff   : > { %5370 = vmatprep.subr.bf16.mxu1 %v11031_v19  ;;  %v11085_v19 = vcombine.high %v3682_v12, %v3686_v13  ;;  %v3734_v3 = vld [vmem:[#allocation7 + $0x730] sm:$0xff] }
 0x401   : > { %5285 = vmatpush1.bf16.msra.mxu0 %v11028_v24  ;;  %v3695_v24 = vld [vmem:[#allocation7 + $0x5f8] sm:$0xff] }
 0x402   : > { %5371 = vmatpush1.bf16.msra.mxu1 %v11030_v25  ;;  %5297 = vmatprep.subr.bf16.mxu0 %v11037_v26  ;;  %v11084_v25 = vcombine.low %v3682_v12, %v3686_v13  ;;  %v11086_v26 = vcombine.low %v3683_v14, %v3687_v15  ;;  %v11095_v33 = vcombine.high %v3691_v23, %v3695_v24  ;;  %v3738_v13 = vld [vmem:[#allocation7 + $0x750] sm:$0xff]  ;;  %v3739_v15 = vld [vmem:[#allocation7 + $0x758] sm:$0xff] }
 0x403   : > { %5383 = vmatprep.subr.bf16.mxu1 %v11039_v32  ;;  %v11093_v32 = vcombine.high %v3690_v21, %v3694_v22  ;;  %v3742_v14 = vld [vmem:[#allocation7 + $0x770] sm:$0xff] }
 0x404   : > { %5287 = vmatmul.mubr.bf16.vlgmr.msra.gmra.mrb[8].mxu0 %v13780_v29 }
 0x405   : > { %5373 = vmatmul.mubr.bf16.vlgmr.msra.gmra.mrb[24].mxu1 %v13780_v29  ;;  %5298 = vmatpush1.bf16.msra.mxu0 %v11036_v35  ;;  %v11054_v29 = vcombine.low %v3651_v42, %v3655_v5  ;;  %v3702_v35 = vld [vmem:[#allocation7 + $0x630] sm:$0xff]  ;;  %v3707_v5 = vld [vmem:[#allocation7 + $0x658] sm:$0xff] }
 0x406   : > { %5329 = vmatprep.mubr.bf16.mxu0 %v13794_v60  ;;  %5384 = vmatpush1.bf16.msra.mxu1 %v11038_v37  ;;  %v11092_v37 = vcombine.low %v3690_v21, %v3694_v22  ;;  %v11101_v39 = vcombine.high %v3698_v34, %v3702_v35  ;;  %v3710_v42 = vld [vmem:[#allocation7 + $0x670] sm:$0xff] }
 0x407   : > { %5415 = vmatprep.mubr.bf16.mxu1 %v13794_v60  ;;  %5299 = vmatprep.subr.bf16.mxu0 %v11045_v38  ;;  %v11060_v60 = vcombine.low %v3658_v46, %v3662_v48  ;;  %v11094_v38 = vcombine.low %v3691_v23, %v3695_v24  ;;  %v3714_v48 = vld [vmem:[#allocation7 + $0x690] sm:$0xff]  ;;  %v3747_v24 = vld [vmem:[#allocation7 + $0x798] sm:$0xff] }
 0x408   : > { %5385 = vmatprep.subr.bf16.mxu1 %v11047_v41  ;;  %v3706_v41 = vld [vmem:[#allocation7 + $0x650] sm:$0xff] }
 0x409   : > { %5300 = vmatpush1.bf16.msra.mxu0 %v11044_v7  ;;  %v3711_v7 = vld [vmem:[#allocation7 + $0x678] sm:$0xff]  ;;  %v3746_v22 = vld [vmem:[#allocation7 + $0x790] sm:$0xff] }
 0x40a   : > { %5386 = vmatpush1.bf16.msra.mxu1 %v11046_v43  ;;  %5301 = vmatprep.subr.bf16.mxu0 %v11053_v44  ;;  %v11100_v43 = vcombine.low %v3698_v34, %v3702_v35  ;;  %v11102_v44 = vcombine.low %v3699_v36, %v3703_v31  ;;  %v11111_v46 = vcombine.high %v3707_v5, %v3711_v7  ;;  %v3750_v23 = vld [vmem:[#allocation7 + $0x7b0] sm:$0xff]  ;;  %v3755_v31 = vld [vmem:[#allocation7 + $0x7d8] sm:$0xff] }
 0x40b   : > { %5387 = vmatprep.subr.bf16.mxu1 %v11055_v45  ;;  %v11109_v45 = vcombine.high %v3706_v41, %v3710_v42  ;;  %v3754_v35 = vld [vmem:[#allocation7 + $0x7d0] sm:$0xff] }
 0x40c   : > { %v3758_v36 = vld [vmem:[#allocation7 + $0x7f0] sm:$0xff] }
 0x40d   : > { %5302 = vmatpush1.bf16.msra.mxu0 %v11052_v17  ;;  %v3719_v17 = vld [vmem:[#allocation7 + $0x6b8] sm:$0xff] }
 0x40e   : > { %5388 = vmatpush1.bf16.msra.mxu1 %v11054_v29  ;;  %5303 = vmatprep.subr.bf16.mxu0 %v11061_v50  ;;  %v11108_v29 = vcombine.low %v3706_v41, %v3710_v42  ;;  %v11110_v50 = vcombine.low %v3707_v5, %v3711_v7  ;;  %v11119_v55 = vcombine.high %v3715_v27, %v3719_v17  ;;  %v12467_v7 = vld [vmem:[#allocation8 + $0x4] ss:$16 sps:$4 sm:$0xff]  }
 0x40f   : > { %5389 = vmatprep.subr.bf16.mxu1 %v11063_v53  ;;  %v11117_v53 = vcombine.high %v3714_v48, %v3718_v49  ;;  %v11156_v42 = vcombine.low %v3754_v35, %v3758_v36 }
 0x411   : > { %5304 = vmatpush1.bf16.msra.mxu0 %v11060_v60  ;;  %v3727_v60 = vld [vmem:[#allocation7 + $0x6f8] sm:$0xff] }
 0x412   : > { %5390 = vmatpush1.bf16.msra.mxu1 %v11062_v62  ;;  %5305 = vmatprep.subr.bf16.mxu0 %v11069_v63  ;;  %v11116_v62 = vcombine.low %v3714_v48, %v3718_v49  ;;  %v11118_v63 = vcombine.low %v3715_v27, %v3719_v17  ;;  %v11127_v47 = vcombine.high %v3723_v61, %v3727_v60  ;;  %v12476_v48 = vld [vmem:[#allocation8 + $0x2c] ss:$16 sps:$4 sm:$0xff]   ;;  %v12471_v49 = vld [vmem:[#allocation8 + $0x20] ss:$16 sps:$4 sm:$0xff]   ;;  %v12474_v27 = vld [vmem:[#allocation8 + $0x28] ss:$16 sps:$4 sm:$0xff]  }
 0x413   : > { %5391 = vmatprep.subr.bf16.mxu1 %v11071_v0  ;;  %v11125_v0 = vcombine.high %v3722_v57, %v3726_v59  ;;  %v12479_v17 = vld [vmem:[#allocation8 + $0x44] ss:$16 sps:$4 sm:$0xff]  }
 0x415   : > { %5306 = vmatpush1.bf16.msra.mxu0 %v11068_v8  ;;  %v3735_v8 = vld [vmem:[#allocation7 + $0x738] sm:$0xff] }
 0x416   : > { %5392 = vmatpush1.bf16.msra.mxu1 %v11070_v9  ;;  %5307 = vmatprep.subr.bf16.mxu0 %v11077_v10  ;;  %v11124_v9 = vcombine.low %v3722_v57, %v3726_v59  ;;  %v11126_v10 = vcombine.low %v3723_v61, %v3727_v60  ;;  %v11135_v12 = vcombine.high %v3731_v6, %v3735_v8  ;;  %v12488_v57 = vld [vmem:[#allocation8 + $0x6c] ss:$16 sps:$4 sm:$0xff]   ;;  %v12483_v59 = vld [vmem:[#allocation8 + $0x60] ss:$16 sps:$4 sm:$0xff]   ;;  %v12491_v61 = vld [vmem:[#allocation8 + $0x84] ss:$16 sps:$4 sm:$0xff]  }
 0x417   : > { %5393 = vmatprep.subr.bf16.mxu1 %v11079_v11  ;;  %v11133_v11 = vcombine.high %v3730_v1, %v3734_v3  ;;  %v12494_v60 = vld [vmem:[#allocation8 + $0x8c] ss:$16 sps:$4 sm:$0xff]  }
 0x419   : > { %5308 = vmatpush1.bf16.msra.mxu0 %v11076_v16  ;;  %v3743_v16 = vld [vmem:[#allocation7 + $0x778] sm:$0xff] }
 0x41a   : > { %5394 = vmatpush1.bf16.msra.mxu1 %v11078_v18  ;;  %5309 = vmatprep.subr.bf16.mxu0 %v11085_v19  ;;  %v11132_v18 = vcombine.low %v3730_v1, %v3734_v3  ;;  %v11134_v19 = vcombine.low %v3731_v6, %v3735_v8  ;;  %v11143_v21 = vcombine.high %v3739_v15, %v3743_v16  ;;  %v12495_v1 = vld [vmem:[#allocation8 + $0xa0] ss:$16 sps:$4 sm:$0xff]   ;;  %v12498_v3 = vld [vmem:[#allocation8 + $0xa8] ss:$16 sps:$4 sm:$0xff]   ;;  %v12503_v6 = vld [vmem:[#allocation8 + $0xc4] ss:$16 sps:$4 sm:$0xff]  }
 0x41b   : > { %5395 = vmatprep.subr.bf16.mxu1 %v11087_v20  ;;  %v11141_v20 = vcombine.high %v3738_v13, %v3742_v14  ;;  %v12506_v8 = vld [vmem:[#allocation8 + $0xcc] ss:$16 sps:$4 sm:$0xff]  }
 0x41d   : > { %5310 = vmatpush1.bf16.msra.mxu0 %v11084_v25  ;;  %v3751_v25 = vld [vmem:[#allocation7 + $0x7b8] sm:$0xff] }
 0x41e   : > { %5396 = vmatpush1.bf16.msra.mxu1 %v11086_v26  ;;  %5311 = vmatprep.subr.bf16.mxu0 %v11093_v32  ;;  %v11140_v26 = vcombine.low %v3738_v13, %v3742_v14  ;;  %v11142_v32 = vcombine.low %v3739_v15, %v3743_v16  ;;  %v11151_v34 = vcombine.high %v3747_v24, %v3751_v25  ;;  %v12507_v13 = vld [vmem:[#allocation8 + $0xe0] ss:$16 sps:$4 sm:$0xff]   ;;  %v12510_v14 = vld [vmem:[#allocation8 + $0xe8] ss:$16 sps:$4 sm:$0xff]   ;;  %v12515_v15 = vld [vmem:[#allocation8 + $0x104] ss:$16 sps:$4 sm:$0xff]  }
 0x41f   : > { %5397 = vmatprep.subr.bf16.mxu1 %v11095_v33  ;;  %v11149_v33 = vcombine.high %v3746_v22, %v3750_v23  ;;  %v12518_v16 = vld [vmem:[#allocation8 + $0x10c] ss:$16 sps:$4 sm:$0xff]  }
 0x421   : > { %5312 = vmatpush1.bf16.msra.mxu0 %v11092_v37  ;;  %v3759_v37 = vld [vmem:[#allocation7 + $0x7f8] sm:$0xff] }
 0x422   : > { %5398 = vmatpush1.bf16.msra.mxu1 %v11094_v38  ;;  %5313 = vmatprep.subr.bf16.mxu0 %v11101_v39  ;;  %v11148_v38 = vcombine.low %v3746_v22, %v3750_v23  ;;  %v11150_v39 = vcombine.low %v3747_v24, %v3751_v25  ;;  %v11159_v41 = vcombine.high %v3755_v31, %v3759_v37  ;;  %v12519_v22 = vld [vmem:[#allocation8 + $0x120] ss:$16 sps:$4 sm:$0xff]   ;;  %v12522_v23 = vld [vmem:[#allocation8 + $0x128] ss:$16 sps:$4 sm:$0xff]   ;;  %v12527_v24 = vld [vmem:[#allocation8 + $0x144] ss:$16 sps:$4 sm:$0xff]  }
 0x423   : > { %5399 = vmatprep.subr.bf16.mxu1 %v11103_v40  ;;  %v11157_v40 = vcombine.high %v3754_v35, %v3758_v36  ;;  %v11158_v5 = vcombine.low %v3755_v31, %v3759_v37  ;;  %v12530_v25 = vld [vmem:[#allocation8 + $0x14c] ss:$16 sps:$4 sm:$0xff]   ;;  %v12531_v35 = vld [vmem:[#allocation8 + $0x160] ss:$16 sps:$4 sm:$0xff]   ;;  %v12534_v36 = vld [vmem:[#allocation8 + $0x168] ss:$16 sps:$4 sm:$0xff]  }
 0x424   : > { %v12539_v31 = vld [vmem:[#allocation8 + $0x184] ss:$16 sps:$4 sm:$0xff]   ;;  %v12542_v37 = vld [vmem:[#allocation8 + $0x18c] ss:$16 sps:$4 sm:$0xff]  }
 0x425   : > { %5314 = vmatpush1.bf16.msra.mxu0 %v11100_v43  ;;  %v12470_v43 = vld [vmem:[#allocation8 + $0xc] ss:$16 sps:$4 sm:$0xff]  }
 0x426   : > { %5400 = vmatpush1.bf16.msra.mxu1 %v11102_v44  ;;  %5315 = vmatprep.subr.bf16.mxu0 %v11109_v45  ;;  %v12465_v44 = vld [vmem:[#allocation8] ss:$16 sps:$4 sm:$0xff]   ;;  %v12468_v45 = vld [vmem:[#allocation8 + $0x8] ss:$16 sps:$4 sm:$0xff]  }
 0x427   : > { %5401 = vmatprep.subr.bf16.mxu1 %v11111_v46  ;;  %v12473_v46 = vld [vmem:[#allocation8 + $0x24] ss:$16 sps:$4 sm:$0xff]  }
 0x429   : > { %5316 = vmatpush1.bf16.msra.mxu0 %v11108_v29  ;;  %v12482_v29 = vld [vmem:[#allocation8 + $0x4c] ss:$16 sps:$4 sm:$0xff]  }
 0x42a   : > { %5402 = vmatpush1.bf16.msra.mxu1 %v11110_v50  ;;  %5317 = vmatprep.subr.bf16.mxu0 %v11117_v53  ;;  %v12477_v50 = vld [vmem:[#allocation8 + $0x40] ss:$16 sps:$4 sm:$0xff]   ;;  %v12480_v53 = vld [vmem:[#allocation8 + $0x48] ss:$16 sps:$4 sm:$0xff]  }
 0x42b   : > { %5403 = vmatprep.subr.bf16.mxu1 %v11119_v55  ;;  %v12485_v55 = vld [vmem:[#allocation8 + $0x64] ss:$16 sps:$4 sm:$0xff]  }
 0x42d   : > { %5318 = vmatpush1.bf16.msra.mxu0 %v11116_v62  ;;  %v12489_v62 = vld [vmem:[#allocation8 + $0x80] ss:$16 sps:$4 sm:$0xff]  }
 0x42e   : > { %5404 = vmatpush1.bf16.msra.mxu1 %v11118_v63  ;;  %5319 = vmatprep.subr.bf16.mxu0 %v11125_v0  ;;  %v12492_v63 = vld [vmem:[#allocation8 + $0x88] ss:$16 sps:$4 sm:$0xff]   ;;  %v12497_v0 = vld [vmem:[#allocation8 + $0xa4] ss:$16 sps:$4 sm:$0xff]  }
 0x42f   : > { %5405 = vmatprep.subr.bf16.mxu1 %v11127_v47  ;;  %v12500_v47 = vld [vmem:[#allocation8 + $0xac] ss:$16 sps:$4 sm:$0xff]  }
 0x431   : > { %5320 = vmatpush1.bf16.msra.mxu0 %v11124_v9  ;;  %v12501_v9 = vld [vmem:[#allocation8 + $0xc0] ss:$16 sps:$4 sm:$0xff]  }
 0x432   : > { %5406 = vmatpush1.bf16.msra.mxu1 %v11126_v10  ;;  %5321 = vmatprep.subr.bf16.mxu0 %v11133_v11  ;;  %v12504_v10 = vld [vmem:[#allocation8 + $0xc8] ss:$16 sps:$4 sm:$0xff]   ;;  %v12509_v11 = vld [vmem:[#allocation8 + $0xe4] ss:$16 sps:$4 sm:$0xff]  }
 0x433   : > { %5407 = vmatprep.subr.bf16.mxu1 %v11135_v12  ;;  %v12512_v12 = vld [vmem:[#allocation8 + $0xec] ss:$16 sps:$4 sm:$0xff]  }
 0x435   : > { %5322 = vmatpush1.bf16.msra.mxu0 %v11132_v18  ;;  %v12513_v18 = vld [vmem:[#allocation8 + $0x100] ss:$16 sps:$4 sm:$0xff]  }
 0x436   : > { %5408 = vmatpush1.bf16.msra.mxu1 %v11134_v19  ;;  %5323 = vmatprep.subr.bf16.mxu0 %v11141_v20  ;;  %v12516_v19 = vld [vmem:[#allocation8 + $0x108] ss:$16 sps:$4 sm:$0xff]   ;;  %v12521_v20 = vld [vmem:[#allocation8 + $0x124] ss:$16 sps:$4 sm:$0xff]  }
 0x437   : > { %5409 = vmatprep.subr.bf16.mxu1 %v11143_v21  ;;  %v12524_v21 = vld [vmem:[#allocation8 + $0x12c] ss:$16 sps:$4 sm:$0xff]  }
 0x439   : > { %5324 = vmatpush1.bf16.msra.mxu0 %v11140_v26  ;;  %v12525_v26 = vld [vmem:[#allocation8 + $0x140] ss:$16 sps:$4 sm:$0xff]  }
 0x43a   : > { %5410 = vmatpush1.bf16.msra.mxu1 %v11142_v32  ;;  %5325 = vmatprep.subr.bf16.mxu0 %v11149_v33  ;;  %v12528_v32 = vld [vmem:[#allocation8 + $0x148] ss:$16 sps:$4 sm:$0xff]   ;;  %v12533_v33 = vld [vmem:[#allocation8 + $0x164] ss:$16 sps:$4 sm:$0xff]  }
 0x43b   : > { %5411 = vmatprep.subr.bf16.mxu1 %v11151_v34  ;;  %v12536_v34 = vld [vmem:[#allocation8 + $0x16c] ss:$16 sps:$4 sm:$0xff]  }
 0x43d   : > { %5326 = vmatpush1.bf16.msra.mxu0 %v11148_v38  ;;  %v12537_v38 = vld [vmem:[#allocation8 + $0x180] ss:$16 sps:$4 sm:$0xff]  }
 0x43e   : > { %5412 = vmatpush1.bf16.msra.mxu1 %v11150_v39  ;;  %5327 = vmatprep.subr.bf16.mxu0 %v11157_v40  ;;  %v12540_v39 = vld [vmem:[#allocation8 + $0x188] ss:$16 sps:$4 sm:$0xff]   ;;  %v12545_v40 = vld [vmem:[#allocation8 + $0x1a4] ss:$16 sps:$4 sm:$0xff]  }
 0x43f   : > { %5413 = vmatprep.subr.bf16.mxu1 %v11159_v41  ;;  %v12548_v41 = vld [vmem:[#allocation8 + $0x1ac] ss:$16 sps:$4 sm:$0xff]  }
 0x441   : > { %5328 = vmatpush1.bf16.msra.mxu0 %v11156_v42  ;;  %v12543_v42 = vld [vmem:[#allocation8 + $0x1a0] ss:$16 sps:$4 sm:$0xff]  }
 0x442   : > { %5414 = vmatpush1.bf16.msra.mxu1 %v11158_v5  ;;  %7024 = vmatprep.subr.bf16.mxu0 %v12467_v7  ;;  %v12546_v5 = vld [vmem:[#allocation8 + $0x1a8] ss:$16 sps:$4 sm:$0xff]   ;;  %v12551_v7 = vld [vmem:[#allocation8 + $0x1c4] ss:$16 sps:$4 sm:$0xff]  }
 0x443   : > { %7196 = vmatprep.subr.bf16.mxu1 %v12470_v43  ;;  %v12554_v43 = vld [vmem:[#allocation8 + $0x1cc] ss:$16 sps:$4 sm:$0xff]  }
 0x444   : > { %5330 = vmatmul.mubr.bf16.vlgmr.msra.gmra.mrb[8].mxu0 %v13792_v58 }
 0x445   : > { %5416 = vmatmul.mubr.bf16.vlgmr.msra.gmra.mrb[24].mxu1 %v13792_v58  ;;  %7025 = vmatpush1.bf16.msra.mxu0 %v12465_v44  ;;  %v12486_v58 = vld [vmem:[#allocation8 + $0x68] ss:$16 sps:$4 sm:$0xff]   ;;  %v12549_v44 = vld [vmem:[#allocation8 + $0x1c0] ss:$16 sps:$4 sm:$0xff]  }
 0x446   : > { %7197 = vmatpush1.bf16.msra.mxu1 %v12468_v45  ;;  %7026 = vmatprep.subr.bf16.mxu0 %v12473_v46  ;;  %v12552_v45 = vld [vmem:[#allocation8 + $0x1c8] ss:$16 sps:$4 sm:$0xff]   ;;  %v12557_v46 = vld [vmem:[#allocation8 + $0x1e4] ss:$16 sps:$4 sm:$0xff]  }
 0x447   : > { %7198 = vmatprep.subr.bf16.mxu1 %v12476_v48  ;;  %v12560_v48 = vld [vmem:[#allocation8 + $0x1ec] ss:$16 sps:$4 sm:$0xff]  }
 0x449   : > { %7027 = vmatpush1.bf16.msra.mxu0 %v12471_v49  ;;  %v12555_v49 = vld [vmem:[#allocation8 + $0x1e0] ss:$16 sps:$4 sm:$0xff]  }
 0x44a   : > { %7199 = vmatpush1.bf16.msra.mxu1 %v12474_v27  ;;  %7028 = vmatprep.subr.bf16.mxu0 %v12479_v17  ;;  %v12558_v27 = vld [vmem:[#allocation8 + $0x1e8] ss:$16 sps:$4 sm:$0xff]   ;;  %v12563_v17 = vld [vmem:[#allocation8 + $0x204] ss:$16 sps:$4 sm:$0xff]  }
 0x44b   : > { %7200 = vmatprep.subr.bf16.mxu1 %v12482_v29  ;;  %v12566_v29 = vld [vmem:[#allocation8 + $0x20c] ss:$16 sps:$4 sm:$0xff]  }
 0x44d   : > { %7029 = vmatpush1.bf16.msra.mxu0 %v12477_v50  ;;  %v13811_v50 = vld [vmem:[%s14011_s6] sm:$0xff] }
 0x44e   : > { %7201 = vmatpush1.bf16.msra.mxu1 %v12480_v53  ;;  %7030 = vmatprep.subr.bf16.mxu0 %v12485_v55  ;;  %v3765_v53 = vrot.slane %v13811_v50, %v13710_v51  ;;  %v3773_v55 = vrot.slane %v13811_v50, %v13729_v2 }
 0x44f   : > { %7202 = vmatprep.subr.bf16.mxu1 %v12488_v57  ;;  %v3769_v57 = vrot.slane %v13811_v50, %v13718_v52 }
 0x451   : > { %7031 = vmatpush1.bf16.msra.mxu0 %v12483_v59  ;;  %v3777_v59 = vrot.slane %v13811_v50, %v13732_v4 }
 0x452   : > { %7203 = vmatpush1.bf16.msra.mxu1 %v12486_v58  ;;  %7032 = vmatprep.subr.bf16.mxu0 %v12491_v61 }
 0x453   : > { %7204 = vmatprep.subr.bf16.mxu1 %v12494_v60 }
 0x455   : > { %7033 = vmatpush1.bf16.msra.mxu0 %v12489_v62 }
 0x456   : > { %7205 = vmatpush1.bf16.msra.mxu1 %v12492_v63  ;;  %7034 = vmatprep.subr.bf16.mxu0 %v12497_v0 }
 0x457   : > { %7206 = vmatprep.subr.bf16.mxu1 %v12500_v47 }
 0x459   : > { %7035 = vmatpush1.bf16.msra.mxu0 %v12495_v1 }
 0x45a   : > { %7207 = vmatpush1.bf16.msra.mxu1 %v12498_v3  ;;  %7036 = vmatprep.subr.bf16.mxu0 %v12503_v6 }
 0x45b   : > { %7208 = vmatprep.subr.bf16.mxu1 %v12506_v8 }
 0x45d   : > { %7037 = vmatpush1.bf16.msra.mxu0 %v12501_v9 }
 0x45e   : > { %7209 = vmatpush1.bf16.msra.mxu1 %v12504_v10  ;;  %7038 = vmatprep.subr.bf16.mxu0 %v12509_v11 }
 0x45f   : > { %7210 = vmatprep.subr.bf16.mxu1 %v12512_v12 }
 0x461   : > { %7039 = vmatpush1.bf16.msra.mxu0 %v12507_v13 }
 0x462   : > { %7211 = vmatpush1.bf16.msra.mxu1 %v12510_v14  ;;  %7040 = vmatprep.subr.bf16.mxu0 %v12515_v15 }
 0x463   : > { %7212 = vmatprep.subr.bf16.mxu1 %v12518_v16 }
 0x465   : > { %7041 = vmatpush1.bf16.msra.mxu0 %v12513_v18 }
 0x466   : > { %7213 = vmatpush1.bf16.msra.mxu1 %v12516_v19  ;;  %7042 = vmatprep.subr.bf16.mxu0 %v12521_v20 }
 0x467   : > { %7214 = vmatprep.subr.bf16.mxu1 %v12524_v21 }
 0x469   : > { %7043 = vmatpush1.bf16.msra.mxu0 %v12519_v22 }
 0x46a   : > { %7215 = vmatpush1.bf16.msra.mxu1 %v12522_v23  ;;  %7044 = vmatprep.subr.bf16.mxu0 %v12527_v24 }
 0x46b   : > { %7216 = vmatprep.subr.bf16.mxu1 %v12530_v25 }
 0x46d   : > { %7045 = vmatpush1.bf16.msra.mxu0 %v12525_v26  ;;  %v12561_v26 = vld [vmem:[#allocation8 + $0x200] ss:$16 sps:$4 sm:$0xff]  }
 0x46e   : > { %7217 = vmatpush1.bf16.msra.mxu1 %v12528_v32  ;;  %7046 = vmatprep.subr.bf16.mxu0 %v12533_v33  ;;  %v12564_v32 = vld [vmem:[#allocation8 + $0x208] ss:$16 sps:$4 sm:$0xff]  }
 0x46f   : > { %7218 = vmatprep.subr.bf16.mxu1 %v12536_v34  ;;  %v12569_v34 = vld [vmem:[#allocation8 + $0x224] ss:$16 sps:$4 sm:$0xff]  }
 0x471   : > { %7047 = vmatpush1.bf16.msra.mxu0 %v12531_v35  ;;  %v12572_v35 = vld [vmem:[#allocation8 + $0x22c] ss:$16 sps:$4 sm:$0xff]  }
 0x472   : > { %7219 = vmatpush1.bf16.msra.mxu1 %v12534_v36  ;;  %7048 = vmatprep.subr.bf16.mxu0 %v12539_v31  ;;  %v12567_v36 = vld [vmem:[#allocation8 + $0x220] ss:$16 sps:$4 sm:$0xff]   ;;  %v12570_v31 = vld [vmem:[#allocation8 + $0x228] ss:$16 sps:$4 sm:$0xff]  }
 0x473   : > { %7220 = vmatprep.subr.bf16.mxu1 %v12542_v37  ;;  %v12575_v37 = vld [vmem:[#allocation8 + $0x244] ss:$16 sps:$4 sm:$0xff]  }
 0x475   : > { %7049 = vmatpush1.bf16.msra.mxu0 %v12537_v38  ;;  %v12578_v38 = vld [vmem:[#allocation8 + $0x24c] ss:$16 sps:$4 sm:$0xff]  }
 0x476   : > { %7221 = vmatpush1.bf16.msra.mxu1 %v12540_v39  ;;  %7050 = vmatprep.subr.bf16.mxu0 %v12545_v40  ;;  %v12573_v39 = vld [vmem:[#allocation8 + $0x240] ss:$16 sps:$4 sm:$0xff]   ;;  %v12576_v40 = vld [vmem:[#allocation8 + $0x248] ss:$16 sps:$4 sm:$0xff]  }
 0x477   : > { %7222 = vmatprep.subr.bf16.mxu1 %v12548_v41  ;;  %v12581_v41 = vld [vmem:[#allocation8 + $0x264] ss:$16 sps:$4 sm:$0xff]  }
 0x479   : > { %7051 = vmatpush1.bf16.msra.mxu0 %v12543_v42  ;;  %v12584_v42 = vld [vmem:[#allocation8 + $0x26c] ss:$16 sps:$4 sm:$0xff]  }
 0x47a   : > { %7223 = vmatpush1.bf16.msra.mxu1 %v12546_v5  ;;  %7052 = vmatprep.subr.bf16.mxu0 %v12551_v7  ;;  %v12579_v5 = vld [vmem:[#allocation8 + $0x260] ss:$16 sps:$4 sm:$0xff]   ;;  %v12582_v7 = vld [vmem:[#allocation8 + $0x268] ss:$16 sps:$4 sm:$0xff]  }
 0x47b   : > { %7224 = vmatprep.subr.bf16.mxu1 %v12554_v43  ;;  %v12587_v43 = vld [vmem:[#allocation8 + $0x284] ss:$16 sps:$4 sm:$0xff]  }
 0x47d   : > { %7053 = vmatpush1.bf16.msra.mxu0 %v12549_v44  ;;  %v12590_v44 = vld [vmem:[#allocation8 + $0x28c] ss:$16 sps:$4 sm:$0xff]  }
 0x47e   : > { %7225 = vmatpush1.bf16.msra.mxu1 %v12552_v45  ;;  %7054 = vmatprep.subr.bf16.mxu0 %v12557_v46  ;;  %v12585_v45 = vld [vmem:[#allocation8 + $0x280] ss:$16 sps:$4 sm:$0xff]   ;;  %v12588_v46 = vld [vmem:[#allocation8 + $0x288] ss:$16 sps:$4 sm:$0xff]  }
 0x47f   : > { %7226 = vmatprep.subr.bf16.mxu1 %v12560_v48  ;;  %v12593_v48 = vld [vmem:[#allocation8 + $0x2a4] ss:$16 sps:$4 sm:$0xff]  }
 0x481   : > { %7055 = vmatpush1.bf16.msra.mxu0 %v12555_v49  ;;  %v12596_v49 = vld [vmem:[#allocation8 + $0x2ac] ss:$16 sps:$4 sm:$0xff]  }
 0x482   : > { %7227 = vmatpush1.bf16.msra.mxu1 %v12558_v27  ;;  %7067 = vmatprep.subr.bf16.mxu0 %v12563_v17  ;;  %v12591_v27 = vld [vmem:[#allocation8 + $0x2a0] ss:$16 sps:$4 sm:$0xff]   ;;  %v12594_v17 = vld [vmem:[#allocation8 + $0x2a8] ss:$16 sps:$4 sm:$0xff]  }
 0x483   : > { %7239 = vmatprep.subr.bf16.mxu1 %v12566_v29  ;;  %v12599_v29 = vld [vmem:[#allocation8 + $0x2c4] ss:$16 sps:$4 sm:$0xff]  }
 0x497   : > { %v5159_v58 = vpop.f32.mrb[4].mxu0  ;;  %v5245_v61 = vpop.f32.mrb[20].mxu1 }
 0x498   : > { %v11827_v60 = vadd.f32 %v5159_v58, %v3765_v53  ;;  %v11831_v62 = vadd.f32 %v5245_v61, %v3773_v55  ;;  %v5161_v63 = vpop.f32.mrb[5].mxu0  ;;  %v5247_v0 = vpop.f32.mrb[21].mxu1  ;;  %v12608_v58 = vld [vmem:[#allocation8 + $0x2ec] ss:$16 sps:$4 sm:$0xff]   ;;  %v12603_v61 = vld [vmem:[#allocation8 + $0x2e0] ss:$16 sps:$4 sm:$0xff]  }
 0x499   : > { %v11828_v47 = vadd.f32 %v5161_v63, %v3769_v57  ;;  %v11832_v1 = vadd.f32 %v5247_v0, %v3777_v59  ;;  %v5163_v3 = vpop.f32.mrb[6].mxu0  ;;  %v5249_v6 = vpop.f32.mrb[22].mxu1  ;;  %v12614_v63 = vld [vmem:[#allocation8 + $0x30c] ss:$16 sps:$4 sm:$0xff]   ;;  %v12609_v0 = vld [vmem:[#allocation8 + $0x300] ss:$16 sps:$4 sm:$0xff]  }
 0x49a   : > { %13041 = vtanh.f32 %v11827_v60  ;;  %v11829_v8 = vadd.f32 %v5163_v3, %v3765_v53  ;;  %v5165_v9 = vpop.f32.mrb[7].mxu0  ;;  %v5251_v10 = vpop.f32.mrb[23].mxu1  ;;  %v11833_v11 = vadd.f32 %v5249_v6, %v3773_v55  ;;  %v12602_v53 = vld [vmem:[#allocation8 + $0x2cc] ss:$16 sps:$4 sm:$0xff]   ;;  %v12597_v55 = vld [vmem:[#allocation8 + $0x2c0] ss:$16 sps:$4 sm:$0xff]  }
 0x49b   : > { %13043 = vtanh.f32 %v11831_v62  ;;  %v11830_v12 = vadd.f32 %v5165_v9, %v3769_v57  ;;  %v11834_v13 = vadd.f32 %v5251_v10, %v3777_v59  ;;  %v12600_v57 = vld [vmem:[#allocation8 + $0x2c8] ss:$16 sps:$4 sm:$0xff]   ;;  %v12605_v59 = vld [vmem:[#allocation8 + $0x2e4] ss:$16 sps:$4 sm:$0xff]   ;;  %v12620_v3 = vld [vmem:[#allocation8 + $0x32c] ss:$16 sps:$4 sm:$0xff]  }
 0x49c   : > { %13045 = vtanh.f32 %v11828_v47  ;;  %v12606_v60 = vld [vmem:[#allocation8 + $0x2e8] ss:$16 sps:$4 sm:$0xff]   ;;  %v12611_v62 = vld [vmem:[#allocation8 + $0x304] ss:$16 sps:$4 sm:$0xff]   ;;  %v12615_v6 = vld [vmem:[#allocation8 + $0x320] ss:$16 sps:$4 sm:$0xff]  }
 0x49d   : > { %13047 = vtanh.f32 %v11832_v1  ;;  %v12612_v47 = vld [vmem:[#allocation8 + $0x308] ss:$16 sps:$4 sm:$0xff]   ;;  %v12617_v1 = vld [vmem:[#allocation8 + $0x324] ss:$16 sps:$4 sm:$0xff]   ;;  %v12626_v10 = vld [vmem:[#allocation8 + $0x34c] ss:$16 sps:$4 sm:$0xff]  }
 0x49e   : > { %13049 = vtanh.f32 %v11829_v8  ;;  %v12618_v8 = vld [vmem:[#allocation8 + $0x328] ss:$16 sps:$4 sm:$0xff]   ;;  %v12623_v9 = vld [vmem:[#allocation8 + $0x344] ss:$16 sps:$4 sm:$0xff]  }
 0x49f   : > { %13051 = vtanh.f32 %v11833_v11  ;;  %v12621_v11 = vld [vmem:[#allocation8 + $0x340] ss:$16 sps:$4 sm:$0xff]  }
 0x4a0   : > { %13053 = vtanh.f32 %v11830_v12  ;;  %v12624_v12 = vld [vmem:[#allocation8 + $0x348] ss:$16 sps:$4 sm:$0xff]  }
 0x4a1   : > { %13055 = vtanh.f32 %v11834_v13  ;;  %v12629_v13 = vld [vmem:[#allocation8 + $0x364] ss:$16 sps:$4 sm:$0xff]  }
 0x4a4   : > { %v13042_v14 = vpop.eup %13041 }
 0x4a5   : > { %v13044_v15 = vpop.eup %13043  ;;  %5442 = vst [vmem:[%s13825_s15] sm:$0xff] %v13042_v14 }
 0x4a6   : > { %v13046_v16 = vpop.eup %13045  ;;  %5444 = vst [vmem:[%s13825_s15 + $0x10] sm:$0xff] %v13044_v15 }
 0x4a7   : > { %v13048_v18 = vpop.eup %13047  ;;  %5443 = vst [vmem:[%s13825_s15 + $0x8] sm:$0xff] %v13046_v16 }
 0x4a8   : > { %v13050_v19 = vpop.eup %13049  ;;  %5445 = vst [vmem:[%s13825_s15 + $0x18] sm:$0xff] %v13048_v18 }
 0x4a9   : > { %v13052_v20 = vpop.eup %13051  ;;  %5450 = vst [vmem:[%s13825_s15 + $0x40] sm:$0xff] %v13050_v19  ;;  %v5458_v21 = vpack.c.bf16 %v13050_v19, %v13042_v14  ;;  %v12632_v14 = vld [vmem:[#allocation8 + $0x36c] ss:$16 sps:$4 sm:$0xff]  }
 0x4aa   : > { %v13054_v22 = vpop.eup %13053  ;;  %5452 = vst [vmem:[%s13825_s15 + $0x50] sm:$0xff] %v13052_v20  ;;  %v13833_v23 = vpack.c.bf16 %v13052_v20, %v13044_v15  ;;  %v12627_v15 = vld [vmem:[#allocation8 + $0x360] ss:$16 sps:$4 sm:$0xff]   ;;  %v12638_v19 = vld [vmem:[#allocation8 + $0x38c] ss:$16 sps:$4 sm:$0xff]  }
 0x4ab   : > { %v13056_v24 = vpop.eup %13055  ;;  %5451 = vst [vmem:[%s13825_s15 + $0x48] sm:$0xff] %v13054_v22  ;;  %v5459_v25 = vpack.c.bf16 %v13054_v22, %v13046_v16  ;;  %v12630_v16 = vld [vmem:[#allocation8 + $0x368] ss:$16 sps:$4 sm:$0xff]   ;;  %v12633_v20 = vld [vmem:[#allocation8 + $0x380] ss:$16 sps:$4 sm:$0xff]  }
 0x4ac   : > { %5453 = vst [vmem:[%s13825_s15 + $0x58] sm:$0xff] %v13056_v24  ;;  %v5461_v33 = vpack.c.bf16 %v13056_v24, %v13048_v18  ;;  %v12635_v18 = vld [vmem:[#allocation8 + $0x384] ss:$16 sps:$4 sm:$0xff]   ;;  %v12644_v24 = vld [vmem:[#allocation8 + $0x3ac] ss:$16 sps:$4 sm:$0xff]  }
 0x4ad   : > { %7056 = vmatprep.mubr.bf16.mxu0 %v5459_v25  ;;  %7228 = vmatprep.mubr.bf16.mxu1 %v5459_v25  ;;  %v12641_v22 = vld [vmem:[#allocation8 + $0x3a4] ss:$16 sps:$4 sm:$0xff]   ;;  %v12639_v25 = vld [vmem:[#allocation8 + $0x3a0] ss:$16 sps:$4 sm:$0xff]  }
 0x4ae   : > { %7057 = vmatmul.mubr.bf16.vlgmr.msra.gmra.mrb[12].mxu0 %v5458_v21  ;;  %7229 = vmatmul.mubr.bf16.vlgmr.msra.gmra.mrb[28].mxu1 %v5458_v21  ;;  %v12636_v21 = vld [vmem:[#allocation8 + $0x388] ss:$16 sps:$4 sm:$0xff]  }
 0x4af   : > { %7068 = vmatpush1.bf16.msra.mxu0 %v12561_v26  ;;  %7240 = vmatpush1.bf16.msra.mxu1 %v12564_v32  ;;  %v12642_v26 = vld [vmem:[#allocation8 + $0x3a8] ss:$16 sps:$4 sm:$0xff]   ;;  %v12647_v32 = vld [vmem:[#allocation8 + $0x3c4] ss:$16 sps:$4 sm:$0xff]  }
 0x4b0   : > { %7099 = vmatprep.mubr.bf16.mxu0 %v5461_v33  ;;  %7271 = vmatprep.mubr.bf16.mxu1 %v5461_v33  ;;  %v12650_v33 = vld [vmem:[#allocation8 + $0x3cc] ss:$16 sps:$4 sm:$0xff]  }
 0x4b1   : > { %7069 = vmatprep.subr.bf16.mxu0 %v12569_v34  ;;  %7241 = vmatprep.subr.bf16.mxu1 %v12572_v35  ;;  %v12645_v34 = vld [vmem:[#allocation8 + $0x3c0] ss:$16 sps:$4 sm:$0xff]   ;;  %v12648_v35 = vld [vmem:[#allocation8 + $0x3c8] ss:$16 sps:$4 sm:$0xff]  }
 0x4b3   : > { %7070 = vmatpush1.bf16.msra.mxu0 %v12567_v36  ;;  %7242 = vmatpush1.bf16.msra.mxu1 %v12570_v31  ;;  %v12653_v36 = vld [vmem:[#allocation8 + $0x3e4] ss:$16 sps:$4 sm:$0xff]   ;;  %v12656_v31 = vld [vmem:[#allocation8 + $0x3ec] ss:$16 sps:$4 sm:$0xff]  }
 0x4b4   : > { %7071 = vmatprep.subr.bf16.mxu0 %v12575_v37  ;;  %7243 = vmatprep.subr.bf16.mxu1 %v12578_v38  ;;  %v12651_v37 = vld [vmem:[#allocation8 + $0x3e0] ss:$16 sps:$4 sm:$0xff]   ;;  %v12654_v38 = vld [vmem:[#allocation8 + $0x3e8] ss:$16 sps:$4 sm:$0xff]  }
 0x4b7   : > { %7072 = vmatpush1.bf16.msra.mxu0 %v12573_v39  ;;  %7244 = vmatpush1.bf16.msra.mxu1 %v12576_v40  ;;  %v12659_v39 = vld [vmem:[#allocation8 + $0x404] ss:$16 sps:$4 sm:$0xff]   ;;  %v12662_v40 = vld [vmem:[#allocation8 + $0x40c] ss:$16 sps:$4 sm:$0xff]  }
 0x4b8   : > { %7073 = vmatprep.subr.bf16.mxu0 %v12581_v41  ;;  %7245 = vmatprep.subr.bf16.mxu1 %v12584_v42  ;;  %v12657_v41 = vld [vmem:[#allocation8 + $0x400] ss:$16 sps:$4 sm:$0xff]   ;;  %v12660_v42 = vld [vmem:[#allocation8 + $0x408] ss:$16 sps:$4 sm:$0xff]  }
 0x4bb   : > { %7074 = vmatpush1.bf16.msra.mxu0 %v12579_v5  ;;  %7246 = vmatpush1.bf16.msra.mxu1 %v12582_v7  ;;  %v12665_v5 = vld [vmem:[#allocation8 + $0x424] ss:$16 sps:$4 sm:$0xff]   ;;  %v12668_v7 = vld [vmem:[#allocation8 + $0x42c] ss:$16 sps:$4 sm:$0xff]  }
 0x4bc   : > { %7075 = vmatprep.subr.bf16.mxu0 %v12587_v43  ;;  %7247 = vmatprep.subr.bf16.mxu1 %v12590_v44  ;;  %v12663_v43 = vld [vmem:[#allocation8 + $0x420] ss:$16 sps:$4 sm:$0xff]   ;;  %v12666_v44 = vld [vmem:[#allocation8 + $0x428] ss:$16 sps:$4 sm:$0xff]  }
 0x4bf   : > { %7076 = vmatpush1.bf16.msra.mxu0 %v12585_v45  ;;  %7248 = vmatpush1.bf16.msra.mxu1 %v12588_v46  ;;  %v12671_v45 = vld [vmem:[#allocation8 + $0x444] ss:$16 sps:$4 sm:$0xff]   ;;  %v12674_v46 = vld [vmem:[#allocation8 + $0x44c] ss:$16 sps:$4 sm:$0xff]  }
 0x4c0   : > { %7077 = vmatprep.subr.bf16.mxu0 %v12593_v48  ;;  %7249 = vmatprep.subr.bf16.mxu1 %v12596_v49  ;;  %v12669_v48 = vld [vmem:[#allocation8 + $0x440] ss:$16 sps:$4 sm:$0xff]   ;;  %v12672_v49 = vld [vmem:[#allocation8 + $0x448] ss:$16 sps:$4 sm:$0xff]  }
 0x4c3   : > { %7078 = vmatpush1.bf16.msra.mxu0 %v12591_v27  ;;  %7250 = vmatpush1.bf16.msra.mxu1 %v12594_v17  ;;  %v12677_v27 = vld [vmem:[#allocation8 + $0x464] ss:$16 sps:$4 sm:$0xff]   ;;  %v12680_v17 = vld [vmem:[#allocation8 + $0x46c] ss:$16 sps:$4 sm:$0xff]  }
 0x4c4   : > { %7079 = vmatprep.subr.bf16.mxu0 %v12599_v29  ;;  %7251 = vmatprep.subr.bf16.mxu1 %v12602_v53  ;;  %v12675_v29 = vld [vmem:[#allocation8 + $0x460] ss:$16 sps:$4 sm:$0xff]   ;;  %v12683_v53 = vld [vmem:[#allocation8 + $0x484] ss:$16 sps:$4 sm:$0xff]  }
 0x4c7   : > { %7080 = vmatpush1.bf16.msra.mxu0 %v12597_v55  ;;  %7252 = vmatpush1.bf16.msra.mxu1 %v12600_v57  ;;  %v12686_v55 = vld [vmem:[#allocation8 + $0x48c] ss:$16 sps:$4 sm:$0xff]   ;;  %v12681_v57 = vld [vmem:[#allocation8 + $0x480] ss:$16 sps:$4 sm:$0xff]  }
 0x4c8   : > { %7081 = vmatprep.subr.bf16.mxu0 %v12605_v59  ;;  %7253 = vmatprep.subr.bf16.mxu1 %v12608_v58  ;;  %v12684_v59 = vld [vmem:[#allocation8 + $0x488] ss:$16 sps:$4 sm:$0xff]   ;;  %v12689_v58 = vld [vmem:[#allocation8 + $0x4a4] ss:$16 sps:$4 sm:$0xff]  }
 0x4cb   : > { %7082 = vmatpush1.bf16.msra.mxu0 %v12603_v61  ;;  %7254 = vmatpush1.bf16.msra.mxu1 %v12606_v60  ;;  %v12692_v61 = vld [vmem:[#allocation8 + $0x4ac] ss:$16 sps:$4 sm:$0xff]   ;;  %v12687_v60 = vld [vmem:[#allocation8 + $0x4a0] ss:$16 sps:$4 sm:$0xff]  }
 0x4cc   : > { %7083 = vmatprep.subr.bf16.mxu0 %v12611_v62  ;;  %7255 = vmatprep.subr.bf16.mxu1 %v12614_v63  ;;  %v12690_v62 = vld [vmem:[#allocation8 + $0x4a8] ss:$16 sps:$4 sm:$0xff]   ;;  %v12695_v63 = vld [vmem:[#allocation8 + $0x4c4] ss:$16 sps:$4 sm:$0xff]  }
 0x4cf   : > { %7084 = vmatpush1.bf16.msra.mxu0 %v12609_v0  ;;  %7256 = vmatpush1.bf16.msra.mxu1 %v12612_v47  ;;  %v12698_v0 = vld [vmem:[#allocation8 + $0x4cc] ss:$16 sps:$4 sm:$0xff]   ;;  %v12693_v47 = vld [vmem:[#allocation8 + $0x4c0] ss:$16 sps:$4 sm:$0xff]  }
 0x4d0   : > { %7085 = vmatprep.subr.bf16.mxu0 %v12617_v1  ;;  %7257 = vmatprep.subr.bf16.mxu1 %v12620_v3  ;;  %v12696_v1 = vld [vmem:[#allocation8 + $0x4c8] ss:$16 sps:$4 sm:$0xff]   ;;  %v12701_v3 = vld [vmem:[#allocation8 + $0x4e4] ss:$16 sps:$4 sm:$0xff]  }
 0x4d3   : > { %7086 = vmatpush1.bf16.msra.mxu0 %v12615_v6  ;;  %7258 = vmatpush1.bf16.msra.mxu1 %v12618_v8  ;;  %v12704_v6 = vld [vmem:[#allocation8 + $0x4ec] ss:$16 sps:$4 sm:$0xff]   ;;  %v12699_v8 = vld [vmem:[#allocation8 + $0x4e0] ss:$16 sps:$4 sm:$0xff]  }
 0x4d4   : > { %7087 = vmatprep.subr.bf16.mxu0 %v12623_v9  ;;  %7259 = vmatprep.subr.bf16.mxu1 %v12626_v10  ;;  %v12702_v9 = vld [vmem:[#allocation8 + $0x4e8] ss:$16 sps:$4 sm:$0xff]   ;;  %v12707_v10 = vld [vmem:[#allocation8 + $0x504] ss:$16 sps:$4 sm:$0xff]  }
 0x4d7   : > { %7088 = vmatpush1.bf16.msra.mxu0 %v12621_v11  ;;  %7260 = vmatpush1.bf16.msra.mxu1 %v12624_v12  ;;  %v12710_v11 = vld [vmem:[#allocation8 + $0x50c] ss:$16 sps:$4 sm:$0xff]   ;;  %v12705_v12 = vld [vmem:[#allocation8 + $0x500] ss:$16 sps:$4 sm:$0xff]  }
 0x4d8   : > { %7089 = vmatprep.subr.bf16.mxu0 %v12629_v13  ;;  %7261 = vmatprep.subr.bf16.mxu1 %v12632_v14  ;;  %v12708_v13 = vld [vmem:[#allocation8 + $0x508] ss:$16 sps:$4 sm:$0xff]   ;;  %v12713_v14 = vld [vmem:[#allocation8 + $0x524] ss:$16 sps:$4 sm:$0xff]  }
 0x4db   : > { %7090 = vmatpush1.bf16.msra.mxu0 %v12627_v15  ;;  %7262 = vmatpush1.bf16.msra.mxu1 %v12630_v16  ;;  %v12716_v15 = vld [vmem:[#allocation8 + $0x52c] ss:$16 sps:$4 sm:$0xff]   ;;  %v12711_v16 = vld [vmem:[#allocation8 + $0x520] ss:$16 sps:$4 sm:$0xff]  }
 0x4dc   : > { %7091 = vmatprep.subr.bf16.mxu0 %v12635_v18  ;;  %7263 = vmatprep.subr.bf16.mxu1 %v12638_v19  ;;  %v12714_v18 = vld [vmem:[#allocation8 + $0x528] ss:$16 sps:$4 sm:$0xff]   ;;  %v12719_v19 = vld [vmem:[#allocation8 + $0x544] ss:$16 sps:$4 sm:$0xff]  }
 0x4df   : > { %7092 = vmatpush1.bf16.msra.mxu0 %v12633_v20  ;;  %7264 = vmatpush1.bf16.msra.mxu1 %v12636_v21  ;;  %v12722_v20 = vld [vmem:[#allocation8 + $0x54c] ss:$16 sps:$4 sm:$0xff]   ;;  %v12717_v21 = vld [vmem:[#allocation8 + $0x540] ss:$16 sps:$4 sm:$0xff]  }
 0x4e0   : > { %7093 = vmatprep.subr.bf16.mxu0 %v12641_v22  ;;  %7265 = vmatprep.subr.bf16.mxu1 %v12644_v24  ;;  %v12720_v22 = vld [vmem:[#allocation8 + $0x548] ss:$16 sps:$4 sm:$0xff]   ;;  %v12725_v24 = vld [vmem:[#allocation8 + $0x564] ss:$16 sps:$4 sm:$0xff]  }
 0x4e3   : > { %7094 = vmatpush1.bf16.msra.mxu0 %v12639_v25  ;;  %7266 = vmatpush1.bf16.msra.mxu1 %v12642_v26  ;;  %v12728_v25 = vld [vmem:[#allocation8 + $0x56c] ss:$16 sps:$4 sm:$0xff]   ;;  %v3781_v26 = vrot.slane %v13811_v50, %v13743_v28 }
 0x4e4   : > { %7095 = vmatprep.subr.bf16.mxu0 %v12647_v32  ;;  %7267 = vmatprep.subr.bf16.mxu1 %v12650_v33  ;;  %v3789_v32 = vrot.slane %v13811_v50, %v13757_v54  ;;  %v3785_v33 = vrot.slane %v13811_v50, %v13746_v30 }
 0x4e7   : > { %7096 = vmatpush1.bf16.msra.mxu0 %v12645_v34  ;;  %7268 = vmatpush1.bf16.msra.mxu1 %v12648_v35  ;;  %v3793_v34 = vrot.slane %v13811_v50, %v13760_v56  ;;  %v12723_v35 = vld [vmem:[#allocation8 + $0x560] ss:$16 sps:$4 sm:$0xff]  }
 0x4e8   : > { %7097 = vmatprep.subr.bf16.mxu0 %v12653_v36  ;;  %7269 = vmatprep.subr.bf16.mxu1 %v12656_v31  ;;  %v12726_v36 = vld [vmem:[#allocation8 + $0x568] ss:$16 sps:$4 sm:$0xff]  }
 0x4eb   : > { %7098 = vmatpush1.bf16.msra.mxu0 %v12651_v37  ;;  %7270 = vmatpush1.bf16.msra.mxu1 %v12654_v38 }
 0x4ec   : > { %7110 = vmatprep.subr.bf16.mxu0 %v12659_v39  ;;  %7282 = vmatprep.subr.bf16.mxu1 %v12662_v40  ;;  %v12731_v40 = vld [vmem:[#allocation8 + $0x584] ss:$16 sps:$4 sm:$0xff]  }
 0x4ee   : > { %7100 = vmatmul.mubr.bf16.vlgmr.msra.gmra.mrb[12].mxu0 %v13833_v23  ;;  %7272 = vmatmul.mubr.bf16.vlgmr.msra.gmra.mrb[28].mxu1 %v13833_v23  ;;  %v12678_v23 = vld [vmem:[#allocation8 + $0x468] ss:$16 sps:$4 sm:$0xff]  }
 0x4ef   : > { %7111 = vmatpush1.bf16.msra.mxu0 %v12657_v41  ;;  %7283 = vmatpush1.bf16.msra.mxu1 %v12660_v42  ;;  %v12734_v41 = vld [vmem:[#allocation8 + $0x58c] ss:$16 sps:$4 sm:$0xff]  }
 0x4f0   : > { %7112 = vmatprep.subr.bf16.mxu0 %v12665_v5  ;;  %7284 = vmatprep.subr.bf16.mxu1 %v12668_v7 }
 0x4f3   : > { %7113 = vmatpush1.bf16.msra.mxu0 %v12663_v43  ;;  %7285 = vmatpush1.bf16.msra.mxu1 %v12666_v44 }
 0x4f4   : > { %7114 = vmatprep.subr.bf16.mxu0 %v12671_v45  ;;  %7286 = vmatprep.subr.bf16.mxu1 %v12674_v46 }
 0x4f7   : > { %7115 = vmatpush1.bf16.msra.mxu0 %v12669_v48  ;;  %7287 = vmatpush1.bf16.msra.mxu1 %v12672_v49 }
 0x4f8   : > { %7116 = vmatprep.subr.bf16.mxu0 %v12677_v27  ;;  %7288 = vmatprep.subr.bf16.mxu1 %v12680_v17  ;;  %v12729_v27 = vld [vmem:[#allocation8 + $0x580] ss:$16 sps:$4 sm:$0xff]   ;;  %v12732_v17 = vld [vmem:[#allocation8 + $0x588] ss:$16 sps:$4 sm:$0xff]  }
 0x4fb   : > { %7117 = vmatpush1.bf16.msra.mxu0 %v12675_v29  ;;  %7289 = vmatpush1.bf16.msra.mxu1 %v12678_v23  ;;  %v12737_v23 = vld [vmem:[#allocation8 + $0x5a4] ss:$16 sps:$4 sm:$0xff]  }
 0x4fc   : > { %7118 = vmatprep.subr.bf16.mxu0 %v12683_v53  ;;  %7290 = vmatprep.subr.bf16.mxu1 %v12686_v55  ;;  %v12740_v53 = vld [vmem:[#allocation8 + $0x5ac] ss:$16 sps:$4 sm:$0xff]  }
 0x4ff   : > { %7119 = vmatpush1.bf16.msra.mxu0 %v12681_v57  ;;  %7291 = vmatpush1.bf16.msra.mxu1 %v12684_v59  ;;  %v12735_v57 = vld [vmem:[#allocation8 + $0x5a0] ss:$16 sps:$4 sm:$0xff]   ;;  %v12738_v59 = vld [vmem:[#allocation8 + $0x5a8] ss:$16 sps:$4 sm:$0xff]  }
 0x500   : > { %7120 = vmatprep.subr.bf16.mxu0 %v12689_v58  ;;  %7292 = vmatprep.subr.bf16.mxu1 %v12692_v61  ;;  %v12743_v58 = vld [vmem:[#allocation8 + $0x5c4] ss:$16 sps:$4 sm:$0xff]   ;;  %v12746_v61 = vld [vmem:[#allocation8 + $0x5cc] ss:$16 sps:$4 sm:$0xff]  }
 0x503   : > { %7121 = vmatpush1.bf16.msra.mxu0 %v12687_v60  ;;  %7293 = vmatpush1.bf16.msra.mxu1 %v12690_v62  ;;  %v12741_v60 = vld [vmem:[#allocation8 + $0x5c0] ss:$16 sps:$4 sm:$0xff]   ;;  %v12744_v62 = vld [vmem:[#allocation8 + $0x5c8] ss:$16 sps:$4 sm:$0xff]  }
 0x504   : > { %7122 = vmatprep.subr.bf16.mxu0 %v12695_v63  ;;  %7294 = vmatprep.subr.bf16.mxu1 %v12698_v0  ;;  %v12749_v0 = vld [vmem:[#allocation8 + $0x5e4] ss:$16 sps:$4 sm:$0xff]  }
 0x507   : > { %7123 = vmatpush1.bf16.msra.mxu0 %v12693_v47  ;;  %7295 = vmatpush1.bf16.msra.mxu1 %v12696_v1  ;;  %v12752_v47 = vld [vmem:[#allocation8 + $0x5ec] ss:$16 sps:$4 sm:$0xff]  }
 0x508   : > { %7124 = vmatprep.subr.bf16.mxu0 %v12701_v3  ;;  %7296 = vmatprep.subr.bf16.mxu1 %v12704_v6 }
 0x50b   : > { %7125 = vmatpush1.bf16.msra.mxu0 %v12699_v8  ;;  %7297 = vmatpush1.bf16.msra.mxu1 %v12702_v9  ;;  %v12747_v8 = vld [vmem:[#allocation8 + $0x5e0] ss:$16 sps:$4 sm:$0xff]   ;;  %v12750_v9 = vld [vmem:[#allocation8 + $0x5e8] ss:$16 sps:$4 sm:$0xff]  }
 0x50c   : > { %7126 = vmatprep.subr.bf16.mxu0 %v12707_v10  ;;  %7298 = vmatprep.subr.bf16.mxu1 %v12710_v11  ;;  %v12755_v11 = vld [vmem:[#allocation8 + $0x604] ss:$16 sps:$4 sm:$0xff]  }
 0x50f   : > { %7127 = vmatpush1.bf16.msra.mxu0 %v12705_v12  ;;  %7299 = vmatpush1.bf16.msra.mxu1 %v12708_v13  ;;  %v12758_v12 = vld [vmem:[#allocation8 + $0x60c] ss:$16 sps:$4 sm:$0xff]  }
 0x510   : > { %7128 = vmatprep.subr.bf16.mxu0 %v12713_v14  ;;  %7300 = vmatprep.subr.bf16.mxu1 %v12716_v15 }
 0x513   : > { %7129 = vmatpush1.bf16.msra.mxu0 %v12711_v16  ;;  %7301 = vmatpush1.bf16.msra.mxu1 %v12714_v18 }
 0x514   : > { %7130 = vmatprep.subr.bf16.mxu0 %v12719_v19  ;;  %7302 = vmatprep.subr.bf16.mxu1 %v12722_v20  ;;  %v12753_v20 = vld [vmem:[#allocation8 + $0x600] ss:$16 sps:$4 sm:$0xff]  }
 0x517   : > { %7131 = vmatpush1.bf16.msra.mxu0 %v12717_v21  ;;  %7303 = vmatpush1.bf16.msra.mxu1 %v12720_v22  ;;  %v5331_v31 = vpop.f32.mrb[8].mxu0  ;;  %v12756_v21 = vld [vmem:[#allocation8 + $0x608] ss:$16 sps:$4 sm:$0xff]  }
 0x518   : > { %7132 = vmatprep.subr.bf16.mxu0 %v12725_v24  ;;  %7304 = vmatprep.subr.bf16.mxu1 %v12728_v25  ;;  %v11835_v37 = vadd.f32 %v5331_v31, %v3781_v26  ;;  %v5417_v38 = vpop.f32.mrb[24].mxu1  ;;  %v5333_v39 = vpop.f32.mrb[9].mxu0  ;;  %v12761_v24 = vld [vmem:[#allocation8 + $0x624] ss:$16 sps:$4 sm:$0xff]   ;;  %v12764_v25 = vld [vmem:[#allocation8 + $0x62c] ss:$16 sps:$4 sm:$0xff]  }
 0x519   : > { %v11839_v42 = vadd.f32 %v5417_v38, %v3789_v32  ;;  %v11836_v5 = vadd.f32 %v5333_v39, %v3785_v33  ;;  %v5419_v7 = vpop.f32.mrb[25].mxu1  ;;  %v5335_v43 = vpop.f32.mrb[10].mxu0  ;;  %v12773_v31 = vld [vmem:[#allocation8 + $0x664] ss:$16 sps:$4 sm:$0xff]   ;;  %v12771_v38 = vld [vmem:[#allocation8 + $0x660] ss:$16 sps:$4 sm:$0xff]  }
 0x51a   : > { %13057 = vtanh.f32 %v11835_v37  ;;  %v11840_v44 = vadd.f32 %v5419_v7, %v3793_v34  ;;  %v11837_v45 = vadd.f32 %v5335_v43, %v3781_v26  ;;  %v5421_v50 = vpop.f32.mrb[26].mxu1  ;;  %v5337_v46 = vpop.f32.mrb[11].mxu0  ;;  %v12759_v26 = vld [vmem:[#allocation8 + $0x620] ss:$16 sps:$4 sm:$0xff]   ;;  %v12776_v37 = vld [vmem:[#allocation8 + $0x66c] ss:$16 sps:$4 sm:$0xff]  }
 0x51b   : > { %13059 = vtanh.f32 %v11839_v42  ;;  %7133 = vmatpush1.bf16.msra.mxu0 %v12723_v35  ;;  %7305 = vmatpush1.bf16.msra.mxu1 %v12726_v36  ;;  %v11841_v48 = vadd.f32 %v5421_v50, %v3789_v32  ;;  %v5423_v49 = vpop.f32.mrb[27].mxu1  ;;  %v11838_v29 = vadd.f32 %v5337_v46, %v3785_v33  ;;  %v12762_v32 = vld [vmem:[#allocation8 + $0x628] ss:$16 sps:$4 sm:$0xff]   ;;  %v12767_v33 = vld [vmem:[#allocation8 + $0x644] ss:$16 sps:$4 sm:$0xff]  }
 0x51c   : > { %13061 = vtanh.f32 %v11836_v5  ;;  %7134 = vmatprep.subr.bf16.mxu0 %v12731_v40  ;;  %7306 = vmatprep.subr.bf16.mxu1 %v12734_v41  ;;  %v11842_v55 = vadd.f32 %v5423_v49, %v3793_v34  ;;  %v12770_v34 = vld [vmem:[#allocation8 + $0x64c] ss:$16 sps:$4 sm:$0xff]   ;;  %v12765_v35 = vld [vmem:[#allocation8 + $0x640] ss:$16 sps:$4 sm:$0xff]   ;;  %v12768_v36 = vld [vmem:[#allocation8 + $0x648] ss:$16 sps:$4 sm:$0xff]  }
 0x51d   : > { %13063 = vtanh.f32 %v11840_v44  ;;  %v12774_v39 = vld [vmem:[#allocation8 + $0x668] ss:$16 sps:$4 sm:$0xff]   ;;  %v12779_v40 = vld [vmem:[#allocation8 + $0x684] ss:$16 sps:$4 sm:$0xff]   ;;  %v12782_v41 = vld [vmem:[#allocation8 + $0x68c] ss:$16 sps:$4 sm:$0xff]  }
 0x51e   : > { %13065 = vtanh.f32 %v11837_v45  ;;  %v12777_v42 = vld [vmem:[#allocation8 + $0x680] ss:$16 sps:$4 sm:$0xff]   ;;  %v12780_v5 = vld [vmem:[#allocation8 + $0x688] ss:$16 sps:$4 sm:$0xff]   ;;  %v12785_v7 = vld [vmem:[#allocation8 + $0x6a4] ss:$16 sps:$4 sm:$0xff]  }
 0x51f   : > { %13067 = vtanh.f32 %v11841_v48  ;;  %7135 = vmatpush1.bf16.msra.mxu0 %v12729_v27  ;;  %7307 = vmatpush1.bf16.msra.mxu1 %v12732_v17  ;;  %v12788_v43 = vld [vmem:[#allocation8 + $0x6ac] ss:$16 sps:$4 sm:$0xff]   ;;  %v12783_v44 = vld [vmem:[#allocation8 + $0x6a0] ss:$16 sps:$4 sm:$0xff]   ;;  %v12786_v45 = vld [vmem:[#allocation8 + $0x6a8] ss:$16 sps:$4 sm:$0xff]  }
 0x520   : > { %13069 = vtanh.f32 %v11838_v29  ;;  %7136 = vmatprep.subr.bf16.mxu0 %v12737_v23  ;;  %7308 = vmatprep.subr.bf16.mxu1 %v12740_v53  ;;  %v12791_v50 = vld [vmem:[#allocation8 + $0x6c4] ss:$16 sps:$4 sm:$0xff]   ;;  %v12794_v46 = vld [vmem:[#allocation8 + $0x6cc] ss:$16 sps:$4 sm:$0xff]   ;;  %v12789_v48 = vld [vmem:[#allocation8 + $0x6c0] ss:$16 sps:$4 sm:$0xff]  }
 0x521   : > { %13071 = vtanh.f32 %v11842_v55  ;;  %v12792_v49 = vld [vmem:[#allocation8 + $0x6c8] ss:$16 sps:$4 sm:$0xff]   ;;  %v12797_v27 = vld [vmem:[#allocation8 + $0x6e4] ss:$16 sps:$4 sm:$0xff]   ;;  %v12800_v17 = vld [vmem:[#allocation8 + $0x6ec] ss:$16 sps:$4 sm:$0xff]  }
 0x522   : > { %v12795_v29 = vld [vmem:[#allocation8 + $0x6e0] ss:$16 sps:$4 sm:$0xff]   ;;  %v12798_v23 = vld [vmem:[#allocation8 + $0x6e8] ss:$16 sps:$4 sm:$0xff]   ;;  %v12803_v53 = vld [vmem:[#allocation8 + $0x704] ss:$16 sps:$4 sm:$0xff]  }
 0x523   : > { %7137 = vmatpush1.bf16.msra.mxu0 %v12735_v57  ;;  %7309 = vmatpush1.bf16.msra.mxu1 %v12738_v59  ;;  %v12806_v55 = vld [vmem:[#allocation8 + $0x70c] ss:$16 sps:$4 sm:$0xff]   ;;  %v12801_v57 = vld [vmem:[#allocation8 + $0x700] ss:$16 sps:$4 sm:$0xff]   ;;  %v12804_v59 = vld [vmem:[#allocation8 + $0x708] ss:$16 sps:$4 sm:$0xff]  }
 0x524   : > { %v13058_v63 = vpop.eup %13057  ;;  %7138 = vmatprep.subr.bf16.mxu0 %v12743_v58  ;;  %7310 = vmatprep.subr.bf16.mxu1 %v12746_v61  ;;  %v12809_v58 = vld [vmem:[#allocation8 + $0x724] ss:$16 sps:$4 sm:$0xff]   ;;  %v12812_v61 = vld [vmem:[#allocation8 + $0x72c] ss:$16 sps:$4 sm:$0xff]  }
 0x525   : > { %v13060_v1 = vpop.eup %13059  ;;  %5446 = vst [vmem:[%s13825_s15 + $0x20] sm:$0xff] %v13058_v63 }
 0x526   : > { %v13062_v3 = vpop.eup %13061  ;;  %5448 = vst [vmem:[%s13825_s15 + $0x30] sm:$0xff] %v13060_v1 }
 0x527   : > { %v13064_v6 = vpop.eup %13063  ;;  %5447 = vst [vmem:[%s13825_s15 + $0x28] sm:$0xff] %v13062_v3  ;;  %7139 = vmatpush1.bf16.msra.mxu0 %v12741_v60  ;;  %7311 = vmatpush1.bf16.msra.mxu1 %v12744_v62  ;;  %v12807_v60 = vld [vmem:[#allocation8 + $0x720] ss:$16 sps:$4 sm:$0xff]   ;;  %v12810_v62 = vld [vmem:[#allocation8 + $0x728] ss:$16 sps:$4 sm:$0xff]  }
 0x528   : > { %v13066_v10 = vpop.eup %13065  ;;  %5449 = vst [vmem:[%s13825_s15 + $0x38] sm:$0xff] %v13064_v6  ;;  %7140 = vmatprep.subr.bf16.mxu0 %v12749_v0  ;;  %7312 = vmatprep.subr.bf16.mxu1 %v12752_v47  ;;  %v12818_v0 = vld [vmem:[#allocation8 + $0x74c] ss:$16 sps:$4 sm:$0xff]   ;;  %v12813_v47 = vld [vmem:[#allocation8 + $0x740] ss:$16 sps:$4 sm:$0xff]  }
 0x529   : > { %v13068_v13 = vpop.eup %13067  ;;  %5454 = vst [vmem:[%s13825_s15 + $0x60] sm:$0xff] %v13066_v10  ;;  %v5462_v14 = vpack.c.bf16 %v13066_v10, %v13058_v63  ;;  %v12815_v63 = vld [vmem:[#allocation8 + $0x744] ss:$16 sps:$4 sm:$0xff]  }
 0x52a   : > { %v13070_v15 = vpop.eup %13069  ;;  %5456 = vst [vmem:[%s13825_s15 + $0x70] sm:$0xff] %v13068_v13  ;;  %v13853_v16 = vpack.c.bf16 %v13068_v13, %v13060_v1  ;;  %v12816_v1 = vld [vmem:[#allocation8 + $0x748] ss:$16 sps:$4 sm:$0xff]   ;;  %v12827_v10 = vld [vmem:[#allocation8 + $0x784] ss:$16 sps:$4 sm:$0xff]  }
 0x52b   : > { %v13072_v18 = vpop.eup %13071  ;;  %5455 = vst [vmem:[%s13825_s15 + $0x68] sm:$0xff] %v13070_v15  ;;  %7141 = vmatpush1.bf16.msra.mxu0 %v12747_v8  ;;  %7313 = vmatpush1.bf16.msra.mxu1 %v12750_v9  ;;  %v5463_v19 = vpack.c.bf16 %v13070_v15, %v13062_v3  ;;  %v12821_v3 = vld [vmem:[#allocation8 + $0x764] ss:$16 sps:$4 sm:$0xff]   ;;  %v12819_v8 = vld [vmem:[#allocation8 + $0x760] ss:$16 sps:$4 sm:$0xff]  }
 0x52c   : > { %5457 = vst [vmem:[%s13825_s15 + $0x78] sm:$0xff] %v13072_v18  ;;  %7153 = vmatprep.subr.bf16.mxu0 %v12755_v11  ;;  %7325 = vmatprep.subr.bf16.mxu1 %v12758_v12  ;;  %v5465_v22 = vpack.c.bf16 %v13072_v18, %v13064_v6  ;;  %v12824_v6 = vld [vmem:[#allocation8 + $0x76c] ss:$16 sps:$4 sm:$0xff]   ;;  %v12822_v9 = vld [vmem:[#allocation8 + $0x768] ss:$16 sps:$4 sm:$0xff]  }
 0x52d   : > { %7142 = vmatprep.mubr.bf16.mxu0 %v5463_v19  ;;  %7314 = vmatprep.mubr.bf16.mxu1 %v5463_v19  ;;  %v12830_v11 = vld [vmem:[#allocation8 + $0x78c] ss:$16 sps:$4 sm:$0xff]   ;;  %v12825_v12 = vld [vmem:[#allocation8 + $0x780] ss:$16 sps:$4 sm:$0xff]   ;;  %v12828_v13 = vld [vmem:[#allocation8 + $0x788] ss:$16 sps:$4 sm:$0xff]  }
 0x52e   : > { %7143 = vmatmul.mubr.bf16.vlgmr.msra.gmra.mrb[12].mxu0 %v5462_v14  ;;  %7315 = vmatmul.mubr.bf16.vlgmr.msra.gmra.mrb[28].mxu1 %v5462_v14  ;;  %v12833_v14 = vld [vmem:[#allocation8 + $0x7a4] ss:$16 sps:$4 sm:$0xff]   ;;  %v12836_v15 = vld [vmem:[#allocation8 + $0x7ac] ss:$16 sps:$4 sm:$0xff]   ;;  %v12831_v18 = vld [vmem:[#allocation8 + $0x7a0] ss:$16 sps:$4 sm:$0xff]  }
 0x52f   : > { %7154 = vmatpush1.bf16.msra.mxu0 %v12753_v20  ;;  %7326 = vmatpush1.bf16.msra.mxu1 %v12756_v21  ;;  %v12834_v19 = vld [vmem:[#allocation8 + $0x7a8] ss:$16 sps:$4 sm:$0xff]   ;;  %v12839_v20 = vld [vmem:[#allocation8 + $0x7c4] ss:$16 sps:$4 sm:$0xff]   ;;  %v12842_v21 = vld [vmem:[#allocation8 + $0x7cc] ss:$16 sps:$4 sm:$0xff]  }
 0x530   : > { %7185 = vmatprep.mubr.bf16.mxu0 %v5465_v22  ;;  %7357 = vmatprep.mubr.bf16.mxu1 %v5465_v22  ;;  %v12837_v22 = vld [vmem:[#allocation8 + $0x7c0] ss:$16 sps:$4 sm:$0xff]  }
 0x531   : > { %7155 = vmatprep.subr.bf16.mxu0 %v12761_v24  ;;  %7327 = vmatprep.subr.bf16.mxu1 %v12764_v25  ;;  %v12840_v24 = vld [vmem:[#allocation8 + $0x7c8] ss:$16 sps:$4 sm:$0xff]   ;;  %v12845_v25 = vld [vmem:[#allocation8 + $0x7e4] ss:$16 sps:$4 sm:$0xff]  }
 0x533   : > { %7156 = vmatpush1.bf16.msra.mxu0 %v12759_v26  ;;  %7328 = vmatpush1.bf16.msra.mxu1 %v12762_v32  ;;  %v12848_v26 = vld [vmem:[#allocation8 + $0x7ec] ss:$16 sps:$4 sm:$0xff]   ;;  %v7380_v32 = vld [vmem:[#allocation10] sm:$0xff] }
 0x534   : > { %7157 = vmatprep.subr.bf16.mxu0 %v12767_v33  ;;  %7329 = vmatprep.subr.bf16.mxu1 %v12770_v34  ;;  %v7384_v33 = vld [vmem:[#allocation10 + $0x20] sm:$0xff]  ;;  %v7381_v34 = vld [vmem:[#allocation10 + $0x8] sm:$0xff] }
 0x537   : > { %7158 = vmatpush1.bf16.msra.mxu0 %v12765_v35  ;;  %7330 = vmatpush1.bf16.msra.mxu1 %v12768_v36  ;;  %v7385_v35 = vld [vmem:[#allocation10 + $0x28] sm:$0xff]  ;;  %v12843_v36 = vld [vmem:[#allocation8 + $0x7e0] ss:$16 sps:$4 sm:$0xff]  }
 0x538   : > { %7159 = vmatprep.subr.bf16.mxu0 %v12773_v31  ;;  %7331 = vmatprep.subr.bf16.mxu1 %v12776_v37  ;;  %v12846_v31 = vld [vmem:[#allocation8 + $0x7e8] ss:$16 sps:$4 sm:$0xff]   ;;  %v11417_v37 = vcombine.high %v7380_v32, %v7384_v33 }
 0x53b   : > { %7160 = vmatpush1.bf16.msra.mxu0 %v12771_v38  ;;  %7332 = vmatpush1.bf16.msra.mxu1 %v12774_v39  ;;  %v11419_v38 = vcombine.high %v7381_v34, %v7385_v35  ;;  %v7388_v39 = vld [vmem:[#allocation10 + $0x40] sm:$0xff] }
 0x53c   : > { %7161 = vmatprep.subr.bf16.mxu0 %v12779_v40  ;;  %7333 = vmatprep.subr.bf16.mxu1 %v12782_v41  ;;  %v7392_v40 = vld [vmem:[#allocation10 + $0x60] sm:$0xff]  ;;  %v7389_v41 = vld [vmem:[#allocation10 + $0x48] sm:$0xff] }
 0x53f   : > { %7162 = vmatpush1.bf16.msra.mxu0 %v12777_v42  ;;  %7334 = vmatpush1.bf16.msra.mxu1 %v12780_v5  ;;  %v7393_v42 = vld [vmem:[#allocation10 + $0x68] sm:$0xff]  ;;  %v11416_v5 = vcombine.low %v7380_v32, %v7384_v33  ;;  %v7436_v32 = vld [vmem:[#allocation10 + $0x1c0] sm:$0xff] }
 0x540   : > { %7163 = vmatprep.subr.bf16.mxu0 %v12785_v7  ;;  %7335 = vmatprep.subr.bf16.mxu1 %v12788_v43  ;;  %v11418_v7 = vcombine.low %v7381_v34, %v7385_v35  ;;  %v11425_v43 = vcombine.high %v7388_v39, %v7392_v40  ;;  %v7440_v33 = vld [vmem:[#allocation10 + $0x1e0] sm:$0xff]  ;;  %v7437_v34 = vld [vmem:[#allocation10 + $0x1c8] sm:$0xff] }
 0x541   : > { %v7441_v35 = vld [vmem:[#allocation10 + $0x1e8] sm:$0xff] }
 0x543   : > { %7164 = vmatpush1.bf16.msra.mxu0 %v12783_v44  ;;  %7336 = vmatpush1.bf16.msra.mxu1 %v12786_v45  ;;  %v11427_v44 = vcombine.high %v7389_v41, %v7393_v42  ;;  %v7396_v45 = vld [vmem:[#allocation10 + $0x80] sm:$0xff] }
 0x544   : > { %7165 = vmatprep.subr.bf16.mxu0 %v12791_v50  ;;  %7337 = vmatprep.subr.bf16.mxu1 %v12794_v46  ;;  %v7400_v50 = vld [vmem:[#allocation10 + $0xa0] sm:$0xff]  ;;  %v7397_v46 = vld [vmem:[#allocation10 + $0x88] sm:$0xff] }
 0x547   : > { %7166 = vmatpush1.bf16.msra.mxu0 %v12789_v48  ;;  %7338 = vmatpush1.bf16.msra.mxu1 %v12792_v49  ;;  %v7401_v48 = vld [vmem:[#allocation10 + $0xa8] sm:$0xff]  ;;  %v11424_v49 = vcombine.low %v7388_v39, %v7392_v40  ;;  %v7444_v39 = vld [vmem:[#allocation10 + $0x200] sm:$0xff] }
 0x548   : > { %7167 = vmatprep.subr.bf16.mxu0 %v12797_v27  ;;  %7339 = vmatprep.subr.bf16.mxu1 %v12800_v17  ;;  %v11426_v27 = vcombine.low %v7389_v41, %v7393_v42  ;;  %v11433_v17 = vcombine.high %v7396_v45, %v7400_v50  ;;  %v7448_v40 = vld [vmem:[#allocation10 + $0x220] sm:$0xff]  ;;  %v7445_v41 = vld [vmem:[#allocation10 + $0x208] sm:$0xff] }
 0x549   : > { %v7449_v42 = vld [vmem:[#allocation10 + $0x228] sm:$0xff] }
 0x54b   : > { %7168 = vmatpush1.bf16.msra.mxu0 %v12795_v29  ;;  %7340 = vmatpush1.bf16.msra.mxu1 %v12798_v23  ;;  %v11435_v29 = vcombine.high %v7397_v46, %v7401_v48  ;;  %v7404_v23 = vld [vmem:[#allocation10 + $0xc0] sm:$0xff] }
 0x54c   : > { %7169 = vmatprep.subr.bf16.mxu0 %v12803_v53  ;;  %7341 = vmatprep.subr.bf16.mxu1 %v12806_v55  ;;  %v7408_v53 = vld [vmem:[#allocation10 + $0xe0] sm:$0xff]  ;;  %v7405_v55 = vld [vmem:[#allocation10 + $0xc8] sm:$0xff] }
 0x54f   : > { %7170 = vmatpush1.bf16.msra.mxu0 %v12801_v57  ;;  %7342 = vmatpush1.bf16.msra.mxu1 %v12804_v59  ;;  %v7409_v57 = vld [vmem:[#allocation10 + $0xe8] sm:$0xff]  ;;  %v11432_v59 = vcombine.low %v7396_v45, %v7400_v50  ;;  %v7452_v45 = vld [vmem:[#allocation10 + $0x240] sm:$0xff] }
 0x550   : > { %7171 = vmatprep.subr.bf16.mxu0 %v12809_v58  ;;  %7343 = vmatprep.subr.bf16.mxu1 %v12812_v61  ;;  %v11434_v58 = vcombine.low %v7397_v46, %v7401_v48  ;;  %v11441_v61 = vcombine.high %v7404_v23, %v7408_v53  ;;  %v7456_v50 = vld [vmem:[#allocation10 + $0x260] sm:$0xff]  ;;  %v7453_v46 = vld [vmem:[#allocation10 + $0x248] sm:$0xff] }
 0x551   : > { %v7457_v48 = vld [vmem:[#allocation10 + $0x268] sm:$0xff] }
 0x553   : > { %7172 = vmatpush1.bf16.msra.mxu0 %v12807_v60  ;;  %7344 = vmatpush1.bf16.msra.mxu1 %v12810_v62  ;;  %v7412_v60 = vld [vmem:[#allocation10 + $0x100] sm:$0xff] }
 0x554   : > { %7173 = vmatprep.subr.bf16.mxu0 %v12815_v63  ;;  %7345 = vmatprep.subr.bf16.mxu1 %v12818_v0  ;;  %v7416_v62 = vld [vmem:[#allocation10 + $0x120] sm:$0xff]  ;;  %v7413_v63 = vld [vmem:[#allocation10 + $0x108] sm:$0xff] }
 0x555   : > { %v7417_v0 = vld [vmem:[#allocation10 + $0x128] sm:$0xff] }
 0x557   : > { %7174 = vmatpush1.bf16.msra.mxu0 %v12813_v47  ;;  %7346 = vmatpush1.bf16.msra.mxu1 %v12816_v1  ;;  %v11440_v47 = vcombine.low %v7404_v23, %v7408_v53  ;;  %v11442_v1 = vcombine.low %v7405_v55, %v7409_v57  ;;  %v7460_v23 = vld [vmem:[#allocation10 + $0x280] sm:$0xff] }
 0x558   : > { %7175 = vmatprep.subr.bf16.mxu0 %v12821_v3  ;;  %7347 = vmatprep.subr.bf16.mxu1 %v12824_v6  ;;  %v11449_v3 = vcombine.high %v7412_v60, %v7416_v62  ;;  %v11451_v6 = vcombine.high %v7413_v63, %v7417_v0  ;;  %v7464_v53 = vld [vmem:[#allocation10 + $0x2a0] sm:$0xff] }
 0x55b   : > { %7176 = vmatpush1.bf16.msra.mxu0 %v12819_v8  ;;  %7348 = vmatpush1.bf16.msra.mxu1 %v12822_v9  ;;  %v7420_v8 = vld [vmem:[#allocation10 + $0x140] sm:$0xff] }
 0x55c   : > { %7177 = vmatprep.subr.bf16.mxu0 %v12827_v10  ;;  %7349 = vmatprep.subr.bf16.mxu1 %v12830_v11  ;;  %v7424_v9 = vld [vmem:[#allocation10 + $0x160] sm:$0xff]  ;;  %v7421_v10 = vld [vmem:[#allocation10 + $0x148] sm:$0xff] }
 0x55d   : > { %v7425_v11 = vld [vmem:[#allocation10 + $0x168] sm:$0xff] }
 0x55f   : > { %7178 = vmatpush1.bf16.msra.mxu0 %v12825_v12  ;;  %7350 = vmatpush1.bf16.msra.mxu1 %v12828_v13  ;;  %v11448_v12 = vcombine.low %v7412_v60, %v7416_v62  ;;  %v11450_v13 = vcombine.low %v7413_v63, %v7417_v0  ;;  %v7468_v60 = vld [vmem:[#allocation10 + $0x2c0] sm:$0xff]  ;;  %v7469_v63 = vld [vmem:[#allocation10 + $0x2c8] sm:$0xff] }
 0x560   : > { %7179 = vmatprep.subr.bf16.mxu0 %v12833_v14  ;;  %7351 = vmatprep.subr.bf16.mxu1 %v12836_v15  ;;  %v11457_v14 = vcombine.high %v7420_v8, %v7424_v9  ;;  %v11459_v15 = vcombine.high %v7421_v10, %v7425_v11  ;;  %v7472_v62 = vld [vmem:[#allocation10 + $0x2e0] sm:$0xff]  ;;  %v7473_v0 = vld [vmem:[#allocation10 + $0x2e8] sm:$0xff] }
 0x563   : > { %7180 = vmatpush1.bf16.msra.mxu0 %v12831_v18  ;;  %7352 = vmatpush1.bf16.msra.mxu1 %v12834_v19  ;;  %v7428_v18 = vld [vmem:[#allocation10 + $0x180] sm:$0xff] }
 0x564   : > { %7181 = vmatprep.subr.bf16.mxu0 %v12839_v20  ;;  %7353 = vmatprep.subr.bf16.mxu1 %v12842_v21  ;;  %v7432_v19 = vld [vmem:[#allocation10 + $0x1a0] sm:$0xff]  ;;  %v7429_v20 = vld [vmem:[#allocation10 + $0x188] sm:$0xff] }
 0x565   : > { %v7433_v21 = vld [vmem:[#allocation10 + $0x1a8] sm:$0xff] }
 0x567   : > { %7182 = vmatpush1.bf16.msra.mxu0 %v12837_v22  ;;  %7354 = vmatpush1.bf16.msra.mxu1 %v12840_v24  ;;  %v11456_v22 = vcombine.low %v7420_v8, %v7424_v9  ;;  %v11458_v24 = vcombine.low %v7421_v10, %v7425_v11  ;;  %v7476_v8 = vld [vmem:[#allocation10 + $0x300] sm:$0xff]  ;;  %v7477_v10 = vld [vmem:[#allocation10 + $0x308] sm:$0xff] }
 0x568   : > { %7183 = vmatprep.subr.bf16.mxu0 %v12845_v25  ;;  %7355 = vmatprep.subr.bf16.mxu1 %v12848_v26  ;;  %v11465_v25 = vcombine.high %v7428_v18, %v7432_v19  ;;  %v11467_v26 = vcombine.high %v7429_v20, %v7433_v21  ;;  %v7480_v9 = vld [vmem:[#allocation10 + $0x320] sm:$0xff]  ;;  %v7481_v11 = vld [vmem:[#allocation10 + $0x328] sm:$0xff] }
 0x56b   : > { %7184 = vmatpush1.bf16.msra.mxu0 %v12843_v36  ;;  %7356 = vmatpush1.bf16.msra.mxu1 %v12846_v31  ;;  %v11464_v36 = vcombine.low %v7428_v18, %v7432_v19  ;;  %v11466_v31 = vcombine.low %v7429_v20, %v7433_v21  ;;  %v7484_v18 = vld [vmem:[#allocation10 + $0x340] sm:$0xff]  ;;  %v7485_v20 = vld [vmem:[#allocation10 + $0x348] sm:$0xff] }
 0x56c   : > { %8958 = vmatprep.subr.bf16.mxu0 %v11417_v37  ;;  %9044 = vmatprep.subr.bf16.mxu1 %v11419_v38  ;;  %v11473_v37 = vcombine.high %v7436_v32, %v7440_v33  ;;  %v11475_v38 = vcombine.high %v7437_v34, %v7441_v35  ;;  %v7488_v19 = vld [vmem:[#allocation10 + $0x360] sm:$0xff]  ;;  %v7489_v21 = vld [vmem:[#allocation10 + $0x368] sm:$0xff] }
 0x56e   : > { %7186 = vmatmul.mubr.bf16.vlgmr.msra.gmra.mrb[12].mxu0 %v13853_v16  ;;  %7358 = vmatmul.mubr.bf16.vlgmr.msra.gmra.mrb[28].mxu1 %v13853_v16  ;;  %v11443_v16 = vcombine.high %v7405_v55, %v7409_v57  ;;  %v7461_v55 = vld [vmem:[#allocation10 + $0x288] sm:$0xff] }
 0x56f   : > { %8959 = vmatpush1.bf16.msra.mxu0 %v11416_v5  ;;  %9045 = vmatpush1.bf16.msra.mxu1 %v11418_v7  ;;  %v11472_v5 = vcombine.low %v7436_v32, %v7440_v33  ;;  %v11474_v7 = vcombine.low %v7437_v34, %v7441_v35  ;;  %v7465_v57 = vld [vmem:[#allocation10 + $0x2a8] sm:$0xff]  ;;  %v11520_v32 = vcombine.low %v7484_v18, %v7488_v19  ;;  %v7492_v34 = vld [vmem:[#allocation10 + $0x380] sm:$0xff] }
 0x570   : > { %8960 = vmatprep.subr.bf16.mxu0 %v11425_v43  ;;  %9046 = vmatprep.subr.bf16.mxu1 %v11427_v44  ;;  %v11481_v43 = vcombine.high %v7444_v39, %v7448_v40  ;;  %v11483_v44 = vcombine.high %v7445_v41, %v7449_v42  ;;  %v11522_v33 = vcombine.low %v7485_v20, %v7489_v21  ;;  %v7496_v35 = vld [vmem:[#allocation10 + $0x3a0] sm:$0xff] }
 0x573   : > { %8961 = vmatpush1.bf16.msra.mxu0 %v11424_v49  ;;  %9047 = vmatpush1.bf16.msra.mxu1 %v11426_v27  ;;  %v11480_v49 = vcombine.low %v7444_v39, %v7448_v40  ;;  %v11482_v27 = vcombine.low %v7445_v41, %v7449_v42  ;;  %v7500_v41 = vld [vmem:[#allocation10 + $0x3c0] sm:$0xff] }
 0x574   : > { %8962 = vmatprep.subr.bf16.mxu0 %v11433_v17  ;;  %9048 = vmatprep.subr.bf16.mxu1 %v11435_v29  ;;  %v11489_v17 = vcombine.high %v7452_v45, %v7456_v50  ;;  %v11491_v29 = vcombine.high %v7453_v46, %v7457_v48  ;;  %v7504_v42 = vld [vmem:[#allocation10 + $0x3e0] sm:$0xff] }
 0x577   : > { %8963 = vmatpush1.bf16.msra.mxu0 %v11432_v59  ;;  %9049 = vmatpush1.bf16.msra.mxu1 %v11434_v58  ;;  %v11488_v59 = vcombine.low %v7452_v45, %v7456_v50  ;;  %v11490_v58 = vcombine.low %v7453_v46, %v7457_v48  ;;  %v7508_v46 = vld [vmem:[#allocation10 + $0x400] sm:$0xff] }
 0x578   : > { %8964 = vmatprep.subr.bf16.mxu0 %v11441_v61  ;;  %9050 = vmatprep.subr.bf16.mxu1 %v11443_v16  ;;  %v11497_v61 = vcombine.high %v7460_v23, %v7464_v53  ;;  %v11499_v16 = vcombine.high %v7461_v55, %v7465_v57  ;;  %v7512_v48 = vld [vmem:[#allocation10 + $0x420] sm:$0xff] }
 0x57b   : > { %8965 = vmatpush1.bf16.msra.mxu0 %v11440_v47  ;;  %9051 = vmatpush1.bf16.msra.mxu1 %v11442_v1  ;;  %v11496_v47 = vcombine.low %v7460_v23, %v7464_v53  ;;  %v11498_v1 = vcombine.low %v7461_v55, %v7465_v57  ;;  %v5722_v55 = vld [vmem:[%s14013_s8] sm:$0xf] }
 0x57c   : > { %8966 = vmatprep.subr.bf16.mxu0 %v11449_v3  ;;  %9052 = vmatprep.subr.bf16.mxu1 %v11451_v6  ;;  %v11505_v3 = vcombine.high %v7468_v60, %v7472_v62  ;;  %v11507_v6 = vcombine.high %v7469_v63, %v7473_v0  ;;  %v5727_v57 = vrot.slane %v5722_v55, %v13710_v51 }
 0x57f   : > { %8967 = vmatpush1.bf16.msra.mxu0 %v11448_v12  ;;  %9053 = vmatpush1.bf16.msra.mxu1 %v11450_v13  ;;  %v11504_v12 = vcombine.low %v7468_v60, %v7472_v62  ;;  %v11506_v13 = vcombine.low %v7469_v63, %v7473_v0 }
 0x580   : > { %8968 = vmatprep.subr.bf16.mxu0 %v11457_v14  ;;  %9054 = vmatprep.subr.bf16.mxu1 %v11459_v15  ;;  %v11513_v14 = vcombine.high %v7476_v8, %v7480_v9  ;;  %v11515_v15 = vcombine.high %v7477_v10, %v7481_v11 }
 0x583   : > { %8969 = vmatpush1.bf16.msra.mxu0 %v11456_v22  ;;  %9055 = vmatpush1.bf16.msra.mxu1 %v11458_v24  ;;  %v11512_v22 = vcombine.low %v7476_v8, %v7480_v9  ;;  %v11514_v24 = vcombine.low %v7477_v10, %v7481_v11 }
 0x584   : > { %8970 = vmatprep.subr.bf16.mxu0 %v11465_v25  ;;  %9056 = vmatprep.subr.bf16.mxu1 %v11467_v26  ;;  %v11521_v25 = vcombine.high %v7484_v18, %v7488_v19  ;;  %v11523_v26 = vcombine.high %v7485_v20, %v7489_v21 }
 0x587   : > { %8971 = vmatpush1.bf16.msra.mxu0 %v11464_v36  ;;  %9057 = vmatpush1.bf16.msra.mxu1 %v11466_v31  ;;  %v7493_v36 = vld [vmem:[#allocation10 + $0x388] sm:$0xff]  ;;  %v11529_v31 = vcombine.high %v7492_v34, %v7496_v35 }
 0x588   : > { %8972 = vmatprep.subr.bf16.mxu0 %v11473_v37  ;;  %9058 = vmatprep.subr.bf16.mxu1 %v11475_v38  ;;  %v7497_v37 = vld [vmem:[#allocation10 + $0x3a8] sm:$0xff]  ;;  %v11528_v38 = vcombine.low %v7492_v34, %v7496_v35  ;;  %v7520_v34 = vld [vmem:[#allocation10 + $0x460] sm:$0xff] }
 0x589   : > { %v11530_v39 = vcombine.low %v7493_v36, %v7497_v37  ;;  %v11531_v40 = vcombine.high %v7493_v36, %v7497_v37  ;;  %v7517_v35 = vld [vmem:[#allocation10 + $0x448] sm:$0xff] }
 0x58a   : > { %v7521_v36 = vld [vmem:[#allocation10 + $0x468] sm:$0xff] }
 0x58b   : > { %8973 = vmatpush1.bf16.msra.mxu0 %v11472_v5  ;;  %9059 = vmatpush1.bf16.msra.mxu1 %v11474_v7  ;;  %v7501_v5 = vld [vmem:[#allocation10 + $0x3c8] sm:$0xff]  ;;  %v11537_v7 = vcombine.high %v7500_v41, %v7504_v42 }
 0x58c   : > { %8974 = vmatprep.subr.bf16.mxu0 %v11481_v43  ;;  %9060 = vmatprep.subr.bf16.mxu1 %v11483_v44  ;;  %v7505_v43 = vld [vmem:[#allocation10 + $0x3e8] sm:$0xff]  ;;  %v11536_v44 = vcombine.low %v7500_v41, %v7504_v42  ;;  %v7528_v41 = vld [vmem:[#allocation10 + $0x4a0] sm:$0xff] }
 0x58d   : > { %v11538_v45 = vcombine.low %v7501_v5, %v7505_v43  ;;  %v11539_v50 = vcombine.high %v7501_v5, %v7505_v43  ;;  %v7525_v42 = vld [vmem:[#allocation10 + $0x488] sm:$0xff]  ;;  %v11554_v43 = vcombine.low %v7517_v35, %v7521_v36 }
 0x58e   : > { %v7529_v5 = vld [vmem:[#allocation10 + $0x4a8] sm:$0xff] }
 0x58f   : > { %8975 = vmatpush1.bf16.msra.mxu0 %v11480_v49  ;;  %9061 = vmatpush1.bf16.msra.mxu1 %v11482_v27  ;;  %v7509_v49 = vld [vmem:[#allocation10 + $0x408] sm:$0xff]  ;;  %v11545_v27 = vcombine.high %v7508_v46, %v7512_v48 }
 0x590   : > { %8976 = vmatprep.subr.bf16.mxu0 %v11489_v17  ;;  %9062 = vmatprep.subr.bf16.mxu1 %v11491_v29  ;;  %v7513_v17 = vld [vmem:[#allocation10 + $0x428] sm:$0xff]  ;;  %v11544_v29 = vcombine.low %v7508_v46, %v7512_v48  ;;  %v7536_v46 = vld [vmem:[#allocation10 + $0x4e0] sm:$0xff] }
 0x591   : > { %v11546_v23 = vcombine.low %v7509_v49, %v7513_v17  ;;  %v11547_v53 = vcombine.high %v7509_v49, %v7513_v17  ;;  %v7533_v48 = vld [vmem:[#allocation10 + $0x4c8] sm:$0xff]  ;;  %v11562_v17 = vcombine.low %v7525_v42, %v7529_v5 }
 0x592   : > { %v7537_v49 = vld [vmem:[#allocation10 + $0x4e8] sm:$0xff] }
 0x593   : > { %8977 = vmatpush1.bf16.msra.mxu0 %v11488_v59  ;;  %9063 = vmatpush1.bf16.msra.mxu1 %v11490_v58  ;;  %v5735_v59 = vrot.slane %v5722_v55, %v13729_v2  ;;  %v5731_v58 = vrot.slane %v5722_v55, %v13718_v52 }
 0x594   : > { %8978 = vmatprep.subr.bf16.mxu0 %v11497_v61  ;;  %9064 = vmatprep.subr.bf16.mxu1 %v11499_v16  ;;  %v5739_v61 = vrot.slane %v5722_v55, %v13732_v4  ;;  %v7544_v55 = vld [vmem:[#allocation10 + $0x520] sm:$0xff] }
 0x597   : > { %8979 = vmatpush1.bf16.msra.mxu0 %v11496_v47  ;;  %9065 = vmatpush1.bf16.msra.mxu1 %v11498_v1 }
 0x598   : > { %8980 = vmatprep.subr.bf16.mxu0 %v11505_v3  ;;  %9066 = vmatprep.subr.bf16.mxu1 %v11507_v6 }
 0x59b   : > { %8981 = vmatpush1.bf16.msra.mxu0 %v11504_v12  ;;  %9067 = vmatpush1.bf16.msra.mxu1 %v11506_v13 }
 0x59c   : > { %8982 = vmatprep.subr.bf16.mxu0 %v11513_v14  ;;  %9068 = vmatprep.subr.bf16.mxu1 %v11515_v15 }
 0x59f   : > { %8983 = vmatpush1.bf16.msra.mxu0 %v11512_v22  ;;  %9069 = vmatpush1.bf16.msra.mxu1 %v11514_v24 }
 0x5a0   : > { %8984 = vmatprep.subr.bf16.mxu0 %v11521_v25  ;;  %9070 = vmatprep.subr.bf16.mxu1 %v11523_v26  ;;  %v7516_v26 = vld [vmem:[#allocation10 + $0x440] sm:$0xff] }
 0x5a3   : > { %8985 = vmatpush1.bf16.msra.mxu0 %v11520_v32  ;;  %9071 = vmatpush1.bf16.msra.mxu1 %v11522_v33 }
 0x5a4   : > { %8986 = vmatprep.subr.bf16.mxu0 %v11529_v31  ;;  %9072 = vmatprep.subr.bf16.mxu1 %v11531_v40  ;;  %v11555_v40 = vcombine.high %v7517_v35, %v7521_v36  ;;  %v7572_v35 = vld [vmem:[#allocation10 + $0x600] sm:$0xff] }
 0x5a5   : > { %v7576_v36 = vld [vmem:[#allocation10 + $0x620] sm:$0xff] }
 0x5a7   : > { %8987 = vmatpush1.bf16.msra.mxu0 %v11528_v38  ;;  %9073 = vmatpush1.bf16.msra.mxu1 %v11530_v39  ;;  %v7524_v38 = vld [vmem:[#allocation10 + $0x480] sm:$0xff]  ;;  %v11553_v39 = vcombine.high %v7516_v26, %v7520_v34 }
 0x5a8   : > { %8988 = vmatprep.subr.bf16.mxu0 %v11537_v7  ;;  %9074 = vmatprep.subr.bf16.mxu1 %v11539_v50  ;;  %v11552_v7 = vcombine.low %v7516_v26, %v7520_v34  ;;  %v7532_v50 = vld [vmem:[#allocation10 + $0x4c0] sm:$0xff] }
 0x5ab   : > { %8989 = vmatpush1.bf16.msra.mxu0 %v11536_v44  ;;  %9075 = vmatpush1.bf16.msra.mxu1 %v11538_v45  ;;  %v11561_v44 = vcombine.high %v7524_v38, %v7528_v41  ;;  %v11563_v45 = vcombine.high %v7525_v42, %v7529_v5  ;;  %v11609_v42 = vcombine.high %v7572_v35, %v7576_v36 }
 0x5ac   : > { %9001 = vmatprep.subr.bf16.mxu0 %v11545_v27  ;;  %9087 = vmatprep.subr.bf16.mxu1 %v11547_v53  ;;  %v11560_v27 = vcombine.low %v7524_v38, %v7528_v41  ;;  %v7540_v53 = vld [vmem:[#allocation10 + $0x500] sm:$0xff]  ;;  %v7573_v38 = vld [vmem:[#allocation10 + $0x608] sm:$0xff] }
 0x641   : > { %v7187_v16 = vpop.f32.mrb[12].mxu0  ;;  %v7359_v60 = vpop.f32.mrb[28].mxu1 }
 0x642   : > { %v11843_v62 = vadd.f32 %v7187_v16, %v5727_v57  ;;  %v11847_v63 = vadd.f32 %v7359_v60, %v5735_v59  ;;  %v7189_v0 = vpop.f32.mrb[13].mxu0  ;;  %v7361_v47 = vpop.f32.mrb[29].mxu1  ;;  %v11577_v16 = vcombine.high %v7540_v53, %v7544_v55 }
 0x643   : > { %v11844_v1 = vadd.f32 %v7189_v0, %v5731_v58  ;;  %v11848_v3 = vadd.f32 %v7361_v47, %v5739_v61  ;;  %v7191_v6 = vpop.f32.mrb[14].mxu0  ;;  %v7363_v8 = vpop.f32.mrb[30].mxu1  ;;  %v7549_v0 = vld [vmem:[#allocation10 + $0x548] sm:$0xff] }
 0x644   : > { %v11845_v9 = vadd.f32 %v7191_v6, %v5727_v57  ;;  %v11849_v10 = vadd.f32 %v7363_v8, %v5735_v59  ;;  %v7193_v11 = vpop.f32.mrb[15].mxu0  ;;  %v7365_v12 = vpop.f32.mrb[31].mxu1  ;;  %v7368_v15 = vmax.f32 %v11843_v62, 0.0  ;;  %v7370_v18 = vmax.f32 %v11847_v63, 0.0  ;;  %v7541_v57 = vld [vmem:[#allocation10 + $0x508] sm:$0xff]  ;;  %v7548_v62 = vld [vmem:[#allocation10 + $0x540] sm:$0xff] }
 0x645   : > { %v11846_v13 = vadd.f32 %v7193_v11, %v5731_v58  ;;  %v11850_v14 = vadd.f32 %v7365_v12, %v5739_v61  ;;  %v7369_v21 = vmax.f32 %v11844_v1, 0.0  ;;  %v7371_v22 = vmax.f32 %v11848_v3, 0.0  ;;  %v7545_v59 = vld [vmem:[#allocation10 + $0x528] sm:$0xff]  ;;  %v7552_v63 = vld [vmem:[#allocation10 + $0x560] sm:$0xff] }
 0x646   : > { %v7372_v19 = vmax.f32 %v11845_v9, 0.0  ;;  %v7374_v20 = vmax.f32 %v11849_v10, 0.0  ;;  %v11568_v58 = vcombine.low %v7532_v50, %v7536_v46  ;;  %v11570_v61 = vcombine.low %v7533_v48, %v7537_v49  ;;  %v7553_v47 = vld [vmem:[#allocation10 + $0x568] sm:$0xff]  ;;  %v7556_v9 = vld [vmem:[#allocation10 + $0x580] sm:$0xff] }
 0x647   : > { %v7373_v24 = vmax.f32 %v11846_v13, 0.0  ;;  %v7375_v25 = vmax.f32 %v11850_v14, 0.0  ;;  %v11579_v60 = vcombine.high %v7541_v57, %v7545_v59  ;;  %v11576_v1 = vcombine.low %v7540_v53, %v7544_v55  ;;  %v7560_v10 = vld [vmem:[#allocation10 + $0x5a0] sm:$0xff]  ;;  %v7557_v11 = vld [vmem:[#allocation10 + $0x588] sm:$0xff] }
 0x648   : > { %v13866_v32 = vpack.c.bf16 %v7372_v19, %v7368_v15  ;;  %v13868_v33 = vpack.c.bf16 %v7374_v20, %v7370_v18  ;;  %v11578_v3 = vcombine.low %v7541_v57, %v7545_v59  ;;  %v11585_v6 = vcombine.high %v7548_v62, %v7552_v63  ;;  %v7561_v12 = vld [vmem:[#allocation10 + $0x5a8] sm:$0xff]  ;;  %v7564_v19 = vld [vmem:[#allocation10 + $0x5c0] sm:$0xff] }
 0x649   : > { %v13870_v31 = vpack.c.bf16 %v7373_v24, %v7369_v21  ;;  %v13872_v37 = vpack.c.bf16 %v7375_v25, %v7371_v22  ;;  %v11587_v8 = vcombine.high %v7549_v0, %v7553_v47  ;;  %v11584_v13 = vcombine.low %v7548_v62, %v7552_v63  ;;  %v7568_v20 = vld [vmem:[#allocation10 + $0x5e0] sm:$0xff]  ;;  %v7565_v21 = vld [vmem:[#allocation10 + $0x5c8] sm:$0xff] }
 0x64a   : > { %v11586_v14 = vcombine.low %v7549_v0, %v7553_v47  ;;  %v11593_v15 = vcombine.high %v7556_v9, %v7560_v10  ;;  %v11595_v18 = vcombine.high %v7557_v11, %v7561_v12  ;;  %v7569_v22 = vld [vmem:[#allocation10 + $0x5e8] sm:$0xff]  ;;  %v11592_v24 = vcombine.low %v7556_v9, %v7560_v10 }
 0x64b   : > { %8990 = vmatprep.mubr.bf16.mxu0 %v13870_v31  ;;  %9076 = vmatprep.mubr.bf16.mxu1 %v13870_v31  ;;  %v11594_v25 = vcombine.low %v7557_v11, %v7561_v12  ;;  %v11601_v26 = vcombine.high %v7564_v19, %v7568_v20  ;;  %v11603_v34 = vcombine.high %v7565_v21, %v7569_v22 }
 0x64c   : > { %8991 = vmatmul.mubr.bf16.vlgmr.msra.gmra.mrb[16].mxu0 %v13866_v32  ;;  %9077 = vmatmul.mubr.bf16.vlgmr.msra.gmra.mrb[32].mxu1 %v13866_v32  ;;  %v11602_v41 = vcombine.low %v7565_v21, %v7569_v22 }
 0x64d   : > { %9002 = vmatpush1.bf16.msra.mxu0 %v11544_v29  ;;  %9088 = vmatpush1.bf16.msra.mxu1 %v11546_v23  ;;  %v11569_v29 = vcombine.high %v7532_v50, %v7536_v46  ;;  %v11571_v23 = vcombine.high %v7533_v48, %v7537_v49  ;;  %v11608_v50 = vcombine.low %v7572_v35, %v7576_v36 }
 0x64e   : > { %9033 = vmatprep.mubr.bf16.mxu0 %v13872_v37  ;;  %9119 = vmatprep.mubr.bf16.mxu1 %v13872_v37 }
 0x64f   : > { %9003 = vmatprep.subr.bf16.mxu0 %v11553_v39  ;;  %9089 = vmatprep.subr.bf16.mxu1 %v11555_v40  ;;  %v7577_v39 = vld [vmem:[#allocation10 + $0x628] sm:$0xff]  ;;  %v11600_v40 = vcombine.low %v7564_v19, %v7568_v20 }
 0x650   : > { %v11611_v5 = vcombine.high %v7573_v38, %v7577_v39  ;;  %v11610_v46 = vcombine.low %v7573_v38, %v7577_v39 }
 0x651   : > { %9004 = vmatpush1.bf16.msra.mxu0 %v11552_v7  ;;  %9090 = vmatpush1.bf16.msra.mxu1 %v11554_v43  ;;  %v7580_v7 = vld [vmem:[#allocation10 + $0x640] sm:$0xff] }
 0x652   : > { %9005 = vmatprep.subr.bf16.mxu0 %v11561_v44  ;;  %9091 = vmatprep.subr.bf16.mxu1 %v11563_v45  ;;  %v7584_v43 = vld [vmem:[#allocation10 + $0x660] sm:$0xff]  ;;  %v7581_v44 = vld [vmem:[#allocation10 + $0x648] sm:$0xff] }
 0x653   : > { %v7585_v45 = vld [vmem:[#allocation10 + $0x668] sm:$0xff]  ;;  %v11617_v48 = vcombine.high %v7580_v7, %v7584_v43  ;;  %v11616_v53 = vcombine.low %v7580_v7, %v7584_v43 }
 0x654   : > { %v11619_v49 = vcombine.high %v7581_v44, %v7585_v45  ;;  %v11618_v55 = vcombine.low %v7581_v44, %v7585_v45 }
 0x655   : > { %9006 = vmatpush1.bf16.msra.mxu0 %v11560_v27  ;;  %9092 = vmatpush1.bf16.msra.mxu1 %v11562_v17  ;;  %v7588_v27 = vld [vmem:[#allocation10 + $0x680] sm:$0xff] }
 0x656   : > { %9007 = vmatprep.subr.bf16.mxu0 %v11569_v29  ;;  %9093 = vmatprep.subr.bf16.mxu1 %v11571_v23  ;;  %v7592_v17 = vld [vmem:[#allocation10 + $0x6a0] sm:$0xff]  ;;  %v7589_v29 = vld [vmem:[#allocation10 + $0x688] sm:$0xff] }
 0x657   : > { %v7593_v23 = vld [vmem:[#allocation10 + $0x6a8] sm:$0xff]  ;;  %v11625_v57 = vcombine.high %v7588_v27, %v7592_v17  ;;  %v11624_v62 = vcombine.low %v7588_v27, %v7592_v17 }
 0x658   : > { %v11627_v59 = vcombine.high %v7589_v29, %v7593_v23  ;;  %v11626_v63 = vcombine.low %v7589_v29, %v7593_v23 }
 0x659   : > { %9008 = vmatpush1.bf16.msra.mxu0 %v11568_v58  ;;  %9094 = vmatpush1.bf16.msra.mxu1 %v11570_v61  ;;  %v7596_v58 = vld [vmem:[#allocation10 + $0x6c0] sm:$0xff] }
 0x65a   : > { %9009 = vmatprep.subr.bf16.mxu0 %v11577_v16  ;;  %9095 = vmatprep.subr.bf16.mxu1 %v11579_v60  ;;  %v7600_v61 = vld [vmem:[#allocation10 + $0x6e0] sm:$0xff]  ;;  %v7597_v16 = vld [vmem:[#allocation10 + $0x6c8] sm:$0xff] }
 0x65b   : > { %v7601_v60 = vld [vmem:[#allocation10 + $0x6e8] sm:$0xff]  ;;  %v11633_v0 = vcombine.high %v7596_v58, %v7600_v61  ;;  %v11632_v9 = vcombine.low %v7596_v58, %v7600_v61 }
 0x65c   : > { %v11635_v47 = vcombine.high %v7597_v16, %v7601_v60  ;;  %v11634_v10 = vcombine.low %v7597_v16, %v7601_v60 }
 0x65d   : > { %9010 = vmatpush1.bf16.msra.mxu0 %v11576_v1  ;;  %9096 = vmatpush1.bf16.msra.mxu1 %v11578_v3  ;;  %v7604_v1 = vld [vmem:[#allocation10 + $0x700] sm:$0xff] }
 0x65e   : > { %9011 = vmatprep.subr.bf16.mxu0 %v11585_v6  ;;  %9097 = vmatprep.subr.bf16.mxu1 %v11587_v8  ;;  %v7608_v3 = vld [vmem:[#allocation10 + $0x720] sm:$0xff]  ;;  %v7605_v6 = vld [vmem:[#allocation10 + $0x708] sm:$0xff] }
 0x65f   : > { %v7609_v8 = vld [vmem:[#allocation10 + $0x728] sm:$0xff]  ;;  %v11641_v11 = vcombine.high %v7604_v1, %v7608_v3  ;;  %v11640_v19 = vcombine.low %v7604_v1, %v7608_v3 }
 0x660   : > { %v11643_v12 = vcombine.high %v7605_v6, %v7609_v8  ;;  %v11642_v20 = vcombine.low %v7605_v6, %v7609_v8 }
 0x661   : > { %9012 = vmatpush1.bf16.msra.mxu0 %v11584_v13  ;;  %9098 = vmatpush1.bf16.msra.mxu1 %v11586_v14  ;;  %v7612_v13 = vld [vmem:[#allocation10 + $0x740] sm:$0xff] }
 0x662   : > { %9013 = vmatprep.subr.bf16.mxu0 %v11593_v15  ;;  %9099 = vmatprep.subr.bf16.mxu1 %v11595_v18  ;;  %v7616_v14 = vld [vmem:[#allocation10 + $0x760] sm:$0xff]  ;;  %v7613_v15 = vld [vmem:[#allocation10 + $0x748] sm:$0xff] }
 0x663   : > { %v7617_v18 = vld [vmem:[#allocation10 + $0x768] sm:$0xff]  ;;  %v11649_v21 = vcombine.high %v7612_v13, %v7616_v14  ;;  %v11648_v35 = vcombine.low %v7612_v13, %v7616_v14 }
 0x664   : > { %v11651_v22 = vcombine.high %v7613_v15, %v7617_v18  ;;  %v11650_v36 = vcombine.low %v7613_v15, %v7617_v18 }
 0x665   : > { %9014 = vmatpush1.bf16.msra.mxu0 %v11592_v24  ;;  %9100 = vmatpush1.bf16.msra.mxu1 %v11594_v25  ;;  %v7620_v24 = vld [vmem:[#allocation10 + $0x780] sm:$0xff] }
 0x666   : > { %9015 = vmatprep.subr.bf16.mxu0 %v11601_v26  ;;  %9101 = vmatprep.subr.bf16.mxu1 %v11603_v34  ;;  %v7624_v25 = vld [vmem:[#allocation10 + $0x7a0] sm:$0xff]  ;;  %v7621_v26 = vld [vmem:[#allocation10 + $0x788] sm:$0xff] }
 0x667   : > { %v7625_v34 = vld [vmem:[#allocation10 + $0x7a8] sm:$0xff]  ;;  %v11657_v38 = vcombine.high %v7620_v24, %v7624_v25  ;;  %v11656_v7 = vcombine.low %v7620_v24, %v7624_v25 }
 0x668   : > { %v11659_v39 = vcombine.high %v7621_v26, %v7625_v34  ;;  %v11658_v43 = vcombine.low %v7621_v26, %v7625_v34  ;;  %v7422_v34 = vld [vmem:[#allocation10 + $0x150] sm:$0xff] }
 0x669   : > { %9016 = vmatpush1.bf16.msra.mxu0 %v11600_v40  ;;  %9102 = vmatpush1.bf16.msra.mxu1 %v11602_v41  ;;  %v7628_v40 = vld [vmem:[#allocation10 + $0x7c0] sm:$0xff] }
 0x66a   : > { %9017 = vmatprep.subr.bf16.mxu0 %v11609_v42  ;;  %9103 = vmatprep.subr.bf16.mxu1 %v11611_v5  ;;  %v7632_v41 = vld [vmem:[#allocation10 + $0x7e0] sm:$0xff]  ;;  %v7629_v42 = vld [vmem:[#allocation10 + $0x7c8] sm:$0xff] }
 0x66b   : > { %v7633_v5 = vld [vmem:[#allocation10 + $0x7e8] sm:$0xff]  ;;  %v11665_v44 = vcombine.high %v7628_v40, %v7632_v41  ;;  %v11664_v27 = vcombine.low %v7628_v40, %v7632_v41 }
 0x66c   : > { %v11667_v45 = vcombine.high %v7629_v42, %v7633_v5  ;;  %v11666_v17 = vcombine.low %v7629_v42, %v7633_v5  ;;  %v7430_v5 = vld [vmem:[#allocation10 + $0x190] sm:$0xff] }
 0x66d   : > { %9018 = vmatpush1.bf16.msra.mxu0 %v11608_v50  ;;  %9104 = vmatpush1.bf16.msra.mxu1 %v11610_v46  ;;  %v7382_v50 = vld [vmem:[#allocation10 + $0x10] sm:$0xff] }
 0x66e   : > { %9019 = vmatprep.subr.bf16.mxu0 %v11617_v48  ;;  %9105 = vmatprep.subr.bf16.mxu1 %v11619_v49  ;;  %v7386_v46 = vld [vmem:[#allocation10 + $0x30] sm:$0xff]  ;;  %v7383_v48 = vld [vmem:[#allocation10 + $0x18] sm:$0xff] }
 0x66f   : > { %v7387_v49 = vld [vmem:[#allocation10 + $0x38] sm:$0xff]  ;;  %v11421_v29 = vcombine.high %v7382_v50, %v7386_v46  ;;  %v11420_v58 = vcombine.low %v7382_v50, %v7386_v46 }
 0x670   : > { %v11423_v23 = vcombine.high %v7383_v48, %v7387_v49  ;;  %v11422_v61 = vcombine.low %v7383_v48, %v7387_v49  ;;  %v7438_v49 = vld [vmem:[#allocation10 + $0x1d0] sm:$0xff] }
 0x671   : > { %9020 = vmatpush1.bf16.msra.mxu0 %v11616_v53  ;;  %9106 = vmatpush1.bf16.msra.mxu1 %v11618_v55  ;;  %v7390_v53 = vld [vmem:[#allocation10 + $0x50] sm:$0xff] }
 0x672   : > { %9021 = vmatprep.subr.bf16.mxu0 %v11625_v57  ;;  %9107 = vmatprep.subr.bf16.mxu1 %v11627_v59  ;;  %v7394_v55 = vld [vmem:[#allocation10 + $0x70] sm:$0xff]  ;;  %v7391_v57 = vld [vmem:[#allocation10 + $0x58] sm:$0xff] }
 0x673   : > { %v7395_v59 = vld [vmem:[#allocation10 + $0x78] sm:$0xff]  ;;  %v11429_v16 = vcombine.high %v7390_v53, %v7394_v55  ;;  %v11428_v1 = vcombine.low %v7390_v53, %v7394_v55 }
 0x674   : > { %v11431_v60 = vcombine.high %v7391_v57, %v7395_v59  ;;  %v11430_v3 = vcombine.low %v7391_v57, %v7395_v59  ;;  %v7446_v59 = vld [vmem:[#allocation10 + $0x210] sm:$0xff] }
 0x675   : > { %9022 = vmatpush1.bf16.msra.mxu0 %v11624_v62  ;;  %9108 = vmatpush1.bf16.msra.mxu1 %v11626_v63  ;;  %v7398_v62 = vld [vmem:[#allocation10 + $0x90] sm:$0xff] }
 0x676   : > { %9023 = vmatprep.subr.bf16.mxu0 %v11633_v0  ;;  %9109 = vmatprep.subr.bf16.mxu1 %v11635_v47  ;;  %v7402_v63 = vld [vmem:[#allocation10 + $0xb0] sm:$0xff]  ;;  %v7399_v0 = vld [vmem:[#allocation10 + $0x98] sm:$0xff] }
 0x677   : > { %v7403_v47 = vld [vmem:[#allocation10 + $0xb8] sm:$0xff]  ;;  %v11437_v6 = vcombine.high %v7398_v62, %v7402_v63  ;;  %v11436_v13 = vcombine.low %v7398_v62, %v7402_v63 }
 0x678   : > { %v11439_v8 = vcombine.high %v7399_v0, %v7403_v47  ;;  %v11438_v14 = vcombine.low %v7399_v0, %v7403_v47  ;;  %v7454_v47 = vld [vmem:[#allocation10 + $0x250] sm:$0xff] }
 0x679   : > { %9024 = vmatpush1.bf16.msra.mxu0 %v11632_v9  ;;  %9110 = vmatpush1.bf16.msra.mxu1 %v11634_v10  ;;  %v7406_v9 = vld [vmem:[#allocation10 + $0xd0] sm:$0xff] }
 0x67a   : > { %9025 = vmatprep.subr.bf16.mxu0 %v11641_v11  ;;  %9111 = vmatprep.subr.bf16.mxu1 %v11643_v12  ;;  %v7410_v10 = vld [vmem:[#allocation10 + $0xf0] sm:$0xff]  ;;  %v7407_v11 = vld [vmem:[#allocation10 + $0xd8] sm:$0xff] }
 0x67b   : > { %v7411_v12 = vld [vmem:[#allocation10 + $0xf8] sm:$0xff]  ;;  %v11445_v15 = vcombine.high %v7406_v9, %v7410_v10 }
 0x67c   : > { %v11447_v18 = vcombine.high %v7407_v11, %v7411_v12  ;;  %v11446_v24 = vcombine.low %v7407_v11, %v7411_v12  ;;  %v7462_v12 = vld [vmem:[#allocation10 + $0x290] sm:$0xff] }
 0x67d   : > { %9026 = vmatpush1.bf16.msra.mxu0 %v11640_v19  ;;  %9112 = vmatpush1.bf16.msra.mxu1 %v11642_v20  ;;  %v7414_v19 = vld [vmem:[#allocation10 + $0x110] sm:$0xff] }
 0x67e   : > { %9027 = vmatprep.subr.bf16.mxu0 %v11649_v21  ;;  %9113 = vmatprep.subr.bf16.mxu1 %v11651_v22  ;;  %v7418_v20 = vld [vmem:[#allocation10 + $0x130] sm:$0xff]  ;;  %v7419_v21 = vld [vmem:[#allocation10 + $0x138] sm:$0xff]  ;;  %v11444_v22 = vcombine.low %v7406_v9, %v7410_v10 }
 0x67f   : > { %v11453_v25 = vcombine.high %v7414_v19, %v7418_v20 }
 0x681   : > { %9028 = vmatpush1.bf16.msra.mxu0 %v11648_v35  ;;  %9114 = vmatpush1.bf16.msra.mxu1 %v11650_v36  ;;  %v7426_v35 = vld [vmem:[#allocation10 + $0x170] sm:$0xff]  ;;  %v7423_v36 = vld [vmem:[#allocation10 + $0x158] sm:$0xff] }
 0x682   : > { %9029 = vmatprep.subr.bf16.mxu0 %v11657_v38  ;;  %9115 = vmatprep.subr.bf16.mxu1 %v11659_v39  ;;  %v7427_v38 = vld [vmem:[#allocation10 + $0x178] sm:$0xff]  ;;  %v11452_v39 = vcombine.low %v7414_v19, %v7418_v20  ;;  %v11461_v41 = vcombine.high %v7422_v34, %v7426_v35 }
 0x683   : > { %v11463_v42 = vcombine.high %v7423_v36, %v7427_v38  ;;  %v11462_v50 = vcombine.low %v7423_v36, %v7427_v38  ;;  %v7478_v38 = vld [vmem:[#allocation10 + $0x310] sm:$0xff] }
 0x685   : > { %9030 = vmatpush1.bf16.msra.mxu0 %v11656_v7  ;;  %9116 = vmatpush1.bf16.msra.mxu1 %v11658_v43  ;;  %v7434_v7 = vld [vmem:[#allocation10 + $0x1b0] sm:$0xff]  ;;  %v7431_v43 = vld [vmem:[#allocation10 + $0x198] sm:$0xff] }
 0x686   : > { %9031 = vmatprep.subr.bf16.mxu0 %v11665_v44  ;;  %9117 = vmatprep.subr.bf16.mxu1 %v11667_v45  ;;  %v7435_v44 = vld [vmem:[#allocation10 + $0x1b8] sm:$0xff]  ;;  %v11460_v45 = vcombine.low %v7422_v34, %v7426_v35  ;;  %v11469_v46 = vcombine.high %v7430_v5, %v7434_v7 }
 0x687   : > { %v11471_v48 = vcombine.high %v7431_v43, %v7435_v44  ;;  %v11470_v53 = vcombine.low %v7431_v43, %v7435_v44  ;;  %v7486_v44 = vld [vmem:[#allocation10 + $0x350] sm:$0xff] }
 0x689   : > { %9032 = vmatpush1.bf16.msra.mxu0 %v11664_v27  ;;  %9118 = vmatpush1.bf16.msra.mxu1 %v11666_v17  ;;  %v7442_v27 = vld [vmem:[#allocation10 + $0x1f0] sm:$0xff]  ;;  %v7439_v17 = vld [vmem:[#allocation10 + $0x1d8] sm:$0xff] }
 0x68a   : > { %9130 = vmatprep.subr.bf16.mxu0 %v11421_v29  ;;  %9216 = vmatprep.subr.bf16.mxu1 %v11423_v23  ;;  %v7443_v29 = vld [vmem:[#allocation10 + $0x1f8] sm:$0xff]  ;;  %v11468_v23 = vcombine.low %v7430_v5, %v7434_v7  ;;  %v11477_v55 = vcombine.high %v7438_v49, %v7442_v27 }
 0x68b   : > { %v11479_v57 = vcombine.high %v7439_v17, %v7443_v29  ;;  %v11478_v62 = vcombine.low %v7439_v17, %v7443_v29  ;;  %v7494_v29 = vld [vmem:[#allocation10 + $0x390] sm:$0xff] }
 0x68c   : > { %9034 = vmatmul.mubr.bf16.vlgmr.msra.gmra.mrb[16].mxu0 %v13868_v33  ;;  %9120 = vmatmul.mubr.bf16.vlgmr.msra.gmra.mrb[32].mxu1 %v13868_v33 }
 0x68d   : > { %9131 = vmatpush1.bf16.msra.mxu0 %v11420_v58  ;;  %9162 = vmatprep.mubr.bf16.mxu0 %v13870_v31  ;;  %v7450_v58 = vld [vmem:[#allocation10 + $0x230] sm:$0xff] }
 0x68e   : > { %9217 = vmatpush1.bf16.msra.mxu1 %v11422_v61  ;;  %9248 = vmatprep.mubr.bf16.mxu1 %v13870_v31  ;;  %v7415_v31 = vld [vmem:[#allocation10 + $0x118] sm:$0xff]  ;;  %v11485_v63 = vcombine.high %v7446_v59, %v7450_v58 }
 0x68f   : > { %9132 = vmatprep.subr.bf16.mxu0 %v11429_v16  ;;  %9218 = vmatprep.subr.bf16.mxu1 %v11431_v60  ;;  %v11455_v26 = vcombine.high %v7415_v31, %v7419_v21  ;;  %v11454_v40 = vcombine.low %v7415_v31, %v7419_v21  ;;  %v7447_v61 = vld [vmem:[#allocation10 + $0x218] sm:$0xff]  ;;  %v11476_v60 = vcombine.low %v7438_v49, %v7442_v27  ;;  %v7470_v21 = vld [vmem:[#allocation10 + $0x2d0] sm:$0xff] }
 0x690   : > { %v7451_v16 = vld [vmem:[#allocation10 + $0x238] sm:$0xff] }
 0x691   : > { %9133 = vmatpush1.bf16.msra.mxu0 %v11428_v1  ;;  %v11487_v0 = vcombine.high %v7447_v61, %v7451_v16  ;;  %v7458_v1 = vld [vmem:[#allocation10 + $0x270] sm:$0xff]  ;;  %v11486_v9 = vcombine.low %v7447_v61, %v7451_v16 }
 0x692   : > { %9219 = vmatpush1.bf16.msra.mxu1 %v11430_v3  ;;  %9134 = vmatprep.subr.bf16.mxu0 %v11437_v6  ;;  %v7455_v3 = vld [vmem:[#allocation10 + $0x258] sm:$0xff]  ;;  %v11493_v10 = vcombine.high %v7454_v47, %v7458_v1  ;;  %v7502_v16 = vld [vmem:[#allocation10 + $0x3d0] sm:$0xff] }
 0x693   : > { %9220 = vmatprep.subr.bf16.mxu1 %v11439_v8  ;;  %v7459_v6 = vld [vmem:[#allocation10 + $0x278] sm:$0xff]  ;;  %v11484_v8 = vcombine.low %v7446_v59, %v7450_v58 }
 0x694   : > { %v11495_v11 = vcombine.high %v7455_v3, %v7459_v6  ;;  %v11494_v19 = vcombine.low %v7455_v3, %v7459_v6  ;;  %v7510_v6 = vld [vmem:[#allocation10 + $0x410] sm:$0xff] }
 0x695   : > { %9135 = vmatpush1.bf16.msra.mxu0 %v11436_v13  ;;  %v7466_v13 = vld [vmem:[#allocation10 + $0x2b0] sm:$0xff] }
 0x696   : > { %9221 = vmatpush1.bf16.msra.mxu1 %v11438_v14  ;;  %9136 = vmatprep.subr.bf16.mxu0 %v11445_v15  ;;  %v7463_v14 = vld [vmem:[#allocation10 + $0x298] sm:$0xff]  ;;  %v11501_v20 = vcombine.high %v7462_v12, %v7466_v13 }
 0x697   : > { %9222 = vmatprep.subr.bf16.mxu1 %v11447_v18  ;;  %v7467_v15 = vld [vmem:[#allocation10 + $0x2b8] sm:$0xff]  ;;  %v11492_v18 = vcombine.low %v7454_v47, %v7458_v1 }
 0x698   : > { %v11503_v31 = vcombine.high %v7463_v14, %v7467_v15  ;;  %v11502_v34 = vcombine.low %v7463_v14, %v7467_v15  ;;  %v7518_v15 = vld [vmem:[#allocation10 + $0x450] sm:$0xff] }
 0x699   : > { %9137 = vmatpush1.bf16.msra.mxu0 %v11444_v22  ;;  %v7474_v22 = vld [vmem:[#allocation10 + $0x2f0] sm:$0xff] }
 0x69a   : > { %9223 = vmatpush1.bf16.msra.mxu1 %v11446_v24  ;;  %9138 = vmatprep.subr.bf16.mxu0 %v11453_v25  ;;  %v7471_v24 = vld [vmem:[#allocation10 + $0x2d8] sm:$0xff]  ;;  %v11509_v35 = vcombine.high %v7470_v21, %v7474_v22 }
 0x69b   : > { %9224 = vmatprep.subr.bf16.mxu1 %v11455_v26  ;;  %v7475_v25 = vld [vmem:[#allocation10 + $0x2f8] sm:$0xff]  ;;  %v11500_v26 = vcombine.low %v7462_v12, %v7466_v13 }
 0x69c   : > { %v11511_v36 = vcombine.high %v7471_v24, %v7475_v25  ;;  %v11510_v5 = vcombine.low %v7471_v24, %v7475_v25  ;;  %v7526_v24 = vld [vmem:[#allocation10 + $0x490] sm:$0xff] }
 0x69d   : > { %9139 = vmatpush1.bf16.msra.mxu0 %v11452_v39  ;;  %v7482_v39 = vld [vmem:[#allocation10 + $0x330] sm:$0xff] }
 0x69e   : > { %9225 = vmatpush1.bf16.msra.mxu1 %v11454_v40  ;;  %9140 = vmatprep.subr.bf16.mxu0 %v11461_v41  ;;  %v7479_v40 = vld [vmem:[#allocation10 + $0x318] sm:$0xff]  ;;  %v11517_v7 = vcombine.high %v7478_v38, %v7482_v39  ;;  %v7530_v25 = vld [vmem:[#allocation10 + $0x4b0] sm:$0xff] }
 0x69f   : > { %9226 = vmatprep.subr.bf16.mxu1 %v11463_v42  ;;  %v7483_v41 = vld [vmem:[#allocation10 + $0x338] sm:$0xff]  ;;  %v11508_v42 = vcombine.low %v7470_v21, %v7474_v22 }
 0x6a0   : > { %v11519_v43 = vcombine.high %v7479_v40, %v7483_v41  ;;  %v11518_v49 = vcombine.low %v7479_v40, %v7483_v41  ;;  %v7534_v41 = vld [vmem:[#allocation10 + $0x4d0] sm:$0xff] }
 0x6a1   : > { %9141 = vmatpush1.bf16.msra.mxu0 %v11460_v45  ;;  %v7490_v45 = vld [vmem:[#allocation10 + $0x370] sm:$0xff] }
 0x6a2   : > { %9227 = vmatpush1.bf16.msra.mxu1 %v11462_v50  ;;  %9142 = vmatprep.subr.bf16.mxu0 %v11469_v46  ;;  %v7487_v50 = vld [vmem:[#allocation10 + $0x358] sm:$0xff]  ;;  %v11525_v27 = vcombine.high %v7486_v44, %v7490_v45 }
 0x6a3   : > { %9228 = vmatprep.subr.bf16.mxu1 %v11471_v48  ;;  %v7491_v46 = vld [vmem:[#allocation10 + $0x378] sm:$0xff]  ;;  %v11516_v48 = vcombine.low %v7478_v38, %v7482_v39  ;;  %v11565_v39 = vcombine.high %v7526_v24, %v7530_v25 }
 0x6a4   : > { %v11527_v17 = vcombine.high %v7487_v50, %v7491_v46  ;;  %v11526_v59 = vcombine.low %v7487_v50, %v7491_v46  ;;  %v7542_v50 = vld [vmem:[#allocation10 + $0x510] sm:$0xff] }
 0x6a5   : > { %9143 = vmatpush1.bf16.msra.mxu0 %v11468_v23  ;;  %v7498_v23 = vld [vmem:[#allocation10 + $0x3b0] sm:$0xff] }
 0x6a6   : > { %9229 = vmatpush1.bf16.msra.mxu1 %v11470_v53  ;;  %9144 = vmatprep.subr.bf16.mxu0 %v11477_v55  ;;  %v7495_v53 = vld [vmem:[#allocation10 + $0x398] sm:$0xff]  ;;  %v11533_v58 = vcombine.high %v7494_v29, %v7498_v23  ;;  %v7546_v46 = vld [vmem:[#allocation10 + $0x530] sm:$0xff] }
 0x6a7   : > { %9230 = vmatprep.subr.bf16.mxu1 %v11479_v57  ;;  %v7499_v55 = vld [vmem:[#allocation10 + $0x3b8] sm:$0xff]  ;;  %v11524_v57 = vcombine.low %v7486_v44, %v7490_v45 }
 0x6a8   : > { %v11535_v61 = vcombine.high %v7495_v53, %v7499_v55  ;;  %v11534_v47 = vcombine.low %v7495_v53, %v7499_v55  ;;  %v7554_v53 = vld [vmem:[#allocation10 + $0x570] sm:$0xff]  ;;  %v7551_v55 = vld [vmem:[#allocation10 + $0x558] sm:$0xff] }
 0x6a9   : > { %9145 = vmatpush1.bf16.msra.mxu0 %v11476_v60  ;;  %v7506_v60 = vld [vmem:[#allocation10 + $0x3f0] sm:$0xff] }
 0x6aa   : > { %9231 = vmatpush1.bf16.msra.mxu1 %v11478_v62  ;;  %9146 = vmatprep.subr.bf16.mxu0 %v11485_v63  ;;  %v7503_v62 = vld [vmem:[#allocation10 + $0x3d8] sm:$0xff]  ;;  %v11541_v1 = vcombine.high %v7502_v16, %v7506_v60 }
 0x6ab   : > { %9232 = vmatprep.subr.bf16.mxu1 %v11487_v0  ;;  %v7507_v63 = vld [vmem:[#allocation10 + $0x3f8] sm:$0xff]  ;;  %v11532_v0 = vcombine.low %v7494_v29, %v7498_v23  ;;  %v7550_v23 = vld [vmem:[#allocation10 + $0x550] sm:$0xff] }
 0x6ac   : > { %v11543_v3 = vcombine.high %v7503_v62, %v7507_v63  ;;  %v11542_v12 = vcombine.low %v7503_v62, %v7507_v63  ;;  %v7562_v62 = vld [vmem:[#allocation10 + $0x5b0] sm:$0xff]  ;;  %v7559_v63 = vld [vmem:[#allocation10 + $0x598] sm:$0xff] }
 0x6ad   : > { %9147 = vmatpush1.bf16.msra.mxu0 %v11484_v8  ;;  %v7514_v8 = vld [vmem:[#allocation10 + $0x430] sm:$0xff] }
 0x6ae   : > { %9233 = vmatpush1.bf16.msra.mxu1 %v11486_v9  ;;  %9148 = vmatprep.subr.bf16.mxu0 %v11493_v10  ;;  %v7511_v9 = vld [vmem:[#allocation10 + $0x418] sm:$0xff]  ;;  %v11549_v13 = vcombine.high %v7510_v6, %v7514_v8 }
 0x6af   : > { %9234 = vmatprep.subr.bf16.mxu1 %v11495_v11  ;;  %v7515_v10 = vld [vmem:[#allocation10 + $0x438] sm:$0xff]  ;;  %v11540_v11 = vcombine.low %v7502_v16, %v7506_v60  ;;  %v7558_v60 = vld [vmem:[#allocation10 + $0x590] sm:$0xff] }
 0x6b0   : > { %v11551_v14 = vcombine.high %v7511_v9, %v7515_v10  ;;  %v11550_v21 = vcombine.low %v7511_v9, %v7515_v10  ;;  %v7570_v9 = vld [vmem:[#allocation10 + $0x5f0] sm:$0xff]  ;;  %v7567_v10 = vld [vmem:[#allocation10 + $0x5d8] sm:$0xff] }
 0x6b1   : > { %9149 = vmatpush1.bf16.msra.mxu0 %v11492_v18  ;;  %v7522_v18 = vld [vmem:[#allocation10 + $0x470] sm:$0xff] }
 0x6b2   : > { %9235 = vmatpush1.bf16.msra.mxu1 %v11494_v19  ;;  %9150 = vmatprep.subr.bf16.mxu0 %v11501_v20  ;;  %v11548_v19 = vcombine.low %v7510_v6, %v7514_v8  ;;  %v7519_v20 = vld [vmem:[#allocation10 + $0x458] sm:$0xff]  ;;  %v11557_v22 = vcombine.high %v7518_v15, %v7522_v18  ;;  %v7566_v8 = vld [vmem:[#allocation10 + $0x5d0] sm:$0xff] }
 0x6b3   : > { %9236 = vmatprep.subr.bf16.mxu1 %v11503_v31  ;;  %v7523_v31 = vld [vmem:[#allocation10 + $0x478] sm:$0xff] }
 0x6b4   : > { %v11558_v38 = vcombine.low %v7519_v20, %v7523_v31 }
 0x6b5   : > { %9151 = vmatpush1.bf16.msra.mxu0 %v11500_v26  ;;  %v11559_v26 = vcombine.high %v7519_v20, %v7523_v31  ;;  %v7575_v20 = vld [vmem:[#allocation10 + $0x618] sm:$0xff] }
 0x6b6   : > { %9237 = vmatpush1.bf16.msra.mxu1 %v11502_v34  ;;  %9152 = vmatprep.subr.bf16.mxu0 %v11509_v35  ;;  %v7527_v34 = vld [vmem:[#allocation10 + $0x498] sm:$0xff] }
 0x6b7   : > { %9238 = vmatprep.subr.bf16.mxu1 %v11511_v36  ;;  %v7531_v35 = vld [vmem:[#allocation10 + $0x4b8] sm:$0xff]  ;;  %v11556_v36 = vcombine.low %v7518_v15, %v7522_v18  ;;  %v7574_v18 = vld [vmem:[#allocation10 + $0x610] sm:$0xff] }
 0x6b8   : > { %v11567_v40 = vcombine.high %v7527_v34, %v7531_v35  ;;  %v7579_v31 = vld [vmem:[#allocation10 + $0x638] sm:$0xff] }
 0x6b9   : > { %9153 = vmatpush1.bf16.msra.mxu0 %v11508_v42  ;;  %v7538_v42 = vld [vmem:[#allocation10 + $0x4f0] sm:$0xff] }
 0x6ba   : > { %9239 = vmatpush1.bf16.msra.mxu1 %v11510_v5  ;;  %9154 = vmatprep.subr.bf16.mxu0 %v11517_v7  ;;  %v7535_v5 = vld [vmem:[#allocation10 + $0x4d8] sm:$0xff]  ;;  %v11573_v44 = vcombine.high %v7534_v41, %v7538_v42 }
 0x6bb   : > { %9240 = vmatprep.subr.bf16.mxu1 %v11519_v43  ;;  %v7539_v7 = vld [vmem:[#allocation10 + $0x4f8] sm:$0xff]  ;;  %v11564_v43 = vcombine.low %v7526_v24, %v7530_v25  ;;  %v11615_v25 = vcombine.high %v7575_v20, %v7579_v31 }
 0x6bc   : > { %v11575_v45 = vcombine.high %v7535_v5, %v7539_v7 }
 0x6bd   : > { %9155 = vmatpush1.bf16.msra.mxu0 %v11516_v48  ;;  %v7543_v48 = vld [vmem:[#allocation10 + $0x518] sm:$0xff] }
 0x6be   : > { %9241 = vmatpush1.bf16.msra.mxu1 %v11518_v49  ;;  %9156 = vmatprep.subr.bf16.mxu0 %v11525_v27  ;;  %v7547_v49 = vld [vmem:[#allocation10 + $0x538] sm:$0xff]  ;;  %v11574_v27 = vcombine.low %v7535_v5, %v7539_v7  ;;  %v7594_v5 = vld [vmem:[#allocation10 + $0x6b0] sm:$0xff] }
 0x6bf   : > { %9242 = vmatprep.subr.bf16.mxu1 %v11527_v17  ;;  %v11581_v17 = vcombine.high %v7542_v50, %v7546_v46  ;;  %v11583_v29 = vcombine.high %v7543_v48, %v7547_v49  ;;  %v7591_v7 = vld [vmem:[#allocation10 + $0x698] sm:$0xff] }
 0x6c1   : > { %9157 = vmatpush1.bf16.msra.mxu0 %v11524_v57  ;;  %v7555_v57 = vld [vmem:[#allocation10 + $0x578] sm:$0xff] }
 0x6c2   : > { %9243 = vmatpush1.bf16.msra.mxu1 %v11526_v59  ;;  %9158 = vmatprep.subr.bf16.mxu0 %v11533_v58  ;;  %v11580_v59 = vcombine.low %v7542_v50, %v7546_v46  ;;  %v11582_v58 = vcombine.low %v7543_v48, %v7547_v49  ;;  %v11591_v16 = vcombine.high %v7551_v55, %v7555_v57  ;;  %v7598_v46 = vld [vmem:[#allocation10 + $0x6d0] sm:$0xff]  ;;  %v7599_v49 = vld [vmem:[#allocation10 + $0x6d8] sm:$0xff] }
 0x6c3   : > { %9244 = vmatprep.subr.bf16.mxu1 %v11535_v61  ;;  %v11589_v61 = vcombine.high %v7550_v23, %v7554_v53  ;;  %v7602_v48 = vld [vmem:[#allocation10 + $0x6f0] sm:$0xff] }
 0x6c5   : > { %9159 = vmatpush1.bf16.msra.mxu0 %v11532_v0  ;;  %v7563_v0 = vld [vmem:[#allocation10 + $0x5b8] sm:$0xff] }
 0x6c6   : > { %9245 = vmatpush1.bf16.msra.mxu1 %v11534_v47  ;;  %9160 = vmatprep.subr.bf16.mxu0 %v11541_v1  ;;  %v11588_v47 = vcombine.low %v7550_v23, %v7554_v53  ;;  %v11590_v1 = vcombine.low %v7551_v55, %v7555_v57  ;;  %v11599_v6 = vcombine.high %v7559_v63, %v7563_v0  ;;  %v7606_v53 = vld [vmem:[#allocation10 + $0x710] sm:$0xff]  ;;  %v7607_v57 = vld [vmem:[#allocation10 + $0x718] sm:$0xff] }
 0x6c7   : > { %9246 = vmatprep.subr.bf16.mxu1 %v11543_v3  ;;  %v11597_v3 = vcombine.high %v7558_v60, %v7562_v62  ;;  %v7610_v55 = vld [vmem:[#allocation10 + $0x730] sm:$0xff] }
 0x6c9   : > { %9161 = vmatpush1.bf16.msra.mxu0 %v11540_v11  ;;  %v7571_v11 = vld [vmem:[#allocation10 + $0x5f8] sm:$0xff] }
 0x6ca   : > { %9247 = vmatpush1.bf16.msra.mxu1 %v11542_v12  ;;  %9173 = vmatprep.subr.bf16.mxu0 %v11549_v13  ;;  %v11596_v12 = vcombine.low %v7558_v60, %v7562_v62  ;;  %v11598_v13 = vcombine.low %v7559_v63, %v7563_v0  ;;  %v11607_v15 = vcombine.high %v7567_v10, %v7571_v11  ;;  %v7614_v62 = vld [vmem:[#allocation10 + $0x750] sm:$0xff]  ;;  %v7615_v0 = vld [vmem:[#allocation10 + $0x758] sm:$0xff] }
 0x6cb   : > { %9259 = vmatprep.subr.bf16.mxu1 %v11551_v14  ;;  %v11605_v14 = vcombine.high %v7566_v8, %v7570_v9  ;;  %v7618_v63 = vld [vmem:[#allocation10 + $0x770] sm:$0xff] }
 0x6cc   : > { %9163 = vmatmul.mubr.bf16.vlgmr.msra.gmra.mrb[20].mxu0 %v13866_v32 }
 0x6cd   : > { %9249 = vmatmul.mubr.bf16.vlgmr.msra.gmra.mrb[36].mxu1 %v13866_v32  ;;  %9174 = vmatpush1.bf16.msra.mxu0 %v11548_v19  ;;  %v11566_v32 = vcombine.low %v7527_v34, %v7531_v35  ;;  %v7578_v19 = vld [vmem:[#allocation10 + $0x630] sm:$0xff]  ;;  %v7583_v35 = vld [vmem:[#allocation10 + $0x658] sm:$0xff] }
 0x6ce   : > { %9205 = vmatprep.mubr.bf16.mxu0 %v13872_v37  ;;  %9260 = vmatpush1.bf16.msra.mxu1 %v11550_v21  ;;  %v11604_v21 = vcombine.low %v7566_v8, %v7570_v9  ;;  %v11613_v24 = vcombine.high %v7574_v18, %v7578_v19  ;;  %v7586_v34 = vld [vmem:[#allocation10 + $0x670] sm:$0xff] }
 0x6cf   : > { %9291 = vmatprep.mubr.bf16.mxu1 %v13872_v37  ;;  %9175 = vmatprep.subr.bf16.mxu0 %v11557_v22  ;;  %v11572_v37 = vcombine.low %v7534_v41, %v7538_v42  ;;  %v11606_v22 = vcombine.low %v7567_v10, %v7571_v11  ;;  %v7590_v42 = vld [vmem:[#allocation10 + $0x690] sm:$0xff]  ;;  %v7623_v11 = vld [vmem:[#allocation10 + $0x798] sm:$0xff] }
 0x6d0   : > { %9261 = vmatprep.subr.bf16.mxu1 %v11559_v26  ;;  %v7582_v26 = vld [vmem:[#allocation10 + $0x650] sm:$0xff] }
 0x6d1   : > { %9176 = vmatpush1.bf16.msra.mxu0 %v11556_v36  ;;  %v7587_v36 = vld [vmem:[#allocation10 + $0x678] sm:$0xff]  ;;  %v7622_v9 = vld [vmem:[#allocation10 + $0x790] sm:$0xff] }
 0x6d2   : > { %9262 = vmatpush1.bf16.msra.mxu1 %v11558_v38  ;;  %9177 = vmatprep.subr.bf16.mxu0 %v11565_v39  ;;  %v11612_v38 = vcombine.low %v7574_v18, %v7578_v19  ;;  %v11614_v39 = vcombine.low %v7575_v20, %v7579_v31  ;;  %v11623_v41 = vcombine.high %v7583_v35, %v7587_v36  ;;  %v7626_v10 = vld [vmem:[#allocation10 + $0x7b0] sm:$0xff]  ;;  %v7631_v31 = vld [vmem:[#allocation10 + $0x7d8] sm:$0xff] }
 0x6d3   : > { %9263 = vmatprep.subr.bf16.mxu1 %v11567_v40  ;;  %v11621_v40 = vcombine.high %v7582_v26, %v7586_v34  ;;  %v7630_v19 = vld [vmem:[#allocation10 + $0x7d0] sm:$0xff] }
 0x6d4   : > { %v7634_v20 = vld [vmem:[#allocation10 + $0x7f0] sm:$0xff] }
 0x6d5   : > { %9178 = vmatpush1.bf16.msra.mxu0 %v11564_v43  ;;  %v7595_v43 = vld [vmem:[#allocation10 + $0x6b8] sm:$0xff] }
 0x6d6   : > { %9264 = vmatpush1.bf16.msra.mxu1 %v11566_v32  ;;  %9179 = vmatprep.subr.bf16.mxu0 %v11573_v44  ;;  %v11620_v32 = vcombine.low %v7582_v26, %v7586_v34  ;;  %v11622_v44 = vcombine.low %v7583_v35, %v7587_v36  ;;  %v11631_v50 = vcombine.high %v7591_v7, %v7595_v43  ;;  %v12851_v36 = vld [vmem:[#allocation11 + $0x4] ss:$8 sps:$4 sm:$0xff]  }
 0x6d7   : > { %9265 = vmatprep.subr.bf16.mxu1 %v11575_v45  ;;  %v11629_v45 = vcombine.high %v7590_v42, %v7594_v5  ;;  %v11668_v34 = vcombine.low %v7630_v19, %v7634_v20 }
 0x6d9   : > { %9180 = vmatpush1.bf16.msra.mxu0 %v11572_v37  ;;  %v7603_v37 = vld [vmem:[#allocation10 + $0x6f8] sm:$0xff] }
 0x6da   : > { %9266 = vmatpush1.bf16.msra.mxu1 %v11574_v27  ;;  %9181 = vmatprep.subr.bf16.mxu0 %v11581_v17  ;;  %v11628_v27 = vcombine.low %v7590_v42, %v7594_v5  ;;  %v11630_v17 = vcombine.low %v7591_v7, %v7595_v43  ;;  %v11639_v23 = vcombine.high %v7599_v49, %v7603_v37  ;;  %v12855_v42 = vld [vmem:[#allocation11 + $0x20] ss:$8 sps:$4 sm:$0xff]   ;;  %v12860_v5 = vld [vmem:[#allocation11 + $0x34] ss:$8 sps:$4 sm:$0xff]   ;;  %v12858_v7 = vld [vmem:[#allocation11 + $0x30] ss:$8 sps:$4 sm:$0xff]  }
 0x6db   : > { %9267 = vmatprep.subr.bf16.mxu1 %v11583_v29  ;;  %v11637_v29 = vcombine.high %v7598_v46, %v7602_v48  ;;  %v12863_v43 = vld [vmem:[#allocation11 + $0x44] ss:$8 sps:$4 sm:$0xff]  }
 0x6dd   : > { %9182 = vmatpush1.bf16.msra.mxu0 %v11580_v59  ;;  %v7611_v59 = vld [vmem:[#allocation10 + $0x738] sm:$0xff] }
 0x6de   : > { %9268 = vmatpush1.bf16.msra.mxu1 %v11582_v58  ;;  %9183 = vmatprep.subr.bf16.mxu0 %v11589_v61  ;;  %v11636_v58 = vcombine.low %v7598_v46, %v7602_v48  ;;  %v11638_v61 = vcombine.low %v7599_v49, %v7603_v37  ;;  %v11647_v60 = vcombine.high %v7607_v57, %v7611_v59  ;;  %v12872_v46 = vld [vmem:[#allocation11 + $0x74] ss:$8 sps:$4 sm:$0xff]   ;;  %v12870_v48 = vld [vmem:[#allocation11 + $0x70] ss:$8 sps:$4 sm:$0xff]   ;;  %v12875_v49 = vld [vmem:[#allocation11 + $0x84] ss:$8 sps:$4 sm:$0xff]  }
 0x6df   : > { %9269 = vmatprep.subr.bf16.mxu1 %v11591_v16  ;;  %v11645_v16 = vcombine.high %v7606_v53, %v7610_v55  ;;  %v12873_v37 = vld [vmem:[#allocation11 + $0x80] ss:$8 sps:$4 sm:$0xff]  }
 0x6e1   : > { %9184 = vmatpush1.bf16.msra.mxu0 %v11588_v47  ;;  %v7619_v47 = vld [vmem:[#allocation10 + $0x778] sm:$0xff] }
 0x6e2   : > { %9270 = vmatpush1.bf16.msra.mxu1 %v11590_v1  ;;  %9185 = vmatprep.subr.bf16.mxu0 %v11597_v3  ;;  %v11644_v1 = vcombine.low %v7606_v53, %v7610_v55  ;;  %v11646_v3 = vcombine.low %v7607_v57, %v7611_v59  ;;  %v11655_v8 = vcombine.high %v7615_v0, %v7619_v47  ;;  %v12884_v53 = vld [vmem:[#allocation11 + $0xb4] ss:$8 sps:$4 sm:$0xff]   ;;  %v12882_v55 = vld [vmem:[#allocation11 + $0xb0] ss:$8 sps:$4 sm:$0xff]   ;;  %v12887_v57 = vld [vmem:[#allocation11 + $0xc4] ss:$8 sps:$4 sm:$0xff]  }
 0x6e3   : > { %9271 = vmatprep.subr.bf16.mxu1 %v11599_v6  ;;  %v11653_v6 = vcombine.high %v7614_v62, %v7618_v63  ;;  %v12885_v59 = vld [vmem:[#allocation11 + $0xc0] ss:$8 sps:$4 sm:$0xff]  }
 0x6e5   : > { %9186 = vmatpush1.bf16.msra.mxu0 %v11596_v12  ;;  %v7627_v12 = vld [vmem:[#allocation10 + $0x7b8] sm:$0xff] }
 0x6e6   : > { %9272 = vmatpush1.bf16.msra.mxu1 %v11598_v13  ;;  %9187 = vmatprep.subr.bf16.mxu0 %v11605_v14  ;;  %v11652_v13 = vcombine.low %v7614_v62, %v7618_v63  ;;  %v11654_v14 = vcombine.low %v7615_v0, %v7619_v47  ;;  %v11663_v18 = vcombine.high %v7623_v11, %v7627_v12  ;;  %v12896_v62 = vld [vmem:[#allocation11 + $0xf4] ss:$8 sps:$4 sm:$0xff]   ;;  %v12894_v63 = vld [vmem:[#allocation11 + $0xf0] ss:$8 sps:$4 sm:$0xff]   ;;  %v12899_v0 = vld [vmem:[#allocation11 + $0x104] ss:$8 sps:$4 sm:$0xff]  }
 0x6e7   : > { %9273 = vmatprep.subr.bf16.mxu1 %v11607_v15  ;;  %v11661_v15 = vcombine.high %v7622_v9, %v7626_v10  ;;  %v13893_v47 = vld [vmem:[%s14015_s10] sm:$0xff] }
 0x6e9   : > { %9188 = vmatpush1.bf16.msra.mxu0 %v11604_v21  ;;  %v7635_v21 = vld [vmem:[#allocation10 + $0x7f8] sm:$0xff] }
 0x6ea   : > { %9274 = vmatpush1.bf16.msra.mxu1 %v11606_v22  ;;  %9189 = vmatprep.subr.bf16.mxu0 %v11613_v24  ;;  %v11660_v22 = vcombine.low %v7622_v9, %v7626_v10  ;;  %v11662_v24 = vcombine.low %v7623_v11, %v7627_v12  ;;  %v11671_v26 = vcombine.high %v7631_v31, %v7635_v21 }
 0x6eb   : > { %9275 = vmatprep.subr.bf16.mxu1 %v11615_v25  ;;  %v11669_v25 = vcombine.high %v7630_v19, %v7634_v20  ;;  %v11670_v35 = vcombine.low %v7631_v31, %v7635_v21 }
 0x6ed   : > { %9190 = vmatpush1.bf16.msra.mxu0 %v11612_v38  ;;  %v12849_v38 = vld [vmem:[#allocation11] ss:$8 sps:$4 sm:$0xff]  }
 0x6ee   : > { %9276 = vmatpush1.bf16.msra.mxu1 %v11614_v39  ;;  %9191 = vmatprep.subr.bf16.mxu0 %v11621_v40  ;;  %v12854_v39 = vld [vmem:[#allocation11 + $0x14] ss:$8 sps:$4 sm:$0xff]   ;;  %v12852_v40 = vld [vmem:[#allocation11 + $0x10] ss:$8 sps:$4 sm:$0xff]  }
 0x6ef   : > { %9277 = vmatprep.subr.bf16.mxu1 %v11623_v41  ;;  %v12857_v41 = vld [vmem:[#allocation11 + $0x24] ss:$8 sps:$4 sm:$0xff]  }
 0x6f1   : > { %9192 = vmatpush1.bf16.msra.mxu0 %v11620_v32  ;;  %v12861_v32 = vld [vmem:[#allocation11 + $0x40] ss:$8 sps:$4 sm:$0xff]  }
 0x6f2   : > { %9278 = vmatpush1.bf16.msra.mxu1 %v11622_v44  ;;  %9193 = vmatprep.subr.bf16.mxu0 %v11629_v45  ;;  %v12866_v44 = vld [vmem:[#allocation11 + $0x54] ss:$8 sps:$4 sm:$0xff]   ;;  %v12864_v45 = vld [vmem:[#allocation11 + $0x50] ss:$8 sps:$4 sm:$0xff]  }
 0x6f3   : > { %9279 = vmatprep.subr.bf16.mxu1 %v11631_v50  ;;  %v12867_v50 = vld [vmem:[#allocation11 + $0x60] ss:$8 sps:$4 sm:$0xff]  }
 0x6f5   : > { %9194 = vmatpush1.bf16.msra.mxu0 %v11628_v27  ;;  %v12878_v27 = vld [vmem:[#allocation11 + $0x94] ss:$8 sps:$4 sm:$0xff]  }
 0x6f6   : > { %9280 = vmatpush1.bf16.msra.mxu1 %v11630_v17  ;;  %9195 = vmatprep.subr.bf16.mxu0 %v11637_v29  ;;  %v12876_v17 = vld [vmem:[#allocation11 + $0x90] ss:$8 sps:$4 sm:$0xff]   ;;  %v12881_v29 = vld [vmem:[#allocation11 + $0xa4] ss:$8 sps:$4 sm:$0xff]  }
 0x6f7   : > { %9281 = vmatprep.subr.bf16.mxu1 %v11639_v23  ;;  %v12879_v23 = vld [vmem:[#allocation11 + $0xa0] ss:$8 sps:$4 sm:$0xff]  }
 0x6f9   : > { %9196 = vmatpush1.bf16.msra.mxu0 %v11636_v58  ;;  %v12890_v58 = vld [vmem:[#allocation11 + $0xd4] ss:$8 sps:$4 sm:$0xff]  }
 0x6fa   : > { %9282 = vmatpush1.bf16.msra.mxu1 %v11638_v61  ;;  %9197 = vmatprep.subr.bf16.mxu0 %v11645_v16  ;;  %v12888_v61 = vld [vmem:[#allocation11 + $0xd0] ss:$8 sps:$4 sm:$0xff]   ;;  %v12893_v16 = vld [vmem:[#allocation11 + $0xe4] ss:$8 sps:$4 sm:$0xff]  }
 0x6fb   : > { %9283 = vmatprep.subr.bf16.mxu1 %v11647_v60  ;;  %v12891_v60 = vld [vmem:[#allocation11 + $0xe0] ss:$8 sps:$4 sm:$0xff]  }
 0x6fd   : > { %9198 = vmatpush1.bf16.msra.mxu0 %v11644_v1  ;;  %v7641_v1 = vrot.slane %v13893_v47, %v13710_v51 }
 0x6fe   : > { %9284 = vmatpush1.bf16.msra.mxu1 %v11646_v3  ;;  %9199 = vmatprep.subr.bf16.mxu0 %v11653_v6  ;;  %v7649_v3 = vrot.slane %v13893_v47, %v13729_v2  ;;  %v7645_v6 = vrot.slane %v13893_v47, %v13718_v52 }
 0x6ff   : > { %9285 = vmatprep.subr.bf16.mxu1 %v11655_v8  ;;  %v7653_v8 = vrot.slane %v13893_v47, %v13732_v4 }
 0x701   : > { %9200 = vmatpush1.bf16.msra.mxu0 %v11652_v13 }
 0x702   : > { %9286 = vmatpush1.bf16.msra.mxu1 %v11654_v14  ;;  %9201 = vmatprep.subr.bf16.mxu0 %v11661_v15 }
 0x703   : > { %9287 = vmatprep.subr.bf16.mxu1 %v11663_v18 }
 0x705   : > { %9202 = vmatpush1.bf16.msra.mxu0 %v11660_v22 }
 0x706   : > { %9288 = vmatpush1.bf16.msra.mxu1 %v11662_v24  ;;  %9203 = vmatprep.subr.bf16.mxu0 %v11669_v25 }
 0x707   : > { %9289 = vmatprep.subr.bf16.mxu1 %v11671_v26 }
 0x709   : > { %9204 = vmatpush1.bf16.msra.mxu0 %v11668_v34 }
 0x70a   : > { %9290 = vmatpush1.bf16.msra.mxu1 %v11670_v35  ;;  %10106 = vmatprep.subr.bf16.mxu0 %v12851_v36 }
 0x70c   : > { %9206 = vmatmul.mubr.bf16.vlgmr.msra.gmra.mrb[20].mxu0 %v13868_v33 }
 0x70d   : > { %9292 = vmatmul.mubr.bf16.vlgmr.msra.gmra.mrb[36].mxu1 %v13868_v33  ;;  %10107 = vmatpush1.bf16.msra.mxu0 %v12849_v38  ;;  %v12869_v33 = vld [vmem:[#allocation11 + $0x64] ss:$8 sps:$4 sm:$0xff]  }
 0x70e   : > { %10108 = vmatprep.subr.bf16.mxu0 %v12854_v39 }
 0x711   : > { %10109 = vmatpush1.bf16.msra.mxu0 %v12852_v40 }
 0x712   : > { %10110 = vmatprep.subr.bf16.mxu0 %v12857_v41 }
 0x715   : > { %10111 = vmatpush1.bf16.msra.mxu0 %v12855_v42 }
 0x716   : > { %10112 = vmatprep.subr.bf16.mxu0 %v12860_v5 }
 0x719   : > { %10113 = vmatpush1.bf16.msra.mxu0 %v12858_v7 }
 0x71a   : > { %10114 = vmatprep.subr.bf16.mxu0 %v12863_v43  ;;  %v12897_v43 = vld [vmem:[#allocation11 + $0x100] ss:$8 sps:$4 sm:$0xff]  }
 0x71d   : > { %10115 = vmatpush1.bf16.msra.mxu0 %v12861_v32  ;;  %v12902_v32 = vld [vmem:[#allocation11 + $0x114] ss:$8 sps:$4 sm:$0xff]  }
 0x71e   : > { %10116 = vmatprep.subr.bf16.mxu0 %v12866_v44  ;;  %v12900_v44 = vld [vmem:[#allocation11 + $0x110] ss:$8 sps:$4 sm:$0xff]  }
 0x721   : > { %10117 = vmatpush1.bf16.msra.mxu0 %v12864_v45  ;;  %v12905_v45 = vld [vmem:[#allocation11 + $0x124] ss:$8 sps:$4 sm:$0xff]  }
 0x722   : > { %10118 = vmatprep.subr.bf16.mxu0 %v12869_v33  ;;  %v12903_v33 = vld [vmem:[#allocation11 + $0x120] ss:$8 sps:$4 sm:$0xff]  }
 0x725   : > { %10119 = vmatpush1.bf16.msra.mxu0 %v12867_v50  ;;  %v12908_v50 = vld [vmem:[#allocation11 + $0x134] ss:$8 sps:$4 sm:$0xff]  }
 0x726   : > { %10120 = vmatprep.subr.bf16.mxu0 %v12872_v46  ;;  %v12906_v46 = vld [vmem:[#allocation11 + $0x130] ss:$8 sps:$4 sm:$0xff]  }
 0x729   : > { %10121 = vmatpush1.bf16.msra.mxu0 %v12870_v48  ;;  %v12911_v48 = vld [vmem:[#allocation11 + $0x144] ss:$8 sps:$4 sm:$0xff]  }
 0x72a   : > { %10122 = vmatprep.subr.bf16.mxu0 %v12875_v49  ;;  %v12909_v49 = vld [vmem:[#allocation11 + $0x140] ss:$8 sps:$4 sm:$0xff]  }
 0x72d   : > { %10123 = vmatpush1.bf16.msra.mxu0 %v12873_v37  ;;  %v12914_v37 = vld [vmem:[#allocation11 + $0x154] ss:$8 sps:$4 sm:$0xff]  }
 0x72e   : > { %10124 = vmatprep.subr.bf16.mxu0 %v12878_v27  ;;  %v12912_v27 = vld [vmem:[#allocation11 + $0x150] ss:$8 sps:$4 sm:$0xff]  }
 0x731   : > { %10125 = vmatpush1.bf16.msra.mxu0 %v12876_v17  ;;  %v12917_v17 = vld [vmem:[#allocation11 + $0x164] ss:$8 sps:$4 sm:$0xff]  }
 0x732   : > { %10126 = vmatprep.subr.bf16.mxu0 %v12881_v29  ;;  %v12915_v29 = vld [vmem:[#allocation11 + $0x160] ss:$8 sps:$4 sm:$0xff]  }
 0x735   : > { %10127 = vmatpush1.bf16.msra.mxu0 %v12879_v23  ;;  %v12920_v23 = vld [vmem:[#allocation11 + $0x174] ss:$8 sps:$4 sm:$0xff]  }
 0x736   : > { %10128 = vmatprep.subr.bf16.mxu0 %v12884_v53  ;;  %v12918_v53 = vld [vmem:[#allocation11 + $0x170] ss:$8 sps:$4 sm:$0xff]  }
 0x739   : > { %10129 = vmatpush1.bf16.msra.mxu0 %v12882_v55  ;;  %v12923_v55 = vld [vmem:[#allocation11 + $0x184] ss:$8 sps:$4 sm:$0xff]  }
 0x73a   : > { %10130 = vmatprep.subr.bf16.mxu0 %v12887_v57  ;;  %v12921_v57 = vld [vmem:[#allocation11 + $0x180] ss:$8 sps:$4 sm:$0xff]  }
 0x73d   : > { %10131 = vmatpush1.bf16.msra.mxu0 %v12885_v59  ;;  %v12926_v59 = vld [vmem:[#allocation11 + $0x194] ss:$8 sps:$4 sm:$0xff]  }
 0x73e   : > { %10132 = vmatprep.subr.bf16.mxu0 %v12890_v58  ;;  %v12924_v58 = vld [vmem:[#allocation11 + $0x190] ss:$8 sps:$4 sm:$0xff]  }
 0x741   : > { %10133 = vmatpush1.bf16.msra.mxu0 %v12888_v61  ;;  %v12929_v61 = vld [vmem:[#allocation11 + $0x1a4] ss:$8 sps:$4 sm:$0xff]  }
 0x742   : > { %10134 = vmatprep.subr.bf16.mxu0 %v12893_v16  ;;  %v12927_v16 = vld [vmem:[#allocation11 + $0x1a0] ss:$8 sps:$4 sm:$0xff]  }
 0x745   : > { %10135 = vmatpush1.bf16.msra.mxu0 %v12891_v60  ;;  %v12932_v60 = vld [vmem:[#allocation11 + $0x1b4] ss:$8 sps:$4 sm:$0xff]  }
 0x746   : > { %10136 = vmatprep.subr.bf16.mxu0 %v12896_v62  ;;  %v12930_v62 = vld [vmem:[#allocation11 + $0x1b0] ss:$8 sps:$4 sm:$0xff]  }
 0x749   : > { %10137 = vmatpush1.bf16.msra.mxu0 %v12894_v63  ;;  %v12935_v63 = vld [vmem:[#allocation11 + $0x1c4] ss:$8 sps:$4 sm:$0xff]  }
 0x74a   : > { %10149 = vmatprep.subr.bf16.mxu0 %v12899_v0  ;;  %v12933_v0 = vld [vmem:[#allocation11 + $0x1c0] ss:$8 sps:$4 sm:$0xff]  }
 0x75f   : > { %v9035_v9 = vpop.f32.mrb[16].mxu0  ;;  %v9121_v10 = vpop.f32.mrb[32].mxu1 }
 0x760   : > { %v11851_v11 = vadd.f32 %v9035_v9, %v7641_v1  ;;  %v11855_v12 = vadd.f32 %v9121_v10, %v7649_v3  ;;  %v9037_v13 = vpop.f32.mrb[17].mxu0  ;;  %v9123_v14 = vpop.f32.mrb[33].mxu1  ;;  %v12944_v9 = vld [vmem:[#allocation11 + $0x1f4] ss:$8 sps:$4 sm:$0xff]   ;;  %v12942_v10 = vld [vmem:[#allocation11 + $0x1f0] ss:$8 sps:$4 sm:$0xff]  }
 0x761   : > { %v11852_v15 = vadd.f32 %v9037_v13, %v7645_v6  ;;  %v11856_v18 = vadd.f32 %v9123_v14, %v7653_v8  ;;  %v9039_v19 = vpop.f32.mrb[18].mxu0  ;;  %v9125_v20 = vpop.f32.mrb[34].mxu1  ;;  %v12950_v13 = vld [vmem:[#allocation11 + $0x214] ss:$8 sps:$4 sm:$0xff]   ;;  %v12948_v14 = vld [vmem:[#allocation11 + $0x210] ss:$8 sps:$4 sm:$0xff]  }
 0x762   : > { %v11853_v31 = vadd.f32 %v9039_v19, %v7641_v1  ;;  %v11857_v21 = vadd.f32 %v9125_v20, %v7649_v3  ;;  %v9041_v22 = vpop.f32.mrb[19].mxu0  ;;  %v9127_v2 = vpop.f32.mrb[35].mxu1  ;;  %v9302_v26 = vmax.f32 %v11851_v11, 0.0  ;;  %v9304_v34 = vmax.f32 %v11855_v12, 0.0  ;;  %v12938_v1 = vld [vmem:[#allocation11 + $0x1d4] ss:$8 sps:$4 sm:$0xff]  }
 0x763   : > { %v11854_v24 = vadd.f32 %v9041_v22, %v7645_v6  ;;  %v11858_v25 = vadd.f32 %v9127_v2, %v7653_v8  ;;  %v9303_v36 = vmax.f32 %v11852_v15, 0.0  ;;  %v9305_v38 = vmax.f32 %v11856_v18, 0.0  ;;  %v12936_v3 = vld [vmem:[#allocation11 + $0x1d0] ss:$8 sps:$4 sm:$0xff]   ;;  %v12941_v6 = vld [vmem:[#allocation11 + $0x1e4] ss:$8 sps:$4 sm:$0xff]  }
 0x764   : > { %v9310_v35 = vmax.f32 %v11853_v31, 0.0  ;;  %v9312_v4 = vmax.f32 %v11857_v21, 0.0  ;;  %v12939_v8 = vld [vmem:[#allocation11 + $0x1e0] ss:$8 sps:$4 sm:$0xff]   ;;  %v12947_v11 = vld [vmem:[#allocation11 + $0x204] ss:$8 sps:$4 sm:$0xff]  }
 0x765   : > { %v9311_v39 = vmax.f32 %v11854_v24, 0.0  ;;  %v9313_v40 = vmax.f32 %v11858_v25, 0.0  ;;  %v12945_v12 = vld [vmem:[#allocation11 + $0x200] ss:$8 sps:$4 sm:$0xff]   ;;  %v12953_v15 = vld [vmem:[#allocation11 + $0x224] ss:$8 sps:$4 sm:$0xff]  }
 0x766   : > { %v9318_v41 = vpack.c.bf16 %v9310_v35, %v9302_v26  ;;  %v13903_v42 = vpack.c.bf16 %v9312_v4, %v9304_v34  ;;  %v12951_v18 = vld [vmem:[#allocation11 + $0x220] ss:$8 sps:$4 sm:$0xff]   ;;  %v12956_v19 = vld [vmem:[#allocation11 + $0x234] ss:$8 sps:$4 sm:$0xff]   ;;  %v12954_v20 = vld [vmem:[#allocation11 + $0x230] ss:$8 sps:$4 sm:$0xff]  }
 0x767   : > { %v9319_v5 = vpack.c.bf16 %v9311_v39, %v9303_v36  ;;  %v9321_v7 = vpack.c.bf16 %v9313_v40, %v9305_v38  ;;  %v12959_v31 = vld [vmem:[#allocation11 + $0x244] ss:$8 sps:$4 sm:$0xff]   ;;  %v12957_v21 = vld [vmem:[#allocation11 + $0x240] ss:$8 sps:$4 sm:$0xff]   ;;  %v12962_v22 = vld [vmem:[#allocation11 + $0x254] ss:$8 sps:$4 sm:$0xff]  }
 0x768   : > { %v12960_v2 = vld [vmem:[#allocation11 + $0x250] ss:$8 sps:$4 sm:$0xff]   ;;  %v12965_v24 = vld [vmem:[#allocation11 + $0x264] ss:$8 sps:$4 sm:$0xff]   ;;  %v12963_v25 = vld [vmem:[#allocation11 + $0x260] ss:$8 sps:$4 sm:$0xff]  }
 0x769   : > { %10138 = vmatprep.mubr.bf16.mxu0 %v9319_v5  ;;  %v12968_v26 = vld [vmem:[#allocation11 + $0x274] ss:$8 sps:$4 sm:$0xff]   ;;  %v12966_v34 = vld [vmem:[#allocation11 + $0x270] ss:$8 sps:$4 sm:$0xff]   ;;  %v12971_v35 = vld [vmem:[#allocation11 + $0x284] ss:$8 sps:$4 sm:$0xff]  }
 0x76a   : > { %10139 = vmatmul.mubr.bf16.vlgmr.msra.gmra.mrb[24].mxu0 %v9318_v41  ;;  %v12969_v4 = vld [vmem:[#allocation11 + $0x280] ss:$8 sps:$4 sm:$0xff]   ;;  %v12974_v36 = vld [vmem:[#allocation11 + $0x294] ss:$8 sps:$4 sm:$0xff]   ;;  %v12972_v38 = vld [vmem:[#allocation11 + $0x290] ss:$8 sps:$4 sm:$0xff]  }
 0x76b   : > { %10150 = vmatpush1.bf16.msra.mxu0 %v12897_v43  ;;  %10181 = vmatprep.mubr.bf16.mxu0 %v9321_v7  ;;  %v12977_v39 = vld [vmem:[#allocation11 + $0x2a4] ss:$8 sps:$4 sm:$0xff]   ;;  %v12975_v40 = vld [vmem:[#allocation11 + $0x2a0] ss:$8 sps:$4 sm:$0xff]   ;;  %v12980_v41 = vld [vmem:[#allocation11 + $0x2b4] ss:$8 sps:$4 sm:$0xff]  }
 0x76c   : > { %10151 = vmatprep.subr.bf16.mxu0 %v12902_v32  ;;  %v12983_v5 = vld [vmem:[#allocation11 + $0x2c4] ss:$8 sps:$4 sm:$0xff]   ;;  %v12981_v7 = vld [vmem:[#allocation11 + $0x2c0] ss:$8 sps:$4 sm:$0xff]   ;;  %v12986_v43 = vld [vmem:[#allocation11 + $0x2d4] ss:$8 sps:$4 sm:$0xff]  }
 0x76d   : > { %v12984_v32 = vld [vmem:[#allocation11 + $0x2d0] ss:$8 sps:$4 sm:$0xff]  }
 0x76f   : > { %10152 = vmatpush1.bf16.msra.mxu0 %v12900_v44  ;;  %v7657_v44 = vrot.slane %v13893_v47, %v13743_v28 }
 0x770   : > { %10153 = vmatprep.subr.bf16.mxu0 %v12905_v45  ;;  %v12989_v45 = vld [vmem:[#allocation11 + $0x2e4] ss:$8 sps:$4 sm:$0xff]  }
 0x773   : > { %10154 = vmatpush1.bf16.msra.mxu0 %v12903_v33  ;;  %v7665_v33 = vrot.slane %v13893_v47, %v13757_v54 }
 0x774   : > { %10155 = vmatprep.subr.bf16.mxu0 %v12908_v50  ;;  %v7661_v50 = vrot.slane %v13893_v47, %v13746_v30 }
 0x777   : > { %10156 = vmatpush1.bf16.msra.mxu0 %v12906_v46  ;;  %v7669_v46 = vrot.slane %v13893_v47, %v13760_v56  ;;  %v12990_v56 = vld [vmem:[#allocation11 + $0x2f0] ss:$8 sps:$4 sm:$0xff]  }
 0x778   : > { %10157 = vmatprep.subr.bf16.mxu0 %v12911_v48 }
 0x77b   : > { %10158 = vmatpush1.bf16.msra.mxu0 %v12909_v49  ;;  %v12987_v49 = vld [vmem:[#allocation11 + $0x2e0] ss:$8 sps:$4 sm:$0xff]  }
 0x77c   : > { %10159 = vmatprep.subr.bf16.mxu0 %v12914_v37 }
 0x77f   : > { %10160 = vmatpush1.bf16.msra.mxu0 %v12912_v27 }
 0x780   : > { %10161 = vmatprep.subr.bf16.mxu0 %v12917_v17 }
 0x783   : > { %10162 = vmatpush1.bf16.msra.mxu0 %v12915_v29  ;;  %v12992_v29 = vld [vmem:[#allocation11 + $0x2f4] ss:$8 sps:$4 sm:$0xff]  }
 0x784   : > { %10163 = vmatprep.subr.bf16.mxu0 %v12920_v23 }
 0x787   : > { %10164 = vmatpush1.bf16.msra.mxu0 %v12918_v53 }
 0x788   : > { %10165 = vmatprep.subr.bf16.mxu0 %v12923_v55 }
 0x78b   : > { %10166 = vmatpush1.bf16.msra.mxu0 %v12921_v57 }
 0x78c   : > { %10167 = vmatprep.subr.bf16.mxu0 %v12926_v59 }
 0x78f   : > { %10168 = vmatpush1.bf16.msra.mxu0 %v12924_v58 }
 0x790   : > { %10169 = vmatprep.subr.bf16.mxu0 %v12929_v61 }
 0x793   : > { %10170 = vmatpush1.bf16.msra.mxu0 %v12927_v16 }
 0x794   : > { %10171 = vmatprep.subr.bf16.mxu0 %v12932_v60 }
 0x797   : > { %10172 = vmatpush1.bf16.msra.mxu0 %v12930_v62 }
 0x798   : > { %10173 = vmatprep.subr.bf16.mxu0 %v12935_v63  ;;  %v12995_v63 = vld [vmem:[#allocation11 + $0x304] ss:$8 sps:$4 sm:$0xff]  }
 0x79b   : > { %10174 = vmatpush1.bf16.msra.mxu0 %v12933_v0 }
 0x79c   : > { %10175 = vmatprep.subr.bf16.mxu0 %v12938_v1 }
 0x79f   : > { %10176 = vmatpush1.bf16.msra.mxu0 %v12936_v3 }
 0x7a0   : > { %10177 = vmatprep.subr.bf16.mxu0 %v12941_v6 }
 0x7a3   : > { %10178 = vmatpush1.bf16.msra.mxu0 %v12939_v8 }
 0x7a4   : > { %10179 = vmatprep.subr.bf16.mxu0 %v12944_v9 }
 0x7a7   : > { %10180 = vmatpush1.bf16.msra.mxu0 %v12942_v10 }
 0x7a8   : > { %10192 = vmatprep.subr.bf16.mxu0 %v12947_v11 }
 0x7aa   : > { %10182 = vmatmul.mubr.bf16.vlgmr.msra.gmra.mrb[24].mxu0 %v13903_v42  ;;  %v12978_v42 = vld [vmem:[#allocation11 + $0x2b0] ss:$8 sps:$4 sm:$0xff]  }
 0x7ab   : > { %10193 = vmatpush1.bf16.msra.mxu0 %v12945_v12 }
 0x7ac   : > { %10194 = vmatprep.subr.bf16.mxu0 %v12950_v13  ;;  %v12993_v13 = vld [vmem:[#allocation11 + $0x300] ss:$8 sps:$4 sm:$0xff]  }
 0x7af   : > { %10195 = vmatpush1.bf16.msra.mxu0 %v12948_v14 }
 0x7b0   : > { %10196 = vmatprep.subr.bf16.mxu0 %v12953_v15  ;;  %v12998_v15 = vld [vmem:[#allocation11 + $0x314] ss:$8 sps:$4 sm:$0xff]  }
 0x7b3   : > { %10197 = vmatpush1.bf16.msra.mxu0 %v12951_v18  ;;  %v12996_v18 = vld [vmem:[#allocation11 + $0x310] ss:$8 sps:$4 sm:$0xff]  }
 0x7b4   : > { %10198 = vmatprep.subr.bf16.mxu0 %v12956_v19  ;;  %v13001_v19 = vld [vmem:[#allocation11 + $0x324] ss:$8 sps:$4 sm:$0xff]  }
 0x7b7   : > { %10199 = vmatpush1.bf16.msra.mxu0 %v12954_v20  ;;  %v12999_v20 = vld [vmem:[#allocation11 + $0x320] ss:$8 sps:$4 sm:$0xff]  }
 0x7b8   : > { %10200 = vmatprep.subr.bf16.mxu0 %v12959_v31  ;;  %v13004_v31 = vld [vmem:[#allocation11 + $0x334] ss:$8 sps:$4 sm:$0xff]  }
 0x7bb   : > { %10201 = vmatpush1.bf16.msra.mxu0 %v12957_v21  ;;  %v13002_v21 = vld [vmem:[#allocation11 + $0x330] ss:$8 sps:$4 sm:$0xff]  }
 0x7bc   : > { %10202 = vmatprep.subr.bf16.mxu0 %v12962_v22  ;;  %v13007_v22 = vld [vmem:[#allocation11 + $0x344] ss:$8 sps:$4 sm:$0xff]  }
 0x7bf   : > { %10203 = vmatpush1.bf16.msra.mxu0 %v12960_v2  ;;  %v13005_v2 = vld [vmem:[#allocation11 + $0x340] ss:$8 sps:$4 sm:$0xff]  }
 0x7c0   : > { %10204 = vmatprep.subr.bf16.mxu0 %v12965_v24  ;;  %v13010_v24 = vld [vmem:[#allocation11 + $0x354] ss:$8 sps:$4 sm:$0xff]  }
 0x7c3   : > { %10205 = vmatpush1.bf16.msra.mxu0 %v12963_v25  ;;  %v13008_v25 = vld [vmem:[#allocation11 + $0x350] ss:$8 sps:$4 sm:$0xff]  }
 0x7c4   : > { %10206 = vmatprep.subr.bf16.mxu0 %v12968_v26  ;;  %v13013_v26 = vld [vmem:[#allocation11 + $0x364] ss:$8 sps:$4 sm:$0xff]  }
 0x7c7   : > { %10207 = vmatpush1.bf16.msra.mxu0 %v12966_v34  ;;  %v13011_v34 = vld [vmem:[#allocation11 + $0x360] ss:$8 sps:$4 sm:$0xff]  }
 0x7c8   : > { %10208 = vmatprep.subr.bf16.mxu0 %v12971_v35  ;;  %v13016_v35 = vld [vmem:[#allocation11 + $0x374] ss:$8 sps:$4 sm:$0xff]  }
 0x7cb   : > { %10209 = vmatpush1.bf16.msra.mxu0 %v12969_v4  ;;  %v13014_v4 = vld [vmem:[#allocation11 + $0x370] ss:$8 sps:$4 sm:$0xff]  }
 0x7cc   : > { %10210 = vmatprep.subr.bf16.mxu0 %v12974_v36  ;;  %v13019_v36 = vld [vmem:[#allocation11 + $0x384] ss:$8 sps:$4 sm:$0xff]  }
 0x7cf   : > { %10211 = vmatpush1.bf16.msra.mxu0 %v12972_v38  ;;  %v13017_v38 = vld [vmem:[#allocation11 + $0x380] ss:$8 sps:$4 sm:$0xff]  }
 0x7d0   : > { %10212 = vmatprep.subr.bf16.mxu0 %v12977_v39  ;;  %v13022_v39 = vld [vmem:[#allocation11 + $0x394] ss:$8 sps:$4 sm:$0xff]  }
 0x7d3   : > { %10213 = vmatpush1.bf16.msra.mxu0 %v12975_v40  ;;  %v13020_v40 = vld [vmem:[#allocation11 + $0x390] ss:$8 sps:$4 sm:$0xff]  }
 0x7d4   : > { %10214 = vmatprep.subr.bf16.mxu0 %v12980_v41  ;;  %v13025_v41 = vld [vmem:[#allocation11 + $0x3a4] ss:$8 sps:$4 sm:$0xff]  }
 0x7d7   : > { %10215 = vmatpush1.bf16.msra.mxu0 %v12978_v42  ;;  %v13023_v42 = vld [vmem:[#allocation11 + $0x3a0] ss:$8 sps:$4 sm:$0xff]  }
 0x7d8   : > { %10216 = vmatprep.subr.bf16.mxu0 %v12983_v5  ;;  %v13028_v5 = vld [vmem:[#allocation11 + $0x3b4] ss:$8 sps:$4 sm:$0xff]  }
 0x7db   : > { %10217 = vmatpush1.bf16.msra.mxu0 %v12981_v7  ;;  %v13026_v7 = vld [vmem:[#allocation11 + $0x3b0] ss:$8 sps:$4 sm:$0xff]  }
 0x7dc   : > { %10218 = vmatprep.subr.bf16.mxu0 %v12986_v43  ;;  %v13031_v43 = vld [vmem:[#allocation11 + $0x3c4] ss:$8 sps:$4 sm:$0xff]  }
 0x7df   : > { %10219 = vmatpush1.bf16.msra.mxu0 %v12984_v32  ;;  %v9207_v48 = vpop.f32.mrb[20].mxu0  ;;  %v13029_v32 = vld [vmem:[#allocation11 + $0x3c0] ss:$8 sps:$4 sm:$0xff]  }
 0x7e0   : > { %v11859_v37 = vadd.f32 %v9207_v48, %v7657_v44  ;;  %v9293_v27 = vpop.f32.mrb[36].mxu1  ;;  %v9209_v17 = vpop.f32.mrb[21].mxu0  ;;  %10220 = vmatprep.subr.bf16.mxu0 %v12989_v45  ;;  %v13032_v45 = vld [vmem:[#allocation11 + $0x3d0] ss:$8 sps:$4 sm:$0xff]  }
 0x7e1   : > { %v11863_v23 = vadd.f32 %v9293_v27, %v7665_v33  ;;  %v11860_v28 = vadd.f32 %v9209_v17, %v7661_v50  ;;  %v9295_v53 = vpop.f32.mrb[37].mxu1  ;;  %v9211_v55 = vpop.f32.mrb[22].mxu0  ;;  %v13038_v48 = vld [vmem:[#allocation11 + $0x3f0] ss:$8 sps:$4 sm:$0xff]  }
 0x7e2   : > { %v11864_v57 = vadd.f32 %v9295_v53, %v7669_v46  ;;  %v11861_v54 = vadd.f32 %v9211_v55, %v7657_v44  ;;  %v9297_v59 = vpop.f32.mrb[38].mxu1  ;;  %v9213_v58 = vpop.f32.mrb[23].mxu0  ;;  %v9306_v47 = vmax.f32 %v11859_v37, 0.0  ;;  %v13034_v44 = vld [vmem:[#allocation11 + $0x3d4] ss:$8 sps:$4 sm:$0xff]  }
 0x7e3   : > { %v11865_v30 = vadd.f32 %v9297_v59, %v7665_v33  ;;  %v11862_v61 = vadd.f32 %v9213_v58, %v7661_v50  ;;  %v9299_v16 = vpop.f32.mrb[39].mxu1  ;;  %10221 = vmatpush1.bf16.msra.mxu0 %v12987_v49  ;;  %v9308_v0 = vmax.f32 %v11863_v23, 0.0  ;;  %v9307_v1 = vmax.f32 %v11860_v28, 0.0  ;;  %v13037_v33 = vld [vmem:[#allocation11 + $0x3e4] ss:$8 sps:$4 sm:$0xff]  }
 0x7e4   : > { %v9314_v60 = vmax.f32 %v11861_v54, 0.0  ;;  %v11866_v62 = vadd.f32 %v9299_v16, %v7669_v46  ;;  %10222 = vmatprep.subr.bf16.mxu0 %v12992_v29  ;;  %v9309_v8 = vmax.f32 %v11864_v57, 0.0  ;;  %v13035_v50 = vld [vmem:[#allocation11 + $0x3e0] ss:$8 sps:$4 sm:$0xff]   ;;  %v13040_v46 = vld [vmem:[#allocation11 + $0x3f4] ss:$8 sps:$4 sm:$0xff]  }
 0x7e5   : > { %v9316_v3 = vmax.f32 %v11865_v30, 0.0  ;;  %v9315_v6 = vmax.f32 %v11862_v61, 0.0 }
 0x7e6   : > { %v9322_v9 = vpack.c.bf16 %v9314_v60, %v9306_v47  ;;  %v9317_v10 = vmax.f32 %v11866_v62, 0.0 }
 0x7e7   : > { %v13914_v11 = vpack.c.bf16 %v9316_v3, %v9308_v0  ;;  %v9323_v12 = vpack.c.bf16 %v9315_v6, %v9307_v1  ;;  %10223 = vmatpush1.bf16.msra.mxu0 %v12990_v56 }
 0x7e8   : > { %v9325_v14 = vpack.c.bf16 %v9317_v10, %v9309_v8  ;;  %10235 = vmatprep.subr.bf16.mxu0 %v12995_v63 }
 0x7e9   : > { %10224 = vmatprep.mubr.bf16.mxu0 %v9323_v12 }
 0x7ea   : > { %10225 = vmatmul.mubr.bf16.vlgmr.msra.gmra.mrb[24].mxu0 %v9322_v9 }
 0x7eb   : > { %10236 = vmatpush1.bf16.msra.mxu0 %v12993_v13  ;;  %10267 = vmatprep.mubr.bf16.mxu0 %v9325_v14 }
 0x7ec   : > { %10237 = vmatprep.subr.bf16.mxu0 %v12998_v15 }
 0x7ef   : > { %10238 = vmatpush1.bf16.msra.mxu0 %v12996_v18 }
 0x7f0   : > { %10239 = vmatprep.subr.bf16.mxu0 %v13001_v19 }
 0x7f3   : > { %10240 = vmatpush1.bf16.msra.mxu0 %v12999_v20 }
 0x7f4   : > { %10241 = vmatprep.subr.bf16.mxu0 %v13004_v31 }
 0x7f7   : > { %10242 = vmatpush1.bf16.msra.mxu0 %v13002_v21 }
 0x7f8   : > { %10243 = vmatprep.subr.bf16.mxu0 %v13007_v22 }
 0x7fb   : > { %10244 = vmatpush1.bf16.msra.mxu0 %v13005_v2 }
 0x7fc   : > { %10245 = vmatprep.subr.bf16.mxu0 %v13010_v24 }
 0x7ff   : > { %10246 = vmatpush1.bf16.msra.mxu0 %v13008_v25 }
 0x800   : > { %10247 = vmatprep.subr.bf16.mxu0 %v13013_v26 }
 0x803   : > { %10248 = vmatpush1.bf16.msra.mxu0 %v13011_v34 }
 0x804   : > { %10249 = vmatprep.subr.bf16.mxu0 %v13016_v35 }
 0x807   : > { %10250 = vmatpush1.bf16.msra.mxu0 %v13014_v4 }
 0x808   : > { %10251 = vmatprep.subr.bf16.mxu0 %v13019_v36 }
 0x80b   : > { %10252 = vmatpush1.bf16.msra.mxu0 %v13017_v38 }
 0x80c   : > { %10253 = vmatprep.subr.bf16.mxu0 %v13022_v39 }
 0x80f   : > { %10254 = vmatpush1.bf16.msra.mxu0 %v13020_v40 }
 0x810   : > { %10255 = vmatprep.subr.bf16.mxu0 %v13025_v41 }
 0x813   : > { %10256 = vmatpush1.bf16.msra.mxu0 %v13023_v42 }
 0x814   : > { %10257 = vmatprep.subr.bf16.mxu0 %v13028_v5 }
 0x817   : > { %10258 = vmatpush1.bf16.msra.mxu0 %v13026_v7 }
 0x818   : > { %10259 = vmatprep.subr.bf16.mxu0 %v13031_v43 }
 0x81b   : > { %10260 = vmatpush1.bf16.msra.mxu0 %v13029_v32 }
 0x81c   : > { %10261 = vmatprep.subr.bf16.mxu0 %v13034_v44 }
 0x81f   : > { %10262 = vmatpush1.bf16.msra.mxu0 %v13032_v45 }
 0x820   : > { %10263 = vmatprep.subr.bf16.mxu0 %v13037_v33 }
 0x823   : > { %10264 = vmatpush1.bf16.msra.mxu0 %v13035_v50 }
 0x824   : > { %10265 = vmatprep.subr.bf16.mxu0 %v13040_v46 }
 0x827   : > { %10266 = vmatpush1.bf16.msra.mxu0 %v13038_v48 }
 0x82a   : > { %10268 = vmatmul.mubr.bf16.vlgmr.msra.gmra.mrb[24].mxu0 %v13914_v11 }
 0x82b   : > { %13273 = shalt.err (!%p13270_p2)
}
 0x82c   : > { %s13274_s20 = scalar_lea.hbm %s13922_s7, 2048  ;;  %s13278_s21 = scalar_lea.hbm %s14062_s3, 4096 }
 0x82d   : > { %p13275_p3 = scmp.ne.s32.totalorder %s13922_s7, %s13274_s20  ;;  %p13279_p7 = scmp.lt.u32.totalorder %s13922_s7, %s14062_s3 }
 0x82e   : > { %p13280_p8 = scmp.lt.u32.totalorder %s13278_s21, %s13274_s20  ;;  %p13282_p13 = scmp.lt.u32.totalorder %s13274_s20, %s13922_s7 }
 0x82f   : > { %p13276_p4 = pnand %p13275_p3, %p14063_p1 }
 0x830   : > { %p13281_p11 = por %p13280_p8, %p13279_p7 }
 0x831   : > { %p13277_p12 = pneg %p13276_p4 }
 0x832   : > { %p13283_p6 = por %p13282_p13, %p13281_p11 }
 0x834   : > { %p13284_p9 = pnand %p13283_p6, %p13277_p12 }
 0x836   : > { %13287 = shalt.err (!%p13284_p9)
}
 0x837   : > { %s13385_s28 = smov 1024   ;;  %s13386_s27 = smov 64  }
 0x838   : > { %11987 = dma.vmem_to_hbm [thread:$0]  (%p14063_p1), %s13924_s14, 2048, %s13922_s7, %s10307_s19, %s13385_s28, %s13385_s28, %s13386_s27  }
 0x839   : > { %s14064_s13 = sld [smem:[#allocation31_spill]]  ;;  %s10514_s14 = sshll.u32 %s13822_s18, 5 }
 0x83a   : > { %s11818_s7 = sshll.u32 %s13486_s17, 9  ;;  %s562_s19 = scalar_lea.vmem [#allocation14], %s10514_s14 }
 0x83b   : > { %s10343_s23 = sshll.u32 %s562_s19, 4  ;;  %s14065_s15 = sld [smem:[#allocation33_spill]]  ;;  %s13962_s23 = int_to_ptr.vmem [resolvable:$true] %s10343_s23 }
 0x83c   : > { %s10312_s17 = scalar_lea.sflag [#allocation15], %s13822_s18  ;;  %s13288_s29 = scalar_lea.vmem %s13962_s23, 512 }
 0x83d   : > { %p13289_p5 = scmp.ne.s32.totalorder %s13962_s23, %s13288_s29  ;;  %s13387_s16 = smov [#allocation14]  }
 0x83e   : > { %s13292_s28 = sshll.u32 %s13387_s16, 4  ;;  %s13293_s28 = int_to_ptr.vmem [resolvable:$false] %s13292_s28 }
 0x83f   : > { %v9454_v49 = vld [vmem:[%s14064_s13] sm:$0x3]  ;;  %p13290_p10 = pnand %p13289_p5, %p14063_p1  ;;  %s13294_s27 = scalar_lea.vmem %s13293_s28, 1024 }
 0x840   : > { %v9459_v37 = vrot.slane %v9454_v49, %v13710_v51  ;;  %v9463_v27 = vrot.slane %v9454_v49, %v13718_v52  ;;  %p13295_p2 = scmp.lt.s32.totalorder %s13962_s23, %s13293_s28  ;;  %p13296_p3 = scmp.lt.s32.totalorder %s13294_s27, %s13288_s29 }
 0x841   : > { %s14066_s24 = smov %s14065_s15  ;;  %s13960_s21 = scalar_lea.hbm %s14065_s15, %s11818_s7 }
 0x842   : > { %p13291_p0 = pneg %p13290_p10  ;;  %p13297_p4 = por %p13296_p3, %p13295_p2 }
 0x844   : > { %p13298_p12 = pnand %p13297_p4, %p13291_p0 }
 0x8fd   : > { %v10269_v17 = vpop.f32.mrb[24].mxu0 }
 0x8fe   : > { %v11867_v29 = vadd.f32 %v10269_v17, %v9459_v37  ;;  %v10271_v23 = vpop.f32.mrb[25].mxu0 }
 0x8ff   : > { %v11868_v28 = vadd.f32 %v10271_v23, %v9463_v27  ;;  %v10273_v53 = vpop.f32.mrb[26].mxu0 }
 0x900   : > { %v11800_v55 = vmul.f32 -1.442695, %v11867_v29  ;;  %v11869_v57 = vadd.f32 %v10273_v53, %v9459_v37  ;;  %v10275_v54 = vpop.f32.mrb[27].mxu0 }
 0x901   : > { %v11801_v59 = vmul.f32 -1.442695, %v11868_v28  ;;  %v11870_v58 = vadd.f32 %v10275_v54, %v9463_v27 }
 0x902   : > { %13073 = vpow2.f32 %v11800_v55  ;;  %v11802_v30 = vmul.f32 -1.442695, %v11869_v57 }
 0x903   : > { %13075 = vpow2.f32 %v11801_v59  ;;  %v11803_v61 = vmul.f32 -1.442695, %v11870_v58 }
 0x904   : > { %13077 = vpow2.f32 %v11802_v30 }
 0x905   : > { %13079 = vpow2.f32 %v11803_v61 }
 0x90c   : > { %v13074_v51 = vpop.eup %13073 }
 0x90d   : > { %v13076_v52 = vpop.eup %13075  ;;  %v10290_v16 = vadd.f32 1.0, %v13074_v51 }
 0x90e   : > { %v13078_v56 = vpop.eup %13077  ;;  %v10291_v47 = vadd.f32 1.0, %v13076_v52 }
 0x90f   : > { %v13080_v60 = vpop.eup %13079  ;;  %13081 = vrcp.f32 %v10290_v16  ;;  %v10292_v62 = vadd.f32 1.0, %v13078_v56 }
 0x910   : > { %13083 = vrcp.f32 %v10291_v47  ;;  %v10293_v63 = vadd.f32 1.0, %v13080_v60 }
 0x911   : > { %13085 = vrcp.f32 %v10292_v62 }
 0x912   : > { %13087 = vrcp.f32 %v10293_v63 }
 0x919   : > { %v13082_v0 = vpop.eup %13081 }
 0x91a   : > { %v13084_v1 = vpop.eup %13083  ;;  %10302 = vst [vmem:[%s562_s19] sm:$0xff] %v13082_v0 }
 0x91b   : > { %v13086_v3 = vpop.eup %13085  ;;  %10303 = vst [vmem:[%s562_s19 + $0x8] sm:$0xff] %v13084_v1 }
 0x91c   : > { %v13088_v6 = vpop.eup %13087  ;;  %10304 = vst [vmem:[%s562_s19 + $0x10] sm:$0xff] %v13086_v3 }
 0x91d   : > { %10305 = vst [vmem:[%s562_s19 + $0x18] sm:$0xff] %v13088_v6 }
 0x91e   : > { %13301 = shalt.err (!%p13298_p12)
}
 0x91f   : > { %s13302_s22 = scalar_lea.hbm %s13960_s21, 512  ;;  %s13306_s14 = scalar_lea.hbm %s14066_s24, 1024 }
 0x920   : > { %p13303_p7 = scmp.ne.s32.totalorder %s13960_s21, %s13302_s22  ;;  %p13307_p13 = scmp.lt.u32.totalorder %s13960_s21, %s14066_s24 }
 0x921   : > { %p13308_p6 = scmp.lt.u32.totalorder %s13306_s14, %s13302_s22  ;;  %p13310_p5 = scmp.lt.u32.totalorder %s13302_s22, %s13960_s21 }
 0x922   : > { %p13304_p8 = pnand %p13303_p7, %p14063_p1 }
 0x923   : > { %p13309_p9 = por %p13308_p6, %p13307_p13 }
 0x924   : > { %p13305_p11 = pneg %p13304_p8 }
 0x925   : > { %p13311_p10 = por %p13310_p5, %p13309_p9 }
 0x927   : > { %p13312_p0 = pnand %p13311_p10, %p13305_p11 }
 0x929   : > { %13315 = shalt.err (!%p13312_p0)
}
 0x92a   : > { %s13388_s26 = smov 256   ;;  %s13389_s20 = smov 16  }
 0x92b   : > { %11988 = dma.vmem_to_hbm [thread:$0]  (%p14063_p1), %s13962_s23, 512, %s13960_s21, %s10312_s17, %s13388_s26, %s13388_s26, %s13389_s20  }
 0x92c PF: > { %s14067_s15 = sld [smem:[#allocation24_spill]]  ;;  %s14068_s29 = sld [smem:[#allocation22_spill]] }
 0x92d   : > { %s14069_s16 = sld [smem:[#allocation28_spill]] }
 0x932   : > { %p12029_p2 = scmp.ge.s32.totalorder %s14067_s15, 2  ;;  %s10358_s28 = sand.u32 1, %s14068_s29  }
 0x933   : > { %p14070_p3 = scmp.ne.s32.totalorder %s14069_s16, 0  ;;  %s10359_s27 = scalar_lea.sflag [#allocation4], %s10358_s28 }
 0x935   : > { %p12011_p4 = pnand %p12029_p2, %p14070_p3 }
 0x937   : > { %13349 = dma.done.wait (!%p12011_p4), %s10359_s27, 2048  }
 0x938   : > { %13351 = vsyncadd (!%p12011_p4), %s10359_s27, 4294965248  ;;  %s10368_s22 = scalar_lea.sflag [#allocation15], %s10358_s28 }
 0x939   : > { %13353 = dma.done.wait (!%p12011_p4), %s10368_s22, 512  }
 0x93a   : > { %13355 = vsyncadd (!%p12011_p4), %s10368_s22, 4294966784  ;;  %s14071_s16 = sld [smem:[#allocation25_spill]]  ;;  %s14072_s12 = sld [smem:[#allocation23_spill]] }
 0x93b   : > { %s14073_s15 = sld [smem:[#allocation26_spill]]  ;;  %s14074_s29 = smov %s13362_s30 }
 0x940   : > { %p32_p1 = scmp.ge.s32.totalorder %s14071_s16, 4   ;;  %s14075_s30 = smov %s14072_s12 }
 0x942   :  { %34 = sbr.rel (!%p32_p1) target bundleno = 15 (0xf), region = 149 }
 0x949   :  { %10373 = vsyncpa [#allocation3], 1 }
 0x94a   :  { %10375 = vsyncpa [#allocation3 + $0x1], 1 }
 0x94b   :  { %10376 = vsyncpa [#allocation6], 1 }
 0x94c   :  { %10377 = vsyncpa [#allocation9], 1 }
 0x94d   :  { %10378 = vsyncpa [#allocation12], 1 }
 0x94e   :  { %10379 = vsyncpa [#allocation4], 1 }
 0x94f   :  { %10381 = vsyncpa [#allocation4 + $0x1], 1 }
 0x950   :  { %10382 = vsyncpa [#allocation15], 1 }
 0x951   :  { %10384 = vsyncpa [#allocation15 + $0x1], 1 }

</bundles_post_ra>
